<compile_context>
chip_gen: v7x
topology: tpu7x:2x2x1
jax: 0.10.0
libtpu: 0.0.40
codegen_flags: <defaults>
</compile_context>

<pallas_src>
import numpy as np
import jax
import jax.numpy as jnp
from jax.experimental import pallas as pl
from jax.experimental.pallas import tpu as pltpu

H = W = 16
CIN = 3
C1, C2, C3, C4 = 64, 128, 256, 512
KS = 3
KRAW = KS * KS * CIN             # 27
KPAD = 32                        # padded conv1 reduction dim (multiple of 8)
HO, WO = H // 2, W // 2          # spatial after MaxPool2d(2, 2)
NSP1 = H * W                     # spatial positions before pool (256)
NSP2 = HO * WO                   # spatial positions after pool  (64)
OUT_DIM = 1
BN_EPS = 1e-5
NEG_SLOPE = 0.1
TB = 8                           # images per grid step (fits well under 16 MiB)

# Row permutation: per image, order spatial rows as (pool-offset, pool-window)
# so MaxPool2d(2,2) is a max over 4 contiguous NSP2-row blocks.
_POOL_PERM = np.empty(NSP1, np.int32)
for _off in range(4):
    _dy, _dx = _off // 2, _off % 2
    for _ho in range(HO):
        for _wo in range(WO):
            _POOL_PERM[_off * NSP2 + _ho * WO + _wo] = \
                (2 * _ho + _dy) * W + (2 * _wo + _dx)


def _make_kernel(tb):
    def kernel(patch_ref,
               w1, s1, t1, w2, s2, t2, w3, s3, t3, w4, s4, t4,
               wl, bl, out_ref):
        def conv_bn_lrelu(z, w_ref, s_ref, t_ref):
            # conv-as-matmul (bf16 operands, f32 accumulate), folded eval-mode
            # BatchNorm (y * scale + shift), LeakyReLU(0.1) -- all but the dot
            # stay on the VPU in f32.
            y = jnp.dot(z, w_ref[...], preferred_element_type=jnp.float32)
            y = y * s_ref[...] + t_ref[...]
            return jnp.where(y >= 0, y, NEG_SLOPE * y)

        x = patch_ref[...]                                  # (tb*256, 32) bf16
        y1 = conv_bn_lrelu(x, w1, s1, t1)                   # (tb*256, 64) f32

        # MaxPool2d(2, 2): rows are (image, pool-offset, window)-ordered, so
        # the pool is an elementwise max over 4 aligned 64-row slices (VPU).
        y1r = y1.reshape(tb, 4 * NSP2, C1)
        p = jnp.maximum(
            jnp.maximum(y1r[:, 0 * NSP2:1 * NSP2], y1r[:, 1 * NSP2:2 * NSP2]),
            jnp.maximum(y1r[:, 2 * NSP2:3 * NSP2], y1r[:, 3 * NSP2:4 * NSP2]))
        p = p.reshape(tb * NSP2, C1)                        # (tb*64, 64)

        y2 = conv_bn_lrelu(p.astype(jnp.bfloat16), w2, s2, t2)    # (tb*64, 128)
        y3 = conv_bn_lrelu(y2.astype(jnp.bfloat16), w3, s3, t3)   # (tb*64, 256)
        y4 = conv_bn_lrelu(y3.astype(jnp.bfloat16), w4, s4, t4)   # (tb*64, 512)

        # AdaptiveAvgPool2d((1, 1)): mean over the NSP2 spatial rows per image
        # (sublane reduce -- no M=1 matmul).
        pooled = jnp.mean(y4.reshape(tb, NSP2, C4), axis=1)       # (tb, 512)

        # dilinear
        out = jnp.dot(pooled.astype(jnp.bfloat16), wl[...],
                      preferred_element_type=jnp.float32) + bl[...]
        out_ref[...] = out                                        # (tb, 1)
    return kernel


def _full_spec(a):
    nd = a.ndim
    return pl.BlockSpec(a.shape, lambda b, _nd=nd: (0,) * _nd)


def _build_patches(x_nchw, tb):
    """NCHW -> pooled-window-ordered im2col rows, K padded to 32, bf16."""
    n = x_nchw.shape[0]
    x = jnp.transpose(x_nchw, (0, 2, 3, 1)).astype(jnp.float32)    # NHWC
    pad = KS // 2
    x_pad = jnp.pad(x, ((0, 0), (pad, pad), (pad, pad), (0, 0)))
    patches = jnp.concatenate(
        [x_pad[:, dy:dy + H, dx:dx + W, :] for dy in range(KS) for dx in range(KS)],
        axis=-1)                                                   # (N, H, W, 27)
    patches = patches.reshape(n, NSP1, KRAW)
    patches = jnp.pad(patches, ((0, 0), (0, 0), (0, KPAD - KRAW)))  # K 27 -> 32
    patches = patches[:, jnp.asarray(_POOL_PERM), :]               # pool-major rows
    n_pad = ((n + tb - 1) // tb) * tb
    if n_pad != n:
        patches = jnp.pad(patches, ((0, n_pad - n), (0, 0), (0, 0)))
    return patches.reshape(n_pad * NSP1, KPAD).astype(jnp.bfloat16), n_pad


def deep_image_forward(x_nchw, params, tb=TB):
    n = x_nchw.shape[0]
    patches2d, n_pad = _build_patches(x_nchw, tb)
    ng = n_pad // tb

    weight_inputs = (params["w1"], params["s1"], params["t1"],
                     params["w2"], params["s2"], params["t2"],
                     params["w3"], params["s3"], params["t3"],
                     params["w4"], params["s4"], params["t4"],
                     params["wl"], params["bl"])

    in_specs = [pl.BlockSpec((tb * NSP1, KPAD), lambda b: (b, 0))]
    in_specs += [_full_spec(a) for a in weight_inputs]

    out = pl.pallas_call(
        _make_kernel(tb),
        out_shape=jax.ShapeDtypeStruct((n_pad, OUT_DIM), jnp.float32),
        grid=(ng,),
        in_specs=in_specs,
        out_specs=pl.BlockSpec((tb, OUT_DIM), lambda b: (b, 0)),
        compiler_params=pltpu.CompilerParams(
            dimension_semantics=("parallel",),
            vmem_limit_bytes=32 * 1024 * 1024),
    )(patches2d, *weight_inputs)
    return out[:n]


# ------------------------- deterministic parameters -------------------------

def init_params(key):
    keys = list(jax.random.split(key, 32))
    it = iter(keys)

    def conv_block(cout, cin, ks):
        w = jax.random.normal(next(it), (cout, cin, ks, ks), jnp.float32) / np.sqrt(cin * ks * ks)
        bias = 0.1 * jax.random.normal(next(it), (cout,), jnp.float32)
        gamma = 1.0 + 0.2 * jax.random.normal(next(it), (cout,), jnp.float32)
        beta = 0.1 * jax.random.normal(next(it), (cout,), jnp.float32)
        mean = 0.1 * jax.random.normal(next(it), (cout,), jnp.float32)
        var = 0.5 + jax.random.uniform(next(it), (cout,), jnp.float32)
        return dict(w=w, b=bias, gamma=gamma, beta=beta, mean=mean, var=var)

    blocks = [conv_block(C1, CIN, KS), conv_block(C2, C1, 1),
              conv_block(C3, C2, 1), conv_block(C4, C3, 1)]
    wl = jax.random.normal(next(it), (C4, OUT_DIM), jnp.float32) / np.sqrt(C4)
    bl = 0.1 * jax.random.normal(next(it), (OUT_DIM,), jnp.float32)
    return blocks, wl, bl


def pack_params(blocks, wl, bl):
    def fold(blk, pad_k_to=None):
        cout, cin, ks, _ = blk["w"].shape
        scale = blk["gamma"] / jnp.sqrt(blk["var"] + BN_EPS)
        shift = blk["beta"] + (blk["b"] - blk["mean"]) * scale
        # torch OIHW -> (kh, kw, cin, cout) -> ((kh*kw*cin), cout)
        wmat = jnp.transpose(blk["w"], (2, 3, 1, 0)).reshape(ks * ks * cin, cout)
        if pad_k_to is not None and pad_k_to > wmat.shape[0]:
            wmat = jnp.pad(wmat, ((0, pad_k_to - wmat.shape[0]), (0, 0)))
        return (wmat.astype(jnp.bfloat16),
                scale.reshape(1, cout).astype(jnp.float32),
                shift.reshape(1, cout).astype(jnp.float32))

    p = {}
    for i, blk in enumerate(blocks, start=1):
        p[f"w{i}"], p[f"s{i}"], p[f"t{i}"] = fold(blk, KPAD if i == 1 else None)
    p["wl"] = wl.astype(jnp.bfloat16)
    p["bl"] = bl.reshape(1, OUT_DIM).astype(jnp.float32)
    return p


# ----------------------------- pure-JAX reference ----------------------------

def reference_forward(x_nchw, blocks, wl, bl):
    y = x_nchw.astype(jnp.float32)
    for i, blk in enumerate(blocks):
        ks = blk["w"].shape[-1]
        y = jax.lax.conv_general_dilated(
            y, blk["w"], window_strides=(1, 1),
            padding=[(ks // 2, ks // 2)] * 2,
            dimension_numbers=("NCHW", "OIHW", "NCHW"),
            precision=jax.lax.Precision.HIGHEST)
        y = y + blk["b"][None, :, None, None]
        inv = blk["gamma"] / jnp.sqrt(blk["var"] + BN_EPS)
        y = (y - blk["mean"][None, :, None, None]) * inv[None, :, None, None] \
            + blk["beta"][None, :, None, None]
        y = jnp.where(y >= 0, y, NEG_SLOPE * y)
        if i == 0:
            y = jax.lax.reduce_window(y, -jnp.inf, jax.lax.max,
                                      (1, 1, 2, 2), (1, 1, 2, 2), "VALID")
    y = jnp.mean(y, axis=(2, 3))                            # (N, 512)
    return jnp.dot(y, wl, precision=jax.lax.Precision.HIGHEST) + bl


if __name__ == "__main__":
    key = jax.random.PRNGKey(0)
    k_x, k_p = jax.random.split(key)
    n = 16
    x = jax.random.normal(k_x, (n, CIN, H, W), jnp.float32)   # NCHW, like PyTorch

    blocks, wl, bl = init_params(k_p)
    params = pack_params(blocks, wl, bl)

    out = jax.block_until_ready(deep_image_forward(x, params, tb=TB))
    ref = jax.block_until_ready(reference_forward(x, blocks, wl, bl))

    assert out.shape == (n, OUT_DIM), out.shape
    if not np.allclose(np.asarray(out), np.asarray(ref), rtol=5e-2, atol=5e-2):
        raise AssertionError(f"mismatch:\n{np.asarray(out)}\nvs\n{np.asarray(ref)}")
    print("KERNEL_OK")
</pallas_src>

<mosaic_0001>
module attributes {stable_mosaic.version = 11 : i64} {
  func.func @kernel(%arg0: i32, %arg1: memref<2048x32xbf16, #tpu.memory_space<vmem>>, %arg2: memref<32x64xbf16, #tpu.memory_space<vmem>>, %arg3: memref<1x64xf32, #tpu.memory_space<vmem>>, %arg4: memref<1x64xf32, #tpu.memory_space<vmem>>, %arg5: memref<64x128xbf16, #tpu.memory_space<vmem>>, %arg6: memref<1x128xf32, #tpu.memory_space<vmem>>, %arg7: memref<1x128xf32, #tpu.memory_space<vmem>>, %arg8: memref<128x256xbf16, #tpu.memory_space<vmem>>, %arg9: memref<1x256xf32, #tpu.memory_space<vmem>>, %arg10: memref<1x256xf32, #tpu.memory_space<vmem>>, %arg11: memref<256x512xbf16, #tpu.memory_space<vmem>>, %arg12: memref<1x512xf32, #tpu.memory_space<vmem>>, %arg13: memref<1x512xf32, #tpu.memory_space<vmem>>, %arg14: memref<512x1xbf16, #tpu.memory_space<vmem>>, %arg15: memref<1x1xf32, #tpu.memory_space<vmem>>, %arg16: memref<8x1xf32, #tpu.memory_space<vmem>>) attributes {dimension_semantics = [#tpu.dimension_semantics<parallel>], iteration_bounds = array<i64: 2>, scalar_prefetch = 0 : i64, scratch_operands = 0 : i64, tpu.core_type = #tpu.core_type<tc>, window_params = [{transform_indices = @transform_0, window_bounds = array<i64: 2048, 32>}, {pipeline_mode = #tpu.pipeline_mode<synchronous>, transform_indices = @transform_1, window_bounds = array<i64: 32, 64>}, {pipeline_mode = #tpu.pipeline_mode<synchronous>, transform_indices = @transform_2, window_bounds = array<i64: 1, 64>}, {pipeline_mode = #tpu.pipeline_mode<synchronous>, transform_indices = @transform_3, window_bounds = array<i64: 1, 64>}, {pipeline_mode = #tpu.pipeline_mode<synchronous>, transform_indices = @transform_4, window_bounds = array<i64: 64, 128>}, {pipeline_mode = #tpu.pipeline_mode<synchronous>, transform_indices = @transform_5, window_bounds = array<i64: 1, 128>}, {pipeline_mode = #tpu.pipeline_mode<synchronous>, transform_indices = @transform_6, window_bounds = array<i64: 1, 128>}, {pipeline_mode = #tpu.pipeline_mode<synchronous>, transform_indices = @transform_7, window_bounds = array<i64: 128, 256>}, {pipeline_mode = #tpu.pipeline_mode<synchronous>, transform_indices = @transform_8, window_bounds = array<i64: 1, 256>}, {pipeline_mode = #tpu.pipeline_mode<synchronous>, transform_indices = @transform_9, window_bounds = array<i64: 1, 256>}, {pipeline_mode = #tpu.pipeline_mode<synchronous>, transform_indices = @transform_10, window_bounds = array<i64: 256, 512>}, {pipeline_mode = #tpu.pipeline_mode<synchronous>, transform_indices = @transform_11, window_bounds = array<i64: 1, 512>}, {pipeline_mode = #tpu.pipeline_mode<synchronous>, transform_indices = @transform_12, window_bounds = array<i64: 1, 512>}, {pipeline_mode = #tpu.pipeline_mode<synchronous>, transform_indices = @transform_13, window_bounds = array<i64: 512, 1>}, {pipeline_mode = #tpu.pipeline_mode<synchronous>, transform_indices = @transform_14, window_bounds = array<i64: 1, 1>}, {transform_indices = @transform_15, window_bounds = array<i64: 8, 1>}]} {
    %c0 = arith.constant 0 : index
    %c0_0 = arith.constant 0 : index
    %0 = vector.load %arg1[%c0, %c0_0] : memref<2048x32xbf16, #tpu.memory_space<vmem>>, vector<2048x32xbf16>
    %c0_1 = arith.constant 0 : index
    %c0_2 = arith.constant 0 : index
    %1 = vector.load %arg2[%c0_1, %c0_2] : memref<32x64xbf16, #tpu.memory_space<vmem>>, vector<32x64xbf16>
    %cst = arith.constant dense<0.000000e+00> : vector<2048x64xf32>
    %2 = tpu.matmul %0, %1, %cst {dimension_numbers = #tpu.dot_dimension_numbers<[1], [0], [0], [1], [0, 0, 1, 1], [], []>} : vector<2048x32xbf16>, vector<32x64xbf16>, vector<2048x64xf32> -> vector<2048x64xf32>
    %c0_3 = arith.constant 0 : index
    %c0_4 = arith.constant 0 : index
    %3 = vector.load %arg3[%c0_3, %c0_4] : memref<1x64xf32, #tpu.memory_space<vmem>>, vector<1x64xf32>
    %4 = vector.broadcast %3 : vector<1x64xf32> to vector<2048x64xf32>
    %5 = arith.mulf %2, %4 : vector<2048x64xf32>
    %c0_5 = arith.constant 0 : index
    %c0_6 = arith.constant 0 : index
    %6 = vector.load %arg4[%c0_5, %c0_6] : memref<1x64xf32, #tpu.memory_space<vmem>>, vector<1x64xf32>
    %7 = vector.broadcast %6 : vector<1x64xf32> to vector<2048x64xf32>
    %8 = arith.addf %5, %7 : vector<2048x64xf32>
    %cst_7 = arith.constant 0.000000e+00 : f32
    %9 = vector.broadcast %cst_7 : f32 to vector<2048x64xf32>
    %10 = arith.cmpf oge, %8, %9 : vector<2048x64xf32>
    %cst_8 = arith.constant 1.000000e-01 : f32
    %11 = vector.broadcast %cst_8 : f32 to vector<2048x64xf32>
    %12 = arith.mulf %11, %8 : vector<2048x64xf32>
    %13 = arith.select %10, %8, %12 : vector<2048x64xi1>, vector<2048x64xf32>
    %14 = vector.shape_cast %13 : vector<2048x64xf32> to vector<8x256x64xf32>
    %15 = vector.extract_strided_slice %14 {offsets = [0, 0, 0], sizes = [8, 64, 64], strides = [1, 1, 1]} : vector<8x256x64xf32> to vector<8x64x64xf32>
    %16 = vector.extract_strided_slice %14 {offsets = [0, 64, 0], sizes = [8, 64, 64], strides = [1, 1, 1]} : vector<8x256x64xf32> to vector<8x64x64xf32>
    %17 = arith.maximumf %15, %16 : vector<8x64x64xf32>
    %18 = vector.extract_strided_slice %14 {offsets = [0, 128, 0], sizes = [8, 64, 64], strides = [1, 1, 1]} : vector<8x256x64xf32> to vector<8x64x64xf32>
    %19 = vector.extract_strided_slice %14 {offsets = [0, 192, 0], sizes = [8, 64, 64], strides = [1, 1, 1]} : vector<8x256x64xf32> to vector<8x64x64xf32>
    %20 = arith.maximumf %18, %19 : vector<8x64x64xf32>
    %21 = arith.maximumf %17, %20 : vector<8x64x64xf32>
    %22 = vector.shape_cast %21 : vector<8x64x64xf32> to vector<512x64xf32>
    %23 = arith.truncf %22 : vector<512x64xf32> to vector<512x64xbf16>
    %c0_9 = arith.constant 0 : index
    %c0_10 = arith.constant 0 : index
    %24 = vector.load %arg5[%c0_9, %c0_10] : memref<64x128xbf16, #tpu.memory_space<vmem>>, vector<64x128xbf16>
    %cst_11 = arith.constant dense<0.000000e+00> : vector<512x128xf32>
    %25 = tpu.matmul %23, %24, %cst_11 {dimension_numbers = #tpu.dot_dimension_numbers<[1], [0], [0], [1], [0, 0, 1, 1], [], []>} : vector<512x64xbf16>, vector<64x128xbf16>, vector<512x128xf32> -> vector<512x128xf32>
    %c0_12 = arith.constant 0 : index
    %c0_13 = arith.constant 0 : index
    %26 = vector.load %arg6[%c0_12, %c0_13] : memref<1x128xf32, #tpu.memory_space<vmem>>, vector<1x128xf32>
    %27 = vector.broadcast %26 : vector<1x128xf32> to vector<512x128xf32>
    %28 = arith.mulf %25, %27 : vector<512x128xf32>
    %c0_14 = arith.constant 0 : index
    %c0_15 = arith.constant 0 : index
    %29 = vector.load %arg7[%c0_14, %c0_15] : memref<1x128xf32, #tpu.memory_space<vmem>>, vector<1x128xf32>
    %30 = vector.broadcast %29 : vector<1x128xf32> to vector<512x128xf32>
    %31 = arith.addf %28, %30 : vector<512x128xf32>
    %cst_16 = arith.constant 0.000000e+00 : f32
    %32 = vector.broadcast %cst_16 : f32 to vector<512x128xf32>
    %33 = arith.cmpf oge, %31, %32 : vector<512x128xf32>
    %cst_17 = arith.constant 1.000000e-01 : f32
    %34 = vector.broadcast %cst_17 : f32 to vector<512x128xf32>
    %35 = arith.mulf %34, %31 : vector<512x128xf32>
    %36 = arith.select %33, %31, %35 : vector<512x128xi1>, vector<512x128xf32>
    %37 = arith.truncf %36 : vector<512x128xf32> to vector<512x128xbf16>
    %c0_18 = arith.constant 0 : index
    %c0_19 = arith.constant 0 : index
    %38 = vector.load %arg8[%c0_18, %c0_19] : memref<128x256xbf16, #tpu.memory_space<vmem>>, vector<128x256xbf16>
    %cst_20 = arith.constant dense<0.000000e+00> : vector<512x256xf32>
    %39 = tpu.matmul %37, %38, %cst_20 {dimension_numbers = #tpu.dot_dimension_numbers<[1], [0], [0], [1], [0, 0, 1, 1], [], []>} : vector<512x128xbf16>, vector<128x256xbf16>, vector<512x256xf32> -> vector<512x256xf32>
    %c0_21 = arith.constant 0 : index
    %c0_22 = arith.constant 0 : index
    %40 = vector.load %arg9[%c0_21, %c0_22] : memref<1x256xf32, #tpu.memory_space<vmem>>, vector<1x256xf32>
    %41 = vector.broadcast %40 : vector<1x256xf32> to vector<512x256xf32>
    %42 = arith.mulf %39, %41 : vector<512x256xf32>
    %c0_23 = arith.constant 0 : index
    %c0_24 = arith.constant 0 : index
    %43 = vector.load %arg10[%c0_23, %c0_24] : memref<1x256xf32, #tpu.memory_space<vmem>>, vector<1x256xf32>
    %44 = vector.broadcast %43 : vector<1x256xf32> to vector<512x256xf32>
    %45 = arith.addf %42, %44 : vector<512x256xf32>
    %cst_25 = arith.constant 0.000000e+00 : f32
    %46 = vector.broadcast %cst_25 : f32 to vector<512x256xf32>
    %47 = arith.cmpf oge, %45, %46 : vector<512x256xf32>
    %cst_26 = arith.constant 1.000000e-01 : f32
    %48 = vector.broadcast %cst_26 : f32 to vector<512x256xf32>
    %49 = arith.mulf %48, %45 : vector<512x256xf32>
    %50 = arith.select %47, %45, %49 : vector<512x256xi1>, vector<512x256xf32>
    %51 = arith.truncf %50 : vector<512x256xf32> to vector<512x256xbf16>
    %c0_27 = arith.constant 0 : index
    %c0_28 = arith.constant 0 : index
    %52 = vector.load %arg11[%c0_27, %c0_28] : memref<256x512xbf16, #tpu.memory_space<vmem>>, vector<256x512xbf16>
    %cst_29 = arith.constant dense<0.000000e+00> : vector<512x512xf32>
    %53 = tpu.matmul %51, %52, %cst_29 {dimension_numbers = #tpu.dot_dimension_numbers<[1], [0], [0], [1], [0, 0, 1, 1], [], []>} : vector<512x256xbf16>, vector<256x512xbf16>, vector<512x512xf32> -> vector<512x512xf32>
    %c0_30 = arith.constant 0 : index
    %c0_31 = arith.constant 0 : index
    %54 = vector.load %arg12[%c0_30, %c0_31] : memref<1x512xf32, #tpu.memory_space<vmem>>, vector<1x512xf32>
    %55 = vector.broadcast %54 : vector<1x512xf32> to vector<512x512xf32>
    %56 = arith.mulf %53, %55 : vector<512x512xf32>
    %c0_32 = arith.constant 0 : index
    %c0_33 = arith.constant 0 : index
    %57 = vector.load %arg13[%c0_32, %c0_33] : memref<1x512xf32, #tpu.memory_space<vmem>>, vector<1x512xf32>
    %58 = vector.broadcast %57 : vector<1x512xf32> to vector<512x512xf32>
    %59 = arith.addf %56, %58 : vector<512x512xf32>
    %cst_34 = arith.constant 0.000000e+00 : f32
    %60 = vector.broadcast %cst_34 : f32 to vector<512x512xf32>
    %61 = arith.cmpf oge, %59, %60 : vector<512x512xf32>
    %cst_35 = arith.constant 1.000000e-01 : f32
    %62 = vector.broadcast %cst_35 : f32 to vector<512x512xf32>
    %63 = arith.mulf %62, %59 : vector<512x512xf32>
    %64 = arith.select %61, %59, %63 : vector<512x512xi1>, vector<512x512xf32>
    %65 = vector.shape_cast %64 : vector<512x512xf32> to vector<8x64x512xf32>
    %cst_36 = arith.constant dense<0.000000e+00> : vector<8x512xf32>
    %66 = vector.multi_reduction <add>, %65, %cst_36 [1] : vector<8x64x512xf32> to vector<8x512xf32>
    %cst_37 = arith.constant 6.400000e+01 : f32
    %67 = vector.broadcast %cst_37 : f32 to vector<8x512xf32>
    %68 = arith.divf %66, %67 : vector<8x512xf32>
    %69 = arith.truncf %68 : vector<8x512xf32> to vector<8x512xbf16>
    %c0_38 = arith.constant 0 : index
    %c0_39 = arith.constant 0 : index
    %70 = vector.load %arg14[%c0_38, %c0_39] : memref<512x1xbf16, #tpu.memory_space<vmem>>, vector<512x1xbf16>
    %cst_40 = arith.constant dense<0.000000e+00> : vector<8x1xf32>
    %71 = tpu.matmul %69, %70, %cst_40 {dimension_numbers = #tpu.dot_dimension_numbers<[1], [0], [0], [1], [0, 0, 1, 1], [], []>} : vector<8x512xbf16>, vector<512x1xbf16>, vector<8x1xf32> -> vector<8x1xf32>
    %c0_41 = arith.constant 0 : index
    %c0_42 = arith.constant 0 : index
    %72 = vector.load %arg15[%c0_41, %c0_42] : memref<1x1xf32, #tpu.memory_space<vmem>>, vector<1x1xf32>
    %73 = vector.broadcast %72 : vector<1x1xf32> to vector<8x1xf32>
    %74 = arith.addf %71, %73 : vector<8x1xf32>
    %c0_43 = arith.constant 0 : index
    %c0_44 = arith.constant 0 : index
    %75 = vector.load %arg16[%c0_43, %c0_44] : memref<8x1xf32, #tpu.memory_space<vmem>>, vector<8x1xf32>
    tpu.vector_store %arg16[%c0_43, %c0_44], %74 {strides = array<i32>} : memref<8x1xf32, #tpu.memory_space<vmem>>, vector<8x1xf32>,
    return
  }
  func.func @transform_0(%arg0: i32) -> (i32, i32) {
    %c0_i32 = arith.constant 0 : i32
    %c0_i32_0 = arith.constant 0 : i32
    return %arg0, %c0_i32 : i32, i32
  }
  func.func @transform_1(%arg0: i32) -> (i32, i32) {
    %c0_i32 = arith.constant 0 : i32
    %c0_i32_0 = arith.constant 0 : i32
    %c0_i32_1 = arith.constant 0 : i32
    return %c0_i32, %c0_i32_0 : i32, i32
  }
  func.func @transform_2(%arg0: i32) -> (i32, i32) {
    %c0_i32 = arith.constant 0 : i32
    %c0_i32_0 = arith.constant 0 : i32
    %c0_i32_1 = arith.constant 0 : i32
    return %c0_i32, %c0_i32_0 : i32, i32
  }
  func.func @transform_3(%arg0: i32) -> (i32, i32) {
    %c0_i32 = arith.constant 0 : i32
    %c0_i32_0 = arith.constant 0 : i32
    %c0_i32_1 = arith.constant 0 : i32
    return %c0_i32, %c0_i32_0 : i32, i32
  }
  func.func @transform_4(%arg0: i32) -> (i32, i32) {
    %c0_i32 = arith.constant 0 : i32
    %c0_i32_0 = arith.constant 0 : i32
    %c0_i32_1 = arith.constant 0 : i32
    return %c0_i32, %c0_i32_0 : i32, i32
  }
  func.func @transform_5(%arg0: i32) -> (i32, i32) {
    %c0_i32 = arith.constant 0 : i32
    %c0_i32_0 = arith.constant 0 : i32
    %c0_i32_1 = arith.constant 0 : i32
    return %c0_i32, %c0_i32_0 : i32, i32
  }
  func.func @transform_6(%arg0: i32) -> (i32, i32) {
    %c0_i32 = arith.constant 0 : i32
    %c0_i32_0 = arith.constant 0 : i32
    %c0_i32_1 = arith.constant 0 : i32
    return %c0_i32, %c0_i32_0 : i32, i32
  }
  func.func @transform_7(%arg0: i32) -> (i32, i32) {
    %c0_i32 = arith.constant 0 : i32
    %c0_i32_0 = arith.constant 0 : i32
    %c0_i32_1 = arith.constant 0 : i32
    return %c0_i32, %c0_i32_0 : i32, i32
  }
  func.func @transform_8(%arg0: i32) -> (i32, i32) {
    %c0_i32 = arith.constant 0 : i32
    %c0_i32_0 = arith.constant 0 : i32
    %c0_i32_1 = arith.constant 0 : i32
    return %c0_i32, %c0_i32_0 : i32, i32
  }
  func.func @transform_9(%arg0: i32) -> (i32, i32) {
    %c0_i32 = arith.constant 0 : i32
    %c0_i32_0 = arith.constant 0 : i32
    %c0_i32_1 = arith.constant 0 : i32
    return %c0_i32, %c0_i32_0 : i32, i32
  }
  func.func @transform_10(%arg0: i32) -> (i32, i32) {
    %c0_i32 = arith.constant 0 : i32
    %c0_i32_0 = arith.constant 0 : i32
    %c0_i32_1 = arith.constant 0 : i32
    return %c0_i32, %c0_i32_0 : i32, i32
  }
  func.func @transform_11(%arg0: i32) -> (i32, i32) {
    %c0_i32 = arith.constant 0 : i32
    %c0_i32_0 = arith.constant 0 : i32
    %c0_i32_1 = arith.constant 0 : i32
    return %c0_i32, %c0_i32_0 : i32, i32
  }
  func.func @transform_12(%arg0: i32) -> (i32, i32) {
    %c0_i32 = arith.constant 0 : i32
    %c0_i32_0 = arith.constant 0 : i32
    %c0_i32_1 = arith.constant 0 : i32
    return %c0_i32, %c0_i32_0 : i32, i32
  }
  func.func @transform_13(%arg0: i32) -> (i32, i32) {
    %c0_i32 = arith.constant 0 : i32
    %c0_i32_0 = arith.constant 0 : i32
    %c0_i32_1 = arith.constant 0 : i32
    return %c0_i32, %c0_i32_0 : i32, i32
  }
  func.func @transform_14(%arg0: i32) -> (i32, i32) {
    %c0_i32 = arith.constant 0 : i32
    %c0_i32_0 = arith.constant 0 : i32
    %c0_i32_1 = arith.constant 0 : i32
    return %c0_i32, %c0_i32_0 : i32, i32
  }
  func.func @transform_15(%arg0: i32) -> (i32, i32) {
    %c0_i32 = arith.constant 0 : i32
    %c0_i32_0 = arith.constant 0 : i32
    return %arg0, %c0_i32 : i32, i32
  }
}

</mosaic_0001>

<bundles_post_ra>
// kernel: tpu_custom_call.1
= control target key start
LH: loop header
LB: loop body
LE: loop exit
PB: predicated region body
PF: predicated region fallthrough
CT: control target
= control target key end

     0   :  { %s11097_s20 = smov 0   ;;  %s15812_s0 = inlined_call_operand.vmem [shape: bf16[4096,32], index: 0, kind: input, shape index: {}]   ;;  %s15813_s1 = inlined_call_operand.vmem [shape: bf16[32,64], index: 1, kind: input, shape index: {}]   ;;  %s15814_s2 = inlined_call_operand.vmem [shape: f32[1,64], index: 2, kind: input, shape index: {}]   ;;  %s15815_s3 = inlined_call_operand.vmem [shape: f32[1,64], index: 3, kind: input, shape index: {}]   ;;  %s15816_s4 = inlined_call_operand.vmem [shape: bf16[64,128], index: 4, kind: input, shape index: {}]   ;;  %s15817_s5 = inlined_call_operand.vmem [shape: f32[1,128], index: 5, kind: input, shape index: {}]   ;;  %s15818_s6 = inlined_call_operand.vmem [shape: f32[1,128], index: 6, kind: input, shape index: {}]   ;;  %s15819_s7 = inlined_call_operand.vmem [shape: bf16[128,256], index: 7, kind: input, shape index: {}]   ;;  %s15820_s8 = inlined_call_operand.vmem [shape: f32[1,256], index: 8, kind: input, shape index: {}]   ;;  %s15821_s9 = inlined_call_operand.vmem [shape: f32[1,256], index: 9, kind: input, shape index: {}]   ;;  %s15822_s10 = inlined_call_operand.vmem [shape: bf16[256,512], index: 10, kind: input, shape index: {}]   ;;  %s15823_s11 = inlined_call_operand.vmem [shape: f32[1,512], index: 11, kind: input, shape index: {}]   ;;  %s15824_s12 = inlined_call_operand.vmem [shape: f32[1,512], index: 12, kind: input, shape index: {}]   ;;  %s15825_s13 = inlined_call_operand.vmem [shape: bf16[512,1], index: 13, kind: input, shape index: {}]   ;;  %s15826_s14 = inlined_call_operand.<no memory space> [shape: f32[1,1], index: 14, kind: input, shape index: {}]   ;;  %s15827_s15 = inlined_call_operand.vmem [shape: f32[16,1], index: 15, kind: output, shape index: {}]  }
   0x1   :  { %v20_v0 = vstv %s15826_s14 }
   0x2   :  { %21 = vst [vmem:[#allocation2] sm:$0x1] %v20_v0 }
   0x3 LB: > { %s11103_s21 = sadd.s32 4294967295, %s11011_s20   ;;  %p9735_p0 = scmp.ge.s32.totalorder %s11011_s20, 1  ;;  %s11011_s20 = sphi %s11097_s20, %s27_s20  }
   0x4   : > { %p440_p1 = scmp.lt.s32.totalorder %s11011_s20, 3 }
   0x6   : > { %p441_p2 = pnand %p9735_p0, %p440_p1 }
   0x8   : > { %444 = sbr.rel (%p441_p2) target bundleno = 1912 (0x778), region = 80 }
   0xf   : > { %v10707_v1 = vld [vmem:[%s15813_s1] sm:$0xff]   ;;  %s9736_s14 = sshll.u32 %s11103_s21, 8  ;;  %v10708_v2 = vld [vmem:[%s15813_s1 + $0x8] sm:$0xff]   ;;  %vm1410_vm0 = vcmask 261120   ;;  %v10789_v53 = vld [vmem:[%s15816_s4 + $0x10] sm:$0xff]   ;;  %p493_p4 = scmp.lt.s32.totalorder %s11103_s21, 1 }
  0x10   : > { %p488_p3 = scmp.lt.s32.totalorder %s9736_s14, 511  ;;  %10362 = vmatprep.subr.bf16.mxu0 %v10707_v1  ;;  %10694 = vmatprep.subr.bf16.mxu1 %v10707_v1  ;;  %v10783_v47 = vld [vmem:[%s15816_s4] sm:$0xff]   ;;  %v10786_v49 = vld [vmem:[%s15816_s4 + $0x8] sm:$0xff]   ;;  %v10792_v55 = vld [vmem:[%s15816_s4 + $0x18] sm:$0xff]  }
  0x11   : > { %10363 = vmatpush3.bf16.msra.mxu0 %v10707_v1  ;;  %10696 = vmatpush3.bf16.msra.mxu1 %v10707_v1  ;;  %s16226_s21 = smov (!%p493_p4, %s11103_s21), 1 }
  0x12   : > { %s16224_s14 = smov (!%p488_p3, %s9736_s14), 511  ;;  %10364 = vmatprep.subr.bf16.mxu0 %v10708_v2  ;;  %10695 = vmatprep.subr.bf16.mxu1 %v10708_v2 }
  0x13   : > { %s9737_s26 = sshll.u32 %s16224_s14, 2  ;;  %s9738_s14 = sshll.u32 %s16226_s21, 3 }
  0x14   : > { %s11117_s29 = scalar_lea.vmem %s15812_s0, %s9737_s26  ;;  %s496_s26 = scalar_lea.vmem %s15827_s15, %s9738_s14 }
  0x15   : > { %10365 = vmatpush3.bf16.msra.mxu0 %v10708_v2  ;;  %v10709_v3 = vld [vmem:[%s11117_s29] sm:$0xff]   ;;  %10697 = vmatpush3.bf16.msra.mxu1 %v10708_v2  ;;  %v10710_v4 = vld [vmem:[%s11117_s29 + $0x8] sm:$0xff]   ;;  %v10711_v5 = vld [vmem:[%s11117_s29 + $0x10] sm:$0xff]  }
  0x16   : > { %10366 = vmatprep.mubr.msk.bf16.mxu0 %vm1410_vm0, %v10709_v3  ;;  %v10712_v6 = vld [vmem:[%s11117_s29 + $0x18] sm:$0xff]   ;;  %v10713_v7 = vld [vmem:[%s11117_s29 + $0x20] sm:$0xff]   ;;  %v10714_v8 = vld [vmem:[%s11117_s29 + $0x28] sm:$0xff]   ;;  %10622 = vmatprep.subr.bf16.mxu1 %v10783_v47 }
  0x17   : > { %v10715_v9 = vld [vmem:[%s11117_s29 + $0x30] sm:$0xff]   ;;  %v10716_v10 = vld [vmem:[%s11117_s29 + $0x38] sm:$0xff]   ;;  %v10717_v11 = vld [vmem:[%s11117_s29 + $0x40] sm:$0xff]  }
  0x18   : > { %10367 = vmatmul.mubr.msk.bf16.vlgmr.msra.gmra.mrb[0].mxu0 %vm1410_vm0, %v10710_v4  ;;  %v10718_v12 = vld [vmem:[%s11117_s29 + $0x48] sm:$0xff]   ;;  %v10719_v13 = vld [vmem:[%s11117_s29 + $0x50] sm:$0xff]   ;;  %v10720_v14 = vld [vmem:[%s11117_s29 + $0x58] sm:$0xff]  }
  0x19   : > { %10370 = vmatprep.mubr.msk.bf16.mxu0 %vm1410_vm0, %v10711_v5  ;;  %v10721_v15 = vld [vmem:[%s11117_s29 + $0x60] sm:$0xff]   ;;  %v10722_v16 = vld [vmem:[%s11117_s29 + $0x68] sm:$0xff]   ;;  %v10723_v17 = vld [vmem:[%s11117_s29 + $0x70] sm:$0xff]  }
  0x1a   : > { %v10724_v18 = vld [vmem:[%s11117_s29 + $0x78] sm:$0xff]   ;;  %v10725_v19 = vld [vmem:[%s11117_s29 + $0x80] sm:$0xff]   ;;  %v10726_v20 = vld [vmem:[%s11117_s29 + $0x88] sm:$0xff]  }
  0x1b   : > { %v10727_v21 = vld [vmem:[%s11117_s29 + $0x90] sm:$0xff]   ;;  %v10728_v22 = vld [vmem:[%s11117_s29 + $0x98] sm:$0xff]   ;;  %v10729_v23 = vld [vmem:[%s11117_s29 + $0xa0] sm:$0xff]  }
  0x1c   : > { %v10730_v24 = vld [vmem:[%s11117_s29 + $0xa8] sm:$0xff]   ;;  %v10731_v25 = vld [vmem:[%s11117_s29 + $0xb0] sm:$0xff]   ;;  %v10732_v26 = vld [vmem:[%s11117_s29 + $0xb8] sm:$0xff]  }
  0x1d   : > { %v10733_v27 = vld [vmem:[%s11117_s29 + $0xc0] sm:$0xff]   ;;  %v10734_v28 = vld [vmem:[%s11117_s29 + $0xc8] sm:$0xff]   ;;  %v10735_v29 = vld [vmem:[%s11117_s29 + $0xd0] sm:$0xff]  }
  0x1e   : > { %v10736_v30 = vld [vmem:[%s11117_s29 + $0xd8] sm:$0xff]   ;;  %v10737_v31 = vld [vmem:[%s11117_s29 + $0xe0] sm:$0xff]   ;;  %v10738_v32 = vld [vmem:[%s11117_s29 + $0xe8] sm:$0xff]  }
  0x1f   : > { %v10769_v33 = vld [vmem:[%s11117_s29 + $0x3b0] sm:$0xff]   ;;  %v10770_v34 = vld [vmem:[%s11117_s29 + $0x3b8] sm:$0xff]   ;;  %v10773_v37 = vld [vmem:[%s11117_s29 + $0x3c0] sm:$0xff]  }
  0x20   : > { %10371 = vmatmul.mubr.msk.bf16.gmra.mrb[4].mxu0 %vm1410_vm0, %v10712_v6  ;;  %10602 = vmatprep.mubr.msk.bf16.mxu1 %vm1410_vm0, %v10769_v33  ;;  %v10739_v35 = vld [vmem:[%s11117_s29 + $0xf0] sm:$0xff]   ;;  %v10740_v36 = vld [vmem:[%s11117_s29 + $0xf8] sm:$0xff]   ;;  %v10774_v38 = vld [vmem:[%s11117_s29 + $0x3c8] sm:$0xff]  }
  0x21   : > { %10374 = vmatprep.mubr.msk.bf16.mxu0 %vm1410_vm0, %v10713_v7  ;;  %10603 = vmatmul.mubr.msk.bf16.vlgmr.msra.gmra.mrb[0].mxu1 %vm1410_vm0, %v10770_v34  ;;  %v10741_v39 = vld [vmem:[%s11117_s29 + $0x100] sm:$0xff]   ;;  %v10742_v40 = vld [vmem:[%s11117_s29 + $0x108] sm:$0xff]   ;;  %v10777_v41 = vld [vmem:[%s11117_s29 + $0x3d0] sm:$0xff]  }
  0x22   : > { %10606 = vmatprep.mubr.msk.bf16.mxu1 %vm1410_vm0, %v10773_v37  ;;  %v10778_v42 = vld [vmem:[%s11117_s29 + $0x3d8] sm:$0xff]   ;;  %v10743_v43 = vld [vmem:[%s11117_s29 + $0x110] sm:$0xff]   ;;  %v10781_v45 = vld [vmem:[%s11117_s29 + $0x3e0] sm:$0xff]   ;;  %10623 = vmatpush3.bf16.msra.mxu1 %v10783_v47 }
  0x23   : > { %v10744_v44 = vld [vmem:[%s11117_s29 + $0x118] sm:$0xff]   ;;  %v10782_v46 = vld [vmem:[%s11117_s29 + $0x3e8] sm:$0xff]   ;;  %v10745_v48 = vld [vmem:[%s11117_s29 + $0x120] sm:$0xff]   ;;  %10624 = vmatprep.subr.bf16.mxu1 %v10786_v49 }
  0x24   : > { %v10746_v50 = vld [vmem:[%s11117_s29 + $0x128] sm:$0xff]   ;;  %v10787_v51 = vld [vmem:[%s11117_s29 + $0x3f0] sm:$0xff]   ;;  %v10788_v52 = vld [vmem:[%s11117_s29 + $0x3f8] sm:$0xff]  }
  0x25   : > { %v10747_v54 = vld [vmem:[%s11117_s29 + $0x130] sm:$0xff]   ;;  %v10748_v56 = vld [vmem:[%s11117_s29 + $0x138] sm:$0xff]   ;;  %v10749_v57 = vld [vmem:[%s11117_s29 + $0x140] sm:$0xff]  }
  0x26   : > { %10625 = vmatpush3.bf16.msra.mxu1 %v10786_v49  ;;  %v10750_v58 = vld [vmem:[%s11117_s29 + $0x148] sm:$0xff]   ;;  %v10751_v59 = vld [vmem:[%s11117_s29 + $0x150] sm:$0xff]   ;;  %v10752_v60 = vld [vmem:[%s11117_s29 + $0x158] sm:$0xff]  }
  0x27   : > { %10626 = vmatprep.subr.bf16.mxu1 %v10789_v53  ;;  %v10753_v61 = vld [vmem:[%s11117_s29 + $0x160] sm:$0xff]   ;;  %v10754_v62 = vld [vmem:[%s11117_s29 + $0x168] sm:$0xff]   ;;  %v10755_v63 = vld [vmem:[%s11117_s29 + $0x170] sm:$0xff]  }
  0x28   : > { %10375 = vmatmul.mubr.msk.bf16.gmra.mrb[8].mxu0 %vm1410_vm0, %v10714_v8  ;;  %v10756_v0 = vld [vmem:[%s11117_s29 + $0x178] sm:$0xff]   ;;  %v10757_v1 = vld [vmem:[%s11117_s29 + $0x180] sm:$0xff]   ;;  %v10758_v2 = vld [vmem:[%s11117_s29 + $0x188] sm:$0xff]  }
  0x29   : > { %10378 = vmatprep.mubr.msk.bf16.mxu0 %vm1410_vm0, %v10715_v9  ;;  %10607 = vmatmul.mubr.msk.bf16.gmra.mrb[4].mxu1 %vm1410_vm0, %v10774_v38  ;;  %v10759_v3 = vld [vmem:[%s11117_s29 + $0x190] sm:$0xff]   ;;  %v10760_v4 = vld [vmem:[%s11117_s29 + $0x198] sm:$0xff]   ;;  %v10761_v5 = vld [vmem:[%s11117_s29 + $0x1a0] sm:$0xff]  }
  0x2a   : > { %10610 = vmatprep.mubr.msk.bf16.mxu1 %vm1410_vm0, %v10777_v41  ;;  %10627 = vmatpush3.bf16.msra.mxu1 %v10789_v53  ;;  %v10762_v6 = vld [vmem:[%s11117_s29 + $0x1a8] sm:$0xff]   ;;  %v10763_v7 = vld [vmem:[%s11117_s29 + $0x1b0] sm:$0xff]   ;;  %v10768_v41 = vld [vmem:[%s11117_s29 + $0x1d8] sm:$0xff]  }
  0x2b   : > { %10628 = vmatprep.subr.bf16.mxu1 %v10792_v55  ;;  %v10771_v47 = vld [vmem:[%s11117_s29 + $0x1e0] sm:$0xff]  }
  0x2e   : > { %10629 = vmatpush3.bf16.msra.mxu1 %v10792_v55 }
  0x30   : > { %10379 = vmatmul.mubr.msk.bf16.gmra.mrb[12].mxu0 %vm1410_vm0, %v10716_v10  ;;  %v10764_v10 = vld [vmem:[%s11117_s29 + $0x1b8] sm:$0xff]  }
  0x31   : > { %10382 = vmatprep.mubr.msk.bf16.mxu0 %vm1410_vm0, %v10717_v11  ;;  %10611 = vmatmul.mubr.msk.bf16.gmra.mrb[8].mxu1 %vm1410_vm0, %v10778_v42  ;;  %v11265_v11 = vld [vmem:[%s15814_s2] ss:$0 sm:$0xff] }
  0x32   : > { %10614 = vmatprep.mubr.msk.bf16.mxu1 %vm1410_vm0, %v10781_v45 }
  0x38   : > { %10383 = vmatmul.mubr.msk.bf16.gmra.mrb[16].mxu0 %vm1410_vm0, %v10718_v12 }
  0x39   : > { %10386 = vmatprep.mubr.msk.bf16.mxu0 %vm1410_vm0, %v10719_v13  ;;  %10615 = vmatmul.mubr.msk.bf16.gmra.mrb[12].mxu1 %vm1410_vm0, %v10782_v46  ;;  %v10765_v13 = vld [vmem:[%s11117_s29 + $0x1c0] sm:$0xff]  }
  0x3a   : > { %10618 = vmatprep.mubr.msk.bf16.mxu1 %vm1410_vm0, %v10787_v51 }
  0x40   : > { %10387 = vmatmul.mubr.msk.bf16.gmra.mrb[20].mxu0 %vm1410_vm0, %v10720_v14 }
  0x41   : > { %10390 = vmatprep.mubr.msk.bf16.mxu0 %vm1410_vm0, %v10721_v15  ;;  %10619 = vmatmul.mubr.msk.bf16.gmra.mrb[16].mxu1 %vm1410_vm0, %v10788_v52 }
  0x48   : > { %10391 = vmatmul.mubr.msk.bf16.gmra.mrb[24].mxu0 %vm1410_vm0, %v10722_v16  ;;  %v11273_v16 = vld [vmem:[%s15815_s3] ss:$0 sm:$0xff] }
  0x49   : > { %10394 = vmatprep.mubr.msk.bf16.mxu0 %vm1410_vm0, %v10723_v17 }
  0x50   : > { %10395 = vmatmul.mubr.msk.bf16.gmra.mrb[28].mxu0 %vm1410_vm0, %v10724_v18 }
  0x51   : > { %10398 = vmatprep.mubr.msk.bf16.mxu0 %vm1410_vm0, %v10725_v19 }
  0x58   : > { %10399 = vmatmul.mubr.msk.bf16.gmra.mrb[32].mxu0 %vm1410_vm0, %v10726_v20 }
  0x59   : > { %10402 = vmatprep.mubr.msk.bf16.mxu0 %vm1410_vm0, %v10727_v21 }
  0x60   : > { %10403 = vmatmul.mubr.msk.bf16.gmra.mrb[36].mxu0 %vm1410_vm0, %v10728_v22 }
  0x61   : > { %10406 = vmatprep.mubr.msk.bf16.mxu0 %vm1410_vm0, %v10729_v23  ;;  %v10766_v23 = vld [vmem:[%s11117_s29 + $0x1c8] sm:$0xff]  }
  0x68   : > { %10407 = vmatmul.mubr.msk.bf16.gmra.mrb[40].mxu0 %vm1410_vm0, %v10730_v24 }
  0x69   : > { %10410 = vmatprep.mubr.msk.bf16.mxu0 %vm1410_vm0, %v10731_v25 }
  0x70   : > { %10411 = vmatmul.mubr.msk.bf16.gmra.mrb[44].mxu0 %vm1410_vm0, %v10732_v26 }
  0x71   : > { %10414 = vmatprep.mubr.msk.bf16.mxu0 %vm1410_vm0, %v10733_v27  ;;  %v10767_v27 = vld [vmem:[%s11117_s29 + $0x1d0] sm:$0xff]  }
  0x78   : > { %10415 = vmatmul.mubr.msk.bf16.gmra.mrb[48].mxu0 %vm1410_vm0, %v10734_v28 }
  0x79   : > { %10418 = vmatprep.mubr.msk.bf16.mxu0 %vm1410_vm0, %v10735_v29 }
  0x80   : > { %10419 = vmatmul.mubr.msk.bf16.gmra.mrb[52].mxu0 %vm1410_vm0, %v10736_v30 }
  0x81   : > { %10422 = vmatprep.mubr.msk.bf16.mxu0 %vm1410_vm0, %v10737_v31 }
  0x88   : > { %10423 = vmatmul.mubr.msk.bf16.gmra.mrb[56].mxu0 %vm1410_vm0, %v10738_v32 }
  0x89   : > { %10426 = vmatprep.mubr.msk.bf16.mxu0 %vm1410_vm0, %v10739_v35 }
  0x90   : > { %10427 = vmatmul.mubr.msk.bf16.gmra.mrb[60].mxu0 %vm1410_vm0, %v10740_v36 }
  0x91   : > { %10430 = vmatprep.mubr.msk.bf16.mxu0 %vm1410_vm0, %v10741_v39 }
  0x98   : > { %10431 = vmatmul.mubr.msk.bf16.gmra.mrb[64].mxu0 %vm1410_vm0, %v10742_v40 }
  0x99   : > { %10434 = vmatprep.mubr.msk.bf16.mxu0 %vm1410_vm0, %v10743_v43 }
  0xa0   : > { %10435 = vmatmul.mubr.msk.bf16.gmra.mrb[68].mxu0 %vm1410_vm0, %v10744_v44 }
  0xa1   : > { %10438 = vmatprep.mubr.msk.bf16.mxu0 %vm1410_vm0, %v10745_v48 }
  0xa8   : > { %10439 = vmatmul.mubr.msk.bf16.gmra.mrb[72].mxu0 %vm1410_vm0, %v10746_v50 }
  0xa9   : > { %10442 = vmatprep.mubr.msk.bf16.mxu0 %vm1410_vm0, %v10747_v54 }
  0xb0   : > { %10443 = vmatmul.mubr.msk.bf16.gmra.mrb[76].mxu0 %vm1410_vm0, %v10748_v56 }
  0xb1   : > { %10446 = vmatprep.mubr.msk.bf16.mxu0 %vm1410_vm0, %v10749_v57 }
  0xb8   : > { %10447 = vmatmul.mubr.msk.bf16.gmra.mrb[80].mxu0 %vm1410_vm0, %v10750_v58 }
  0xb9   : > { %10450 = vmatprep.mubr.msk.bf16.mxu0 %vm1410_vm0, %v10751_v59 }
  0xc0   : > { %10451 = vmatmul.mubr.msk.bf16.gmra.mrb[84].mxu0 %vm1410_vm0, %v10752_v60 }
  0xc1   : > { %10454 = vmatprep.mubr.msk.bf16.mxu0 %vm1410_vm0, %v10753_v61 }
  0xc8   : > { %10455 = vmatmul.mubr.msk.bf16.gmra.mrb[88].mxu0 %vm1410_vm0, %v10754_v62 }
  0xc9   : > { %10458 = vmatprep.mubr.msk.bf16.mxu0 %vm1410_vm0, %v10755_v63 }
  0xd0   : > { %10459 = vmatmul.mubr.msk.bf16.gmra.mrb[92].mxu0 %vm1410_vm0, %v10756_v0 }
  0xd1   : > { %10462 = vmatprep.mubr.msk.bf16.mxu0 %vm1410_vm0, %v10757_v1 }
  0xd8   : > { %10463 = vmatmul.mubr.msk.bf16.gmra.mrb[96].mxu0 %vm1410_vm0, %v10758_v2 }
  0xd9   : > { %10466 = vmatprep.mubr.msk.bf16.mxu0 %vm1410_vm0, %v10759_v3 }
  0xe0   : > { %10467 = vmatmul.mubr.msk.bf16.gmra.mrb[100].mxu0 %vm1410_vm0, %v10760_v4 }
  0xe1   : > { %10470 = vmatprep.mubr.msk.bf16.mxu0 %vm1410_vm0, %v10761_v5 }
  0xe8   : > { %10471 = vmatmul.mubr.msk.bf16.gmra.mrb[104].mxu0 %vm1410_vm0, %v10762_v6 }
  0xe9   : > { %10474 = vmatprep.mubr.msk.bf16.mxu0 %vm1410_vm0, %v10763_v7 }
  0xeb   : > { %v10368_v8 = vpop.f32.mrb[0].mxu0 }
  0xec   : > { %v1829_v9 = vpop.f32.mrb[1].mxu0  ;;  %v2861_v15 = vmul.f32 %v10368_v8, %v11265_v11 }
  0xed   : > { %v10369_v12 = vpop.f32.mrb[2].mxu0  ;;  %v2859_v17 = vmul.f32 %v11265_v11, %v1829_v9  ;;  %v10772_v9 = vld [vmem:[%s11117_s29 + $0x1e8] sm:$0xff]  }
  0xee   : > { %v1832_v14 = vpop.f32.mrb[3].mxu0  ;;  %v2862_v18 = vmul.f32 %v10369_v12, %v11265_v11  ;;  %v3124_v21 = vadd.f32 %v11273_v16, %v2861_v15 }
  0xef   : > { %v2860_v19 = vmul.f32 %v11265_v11, %v1832_v14  ;;  %v3122_v24 = vadd.f32 %v11273_v16, %v2859_v17  ;;  %v10775_v17 = vld [vmem:[%s11117_s29 + $0x1f0] sm:$0xff]  }
  0xf0   : > { %10475 = vmatmul.mubr.msk.bf16.gmra.mrb[108].mxu0 %vm1410_vm0, %v10764_v10  ;;  %v3125_v25 = vadd.f32 %v11273_v16, %v2862_v18  ;;  %v3636_v31 = vmul.f32 0.1, %v3124_v21  ;;  %vm3380_vm1 = vcmp.ge.f32.partialorder %v3124_v21, 0.0 }
  0xf1   : > { %10478 = vmatprep.mubr.msk.bf16.mxu0 %vm1410_vm0, %v10765_v13  ;;  %v3123_v28 = vadd.f32 %v11273_v16, %v2860_v19  ;;  %v3634_v32 = vmul.f32 0.1, %v3122_v24  ;;  %vm3378_vm2 = vcmp.ge.f32.partialorder %v3122_v24, 0.0 }
  0xf2   : > { %v3637_v33 = vmul.f32 0.1, %v3125_v25  ;;  %vm3381_vm3 = vcmp.ge.f32.partialorder %v3125_v25, 0.0  ;;  %v11290_v38 = vsel %vm3380_vm1, %v3124_v21, %v3636_v31 }
  0xf3   : > { %v10372_v20 = vpop.f32.mrb[4].mxu0  ;;  %v3635_v34 = vmul.f32 0.1, %v3123_v28  ;;  %vm3379_vm4 = vcmp.ge.f32.partialorder %v3123_v28, 0.0  ;;  %v11294_v42 = vsel %vm3378_vm2, %v3122_v24, %v3634_v32 }
  0xf4   : > { %v1845_v22 = vpop.f32.mrb[5].mxu0  ;;  %v2865_v30 = vmul.f32 %v10372_v20, %v11265_v11  ;;  %v11296_v43 = vsel %vm3381_vm3, %v3125_v25, %v3637_v33 }
  0xf5   : > { %v10373_v26 = vpop.f32.mrb[6].mxu0  ;;  %v2863_v35 = vmul.f32 %v11265_v11, %v1845_v22  ;;  %v11301_v48 = vsel %vm3379_vm4, %v3123_v28, %v3635_v34 }
  0xf6   : > { %v1848_v29 = vpop.f32.mrb[7].mxu0  ;;  %v3128_v36 = vadd.f32 %v11273_v16, %v2865_v30  ;;  %v2866_v44 = vmul.f32 %v10373_v26, %v11265_v11 }
  0xf7   : > { %v3126_v49 = vadd.f32 %v11273_v16, %v2863_v35  ;;  %v2864_v53 = vmul.f32 %v11265_v11, %v1848_v29 }
  0xf8   : > { %10479 = vmatmul.mubr.msk.bf16.gmra.mrb[112].mxu0 %vm1410_vm0, %v10766_v23  ;;  %vm3384_vm5 = vcmp.ge.f32.partialorder %v3128_v36, 0.0  ;;  %v3640_v56 = vmul.f32 0.1, %v3128_v36  ;;  %v3129_v59 = vadd.f32 %v11273_v16, %v2866_v44 }
  0xf9   : > { %10482 = vmatprep.mubr.msk.bf16.mxu0 %vm1410_vm0, %v10767_v27  ;;  %vm3382_vm8 = vcmp.ge.f32.partialorder %v3126_v49, 0.0  ;;  %v3638_v4 = vmul.f32 0.1, %v3126_v49  ;;  %v3127_v10 = vadd.f32 %v11273_v16, %v2864_v53 }
  0xfa   : > { %v11334_v18 = vsel %vm3384_vm5, %v3128_v36, %v3640_v56  ;;  %vm3385_vm11 = vcmp.ge.f32.partialorder %v3129_v59, 0.0  ;;  %v3641_v23 = vmul.f32 0.1, %v3129_v59 }
  0xfb   : > { %v10376_v37 = vpop.f32.mrb[8].mxu0  ;;  %v11343_v26 = vsel %vm3382_vm8, %v3126_v49, %v3638_v4  ;;  %v3639_v29 = vmul.f32 0.1, %v3127_v10  ;;  %vm3383_vm14 = vcmp.ge.f32.partialorder %v3127_v10, 0.0 }
  0xfc   : > { %v2869_v39 = vmul.f32 %v10376_v37, %v11265_v11  ;;  %v1861_v40 = vpop.f32.mrb[9].mxu0 }
  0xfd   : > { %v2867_v45 = vmul.f32 %v11265_v11, %v1861_v40  ;;  %v10377_v46 = vpop.f32.mrb[10].mxu0 }
  0xfe   : > { %v3132_v50 = vadd.f32 %v11273_v16, %v2869_v39  ;;  %v2870_v51 = vmul.f32 %v10377_v46, %v11265_v11  ;;  %v1864_v52 = vpop.f32.mrb[11].mxu0  ;;  %v11356_v39 = vsel %vm3385_vm11, %v3129_v59, %v3641_v23  ;;  %v11363_v46 = vsel %vm3383_vm14, %v3127_v10, %v3639_v29 }
  0xff   : > { %v3130_v54 = vadd.f32 %v11273_v16, %v2867_v45  ;;  %v2868_v55 = vmul.f32 %v11265_v11, %v1864_v52  ;;  %v10776_v45 = vld [vmem:[%s11117_s29 + $0x1f8] sm:$0xff]   ;;  %vm4402_vm11 = vcmask 523264  }
 0x100   : > { %vm3388_vm6 = vcmp.ge.f32.partialorder %v3132_v50, 0.0  ;;  %v3644_v57 = vmul.f32 0.1, %v3132_v50  ;;  %v3133_v58 = vadd.f32 %v11273_v16, %v2870_v51  ;;  %10483 = vmatmul.mubr.msk.bf16.gmra.mrb[116].mxu0 %vm1410_vm0, %v10768_v41  ;;  %v10779_v51 = vld [vmem:[%s11117_s29 + $0x200] sm:$0xff]  }
 0x101   : > { %vm3386_vm7 = vcmp.ge.f32.partialorder %v3130_v54, 0.0  ;;  %v3642_v60 = vmul.f32 0.1, %v3130_v54  ;;  %v3131_v61 = vadd.f32 %v11273_v16, %v2868_v55  ;;  %10486 = vmatprep.mubr.msk.bf16.mxu0 %vm1410_vm0, %v10771_v47 }
 0x102   : > { %v11314_v62 = vsel %vm3388_vm6, %v3132_v50, %v3644_v57  ;;  %vm3389_vm9 = vcmp.ge.f32.partialorder %v3133_v58, 0.0  ;;  %v3645_v63 = vmul.f32 0.1, %v3133_v58 }
 0x103   : > { %v4148_v0 = vmax.f32 %v11290_v38, %v11314_v62  ;;  %v11318_v1 = vsel %vm3386_vm7, %v3130_v54, %v3642_v60  ;;  %vm3387_vm10 = vcmp.ge.f32.partialorder %v3131_v61, 0.0  ;;  %v3643_v2 = vmul.f32 0.1, %v3131_v61  ;;  %v10380_v3 = vpop.f32.mrb[12].mxu0 }
 0x104   : > { %v4146_v5 = vmax.f32 %v11294_v42, %v11318_v1  ;;  %v11322_v6 = vsel %vm3389_vm9, %v3133_v58, %v3645_v63  ;;  %v2873_v7 = vmul.f32 %v10380_v3, %v11265_v11  ;;  %v1877_v8 = vpop.f32.mrb[13].mxu0 }
 0x105   : > { %v4149_v12 = vmax.f32 %v11296_v43, %v11322_v6  ;;  %v11329_v13 = vsel %vm3387_vm10, %v3131_v61, %v3643_v2  ;;  %v2871_v14 = vmul.f32 %v11265_v11, %v1877_v8  ;;  %v10381_v15 = vpop.f32.mrb[14].mxu0  ;;  %v10780_v2 = vld [vmem:[%s11117_s29 + $0x208] sm:$0xff]  }
 0x106   : > { %v4147_v19 = vmax.f32 %v11301_v48, %v11329_v13  ;;  %v3136_v20 = vadd.f32 %v11273_v16, %v2873_v7  ;;  %v2874_v21 = vmul.f32 %v10381_v15, %v11265_v11  ;;  %v1880_v22 = vpop.f32.mrb[15].mxu0  ;;  %v10784_v7 = vld [vmem:[%s11117_s29 + $0x210] sm:$0xff]  }
 0x107   : > { %v3134_v24 = vadd.f32 %v11273_v16, %v2871_v14  ;;  %v2872_v25 = vmul.f32 %v11265_v11, %v1880_v22 }
 0x108   : > { %vm3392_vm12 = vcmp.ge.f32.partialorder %v3136_v20, 0.0  ;;  %v3648_v27 = vmul.f32 0.1, %v3136_v20  ;;  %v3137_v28 = vadd.f32 %v11273_v16, %v2874_v21  ;;  %10487 = vmatmul.mubr.msk.bf16.gmra.mrb[120].mxu0 %vm1410_vm0, %v10772_v9 }
 0x109   : > { %vm3390_vm13 = vcmp.ge.f32.partialorder %v3134_v24, 0.0  ;;  %v3646_v30 = vmul.f32 0.1, %v3134_v24  ;;  %v3135_v31 = vadd.f32 %v11273_v16, %v2872_v25  ;;  %10490 = vmatprep.mubr.msk.bf16.mxu0 %vm1410_vm0, %v10775_v17 }
 0x10a   : > { %v11349_v32 = vsel %vm3392_vm12, %v3136_v20, %v3648_v27  ;;  %vm3393_vm15 = vcmp.ge.f32.partialorder %v3137_v28, 0.0  ;;  %v3649_v33 = vmul.f32 0.1, %v3137_v28 }
 0x10b   : > { %v4152_v34 = vmax.f32 %v11334_v18, %v11349_v32  ;;  %v11353_v35 = vsel %vm3390_vm13, %v3134_v24, %v3646_v30  ;;  %vm3391_vm1 = vcmp.ge.f32.partialorder %v3135_v31, 0.0  ;;  %v3647_v36 = vmul.f32 0.1, %v3135_v31  ;;  %v10384_v37 = vpop.f32.mrb[16].mxu0 }
 0x10c   : > { %v4150_v40 = vmax.f32 %v11343_v26, %v11353_v35  ;;  %v11360_v41 = vsel %vm3393_vm15, %v3137_v28, %v3649_v33  ;;  %v1893_v44 = vpop.f32.mrb[17].mxu0  ;;  %v2877_v54 = vmul.f32 %v10384_v37, %v11265_v11  ;;  %v10785_v33 = vld [vmem:[%s11117_s29 + $0x218] sm:$0xff]  }
 0x10d   : > { %v4153_v47 = vmax.f32 %v11356_v39, %v11360_v41  ;;  %v11367_v49 = vsel %vm3391_vm1, %v3135_v31, %v3647_v36  ;;  %v10385_v50 = vpop.f32.mrb[18].mxu0  ;;  %v2875_v55 = vmul.f32 %v11265_v11, %v1893_v44 }
 0x10e   : > { %v4151_v52 = vmax.f32 %v11363_v46, %v11367_v49  ;;  %v1896_v53 = vpop.f32.mrb[19].mxu0  ;;  %v2878_v56 = vmul.f32 %v10385_v50, %v11265_v11  ;;  %v3140_v59 = vadd.f32 %v11273_v16, %v2877_v54  ;;  %v10790_v50 = vld [vmem:[%s11117_s29 + $0x220] sm:$0xff]  }
 0x10f   : > { %v2876_v57 = vmul.f32 %v11265_v11, %v1896_v53  ;;  %v3138_v60 = vadd.f32 %v11273_v16, %v2875_v55 }
 0x110   : > { %10491 = vmatmul.mubr.msk.bf16.gmra.mrb[124].mxu0 %vm1410_vm0, %v10776_v45  ;;  %v3141_v3 = vadd.f32 %v11273_v16, %v2878_v56  ;;  %v3652_v14 = vmul.f32 0.1, %v3140_v59  ;;  %vm3396_vm2 = vcmp.ge.f32.partialorder %v3140_v59, 0.0 }
 0x111   : > { %10494 = vmatprep.mubr.msk.bf16.mxu0 %vm1410_vm0, %v10779_v51  ;;  %v3139_v8 = vadd.f32 %v11273_v16, %v2876_v57  ;;  %v3650_v15 = vmul.f32 0.1, %v3138_v60  ;;  %vm3394_vm3 = vcmp.ge.f32.partialorder %v3138_v60, 0.0 }
 0x112   : > { %v3653_v20 = vmul.f32 0.1, %v3141_v3  ;;  %vm3397_vm4 = vcmp.ge.f32.partialorder %v3141_v3, 0.0  ;;  %v3908_v27 = vsel %vm3396_vm2, %v3140_v59, %v3652_v14 }
 0x113   : > { %v10388_v58 = vpop.f32.mrb[20].mxu0  ;;  %v3651_v22 = vmul.f32 0.1, %v3139_v8  ;;  %vm3395_vm5 = vcmp.ge.f32.partialorder %v3139_v8, 0.0  ;;  %v3906_v28 = vsel %vm3394_vm3, %v3138_v60, %v3650_v15 }
 0x114   : > { %v2881_v61 = vmul.f32 %v10388_v58, %v11265_v11  ;;  %v1909_v63 = vpop.f32.mrb[21].mxu0  ;;  %v3909_v36 = vsel %vm3397_vm4, %v3141_v3, %v3653_v20 }
 0x115   : > { %v10389_v4 = vpop.f32.mrb[22].mxu0  ;;  %v2879_v9 = vmul.f32 %v11265_v11, %v1909_v63  ;;  %v3907_v51 = vsel %vm3395_vm5, %v3139_v8, %v3651_v22 }
 0x116   : > { %v1912_v10 = vpop.f32.mrb[23].mxu0  ;;  %v3144_v17 = vadd.f32 %v11273_v16, %v2881_v61  ;;  %v2882_v21 = vmul.f32 %v10389_v4, %v11265_v11 }
 0x117   : > { %v3142_v23 = vadd.f32 %v11273_v16, %v2879_v9  ;;  %v2880_v24 = vmul.f32 %v11265_v11, %v1912_v10 }
 0x118   : > { %10495 = vmatmul.mubr.msk.bf16.gmra.mrb[128].mxu0 %vm1410_vm0, %v10780_v2  ;;  %v3656_v29 = vmul.f32 0.1, %v3144_v17  ;;  %vm3400_vm6 = vcmp.ge.f32.partialorder %v3144_v17, 0.0  ;;  %v11395_v37 = vadd.f32 %v11273_v16, %v2882_v21 }
 0x119   : > { %10498 = vmatprep.mubr.msk.bf16.mxu0 %vm1410_vm0, %v10784_v7  ;;  %v3654_v53 = vmul.f32 0.1, %v3142_v23  ;;  %vm3398_vm7 = vcmp.ge.f32.partialorder %v3142_v23, 0.0  ;;  %v11402_v57 = vadd.f32 %v11273_v16, %v2880_v24 }
 0x11a   : > { %v11406_v60 = vsel %vm3400_vm6, %v3144_v17, %v3656_v29  ;;  %vm3401_vm9 = vcmp.ge.f32.partialorder %v11395_v37, 0.0  ;;  %v3657_v2 = vmul.f32 0.1, %v11395_v37 }
 0x11b   : > { %v10392_v25 = vpop.f32.mrb[24].mxu0  ;;  %v11415_v7 = vsel %vm3398_vm7, %v3142_v23, %v3654_v53  ;;  %vm3399_vm14 = vcmp.ge.f32.partialorder %v11402_v57, 0.0 }
 0x11c   : > { %v2885_v30 = vmul.f32 %v10392_v25, %v11265_v11  ;;  %v1925_v31 = vpop.f32.mrb[25].mxu0  ;;  %v10791_v25 = vld [vmem:[%s11117_s29 + $0x228] sm:$0xff]   ;;  %v3913_v13 = vsel %vm3401_vm9, %v11395_v37, %v3657_v2  ;;  %v10795_v2 = vld [vmem:[%s11117_s29 + $0x240] sm:$0xff]  }
 0x11d   : > { %v2883_v44 = vmul.f32 %v11265_v11, %v1925_v31  ;;  %v10393_v45 = vpop.f32.mrb[26].mxu0 }
 0x11e   : > { %v3148_v54 = vadd.f32 %v11273_v16, %v2885_v30  ;;  %v2886_v55 = vmul.f32 %v10393_v45, %v11265_v11  ;;  %v1928_v56 = vpop.f32.mrb[27].mxu0 }
 0x11f   : > { %v3146_v58 = vadd.f32 %v11273_v16, %v2883_v44  ;;  %v2884_v59 = vmul.f32 %v11265_v11, %v1928_v56 }
 0x120   : > { %vm3404_vm8 = vcmp.ge.f32.partialorder %v3148_v54, 0.0  ;;  %v3660_v61 = vmul.f32 0.1, %v3148_v54  ;;  %v3149_v63 = vadd.f32 %v11273_v16, %v2886_v55  ;;  %10499 = vmatmul.mubr.msk.bf16.gmra.mrb[132].mxu0 %vm1410_vm0, %v10785_v33  ;;  %v10793_v33 = vld [vmem:[%s11117_s29 + $0x230] sm:$0xff]  }
 0x121   : > { %vm3402_vm10 = vcmp.ge.f32.partialorder %v3146_v58, 0.0  ;;  %v3658_v3 = vmul.f32 0.1, %v3146_v58  ;;  %v3147_v4 = vadd.f32 %v11273_v16, %v2884_v59  ;;  %10502 = vmatprep.mubr.msk.bf16.mxu0 %vm1410_vm0, %v10790_v50 }
 0x122   : > { %v3916_v8 = vsel %vm3404_vm8, %v3148_v54, %v3660_v61  ;;  %vm3405_vm12 = vcmp.ge.f32.partialorder %v3149_v63, 0.0  ;;  %v3661_v9 = vmul.f32 0.1, %v3149_v63  ;;  %v3655_v54 = vmul.f32 0.1, %v11402_v57 }
 0x123   : > { %v4212_v10 = vmax.f32 %v3908_v27, %v3916_v8  ;;  %v3914_v14 = vsel %vm3402_vm10, %v3146_v58, %v3658_v3  ;;  %vm3403_vm13 = vcmp.ge.f32.partialorder %v3147_v4, 0.0  ;;  %v3659_v15 = vmul.f32 0.1, %v3147_v4  ;;  %v10396_v17 = vpop.f32.mrb[28].mxu0  ;;  %v10794_v3 = vld [vmem:[%s11117_s29 + $0x238] sm:$0xff]  }
 0x124   : > { %v4210_v20 = vmax.f32 %v3906_v28, %v3914_v14  ;;  %v3917_v21 = vsel %vm3405_vm12, %v3149_v63, %v3661_v9  ;;  %v2889_v22 = vmul.f32 %v10396_v17, %v11265_v11  ;;  %v1941_v24 = vpop.f32.mrb[29].mxu0  ;;  %v10796_v17 = vld [vmem:[%s11117_s29 + $0x248] sm:$0xff]  }
 0x125   : > { %v4276_v23 = vmax.f32 %v4148_v0, %v4212_v10  ;;  %v4213_v29 = vmax.f32 %v3909_v36, %v3917_v21  ;;  %v3915_v30 = vsel %vm3403_vm13, %v3147_v4, %v3659_v15  ;;  %v2887_v27 = vmul.f32 %v11265_v11, %v1941_v24  ;;  %v10397_v31 = vpop.f32.mrb[30].mxu0 }
 0x126   : > { %v4211_v44 = vmax.f32 %v3907_v51, %v3915_v30  ;;  %v3152_v45 = vadd.f32 %v11273_v16, %v2889_v22  ;;  %v2890_v28 = vmul.f32 %v10397_v31, %v11265_v11  ;;  %v1944_v50 = vpop.f32.mrb[31].mxu0  ;;  %v4274_v53 = vmax.f32 %v4146_v5, %v4210_v20  ;;  %v10797_v20 = vld [vmem:[%s11117_s29 + $0x250] sm:$0xff]  }
 0x127   : > { %v4277_v38 = vmax.f32 %v4149_v12, %v4213_v29  ;;  %v3150_v62 = vadd.f32 %v11273_v16, %v2887_v27  ;;  %v2888_v0 = vmul.f32 %v11265_v11, %v1944_v50  ;;  %v10798_v50 = vld [vmem:[%s11117_s29 + $0x258] sm:$0xff]  }
 0x128   : > { %vm3408_vm15 = vcmp.ge.f32.partialorder %v3152_v45, 0.0  ;;  %v3664_v36 = vmul.f32 0.1, %v3152_v45  ;;  %v3153_v51 = vadd.f32 %v11273_v16, %v2890_v28  ;;  %10503 = vmatmul.mubr.msk.bf16.gmra.mrb[136].mxu0 %vm1410_vm0, %v10791_v25  ;;  %v4275_v42 = vmax.f32 %v4147_v19, %v4211_v44 }
 0x129   : > { %v4339_v1 = vpack.c.bf16 %v4277_v38, %v4276_v23  ;;  %vm3406_vm1 = vcmp.ge.f32.partialorder %v3150_v62, 0.0  ;;  %v3662_v5 = vmul.f32 0.1, %v3150_v62  ;;  %v3151_v43 = vadd.f32 %v11273_v16, %v2888_v0  ;;  %10506 = vmatprep.mubr.msk.bf16.mxu0 %vm1410_vm0, %v10793_v33 }
 0x12a   : > { %v3920_v6 = vsel %vm3408_vm15, %v3152_v45, %v3664_v36  ;;  %vm3409_vm2 = vcmp.ge.f32.partialorder %v3153_v51, 0.0  ;;  %v3665_v12 = vmul.f32 0.1, %v3153_v51  ;;  %v4338_v55 = vpack.c.bf16 %v4275_v42, %v4274_v53  ;;  %v10799_v36 = vld [vmem:[%s11117_s29 + $0x260] sm:$0xff]  }
 0x12b   : > { %v4216_v56 = vmax.f32 %v11406_v60, %v3920_v6  ;;  %v3918_v58 = vsel %vm3406_vm1, %v3150_v62, %v3662_v5  ;;  %vm3407_vm3 = vcmp.ge.f32.partialorder %v3151_v43, 0.0  ;;  %v3663_v59 = vmul.f32 0.1, %v3151_v43  ;;  %v10400_v48 = vpop.f32.mrb[32].mxu0 }
 0x12c   : > { %v4214_v19 = vmax.f32 %v11415_v7, %v3918_v58  ;;  %v3921_v61 = vsel %vm3409_vm2, %v3153_v51, %v3665_v12  ;;  %v1957_v63 = vpop.f32.mrb[33].mxu0  ;;  %10630 = vmatprep.mubr.msk.bf16.mxu1 %vm4402_vm11, %v4338_v55  ;;  %v3911_v60 = vsel %vm3399_vm14, %v11402_v57, %v3655_v54  ;;  %v2893_v15 = vmul.f32 %v10400_v48, %v11265_v11 }
 0x12d   : > { %v4217_v4 = vmax.f32 %v3913_v13, %v3921_v61  ;;  %v3919_v8 = vsel %vm3407_vm3, %v3151_v43, %v3663_v59  ;;  %v10401_v9 = vpop.f32.mrb[34].mxu0  ;;  %10631 = vmatmul.mubr.msk.bf16.vlgmr.msra.gmra.mrb[20].mxu1 %vm4402_vm11, %v4339_v1  ;;  %v4280_v37 = vmax.f32 %v4152_v34, %v4216_v56  ;;  %v2891_v32 = vmul.f32 %v11265_v11, %v1957_v63 }
 0x12e   : > { %v4215_v7 = vmax.f32 %v3911_v60, %v3919_v8  ;;  %v1960_v10 = vpop.f32.mrb[35].mxu0  ;;  %v4278_v14 = vmax.f32 %v4150_v40, %v4214_v19  ;;  %v2894_v34 = vmul.f32 %v10401_v9, %v11265_v11  ;;  %v3156_v41 = vadd.f32 %v11273_v16, %v2893_v15 }
 0x12f   : > { %v4281_v57 = vmax.f32 %v4153_v47, %v4217_v4  ;;  %v2892_v35 = vmul.f32 %v11265_v11, %v1960_v10  ;;  %v3154_v46 = vadd.f32 %v11273_v16, %v2891_v32 }
 0x130   : > { %10507 = vmatmul.mubr.msk.bf16.gmra.mrb[140].mxu0 %vm1410_vm0, %v10794_v3  ;;  %v4279_v18 = vmax.f32 %v4151_v52, %v4215_v7  ;;  %v3157_v49 = vadd.f32 %v11273_v16, %v2894_v34  ;;  %v3668_v25 = vmul.f32 0.1, %v3156_v41  ;;  %vm3412_vm4 = vcmp.ge.f32.partialorder %v3156_v41, 0.0 }
 0x131   : > { %v4341_v26 = vpack.c.bf16 %v4281_v57, %v4280_v37  ;;  %10510 = vmatprep.mubr.msk.bf16.mxu0 %vm1410_vm0, %v10795_v2  ;;  %v3155_v21 = vadd.f32 %v11273_v16, %v2892_v35  ;;  %v3666_v23 = vmul.f32 0.1, %v3154_v46  ;;  %vm3410_vm5 = vcmp.ge.f32.partialorder %v3154_v46, 0.0 }
 0x132   : > { %v4340_v39 = vpack.c.bf16 %v4279_v18, %v4278_v14  ;;  %v3669_v29 = vmul.f32 0.1, %v3157_v49  ;;  %vm3413_vm6 = vcmp.ge.f32.partialorder %v3157_v49, 0.0  ;;  %v11486_v44 = vsel %vm3412_vm4, %v3156_v41, %v3668_v25  ;;  %v10800_v14 = vld [vmem:[%s11117_s29 + $0x268] sm:$0xff]  }
 0x133   : > { %v10404_v40 = vpop.f32.mrb[36].mxu0  ;;  %v3667_v30 = vmul.f32 0.1, %v3155_v21  ;;  %vm3411_vm7 = vcmp.ge.f32.partialorder %v3155_v21, 0.0  ;;  %v11490_v53 = vsel %vm3410_vm5, %v3154_v46, %v3666_v23 }
 0x134   : > { %v1973_v47 = vpop.f32.mrb[37].mxu0  ;;  %10634 = vmatprep.mubr.msk.bf16.mxu1 %vm4402_vm11, %v4340_v39  ;;  %v2897_v24 = vmul.f32 %v10404_v40, %v11265_v11  ;;  %v11492_v54 = vsel %vm3413_vm6, %v3157_v49, %v3669_v29 }
 0x135   : > { %v10405_v52 = vpop.f32.mrb[38].mxu0  ;;  %10635 = vmatmul.mubr.msk.bf16.gmra.mrb[24].mxu1 %vm4402_vm11, %v4341_v26  ;;  %v2895_v27 = vmul.f32 %v11265_v11, %v1973_v47  ;;  %v11497_v51 = vsel %vm3411_vm7, %v3155_v21, %v3667_v30  ;;  %v10801_v26 = vld [vmem:[%s11117_s29 + $0x270] sm:$0xff]  }
 0x136   : > { %v1976_v22 = vpop.f32.mrb[39].mxu0  ;;  %v3160_v31 = vadd.f32 %v11273_v16, %v2897_v24  ;;  %v2898_v38 = vmul.f32 %v10405_v52, %v11265_v11 }
 0x137   : > { %v3158_v42 = vadd.f32 %v11273_v16, %v2895_v27  ;;  %v2896_v6 = vmul.f32 %v11265_v11, %v1976_v22 }
 0x138   : > { %10511 = vmatmul.mubr.msk.bf16.gmra.mrb[144].mxu0 %vm1410_vm0, %v10796_v17  ;;  %vm3416_vm8 = vcmp.ge.f32.partialorder %v3160_v31, 0.0  ;;  %v3672_v56 = vmul.f32 0.1, %v3160_v31  ;;  %v3161_v48 = vadd.f32 %v11273_v16, %v2898_v38 }
 0x139   : > { %10514 = vmatprep.mubr.msk.bf16.mxu0 %vm1410_vm0, %v10797_v20  ;;  %vm3414_vm12 = vcmp.ge.f32.partialorder %v3158_v42, 0.0  ;;  %v3670_v9 = vmul.f32 0.1, %v3158_v42  ;;  %v3159_v57 = vadd.f32 %v11273_v16, %v2896_v6 }
 0x13a   : > { %v11530_v35 = vsel %vm3416_vm8, %v3160_v31, %v3672_v56  ;;  %vm3417_vm15 = vcmp.ge.f32.partialorder %v3161_v48, 0.0  ;;  %v3673_v17 = vmul.f32 0.1, %v3161_v48 }
 0x13b   : > { %v10408_v33 = vpop.f32.mrb[40].mxu0  ;;  %v11539_v52 = vsel %vm3414_vm12, %v3158_v42, %v3670_v9  ;;  %v3671_v22 = vmul.f32 0.1, %v3159_v57  ;;  %vm3415_vm3 = vcmp.ge.f32.partialorder %v3159_v57, 0.0 }
 0x13c   : > { %v2901_v45 = vmul.f32 %v10408_v33, %v11265_v11  ;;  %v1989_v28 = vpop.f32.mrb[41].mxu0 }
 0x13d   : > { %v2899_v62 = vmul.f32 %v11265_v11, %v1989_v28  ;;  %v10409_v0 = vpop.f32.mrb[42].mxu0 }
 0x13e   : > { %v3164_v1 = vadd.f32 %v11273_v16, %v2901_v45  ;;  %v2902_v5 = vmul.f32 %v10409_v0, %v11265_v11  ;;  %v1992_v43 = vpop.f32.mrb[43].mxu0  ;;  %v11552_v45 = vsel %vm3417_vm15, %v3161_v48, %v3673_v17  ;;  %v11559_v0 = vsel %vm3415_vm3, %v3159_v57, %v3671_v22 }
 0x13f   : > { %v3162_v12 = vadd.f32 %v11273_v16, %v2899_v62  ;;  %v2900_v55 = vmul.f32 %v11265_v11, %v1992_v43  ;;  %v10802_v62 = vld [vmem:[%s11117_s29 + $0x278] sm:$0xff]  }
 0x140   : > { %vm3420_vm9 = vcmp.ge.f32.partialorder %v3164_v1, 0.0  ;;  %v3676_v58 = vmul.f32 0.1, %v3164_v1  ;;  %v3165_v59 = vadd.f32 %v11273_v16, %v2902_v5  ;;  %10515 = vmatmul.mubr.msk.bf16.gmra.mrb[148].mxu0 %vm1410_vm0, %v10798_v50  ;;  %v10803_v5 = vld [vmem:[%s11117_s29 + $0x280] sm:$0xff]  }
 0x141   : > { %vm3418_vm10 = vcmp.ge.f32.partialorder %v3162_v12, 0.0  ;;  %v3674_v13 = vmul.f32 0.1, %v3162_v12  ;;  %v3163_v19 = vadd.f32 %v11273_v16, %v2900_v55  ;;  %10518 = vmatprep.mubr.msk.bf16.mxu0 %vm1410_vm0, %v10799_v36 }
 0x142   : > { %v11510_v61 = vsel %vm3420_vm9, %v3164_v1, %v3676_v58  ;;  %vm3421_vm13 = vcmp.ge.f32.partialorder %v3165_v59, 0.0  ;;  %v3677_v63 = vmul.f32 0.1, %v3165_v59 }
 0x143   : > { %v4156_v3 = vmax.f32 %v11486_v44, %v11510_v61  ;;  %v11514_v60 = vsel %vm3418_vm10, %v3162_v12, %v3674_v13  ;;  %vm3419_vm14 = vcmp.ge.f32.partialorder %v3163_v19, 0.0  ;;  %v3675_v4 = vmul.f32 0.1, %v3163_v19  ;;  %v10412_v8 = vpop.f32.mrb[44].mxu0 }
 0x144   : > { %v4154_v37 = vmax.f32 %v11490_v53, %v11514_v60  ;;  %v11518_v2 = vsel %vm3421_vm13, %v3165_v59, %v3677_v63  ;;  %v2905_v7 = vmul.f32 %v10412_v8, %v11265_v11  ;;  %v2005_v10 = vpop.f32.mrb[45].mxu0 }
 0x145   : > { %v4157_v15 = vmax.f32 %v11492_v54, %v11518_v2  ;;  %v11525_v18 = vsel %vm3419_vm14, %v3163_v19, %v3675_v4  ;;  %v2903_v32 = vmul.f32 %v11265_v11, %v2005_v10  ;;  %v10413_v34 = vpop.f32.mrb[46].mxu0  ;;  %v10804_v4 = vld [vmem:[%s11117_s29 + $0x288] sm:$0xff]  }
 0x146   : > { %v4155_v39 = vmax.f32 %v11497_v51, %v11525_v18  ;;  %v3168_v40 = vadd.f32 %v11273_v16, %v2905_v7  ;;  %v2906_v41 = vmul.f32 %v10413_v34, %v11265_v11  ;;  %v2008_v47 = vpop.f32.mrb[47].mxu0  ;;  %v10805_v7 = vld [vmem:[%s11117_s29 + $0x290] sm:$0xff]  }
 0x147   : > { %v3166_v46 = vadd.f32 %v11273_v16, %v2903_v32  ;;  %v2904_v49 = vmul.f32 %v11265_v11, %v2008_v47 }
 0x148   : > { %vm3424_vm1 = vcmp.ge.f32.partialorder %v3168_v40, 0.0  ;;  %v3680_v20 = vmul.f32 0.1, %v3168_v40  ;;  %v3169_v21 = vadd.f32 %v11273_v16, %v2906_v41  ;;  %10519 = vmatmul.mubr.msk.bf16.gmra.mrb[152].mxu0 %vm1410_vm0, %v10800_v14 }
 0x149   : > { %vm3422_vm2 = vcmp.ge.f32.partialorder %v3166_v46, 0.0  ;;  %v3678_v24 = vmul.f32 0.1, %v3166_v46  ;;  %v3167_v25 = vadd.f32 %v11273_v16, %v2904_v49  ;;  %10522 = vmatprep.mubr.msk.bf16.mxu0 %vm1410_vm0, %v10801_v26 }
 0x14a   : > { %v11545_v23 = vsel %vm3424_vm1, %v3168_v40, %v3680_v20  ;;  %vm3425_vm4 = vcmp.ge.f32.partialorder %v3169_v21, 0.0  ;;  %v3681_v29 = vmul.f32 0.1, %v3169_v21 }
 0x14b   : > { %v4160_v30 = vmax.f32 %v11530_v35, %v11545_v23  ;;  %v11549_v27 = vsel %vm3422_vm2, %v3166_v46, %v3678_v24  ;;  %vm3423_vm5 = vcmp.ge.f32.partialorder %v3167_v25, 0.0  ;;  %v3679_v31 = vmul.f32 0.1, %v3167_v25  ;;  %v10416_v33 = vpop.f32.mrb[48].mxu0 }
 0x14c   : > { %v4158_v28 = vmax.f32 %v11539_v52, %v11549_v27  ;;  %v11556_v50 = vsel %vm3425_vm4, %v3169_v21, %v3681_v29  ;;  %v2021_v38 = vpop.f32.mrb[49].mxu0  ;;  %v2909_v12 = vmul.f32 %v10416_v33, %v11265_v11  ;;  %v10806_v29 = vld [vmem:[%s11117_s29 + $0x298] sm:$0xff]  }
 0x14d   : > { %v4161_v36 = vmax.f32 %v11552_v45, %v11556_v50  ;;  %v11563_v42 = vsel %vm3423_vm5, %v3167_v25, %v3679_v31  ;;  %v10417_v1 = vpop.f32.mrb[50].mxu0  ;;  %v2907_v55 = vmul.f32 %v11265_v11, %v2021_v38 }
 0x14e   : > { %v4159_v43 = vmax.f32 %v11559_v0, %v11563_v42  ;;  %v2024_v6 = vpop.f32.mrb[51].mxu0  ;;  %v2910_v56 = vmul.f32 %v10417_v1, %v11265_v11  ;;  %v3172_v48 = vadd.f32 %v11273_v16, %v2909_v12  ;;  %v10807_v1 = vld [vmem:[%s11117_s29 + $0x2a0] sm:$0xff]  }
 0x14f   : > { %v2908_v58 = vmul.f32 %v11265_v11, %v2024_v6  ;;  %v3170_v13 = vadd.f32 %v11273_v16, %v2907_v55 }
 0x150   : > { %10523 = vmatmul.mubr.msk.bf16.gmra.mrb[156].mxu0 %vm1410_vm0, %v10802_v62  ;;  %v3173_v8 = vadd.f32 %v11273_v16, %v2910_v56  ;;  %v3684_v32 = vmul.f32 0.1, %v3172_v48  ;;  %vm3428_vm6 = vcmp.ge.f32.partialorder %v3172_v48, 0.0 }
 0x151   : > { %10526 = vmatprep.mubr.msk.bf16.mxu0 %vm1410_vm0, %v10803_v5  ;;  %v3171_v10 = vadd.f32 %v11273_v16, %v2908_v58  ;;  %v3682_v34 = vmul.f32 0.1, %v3170_v13  ;;  %vm3426_vm7 = vcmp.ge.f32.partialorder %v3170_v13, 0.0 }
 0x152   : > { %v3685_v40 = vmul.f32 0.1, %v3173_v8  ;;  %vm3429_vm8 = vcmp.ge.f32.partialorder %v3173_v8, 0.0  ;;  %v3940_v20 = vsel %vm3428_vm6, %v3172_v48, %v3684_v32 }
 0x153   : > { %v10420_v59 = vpop.f32.mrb[52].mxu0  ;;  %v3683_v47 = vmul.f32 0.1, %v3171_v10  ;;  %vm3427_vm9 = vcmp.ge.f32.partialorder %v3171_v10, 0.0  ;;  %v3938_v21 = vsel %vm3426_vm7, %v3170_v13, %v3682_v34 }
 0x154   : > { %v2913_v19 = vmul.f32 %v10420_v59, %v11265_v11  ;;  %v2037_v63 = vpop.f32.mrb[53].mxu0  ;;  %v3941_v31 = vsel %vm3429_vm8, %v3173_v8, %v3685_v40 }
 0x155   : > { %v10421_v9 = vpop.f32.mrb[54].mxu0  ;;  %v2911_v14 = vmul.f32 %v11265_v11, %v2037_v63  ;;  %v3939_v5 = vsel %vm3427_vm9, %v3171_v10, %v3683_v47 }
 0x156   : > { %v2040_v57 = vpop.f32.mrb[55].mxu0  ;;  %v3176_v26 = vadd.f32 %v11273_v16, %v2913_v19  ;;  %v2914_v41 = vmul.f32 %v10421_v9, %v11265_v11 }
 0x157   : > { %v3174_v17 = vadd.f32 %v11273_v16, %v2911_v14  ;;  %v2912_v46 = vmul.f32 %v11265_v11, %v2040_v57 }
 0x158   : > { %10527 = vmatmul.mubr.msk.bf16.gmra.mrb[160].mxu0 %vm1410_vm0, %v10804_v4  ;;  %v3688_v22 = vmul.f32 0.1, %v3176_v26  ;;  %vm3432_vm10 = vcmp.ge.f32.partialorder %v3176_v26, 0.0  ;;  %v11591_v33 = vadd.f32 %v11273_v16, %v2914_v41 }
 0x159   : > { %10530 = vmatprep.mubr.msk.bf16.mxu0 %vm1410_vm0, %v10805_v7  ;;  %v3686_v6 = vmul.f32 0.1, %v3174_v17  ;;  %vm3430_vm12 = vcmp.ge.f32.partialorder %v3174_v17, 0.0  ;;  %v11598_v58 = vadd.f32 %v11273_v16, %v2912_v46 }
 0x15a   : > { %v11602_v13 = vsel %vm3432_vm10, %v3176_v26, %v3688_v22  ;;  %vm3433_vm14 = vcmp.ge.f32.partialorder %v11591_v33, 0.0  ;;  %v3689_v4 = vmul.f32 0.1, %v11591_v33 }
 0x15b   : > { %v10424_v49 = vpop.f32.mrb[56].mxu0  ;;  %v11610_v7 = vsel %vm3430_vm12, %v3174_v17, %v3686_v6  ;;  %vm3431_vm3 = vcmp.ge.f32.partialorder %v11598_v58, 0.0 }
 0x15c   : > { %v2917_v24 = vmul.f32 %v10424_v49, %v11265_v11  ;;  %v2053_v25 = vpop.f32.mrb[57].mxu0  ;;  %v10808_v49 = vld [vmem:[%s11117_s29 + $0x2a8] sm:$0xff]   ;;  %v3945_v18 = vsel %vm3433_vm14, %v11591_v33, %v3689_v4  ;;  %v10811_v4 = vld [vmem:[%s11117_s29 + $0x2c0] sm:$0xff]  }
 0x15d   : > { %v2915_v38 = vmul.f32 %v11265_v11, %v2053_v25  ;;  %v10425_v62 = vpop.f32.mrb[58].mxu0 }
 0x15e   : > { %v3180_v12 = vadd.f32 %v11273_v16, %v2917_v24  ;;  %v2918_v55 = vmul.f32 %v10425_v62, %v11265_v11  ;;  %v2056_v56 = vpop.f32.mrb[59].mxu0 }
 0x15f   : > { %v3178_v59 = vadd.f32 %v11273_v16, %v2915_v38  ;;  %v2916_v48 = vmul.f32 %v11265_v11, %v2056_v56 }
 0x160   : > { %vm3436_vm13 = vcmp.ge.f32.partialorder %v3180_v12, 0.0  ;;  %v3692_v19 = vmul.f32 0.1, %v3180_v12  ;;  %v3181_v63 = vadd.f32 %v11273_v16, %v2918_v55  ;;  %10531 = vmatmul.mubr.msk.bf16.gmra.mrb[164].mxu0 %vm1410_vm0, %v10806_v29  ;;  %v10809_v29 = vld [vmem:[%s11117_s29 + $0x2b0] sm:$0xff]  }
 0x161   : > { %vm3434_vm15 = vcmp.ge.f32.partialorder %v3178_v59, 0.0  ;;  %v3690_v8 = vmul.f32 0.1, %v3178_v59  ;;  %v3179_v9 = vadd.f32 %v11273_v16, %v2916_v48  ;;  %10534 = vmatprep.mubr.msk.bf16.mxu0 %vm1410_vm0, %v10807_v1 }
 0x162   : > { %v3948_v10 = vsel %vm3436_vm13, %v3180_v12, %v3692_v19  ;;  %vm3437_vm1 = vcmp.ge.f32.partialorder %v3181_v63, 0.0  ;;  %v3693_v14 = vmul.f32 0.1, %v3181_v63  ;;  %v10810_v19 = vld [vmem:[%s11117_s29 + $0x2b8] sm:$0xff]  }
 0x163   : > { %v4220_v57 = vmax.f32 %v3940_v20, %v3948_v10  ;;  %v3946_v32 = vsel %vm3434_vm15, %v3178_v59, %v3690_v8  ;;  %vm3435_vm2 = vcmp.ge.f32.partialorder %v3179_v9, 0.0  ;;  %v3691_v34 = vmul.f32 0.1, %v3179_v9  ;;  %v10428_v26 = vpop.f32.mrb[60].mxu0 }
 0x164   : > { %v4218_v40 = vmax.f32 %v3938_v21, %v3946_v32  ;;  %v3949_v41 = vsel %vm3437_vm1, %v3181_v63, %v3693_v14  ;;  %v2921_v47 = vmul.f32 %v10428_v26, %v11265_v11  ;;  %v2069_v46 = vpop.f32.mrb[61].mxu0  ;;  %v11645_v63 = vpop.f32.mrb[0].mxu1 }
 0x165   : > { %v4221_v22 = vmax.f32 %v3941_v31, %v3949_v41  ;;  %v3947_v17 = vsel %vm3435_vm2, %v3179_v9, %v3691_v34  ;;  %v2919_v24 = vmul.f32 %v11265_v11, %v2069_v46  ;;  %v10429_v25 = vpop.f32.mrb[62].mxu0  ;;  %v4284_v20 = vmax.f32 %v4156_v3, %v4220_v57 }
 0x166   : > { %v4219_v38 = vmax.f32 %v3939_v5, %v3947_v17  ;;  %v3184_v62 = vadd.f32 %v11273_v16, %v2921_v47  ;;  %v2922_v21 = vmul.f32 %v10429_v25, %v11265_v11  ;;  %v2072_v1 = vpop.f32.mrb[63].mxu0  ;;  %v4282_v6 = vmax.f32 %v4154_v37, %v4218_v40  ;;  %v11690_v47 = vld [vmem:[%s15815_s3] ss:$0 sm:$0xff] }
 0x167   : > { %v3687_v31 = vmul.f32 0.1, %v11598_v58  ;;  %v3182_v12 = vadd.f32 %v11273_v16, %v2919_v24  ;;  %v2920_v55 = vmul.f32 %v11265_v11, %v2072_v1  ;;  %v4285_v44 = vmax.f32 %v4157_v15, %v4221_v22  ;;  %v10812_v24 = vld [vmem:[%s11117_s29 + $0x2c8] sm:$0xff]  }
 0x168   : > { %vm3440_vm4 = vcmp.ge.f32.partialorder %v3184_v62, 0.0  ;;  %v3696_v61 = vmul.f32 0.1, %v3184_v62  ;;  %v3185_v3 = vadd.f32 %v11273_v16, %v2922_v21  ;;  %10535 = vmatmul.mubr.msk.bf16.gmra.mrb[168].mxu0 %vm1410_vm0, %v10808_v49  ;;  %v4283_v53 = vmax.f32 %v4155_v39, %v4219_v38 }
 0x169   : > { %vm3438_vm5 = vcmp.ge.f32.partialorder %v3182_v12, 0.0  ;;  %v3694_v60 = vmul.f32 0.1, %v3182_v12  ;;  %v3183_v37 = vadd.f32 %v11273_v16, %v2920_v55  ;;  %v4343_v5 = vpack.c.bf16 %v4285_v44, %v4284_v20  ;;  %10538 = vmatprep.mubr.msk.bf16.mxu0 %vm1410_vm0, %v10809_v29 }
 0x16a   : > { %v3952_v11 = vsel %vm3440_vm4, %v3184_v62, %v3696_v61  ;;  %vm3441_vm6 = vcmp.ge.f32.partialorder %v3185_v3, 0.0  ;;  %v3697_v54 = vmul.f32 0.1, %v3185_v3  ;;  %v4342_v2 = vpack.c.bf16 %v4283_v53, %v4282_v6  ;;  %v10813_v62 = vld [vmem:[%s11117_s29 + $0x2d0] sm:$0xff]  }
 0x16b   : > { %v4224_v15 = vmax.f32 %v11602_v13, %v3952_v11  ;;  %v3950_v56 = vsel %vm3438_vm5, %v3182_v12, %v3694_v60  ;;  %vm3439_vm7 = vcmp.ge.f32.partialorder %v3183_v37, 0.0  ;;  %v3695_v59 = vmul.f32 0.1, %v3183_v37  ;;  %v10432_v51 = vpop.f32.mrb[64].mxu0 }
 0x16c   : > { %v4222_v16 = vmax.f32 %v11610_v7, %v3950_v56  ;;  %v3953_v39 = vsel %vm3441_vm6, %v3185_v3, %v3697_v54  ;;  %v2085_v48 = vpop.f32.mrb[65].mxu0  ;;  %10638 = vmatprep.mubr.msk.bf16.mxu1 %vm4402_vm11, %v4342_v2  ;;  %v3943_v13 = vsel %vm3431_vm3, %v11598_v58, %v3687_v31  ;;  %v11655_v7 = vpop.f32.mrb[1].mxu1  ;;  %v11665_v58 = vld [vmem:[%s15814_s2] ss:$0 sm:$0xff] }
 0x16d   : > { %v4225_v8 = vmax.f32 %v3945_v18, %v3953_v39  ;;  %v3951_v9 = vsel %vm3439_vm7, %v3183_v37, %v3695_v59  ;;  %v10433_v10 = vpop.f32.mrb[66].mxu0  ;;  %10639 = vmatmul.mubr.msk.bf16.gmra.mrb[28].mxu1 %vm4402_vm11, %v4343_v5  ;;  %v4288_v33 = vmax.f32 %v4160_v30, %v4224_v15  ;;  %15857 = vst [vmem:[#allocation3_spill] sm:$0xff] %v11655_v7  ;;  %v11660_v34 = vpop.f32.mrb[2].mxu1 }
 0x16e   : > { %v4223_v14 = vmax.f32 %v3943_v13, %v3951_v9  ;;  %v2088_v57 = vpop.f32.mrb[67].mxu0  ;;  %v4286_v32 = vmax.f32 %v4158_v28, %v4222_v16  ;;  %15858 = vst [vmem:[#allocation4_spill] sm:$0xff] %v11660_v34  ;;  %v2925_v26 = vmul.f32 %v11665_v58, %v10432_v51  ;;  %v11671_v23 = vpop.f32.mrb[3].mxu1  ;;  %v2923_v30 = vmul.f32 %v11665_v58, %v2085_v48  ;;  %v10814_v13 = vld [vmem:[%s11117_s29 + $0x2d8] sm:$0xff]   ;;  %v10824_v34 = vld [vmem:[%s11117_s29 + $0x328] sm:$0xff]  }
 0x16f   : > { %v4289_v35 = vmax.f32 %v4161_v36, %v4225_v8  ;;  %15859 = vst [vmem:[#allocation5_spill] sm:$0xff] %v11671_v23  ;;  %v2926_v52 = vmul.f32 %v11665_v58, %v10433_v10  ;;  %v11679_v28 = vpop.f32.mrb[4].mxu1  ;;  %v2924_v40 = vmul.f32 %v11665_v58, %v2088_v57  ;;  %v10815_v57 = vld [vmem:[%s11117_s29 + $0x2e0] sm:$0xff]  }
 0x170   : > { %10539 = vmatmul.mubr.msk.bf16.gmra.mrb[172].mxu0 %vm1410_vm0, %v10810_v19  ;;  %v4287_v27 = vmax.f32 %v4159_v43, %v4223_v14  ;;  %v11683_v45 = vpop.f32.mrb[5].mxu1  ;;  %v3188_v0 = vadd.f32 %v11690_v47, %v2925_v26  ;;  %v3186_v46 = vadd.f32 %v11690_v47, %v2923_v30 }
 0x171   : > { %v4345_v41 = vpack.c.bf16 %v4289_v35, %v4288_v33  ;;  %10542 = vmatprep.mubr.msk.bf16.mxu0 %vm1410_vm0, %v10811_v4  ;;  %v11685_v36 = vpop.f32.mrb[6].mxu1  ;;  %v3189_v49 = vadd.f32 %v11690_v47, %v2926_v52  ;;  %v3187_v20 = vadd.f32 %v11690_v47, %v2924_v40 }
 0x172   : > { %v4344_v50 = vpack.c.bf16 %v4287_v27, %v4286_v32  ;;  %v11693_v43 = vpop.f32.mrb[7].mxu1  ;;  %v3700_v55 = vmul.f32 0.1, %v3188_v0  ;;  %vm3444_vm8 = vcmp.ge.f32.partialorder %v3188_v0, 0.0  ;;  %v3698_v53 = vmul.f32 0.1, %v3186_v46 }
 0x173   : > { %v10436_v42 = vpop.f32.mrb[68].mxu0  ;;  %v11700_v25 = vpop.f32.mrb[8].mxu1  ;;  %v3701_v60 = vmul.f32 0.1, %v3189_v49  ;;  %vm3442_vm9 = vcmp.ge.f32.partialorder %v3186_v46, 0.0  ;;  %vm3445_vm10 = vcmp.ge.f32.partialorder %v3189_v49, 0.0 }
 0x174   : > { %v2929_v22 = vmul.f32 %v11665_v58, %v10436_v42  ;;  %v2101_v17 = vpop.f32.mrb[69].mxu0  ;;  %10642 = vmatprep.mubr.msk.bf16.mxu1 %vm4402_vm11, %v4344_v50  ;;  %v11706_v21 = vpop.f32.mrb[9].mxu1  ;;  %v3699_v5 = vmul.f32 0.1, %v3187_v20  ;;  %vm3443_vm12 = vcmp.ge.f32.partialorder %v3187_v20, 0.0  ;;  %v11731_v16 = vsel %vm3444_vm8, %v3188_v0, %v3700_v55 }
 0x175   : > { %v2927_v29 = vmul.f32 %v11665_v58, %v2101_v17  ;;  %v10437_v38 = vpop.f32.mrb[70].mxu0  ;;  %10643 = vmatmul.mubr.msk.bf16.gmra.mrb[32].mxu1 %vm4402_vm11, %v4345_v41  ;;  %v11710_v12 = vpop.f32.mrb[10].mxu1  ;;  %v11733_v39 = vsel %vm3442_vm9, %v3186_v46, %v3698_v53  ;;  %v11740_v9 = vsel %vm3445_vm10, %v3189_v49, %v3701_v60  ;;  %v10816_v53 = vld [vmem:[%s11117_s29 + $0x2e8] sm:$0xff]   ;;  %v3099_v60 = vmul.f32 %v11665_v58, %v11683_v45 }
 0x176   : > { %v3192_v1 = vadd.f32 %v11690_v47, %v2929_v22  ;;  %v2930_v6 = vmul.f32 %v11665_v58, %v10437_v38  ;;  %v2104_v31 = vpop.f32.mrb[71].mxu0  ;;  %v11714_v3 = vpop.f32.mrb[11].mxu1  ;;  %v11743_v10 = vsel %vm3443_vm12, %v3187_v20, %v3699_v5  ;;  %v3102_v45 = vmul.f32 %v11665_v58, %v11685_v36 }
 0x177   : > { %v3190_v44 = vadd.f32 %v11690_v47, %v2927_v29  ;;  %v2928_v61 = vmul.f32 %v11665_v58, %v2104_v31  ;;  %v11717_v37 = vpop.f32.mrb[12].mxu1  ;;  %v3362_v36 = vadd.f32 %v11690_v47, %v3099_v60 }
 0x178   : > { %10543 = vmatmul.mubr.msk.bf16.gmra.mrb[176].mxu0 %vm1410_vm0, %v10812_v24  ;;  %v3704_v11 = vmul.f32 0.1, %v3192_v1  ;;  %v11720_v54 = vpop.f32.mrb[13].mxu1  ;;  %vm3448_vm13 = vcmp.ge.f32.partialorder %v3192_v1, 0.0  ;;  %v3193_v2 = vadd.f32 %v11690_v47, %v2930_v6  ;;  %v3101_v24 = vmul.f32 %v11665_v58, %v11679_v28 }
 0x179   : > { %10546 = vmatprep.mubr.msk.bf16.mxu0 %vm1410_vm0, %v10813_v62  ;;  %v11723_v15 = vpop.f32.mrb[14].mxu1  ;;  %v3702_v56 = vmul.f32 0.1, %v3190_v44  ;;  %v11726_v59 = vadd.f32 %v11690_v47, %v2928_v61  ;;  %vm3446_vm14 = vcmp.ge.f32.partialorder %v3190_v44, 0.0  ;;  %vm3618_vm12 = vcmp.ge.f32.partialorder %v3362_v36, 0.0 }
 0x17a   : > { %v11728_v18 = vpop.f32.mrb[15].mxu1  ;;  %v11746_v33 = vsel %vm3448_vm13, %v3192_v1, %v3704_v11  ;;  %vm3449_vm15 = vcmp.ge.f32.partialorder %v3193_v2, 0.0  ;;  %v3705_v26 = vmul.f32 0.1, %v3193_v2 }
 0x17b   : > { %v10440_v51 = vpop.f32.mrb[72].mxu0  ;;  %v11737_v8 = vpop.f32.mrb[16].mxu1  ;;  %v11757_v40 = vsel %vm3446_vm14, %v3190_v44, %v3702_v56  ;;  %vm3447_vm1 = vcmp.ge.f32.partialorder %v11726_v59, 0.0  ;;  %v3703_v42 = vmul.f32 0.1, %v11726_v59 }
 0x17c   : > { %v2933_v48 = vmul.f32 %v11665_v58, %v10440_v51  ;;  %v2117_v19 = vpop.f32.mrb[73].mxu0  ;;  %v11750_v32 = vpop.f32.mrb[17].mxu1  ;;  %v11772_v20 = vsel %vm3449_vm15, %v3193_v2, %v3705_v26  ;;  %v10817_v51 = vld [vmem:[%s11117_s29 + $0x2f0] sm:$0xff]  }
 0x17d   : > { %v2931_v4 = vmul.f32 %v11665_v58, %v2117_v19  ;;  %v10441_v14 = vpop.f32.mrb[74].mxu0  ;;  %v11754_v27 = vpop.f32.mrb[18].mxu1 }
 0x17e   : > { %v3196_v35 = vadd.f32 %v11690_v47, %v2933_v48  ;;  %v2934_v30 = vmul.f32 %v11665_v58, %v10441_v14  ;;  %v2120_v52 = vpop.f32.mrb[75].mxu0  ;;  %v11762_v0 = vpop.f32.mrb[19].mxu1  ;;  %v3364_v48 = vadd.f32 %v11690_v47, %v3101_v24 }
 0x17f   : > { %v3194_v41 = vadd.f32 %v11690_v47, %v2931_v4  ;;  %v2932_v50 = vmul.f32 %v11665_v58, %v2120_v52 }
 0x180   : > { %vm3452_vm2 = vcmp.ge.f32.partialorder %v3196_v35, 0.0  ;;  %v3708_v46 = vmul.f32 0.1, %v3196_v35  ;;  %v3197_v49 = vadd.f32 %v11690_v47, %v2934_v30  ;;  %10547 = vmatmul.mubr.msk.bf16.gmra.mrb[180].mxu0 %vm1410_vm0, %v10814_v13  ;;  %v3100_v30 = vmul.f32 %v11665_v58, %v11693_v43 }
 0x181   : > { %vm3450_vm3 = vcmp.ge.f32.partialorder %v3194_v41, 0.0  ;;  %v3706_v22 = vmul.f32 0.1, %v3194_v41  ;;  %v3195_v17 = vadd.f32 %v11690_v47, %v2932_v50  ;;  %10550 = vmatprep.mubr.msk.bf16.mxu0 %vm1410_vm0, %v10815_v57  ;;  %v11804_v57 = vsel %vm3447_vm1, %v11726_v59, %v3703_v42 }
 0x182   : > { %v11774_v29 = vsel %vm3452_vm2, %v3196_v35, %v3708_v46  ;;  %vm3453_vm4 = vcmp.ge.f32.partialorder %v3197_v49, 0.0  ;;  %v3709_v38 = vmul.f32 0.1, %v3197_v49  ;;  %vm3620_vm8 = vcmp.ge.f32.partialorder %v3364_v48, 0.0 }
 0x183   : > { %v11778_v1 = vsel %vm3450_vm3, %v3194_v41, %v3706_v22  ;;  %vm3451_vm5 = vcmp.ge.f32.partialorder %v3195_v17, 0.0  ;;  %v3707_v6 = vmul.f32 0.1, %v3195_v17  ;;  %v10444_v31 = vpop.f32.mrb[76].mxu0  ;;  %v3365_v46 = vadd.f32 %v11690_v47, %v3102_v45 }
 0x184   : > { %v11782_v28 = vsel %vm3453_vm4, %v3197_v49, %v3709_v38  ;;  %v2937_v44 = vmul.f32 %v11665_v58, %v10444_v31  ;;  %v2133_v61 = vpop.f32.mrb[77].mxu0 }
 0x185   : > { %v11790_v11 = vsel %vm3451_vm5, %v3195_v17, %v3707_v6  ;;  %v2935_v2 = vmul.f32 %v11665_v58, %v2133_v61  ;;  %v10445_v56 = vpop.f32.mrb[78].mxu0  ;;  %v10818_v61 = vld [vmem:[%s11117_s29 + $0x2f8] sm:$0xff]   ;;  %vm3621_vm13 = vcmp.ge.f32.partialorder %v3365_v46, 0.0 }
 0x186   : > { %v3200_v13 = vadd.f32 %v11690_v47, %v2937_v44  ;;  %v2938_v4 = vmul.f32 %v11665_v58, %v10445_v56  ;;  %v2136_v14 = vpop.f32.mrb[79].mxu0 }
 0x187   : > { %v3198_v26 = vadd.f32 %v11690_v47, %v2935_v2  ;;  %v2936_v35 = vmul.f32 %v11665_v58, %v2136_v14  ;;  %v10821_v14 = vld [vmem:[%s11117_s29 + $0x310] sm:$0xff]  }
 0x188   : > { %vm3456_vm6 = vcmp.ge.f32.partialorder %v3200_v13, 0.0  ;;  %v3712_v52 = vmul.f32 0.1, %v3200_v13  ;;  %v3201_v41 = vadd.f32 %v11690_v47, %v2938_v4  ;;  %10551 = vmatmul.mubr.msk.bf16.gmra.mrb[184].mxu0 %vm1410_vm0, %v10816_v53  ;;  %v3363_v53 = vadd.f32 %v11690_v47, %v3100_v30 }
 0x189   : > { %vm3454_vm7 = vcmp.ge.f32.partialorder %v3198_v26, 0.0  ;;  %v3710_v50 = vmul.f32 0.1, %v3198_v26  ;;  %v3199_v59 = vadd.f32 %v11690_v47, %v2936_v35  ;;  %10554 = vmatprep.mubr.msk.bf16.mxu0 %vm1410_vm0, %v10817_v51  ;;  %v3876_v4 = vmul.f32 0.1, %v3364_v48 }
 0x18a   : > { %v11815_v42 = vsel %vm3456_vm6, %v3200_v13, %v3712_v52  ;;  %vm3457_vm9 = vcmp.ge.f32.partialorder %v3201_v41, 0.0  ;;  %v3713_v43 = vmul.f32 0.1, %v3201_v41  ;;  %v10819_v13 = vld [vmem:[%s11117_s29 + $0x300] sm:$0xff]   ;;  %v3874_v35 = vmul.f32 0.1, %v3362_v36 }
 0x18b   : > { %v11820_v22 = vsel %vm3454_vm7, %v3198_v26, %v3710_v50  ;;  %vm3455_vm10 = vcmp.ge.f32.partialorder %v3199_v59, 0.0  ;;  %v3711_v17 = vmul.f32 0.1, %v3199_v59  ;;  %v10448_v24 = vpop.f32.mrb[80].mxu0  ;;  %v3105_v50 = vmul.f32 %v11665_v58, %v11700_v25 }
 0x18c   : > { %v11824_v6 = vsel %vm3457_vm9, %v3201_v41, %v3713_v43  ;;  %v2941_v31 = vmul.f32 %v11665_v58, %v10448_v24  ;;  %v2149_v44 = vpop.f32.mrb[81].mxu0  ;;  %v3877_v41 = vmul.f32 0.1, %v3365_v46  ;;  %v3875_v43 = vmul.f32 0.1, %v3363_v53 }
 0x18d   : > { %v11831_v2 = vsel %vm3455_vm10, %v3199_v59, %v3711_v17  ;;  %v2939_v56 = vmul.f32 %v11665_v58, %v2149_v44  ;;  %v10449_v51 = vpop.f32.mrb[82].mxu0  ;;  %v3103_v17 = vmul.f32 %v11665_v58, %v11706_v21  ;;  %vm3619_vm14 = vcmp.ge.f32.partialorder %v3363_v53, 0.0 }
 0x18e   : > { %v2942_v45 = vmul.f32 %v11665_v58, %v10449_v51  ;;  %v2152_v26 = vpop.f32.mrb[83].mxu0  ;;  %v3204_v30 = vadd.f32 %v11690_v47, %v2941_v31  ;;  %v11850_v44 = vsel %vm3620_vm8, %v3364_v48, %v3876_v4  ;;  %v11853_v25 = vsel %vm3618_vm12, %v3362_v36, %v3874_v35  ;;  %v10820_v48 = vld [vmem:[%s11117_s29 + $0x308] sm:$0xff]  }
 0x18f   : > { %v2940_v52 = vmul.f32 %v11665_v58, %v2152_v26  ;;  %v3202_v59 = vadd.f32 %v11690_v47, %v2939_v56  ;;  %v11856_v51 = vsel %vm3621_vm13, %v3365_v46, %v3877_v41  ;;  %v11861_v4 = vsel %vm3619_vm14, %v3363_v53, %v3875_v43 }
 0x190   : > { %10555 = vmatmul.mubr.msk.bf16.gmra.mrb[188].mxu0 %vm1410_vm0, %v10818_v61  ;;  %v3205_v24 = vadd.f32 %v11690_v47, %v2942_v45  ;;  %v3368_v61 = vadd.f32 %v11690_v47, %v3105_v50  ;;  %vm3460_vm15 = vcmp.ge.f32.partialorder %v3204_v30, 0.0  ;;  %v3716_v56 = vmul.f32 0.1, %v3204_v30  ;;  %15860 = vst [vmem:[#allocation6_spill] sm:$0xff] %v11856_v51  ;;  %15861 = vst [vmem:[#allocation7_spill] sm:$0xff] %v11861_v4 }
 0x191   : > { %v3203_v31 = vadd.f32 %v11690_v47, %v2940_v52  ;;  %10558 = vmatprep.mubr.msk.bf16.mxu0 %vm1410_vm0, %v10819_v13  ;;  %v3366_v45 = vadd.f32 %v11690_v47, %v3103_v17  ;;  %vm3458_vm1 = vcmp.ge.f32.partialorder %v3202_v59, 0.0  ;;  %v3714_v26 = vmul.f32 0.1, %v3202_v59 }
 0x192   : > { %vm3461_vm2 = vcmp.ge.f32.partialorder %v3205_v24, 0.0  ;;  %v3717_v36 = vmul.f32 0.1, %v3205_v24  ;;  %vm3624_vm4 = vcmp.ge.f32.partialorder %v3368_v61, 0.0  ;;  %v3880_v53 = vmul.f32 0.1, %v3368_v61 }
 0x193   : > { %v10452_v21 = vpop.f32.mrb[84].mxu0  ;;  %vm3459_vm3 = vcmp.ge.f32.partialorder %v3203_v31, 0.0  ;;  %v3715_v60 = vmul.f32 0.1, %v3203_v31  ;;  %v3878_v43 = vmul.f32 0.1, %v3366_v45 }
 0x194   : > { %v2945_v13 = vmul.f32 %v11665_v58, %v10452_v21  ;;  %v2165_v52 = vpop.f32.mrb[85].mxu0  ;;  %vm3622_vm5 = vcmp.ge.f32.partialorder %v3366_v45, 0.0 }
 0x195   : > { %v2943_v35 = vmul.f32 %v11665_v58, %v2165_v52  ;;  %v10453_v50 = vpop.f32.mrb[86].mxu0  ;;  %v3106_v52 = vmul.f32 %v11665_v58, %v11710_v12 }
 0x196   : > { %v3208_v46 = vadd.f32 %v11690_v47, %v2945_v13  ;;  %v2946_v41 = vmul.f32 %v11665_v58, %v10453_v50  ;;  %v2168_v17 = vpop.f32.mrb[87].mxu0  ;;  %v3104_v13 = vmul.f32 %v11665_v58, %v11714_v3  ;;  %v11876_v50 = vsel %vm3460_vm15, %v3204_v30, %v3716_v56 }
 0x197   : > { %v3206_v21 = vadd.f32 %v11690_v47, %v2943_v35  ;;  %v2944_v38 = vmul.f32 %v11665_v58, %v2168_v17  ;;  %v11879_v35 = vsel %vm3458_vm1, %v3202_v59, %v3714_v26  ;;  %v11889_v3 = vsel %vm3459_vm3, %v3203_v31, %v3715_v60 }
 0x198   : > { %v3209_v49 = vadd.f32 %v11690_v47, %v2946_v41  ;;  %10559 = vmatmul.mubr.msk.bf16.gmra.mrb[192].mxu0 %vm1410_vm0, %v10820_v48  ;;  %v3720_v17 = vmul.f32 0.1, %v3208_v46  ;;  %v11883_v48 = vsel %vm3461_vm2, %v3205_v24, %v3717_v36  ;;  %vm3464_vm6 = vcmp.ge.f32.partialorder %v3208_v46, 0.0  ;;  %v10822_v36 = vld [vmem:[%s11117_s29 + $0x318] sm:$0xff]  }
 0x199   : > { %v3718_v19 = vmul.f32 0.1, %v3206_v21  ;;  %10562 = vmatprep.mubr.msk.bf16.mxu0 %vm1410_vm0, %v10821_v14  ;;  %vm3462_vm7 = vcmp.ge.f32.partialorder %v3206_v21, 0.0  ;;  %v11886_v12 = vadd.f32 %v11690_v47, %v2944_v38  ;;  %v11892_v56 = vsel %vm3624_vm4, %v3368_v61, %v3880_v53 }
 0x19a   : > { %v3721_v30 = vmul.f32 0.1, %v3209_v49  ;;  %v11895_v26 = vsel %vm3622_vm5, %v3366_v45, %v3878_v43  ;;  %vm3465_vm8 = vcmp.ge.f32.partialorder %v3209_v49, 0.0  ;;  %v11900_v38 = vadd.f32 %v11690_v47, %v3106_v52  ;;  %v10823_v45 = vld [vmem:[%s11117_s29 + $0x320] sm:$0xff]  }
 0x19b   : > { %v10456_v59 = vpop.f32.mrb[88].mxu0  ;;  %v11903_v41 = vadd.f32 %v11690_v47, %v3104_v13  ;;  %v11905_v60 = vsel %vm3464_vm6, %v3208_v46, %v3720_v17  ;;  %v11907_v31 = vsel %vm3462_vm7, %v3206_v21, %v3718_v19  ;;  %v3109_v43 = vmul.f32 %v11665_v58, %v11717_v37 }
 0x19c   : > { %v2949_v14 = vmul.f32 %v11665_v58, %v10456_v59  ;;  %v2181_v24 = vpop.f32.mrb[89].mxu0  ;;  %v11914_v59 = vmul.f32 0.1, %v11886_v12  ;;  %v3107_v46 = vmul.f32 %v11665_v58, %v11720_v54  ;;  %v11921_v19 = vsel %vm3465_vm8, %v3209_v49, %v3721_v30 }
 0x19d   : > { %v2947_v61 = vmul.f32 %v11665_v58, %v2181_v24  ;;  %v10457_v53 = vpop.f32.mrb[90].mxu0  ;;  %v3372_v37 = vadd.f32 %v11690_v47, %v3109_v43  ;;  %vm3463_vm10 = vcmp.ge.f32.partialorder %v11886_v12, 0.0  ;;  %vm3625_vm6 = vcmp.ge.f32.partialorder %v11900_v38, 0.0 }
 0x19e   : > { %v3212_v52 = vadd.f32 %v11690_v47, %v2949_v14  ;;  %v2950_v5 = vmul.f32 %v11665_v58, %v10457_v53  ;;  %v2184_v13 = vpop.f32.mrb[91].mxu0  ;;  %v11929_v14 = vadd.f32 %v11690_v47, %v3107_v46 }
 0x19f   : > { %v3210_v21 = vadd.f32 %v11690_v47, %v2947_v61  ;;  %v2948_v17 = vmul.f32 %v11665_v58, %v2184_v13  ;;  %vm3628_vm13 = vcmp.ge.f32.partialorder %v3372_v37, 0.0  ;;  %v3884_v53 = vmul.f32 0.1, %v3372_v37 }
 0x1a0   : > { %vm3468_vm9 = vcmp.ge.f32.partialorder %v3212_v52, 0.0  ;;  %v3724_v24 = vmul.f32 0.1, %v3212_v52  ;;  %v3213_v55 = vadd.f32 %v11690_v47, %v2950_v5  ;;  %10563 = vmatmul.mubr.msk.bf16.gmra.mrb[196].mxu0 %vm1410_vm0, %v10822_v36  ;;  %vm3626_vm5 = vcmp.ge.f32.partialorder %v11929_v14, 0.0 }
 0x1a1   : > { %vm3466_vm12 = vcmp.ge.f32.partialorder %v3210_v21, 0.0  ;;  %v3722_v54 = vmul.f32 0.1, %v3210_v21  ;;  %v3211_v49 = vadd.f32 %v11690_v47, %v2948_v17  ;;  %10566 = vmatprep.mubr.msk.bf16.mxu0 %vm1410_vm0, %v10823_v45  ;;  %v11938_v45 = vsel %vm3628_vm13, %v3372_v37, %v3884_v53 }
 0x1a2   : > { %v3980_v30 = vsel %vm3468_vm9, %v3212_v52, %v3724_v24  ;;  %vm3469_vm14 = vcmp.ge.f32.partialorder %v3213_v55, 0.0  ;;  %v3725_v61 = vmul.f32 0.1, %v3213_v55  ;;  %15862 = vst [vmem:[#allocation8_spill] sm:$0xff] %v11938_v45  ;;  %v15864_v37 = vmax.f32 %v11733_v39, %v11778_v1 }
 0x1a3   : > { %v4228_v5 = vmax.f32 %v11876_v50, %v3980_v30  ;;  %v3978_v36 = vsel %vm3466_vm12, %v3210_v21, %v3722_v54  ;;  %vm3467_vm15 = vcmp.ge.f32.partialorder %v3211_v49, 0.0  ;;  %v3723_v43 = vmul.f32 0.1, %v3211_v49  ;;  %v10460_v13 = vpop.f32.mrb[92].mxu0  ;;  %v10825_v30 = vld [vmem:[%s11117_s29 + $0x330] sm:$0xff]  }
 0x1a4   : > { %v4226_v46 = vmax.f32 %v11879_v35, %v3978_v36  ;;  %v3981_v62 = vsel %vm3469_vm14, %v3213_v55, %v3725_v61  ;;  %v2953_v17 = vmul.f32 %v11665_v58, %v10460_v13  ;;  %v2197_v23 = vpop.f32.mrb[93].mxu0  ;;  %v15863_v21 = vmax.f32 %v11731_v16, %v11774_v29 }
 0x1a5   : > { %v4229_v52 = vmax.f32 %v11883_v48, %v3981_v62  ;;  %v3979_v24 = vsel %vm3467_vm15, %v3211_v49, %v3723_v43  ;;  %v2951_v7 = vmul.f32 %v11665_v58, %v2197_v23  ;;  %v10461_v50 = vpop.f32.mrb[94].mxu0  ;;  %v15865_v16 = vmax.f32 %v11740_v9, %v11782_v28 }
 0x1a6   : > { %v4292_v54 = vmax.f32 %v15863_v21, %v4228_v5  ;;  %v4227_v35 = vmax.f32 %v11889_v3, %v3979_v24  ;;  %v3216_v55 = vadd.f32 %v11690_v47, %v2953_v17  ;;  %v2954_v61 = vmul.f32 %v11665_v58, %v10461_v50  ;;  %v2200_v36 = vpop.f32.mrb[95].mxu0 }
 0x1a7   : > { %v4290_v62 = vmax.f32 %v15864_v37, %v4226_v46  ;;  %v3214_v48 = vadd.f32 %v11690_v47, %v2951_v7  ;;  %v2952_v23 = vmul.f32 %v11665_v58, %v2200_v36  ;;  %v4293_v29 = vmax.f32 %v15865_v16, %v4229_v52  ;;  %v10827_v36 = vld [vmem:[%s11117_s29 + $0x340] sm:$0xff]  }
 0x1a8   : > { %vm3472_vm1 = vcmp.ge.f32.partialorder %v3216_v55, 0.0  ;;  %v3728_v49 = vmul.f32 0.1, %v3216_v55  ;;  %v3217_v53 = vadd.f32 %v11690_v47, %v2954_v61  ;;  %10567 = vmatmul.mubr.msk.bf16.gmra.mrb[200].mxu0 %vm1410_vm0, %v10824_v34  ;;  %v15866_v39 = vmax.f32 %v11743_v10, %v11790_v11 }
 0x1a9   : > { %vm3470_vm2 = vcmp.ge.f32.partialorder %v3214_v48, 0.0  ;;  %v3726_v7 = vmul.f32 0.1, %v3214_v48  ;;  %v3215_v5 = vadd.f32 %v11690_v47, %v2952_v23  ;;  %v4347_v43 = vpack.c.bf16 %v4293_v29, %v4292_v54  ;;  %10570 = vmatprep.mubr.msk.bf16.mxu0 %vm1410_vm0, %v10825_v30  ;;  %v10826_v54 = vld [vmem:[%s11117_s29 + $0x338] sm:$0xff]  }
 0x1aa   : > { %v4291_v1 = vmax.f32 %v15866_v39, %v4227_v35  ;;  %v3984_v9 = vsel %vm3472_vm1, %v3216_v55, %v3728_v49  ;;  %vm3473_vm3 = vcmp.ge.f32.partialorder %v3217_v53, 0.0  ;;  %v3729_v28 = vmul.f32 0.1, %v3217_v53  ;;  %v10843_v30 = vld [vmem:[%s15822_s10 + $0xc] ss:$16 sps:$4 sm:$0xff]  }
 0x1ab   : > { %v4232_v46 = vmax.f32 %v11905_v60, %v3984_v9  ;;  %v3982_v17 = vsel %vm3470_vm2, %v3214_v48, %v3726_v7  ;;  %vm3471_vm4 = vcmp.ge.f32.partialorder %v3215_v5, 0.0  ;;  %v3727_v34 = vmul.f32 0.1, %v3215_v5  ;;  %v10464_v52 = vpop.f32.mrb[96].mxu0  ;;  %v10841_v60 = vld [vmem:[%s15822_s10 + $0x8] ss:$16 sps:$4 sm:$0xff]   ;;  %7068 = vmatprep.subr.bf16.mxu0 %v10843_v30 }
 0x1ac   : > { %v4346_v13 = vpack.c.bf16 %v4291_v1, %v4290_v62  ;;  %v3975_v10 = vsel %vm3463_vm10, %v11886_v12, %v11914_v59  ;;  %v4230_v11 = vmax.f32 %v11907_v31, %v3982_v17  ;;  %v3985_v24 = vsel %vm3473_vm3, %v3217_v53, %v3729_v28  ;;  %v2213_v21 = vpop.f32.mrb[97].mxu0  ;;  %7069 = vmatpush1.bf16.msra.mxu0 %v10841_v60  ;;  %v10828_v17 = vld [vmem:[%s11117_s29 + $0x348] sm:$0xff]  }
 0x1ad   : > { %v2957_v50 = vmul.f32 %v11665_v58, %v10464_v52  ;;  %v4233_v35 = vmax.f32 %v11921_v19, %v3985_v24  ;;  %v3983_v12 = vsel %vm3471_vm4, %v3215_v5, %v3727_v34  ;;  %v2955_v31 = vmul.f32 %v11665_v58, %v2213_v21  ;;  %v10465_v59 = vpop.f32.mrb[98].mxu0 }
 0x1ae   : > { %10646 = vmatprep.mubr.msk.bf16.mxu1 %vm4402_vm11, %v4346_v13  ;;  %v15867_v55 = vmax.f32 %v11746_v33, %v11815_v42  ;;  %v4231_v37 = vmax.f32 %v3975_v10, %v3983_v12  ;;  %v2958_v48 = vmul.f32 %v11665_v58, %v10465_v59  ;;  %v2216_v23 = vpop.f32.mrb[99].mxu0  ;;  %v15868_v19 = vmax.f32 %v11757_v40, %v11820_v22 }
 0x1af   : > { %10647 = vmatmul.mubr.msk.bf16.gmra.mrb[36].mxu1 %vm4402_vm11, %v4347_v43  ;;  %v11989_v62 = vadd.f32 %v11690_v47, %v2957_v50  ;;  %v3218_v29 = vadd.f32 %v11690_v47, %v2955_v31  ;;  %v2956_v49 = vmul.f32 %v11665_v58, %v2216_v23  ;;  %v15869_v33 = vmax.f32 %v11772_v20, %v11824_v6 }
 0x1b0   : > { %v4296_v61 = vmax.f32 %v15867_v55, %v4232_v46  ;;  %v4294_v16 = vmax.f32 %v15868_v19, %v4230_v11  ;;  %v3882_v53 = vmul.f32 0.1, %v11929_v14  ;;  %v3221_v39 = vadd.f32 %v11690_v47, %v2958_v48  ;;  %10571 = vmatmul.mubr.msk.bf16.gmra.mrb[204].mxu0 %vm1410_vm0, %v10826_v54 }
 0x1b1   : > { %v4297_v42 = vmax.f32 %v15869_v33, %v4233_v35  ;;  %v15870_v40 = vmax.f32 %v11804_v57, %v11831_v2  ;;  %v3110_v1 = vmul.f32 %v11665_v58, %v11723_v15  ;;  %v3219_v7 = vadd.f32 %v11690_v47, %v2956_v49  ;;  %10574 = vmatprep.mubr.msk.bf16.mxu0 %vm1410_vm0, %v10827_v36 }
 0x1b2   : > { %v3881_v6 = vmul.f32 0.1, %v11900_v38  ;;  %vm3476_vm7 = vcmp.ge.f32.partialorder %v11989_v62, 0.0  ;;  %v3732_v57 = vmul.f32 0.1, %v11989_v62  ;;  %vm3474_vm8 = vcmp.ge.f32.partialorder %v3218_v29, 0.0 }
 0x1b3   : > { %v4295_v22 = vmax.f32 %v15870_v40, %v4231_v37  ;;  %v4349_v20 = vpack.c.bf16 %v4297_v42, %v4296_v61  ;;  %v12016_v5 = vmul.f32 0.1, %v11903_v41  ;;  %v3730_v15 = vmul.f32 0.1, %v3218_v29  ;;  %v10468_v43 = vpop.f32.mrb[100].mxu0  ;;  %v10830_v40 = vld [vmem:[%s11117_s29 + $0x358] sm:$0xff]  }
 0x1b4   : > { %vm3477_vm9 = vcmp.ge.f32.partialorder %v3221_v39, 0.0  ;;  %v12019_v9 = vsel %vm3626_vm5, %v11929_v14, %v3882_v53  ;;  %v3733_v28 = vmul.f32 0.1, %v3221_v39  ;;  %v2961_v13 = vmul.f32 %v11665_v58, %v10468_v43  ;;  %v2229_v46 = vpop.f32.mrb[101].mxu0  ;;  %v10829_v14 = vld [vmem:[%s11117_s29 + $0x350] sm:$0xff]  }
 0x1b5   : > { %v4348_v2 = vpack.c.bf16 %v4295_v22, %v4294_v16  ;;  %v3373_v52 = vadd.f32 %v11690_v47, %v3110_v1  ;;  %vm3475_vm10 = vcmp.ge.f32.partialorder %v3219_v7, 0.0  ;;  %v2959_v10 = vmul.f32 %v11665_v58, %v2229_v46  ;;  %v10469_v11 = vpop.f32.mrb[102].mxu0 }
 0x1b6   : > { %v3108_v24 = vmul.f32 %v11665_v58, %v11728_v18  ;;  %v3113_v50 = vmul.f32 %v11665_v58, %v11737_v8  ;;  %v3224_v21 = vadd.f32 %v11690_v47, %v2961_v13  ;;  %v2962_v54 = vmul.f32 %v11665_v58, %v10469_v11  ;;  %v2232_v60 = vpop.f32.mrb[103].mxu0 }
 0x1b7   : > { %10650 = vmatprep.mubr.msk.bf16.mxu1 %vm4402_vm11, %v4348_v2  ;;  %vm3629_vm12 = vcmp.ge.f32.partialorder %v3373_v52, 0.0  ;;  %v3885_v30 = vmul.f32 0.1, %v3373_v52  ;;  %v3731_v35 = vmul.f32 0.1, %v3219_v7  ;;  %v12037_v12 = vadd.f32 %v11690_v47, %v2959_v10 }
 0x1b8   : > { %10651 = vmatmul.mubr.msk.bf16.gmra.mrb[40].mxu1 %vm4402_vm11, %v4349_v20  ;;  %v2960_v31 = vmul.f32 %v11665_v58, %v2232_v60  ;;  %v3371_v59 = vadd.f32 %v11690_v47, %v3108_v24  ;;  %v3736_v55 = vmul.f32 0.1, %v3224_v21  ;;  %v12042_v18 = vadd.f32 %v11690_v47, %v2962_v54  ;;  %10575 = vmatmul.mubr.msk.bf16.gmra.mrb[208].mxu0 %vm1410_vm0, %v10828_v17 }
 0x1b9   : > { %v12045_v8 = vsel %vm3629_vm12, %v3373_v52, %v3885_v30  ;;  %v3376_v61 = vadd.f32 %v11690_v47, %v3113_v50  ;;  %vm3480_vm13 = vcmp.ge.f32.partialorder %v3224_v21, 0.0  ;;  %10578 = vmatprep.mubr.msk.bf16.mxu0 %vm1410_vm0, %v10829_v14  ;;  %v12055_v37 = vsel %vm3625_vm6, %v11900_v38, %v3881_v6  ;;  %v10831_v6 = vld [vmem:[%s11117_s29 + $0x360] sm:$0xff]  }
 0x1ba   : > { %15871 = vst [vmem:[#allocation9_spill] sm:$0xff] %v12045_v8  ;;  %v12049_v36 = vadd.f32 %v11690_v47, %v2960_v31  ;;  %v12062_v23 = vsel %vm3476_vm7, %v11989_v62, %v3732_v57  ;;  %v12065_v19 = vsel %vm3474_vm8, %v3218_v29, %v3730_v15  ;;  %v12068_v16 = vmul.f32 0.1, %v12037_v12 }
 0x1bb   : > { %vm3627_vm14 = vcmp.ge.f32.partialorder %v3371_v59, 0.0  ;;  %v12071_v49 = vsel %vm3477_vm9, %v3221_v39, %v3733_v28  ;;  %v12074_v38 = vsel %vm3475_vm10, %v3219_v7, %v3731_v35  ;;  %v12077_v33 = vmul.f32 0.1, %v12042_v18  ;;  %v10472_v42 = vpop.f32.mrb[104].mxu0 }
 0x1bc   : > { %v3883_v62 = vmul.f32 0.1, %v3371_v59  ;;  %vm3478_vm15 = vcmp.ge.f32.partialorder %v12037_v12, 0.0  ;;  %v2965_v29 = vmul.f32 %v11665_v58, %v10472_v42  ;;  %v2245_v53 = vpop.f32.mrb[105].mxu0  ;;  %v12083_v22 = vsel %vm3480_vm13, %v3224_v21, %v3736_v55 }
 0x1bd   : > { %vm3632_vm1 = vcmp.ge.f32.partialorder %v3376_v61, 0.0  ;;  %v3888_v39 = vmul.f32 0.1, %v3376_v61  ;;  %v12086_v1 = vmul.f32 0.1, %v12049_v36  ;;  %v2963_v7 = vmul.f32 %v11665_v58, %v2245_v53  ;;  %v10473_v20 = vpop.f32.mrb[106].mxu0 }
 0x1be   : > { %v12091_v57 = vsel %vm3627_vm14, %v3371_v59, %v3883_v62  ;;  %v3111_v2 = vmul.f32 %v11665_v58, %v11750_v32  ;;  %v3228_v15 = vadd.f32 %v11690_v47, %v2965_v29  ;;  %v2966_v43 = vmul.f32 %v11665_v58, %v10473_v20  ;;  %v2248_v28 = vpop.f32.mrb[107].mxu0  ;;  %v10832_v29 = vld [vmem:[%s11117_s29 + $0x368] sm:$0xff]  }
 0x1bf   : > { %15872 = vst [vmem:[#allocation10_spill] sm:$0xff] %v12091_v57  ;;  %v12099_v46 = vsel %vm3632_vm1, %v3376_v61, %v3888_v39  ;;  %v3226_v17 = vadd.f32 %v11690_v47, %v2963_v7  ;;  %v2964_v52 = vmul.f32 %v11665_v58, %v2248_v28  ;;  %v3114_v24 = vmul.f32 %v11665_v58, %v11754_v27 }
 0x1c0   : > { %v3374_v11 = vadd.f32 %v11690_v47, %v3111_v2  ;;  %vm3484_vm2 = vcmp.ge.f32.partialorder %v3228_v15, 0.0  ;;  %v3740_v32 = vmul.f32 0.1, %v3228_v15  ;;  %v3229_v14 = vadd.f32 %v11690_v47, %v2966_v43  ;;  %10579 = vmatmul.mubr.msk.bf16.gmra.mrb[212].mxu0 %vm1410_vm0, %v10830_v40 }
 0x1c1   : > { %vm3481_vm3 = vcmp.ge.f32.partialorder %v12042_v18, 0.0  ;;  %vm3482_vm4 = vcmp.ge.f32.partialorder %v3226_v17, 0.0  ;;  %v3738_v50 = vmul.f32 0.1, %v3226_v17  ;;  %v3227_v21 = vadd.f32 %v11690_v47, %v2964_v52  ;;  %10582 = vmatprep.mubr.msk.bf16.mxu0 %vm1410_vm0, %v10831_v6  ;;  %v10833_v6 = vld [vmem:[%s11117_s29 + $0x370] sm:$0xff]  }
 0x1c2   : > { %vm3630_vm5 = vcmp.ge.f32.partialorder %v3374_v11, 0.0  ;;  %vm3479_vm6 = vcmp.ge.f32.partialorder %v12049_v36, 0.0  ;;  %v12114_v54 = vsel %vm3484_vm2, %v3228_v15, %v3740_v32  ;;  %vm3485_vm7 = vcmp.ge.f32.partialorder %v3229_v14, 0.0  ;;  %v10846_v32 = vld [vmem:[%s15822_s10 + $0x2c] ss:$16 sps:$4 sm:$0xff]  }
 0x1c3   : > { %v3741_v60 = vmul.f32 0.1, %v3229_v14  ;;  %v3886_v30 = vmul.f32 0.1, %v3374_v11  ;;  %v12118_v35 = vsel %vm3482_vm4, %v3226_v17, %v3738_v50  ;;  %vm3483_vm8 = vcmp.ge.f32.partialorder %v3227_v21, 0.0  ;;  %v10476_v59 = vpop.f32.mrb[108].mxu0  ;;  %7070 = vmatprep.subr.bf16.mxu0 %v10846_v32 }
 0x1c4   : > { %v3739_v31 = vmul.f32 0.1, %v3227_v21  ;;  %v2969_v42 = vmul.f32 %v11665_v58, %v10476_v59  ;;  %v2261_v62 = vpop.f32.mrb[109].mxu0  ;;  %vm3623_vm9 = vcmp.ge.f32.partialorder %v11903_v41, 0.0  ;;  %v3377_v52 = vadd.f32 %v11690_v47, %v3114_v24  ;;  %v10840_v15 = vld [vmem:[%s11117_s29 + $0x3a8] sm:$0xff]  }
 0x1c5   : > { %v12122_v61 = vsel %vm3485_vm7, %v3229_v14, %v3741_v60  ;;  %v12128_v53 = vsel %vm3630_vm5, %v3374_v11, %v3886_v30  ;;  %v2967_v7 = vmul.f32 %v11665_v58, %v2261_v62  ;;  %v10477_v20 = vpop.f32.mrb[110].mxu0  ;;  %v10844_v11 = vld [vmem:[%s15822_s10 + $0x28] ss:$16 sps:$4 sm:$0xff]   ;;  %v12154_v50 = vsel %vm3478_vm15, %v12037_v12, %v12068_v16 }
 0x1c6   : > { %v12132_v39 = vsel %vm3483_vm8, %v3227_v21, %v3739_v31  ;;  %v3232_v43 = vadd.f32 %v11690_v47, %v2969_v42  ;;  %v2970_v28 = vmul.f32 %v11665_v58, %v10477_v20  ;;  %v2264_v17 = vpop.f32.mrb[111].mxu0  ;;  %v3112_v24 = vmul.f32 %v11665_v58, %v11762_v0  ;;  %7071 = vmatpush1.bf16.msra.mxu0 %v10844_v11  ;;  %v10834_v11 = vld [vmem:[%s11117_s29 + $0x378] sm:$0xff]  }
 0x1c7   : > { %v3230_v14 = vadd.f32 %v11690_v47, %v2967_v7  ;;  %v2968_v21 = vmul.f32 %v11665_v58, %v2264_v17  ;;  %vm3633_vm12 = vcmp.ge.f32.partialorder %v3377_v52, 0.0  ;;  %v3889_v12 = vmul.f32 0.1, %v3377_v52 }
 0x1c8   : > { %vm3488_vm10 = vcmp.ge.f32.partialorder %v3232_v43, 0.0  ;;  %v3744_v60 = vmul.f32 0.1, %v3232_v43  ;;  %v3233_v30 = vadd.f32 %v11690_v47, %v2970_v28  ;;  %10583 = vmatmul.mubr.msk.bf16.gmra.mrb[216].mxu0 %vm1410_vm0, %v10832_v29  ;;  %v3375_v42 = vadd.f32 %v11690_v47, %v3112_v24 }
 0x1c9   : > { %vm3486_vm13 = vcmp.ge.f32.partialorder %v3230_v14, 0.0  ;;  %v3742_v31 = vmul.f32 0.1, %v3230_v14  ;;  %v3231_v59 = vadd.f32 %v11690_v47, %v2968_v21  ;;  %10586 = vmatprep.mubr.msk.bf16.mxu0 %vm1410_vm0, %v10833_v6  ;;  %v12182_v32 = vsel %vm3633_vm12, %v3377_v52, %v3889_v12 }
 0x1ca   : > { %v12163_v16 = vsel %vm3488_vm10, %v3232_v43, %v3744_v60  ;;  %vm3489_vm14 = vcmp.ge.f32.partialorder %v3233_v30, 0.0  ;;  %v3745_v0 = vmul.f32 0.1, %v3233_v30  ;;  %v12176_v43 = vsel %vm3481_vm3, %v12042_v18, %v12077_v33  ;;  %v10835_v33 = vld [vmem:[%s11117_s29 + $0x380] sm:$0xff]  }
 0x1cb   : > { %v12168_v29 = vsel %vm3486_vm13, %v3230_v14, %v3742_v31  ;;  %vm3487_vm15 = vcmp.ge.f32.partialorder %v3231_v59, 0.0  ;;  %v3743_v7 = vmul.f32 0.1, %v3231_v59  ;;  %v10480_v20 = vpop.f32.mrb[112].mxu0  ;;  %v12190_v21 = vsel %vm3479_vm6, %v12049_v36, %v12086_v1  ;;  %v10838_v14 = vld [vmem:[%s11117_s29 + $0x398] sm:$0xff]  }
 0x1cc   : > { %v12178_v28 = vsel %vm3489_vm14, %v3233_v30, %v3745_v0  ;;  %v2277_v17 = vpop.f32.mrb[113].mxu0  ;;  %vm3631_vm1 = vcmp.ge.f32.partialorder %v3375_v42, 0.0  ;;  %v12203_v31 = vsel %vm3623_vm9, %v11903_v41, %v12016_v5  ;;  %v3887_v36 = vmul.f32 0.1, %v3375_v42 }
 0x1cd   : > { %v12192_v24 = vsel %vm3487_vm15, %v3231_v59, %v3743_v7  ;;  %v10481_v18 = vpop.f32.mrb[114].mxu0  ;;  %v2973_v1 = vmul.f32 %v11665_v58, %v10480_v20  ;;  %v2971_v59 = vmul.f32 %v11665_v58, %v2277_v17 }
 0x1ce   : > { %v2280_v30 = vpop.f32.mrb[115].mxu0  ;;  %v2974_v12 = vmul.f32 %v11665_v58, %v10481_v18  ;;  %v12210_v0 = vsel %vm3631_vm1, %v3375_v42, %v3887_v36 }
 0x1cf   : > { %v2972_v7 = vmul.f32 %v11665_v58, %v2280_v30  ;;  %v3236_v13 = vadd.f32 %v11690_v47, %v2973_v1  ;;  %v3234_v20 = vadd.f32 %v11690_v47, %v2971_v59  ;;  %v12228_v59 = vld [vmem:[%s15814_s2] ss:$0 sm:$0xff] }
 0x1d0   : > { %10587 = vmatmul.mubr.msk.bf16.gmra.mrb[220].mxu0 %vm1410_vm0, %v10834_v11  ;;  %v10836_v11 = vld [vmem:[%s11117_s29 + $0x388] sm:$0xff]   ;;  %v3237_v18 = vadd.f32 %v11690_v47, %v2974_v12 }
 0x1d1   : > { %10590 = vmatprep.mubr.msk.bf16.mxu0 %vm1410_vm0, %v10835_v33  ;;  %v10837_v33 = vld [vmem:[%s11117_s29 + $0x390] sm:$0xff]   ;;  %v3235_v42 = vadd.f32 %v11690_v47, %v2972_v7  ;;  %v3748_v34 = vmul.f32 0.1, %v3236_v13  ;;  %v3746_v41 = vmul.f32 0.1, %v3234_v20  ;;  %vm3492_vm2 = vcmp.ge.f32.partialorder %v3236_v13, 0.0 }
 0x1d2   : > { %vm3490_vm3 = vcmp.ge.f32.partialorder %v3234_v20, 0.0  ;;  %v3749_v1 = vmul.f32 0.1, %v3237_v18  ;;  %vm3493_vm4 = vcmp.ge.f32.partialorder %v3237_v18, 0.0 }
 0x1d3   : > { %v10484_v5 = vpop.f32.mrb[116].mxu0  ;;  %vm3491_vm5 = vcmp.ge.f32.partialorder %v3235_v42, 0.0 }
 0x1d4   : > { %v2977_v17 = vmul.f32 %v11665_v58, %v10484_v5  ;;  %v2293_v48 = vpop.f32.mrb[117].mxu0  ;;  %v4005_v6 = vsel %vm3493_vm4, %v3237_v18, %v3749_v1 }
 0x1d5   : > { %v10485_v3 = vpop.f32.mrb[118].mxu0  ;;  %v2975_v30 = vmul.f32 %v11665_v58, %v2293_v48  ;;  %v3747_v58 = vmul.f32 0.1, %v3235_v42 }
 0x1d6   : > { %v2296_v36 = vpop.f32.mrb[119].mxu0  ;;  %v3240_v60 = vadd.f32 %v11690_v47, %v2977_v17  ;;  %v2978_v12 = vmul.f32 %v12228_v59, %v10485_v3  ;;  %v4004_v17 = vsel %vm3492_vm2, %v3236_v13, %v3748_v34  ;;  %v12239_v3 = vld [vmem:[%s15815_s3] ss:$0 sm:$0xff] }
 0x1d7   : > { %v3238_v48 = vadd.f32 %v11690_v47, %v2975_v30  ;;  %v2976_v7 = vmul.f32 %v12228_v59, %v2296_v36  ;;  %v10839_v34 = vld [vmem:[%s11117_s29 + $0x3a0] sm:$0xff]   ;;  %v4003_v13 = vsel %vm3491_vm5, %v3235_v42, %v3747_v58 }
 0x1d8   : > { %10591 = vmatmul.mubr.msk.bf16.gmra.mrb[224].mxu0 %vm1410_vm0, %v10836_v11  ;;  %v4002_v11 = vsel %vm3490_vm3, %v3234_v20, %v3746_v41  ;;  %v3752_v2 = vmul.f32 0.1, %v3240_v60  ;;  %vm3496_vm6 = vcmp.ge.f32.partialorder %v3240_v60, 0.0  ;;  %v12242_v47 = vadd.f32 %v12239_v3, %v2978_v12 }
 0x1d9   : > { %10594 = vmatprep.mubr.msk.bf16.mxu0 %vm1410_vm0, %v10837_v33  ;;  %v3750_v41 = vmul.f32 0.1, %v3238_v48  ;;  %vm3494_vm7 = vcmp.ge.f32.partialorder %v3238_v48, 0.0  ;;  %v12250_v1 = vadd.f32 %v12239_v3, %v2976_v7 }
 0x1da   : > { %v12254_v62 = vsel %vm3496_vm6, %v3240_v60, %v3752_v2  ;;  %vm3497_vm9 = vcmp.ge.f32.partialorder %v12242_v47, 0.0 }
 0x1db   : > { %v10488_v5 = vpop.f32.mrb[120].mxu0  ;;  %vm3495_vm14 = vcmp.ge.f32.partialorder %v12250_v1, 0.0 }
 0x1dc   : > { %v2981_v10 = vmul.f32 %v12228_v59, %v10488_v5  ;;  %v2309_v52 = vpop.f32.mrb[121].mxu0 }
 0x1dd   : > { %v2979_v33 = vmul.f32 %v12228_v59, %v2309_v52  ;;  %v10489_v30 = vpop.f32.mrb[122].mxu0 }
 0x1de   : > { %v3244_v20 = vadd.f32 %v12239_v3, %v2981_v10  ;;  %v2982_v18 = vmul.f32 %v12228_v59, %v10489_v30  ;;  %v2312_v36 = vpop.f32.mrb[123].mxu0  ;;  %v3753_v10 = vmul.f32 0.1, %v12242_v47 }
 0x1df   : > { %v3242_v5 = vadd.f32 %v12239_v3, %v2979_v33  ;;  %v2980_v12 = vmul.f32 %v12228_v59, %v2312_v36  ;;  %v12262_v33 = vsel %vm3494_vm7, %v3238_v48, %v3750_v41  ;;  %v10847_v48 = vld [vmem:[%s15819_s7] ss:$8 sps:$4 sm:$0xff]  }
 0x1e0   : > { %vm3500_vm8 = vcmp.ge.f32.partialorder %v3244_v20, 0.0  ;;  %v3756_v52 = vmul.f32 0.1, %v3244_v20  ;;  %v3245_v42 = vadd.f32 %v12239_v3, %v2982_v18  ;;  %10595 = vmatmul.mubr.msk.bf16.gmra.mrb[228].mxu0 %vm1410_vm0, %v10838_v14 }
 0x1e1   : > { %vm3498_vm10 = vcmp.ge.f32.partialorder %v3242_v5, 0.0  ;;  %v3754_v58 = vmul.f32 0.1, %v3242_v5  ;;  %v3243_v7 = vadd.f32 %v12239_v3, %v2980_v12  ;;  %10598 = vmatprep.mubr.msk.bf16.mxu0 %vm1410_vm0, %v10839_v34 }
 0x1e2   : > { %v4012_v2 = vsel %vm3500_vm8, %v3244_v20, %v3756_v52  ;;  %vm3501_vm12 = vcmp.ge.f32.partialorder %v3245_v42, 0.0  ;;  %v3757_v60 = vmul.f32 0.1, %v3245_v42 }
 0x1e3   : > { %v4236_v30 = vmax.f32 %v4004_v17, %v4012_v2  ;;  %v4010_v18 = vsel %vm3498_vm10, %v3242_v5, %v3754_v58  ;;  %vm3499_vm13 = vcmp.ge.f32.partialorder %v3243_v7, 0.0  ;;  %v3755_v14 = vmul.f32 0.1, %v3243_v7  ;;  %v10492_v36 = vpop.f32.mrb[124].mxu0  ;;  %v10849_v17 = vld [vmem:[%s15819_s7 + $0x4] ss:$8 sps:$4 sm:$0xff]  }
 0x1e4   : > { %v4234_v40 = vmax.f32 %v4002_v11, %v4010_v18  ;;  %v4013_v55 = vsel %vm3501_vm12, %v3245_v42, %v3757_v60  ;;  %v2985_v27 = vmul.f32 %v12228_v59, %v10492_v36  ;;  %v2325_v12 = vpop.f32.mrb[125].mxu0  ;;  %v15873_v11 = vmax.f32 %v12062_v23, %v12114_v54  ;;  %5250 = vmatprep.subr.bf16.mxu1 %v10849_v17  ;;  %v10852_v23 = vld [vmem:[%s15822_s10 + $0x4c] ss:$16 sps:$4 sm:$0xff]  }
 0x1e5   : > { %v4237_v34 = vmax.f32 %v4005_v6, %v4013_v55  ;;  %v4011_v41 = vsel %vm3499_vm13, %v3243_v7, %v3755_v14  ;;  %v2983_v20 = vmul.f32 %v12228_v59, %v2325_v12  ;;  %v10493_v5 = vpop.f32.mrb[126].mxu0  ;;  %v15874_v18 = vmax.f32 %v12065_v19, %v12118_v35  ;;  %v10850_v55 = vld [vmem:[%s15822_s10 + $0x48] ss:$16 sps:$4 sm:$0xff]   ;;  %5251 = vmatpush1.bf16.msra.mxu1 %v10847_v48 }
 0x1e6   : > { %v4300_v52 = vmax.f32 %v15873_v11, %v4236_v30  ;;  %v4235_v42 = vmax.f32 %v4003_v13, %v4011_v41  ;;  %v3248_v58 = vadd.f32 %v12239_v3, %v2985_v27  ;;  %v2986_v2 = vmul.f32 %v12228_v59, %v10493_v5  ;;  %v2328_v60 = vpop.f32.mrb[127].mxu0  ;;  %7072 = vmatprep.subr.bf16.mxu0 %v10852_v23 }
 0x1e7   : > { %v4298_v36 = vmax.f32 %v15874_v18, %v4234_v40  ;;  %v3751_v54 = vmul.f32 0.1, %v12250_v1  ;;  %v3246_v27 = vadd.f32 %v12239_v3, %v2983_v20  ;;  %v2984_v6 = vmul.f32 %v12228_v59, %v2328_v60  ;;  %7073 = vmatpush1.bf16.msra.mxu0 %v10850_v55 }
 0x1e8   : > { %v15875_v13 = vmax.f32 %v12071_v49, %v12122_v61  ;;  %vm3504_vm15 = vcmp.ge.f32.partialorder %v3248_v58, 0.0  ;;  %v3760_v35 = vmul.f32 0.1, %v3248_v58  ;;  %v3249_v40 = vadd.f32 %v12239_v3, %v2986_v2  ;;  %10599 = vmatmul.mubr.msk.bf16.gmra.mrb[232].mxu0 %vm1410_vm0, %v10840_v15 }
 0x1e9   : > { %v15876_v7 = vmax.f32 %v12074_v38, %v12132_v39  ;;  %vm3502_vm1 = vcmp.ge.f32.partialorder %v3246_v27, 0.0  ;;  %v3758_v14 = vmul.f32 0.1, %v3246_v27  ;;  %v3247_v12 = vadd.f32 %v12239_v3, %v2984_v6 }
 0x1ea   : > { %v4301_v19 = vmax.f32 %v15875_v13, %v4237_v34  ;;  %v4016_v49 = vsel %vm3504_vm15, %v3248_v58, %v3760_v35  ;;  %vm3505_vm2 = vcmp.ge.f32.partialorder %v3249_v40, 0.0  ;;  %v3761_v61 = vmul.f32 0.1, %v3249_v40 }
 0x1eb   : > { %v4299_v30 = vmax.f32 %v15876_v7, %v4235_v42  ;;  %v4240_v34 = vmax.f32 %v12254_v62, %v4016_v49  ;;  %v4014_v41 = vsel %vm3502_vm1, %v3246_v27, %v3758_v14  ;;  %vm3503_vm3 = vcmp.ge.f32.partialorder %v3247_v12, 0.0  ;;  %v10496_v20 = vpop.f32.mrb[128].mxu0 }
 0x1ec   : > { %v4351_v17 = vpack.c.bf16 %v4301_v19, %v4300_v52  ;;  %v3759_v15 = vmul.f32 0.1, %v3247_v12  ;;  %v4009_v38 = vsel %vm3497_vm9, %v12242_v47, %v3753_v10  ;;  %v4238_v39 = vmax.f32 %v12262_v33, %v4014_v41  ;;  %v2341_v11 = vpop.f32.mrb[129].mxu0 }
 0x1ed   : > { %v4350_v48 = vpack.c.bf16 %v4299_v30, %v4298_v36  ;;  %v4017_v5 = vsel %vm3505_vm2, %v3249_v40, %v3761_v61  ;;  %v4007_v52 = vsel %vm3495_vm14, %v12250_v1, %v3751_v54  ;;  %v10497_v58 = vpop.f32.mrb[130].mxu0  ;;  %v15877_v2 = vmax.f32 %v12083_v22, %v12163_v16 }
 0x1ee   : > { %v4241_v42 = vmax.f32 %v4009_v38, %v4017_v5  ;;  %v4015_v62 = vsel %vm3503_vm3, %v3247_v12, %v3759_v15  ;;  %v2344_v10 = vpop.f32.mrb[131].mxu0  ;;  %v15878_v33 = vmax.f32 %v12154_v50, %v12168_v29  ;;  %v15879_v36 = vmax.f32 %v12176_v43, %v12178_v28  ;;  %v10853_v29 = vld [vmem:[%s15819_s7 + $0x10] ss:$8 sps:$4 sm:$0xff]  }
 0x1ef   : > { %10654 = vmatprep.mubr.msk.bf16.mxu1 %vm4402_vm11, %v4350_v48  ;;  %v4304_v60 = vmax.f32 %v15877_v2, %v4240_v34  ;;  %v4239_v47 = vmax.f32 %v4007_v52, %v4015_v62  ;;  %v2989_v1 = vmul.f32 %v12228_v59, %v10496_v20  ;;  %v2987_v23 = vmul.f32 %v12228_v59, %v2341_v11 }
 0x1f0   : > { %10655 = vmatmul.mubr.msk.bf16.gmra.mrb[44].mxu1 %vm4402_vm11, %v4351_v17  ;;  %v4302_v18 = vmax.f32 %v15878_v33, %v4238_v39  ;;  %v4305_v55 = vmax.f32 %v15879_v36, %v4241_v42  ;;  %v15880_v54 = vmax.f32 %v12190_v21, %v12192_v24  ;;  %v2990_v22 = vmul.f32 %v12228_v59, %v10497_v58  ;;  %v10855_v21 = vld [vmem:[%s15819_s7 + $0x14] ss:$8 sps:$4 sm:$0xff]  }
 0x1f1   : > { %v2988_v16 = vmul.f32 %v12228_v59, %v2344_v10  ;;  %v3252_v43 = vadd.f32 %v12239_v3, %v2989_v1  ;;  %v3250_v28 = vadd.f32 %v12239_v3, %v2987_v23  ;;  %5252 = vmatprep.subr.bf16.mxu1 %v10855_v21 }
 0x1f2   : > { %v4303_v27 = vmax.f32 %v15880_v54, %v4239_v47  ;;  %v4353_v6 = vpack.c.bf16 %v4305_v55, %v4304_v60  ;;  %v3253_v24 = vadd.f32 %v12239_v3, %v2990_v22  ;;  %5253 = vmatpush1.bf16.msra.mxu1 %v10853_v29  ;;  %v12367_v54 = vld [vmem:[%s15817_s5] ss:$0 sm:$0xff] }
 0x1f3   : > { %v10500_v50 = vpop.f32.mrb[132].mxu0  ;;  %v3251_v40 = vadd.f32 %v12239_v3, %v2988_v16  ;;  %vm3508_vm0 = vcmp.ge.f32.partialorder %v3252_v43, 0.0  ;;  %v3764_v49 = vmul.f32 0.1, %v3252_v43  ;;  %v3762_v61 = vmul.f32 0.1, %v3250_v28 }
 0x1f4   : > { %v4352_v13 = vpack.c.bf16 %v4303_v27, %v4302_v18  ;;  %v2993_v19 = vmul.f32 %v12228_v59, %v10500_v50  ;;  %v2357_v35 = vpop.f32.mrb[133].mxu0  ;;  %vm3506_vm4 = vcmp.ge.f32.partialorder %v3250_v28, 0.0  ;;  %v3765_v48 = vmul.f32 0.1, %v3253_v24 }
 0x1f5   : > { %v2991_v7 = vmul.f32 %v12228_v59, %v2357_v35  ;;  %v10501_v30 = vpop.f32.mrb[134].mxu0  ;;  %v3763_v34 = vmul.f32 0.1, %v3251_v40  ;;  %vm3509_vm5 = vcmp.ge.f32.partialorder %v3253_v24, 0.0  ;;  %vm3507_vm6 = vcmp.ge.f32.partialorder %v3251_v40, 0.0 }
 0x1f6   : > { %10658 = vmatprep.mubr.msk.bf16.mxu1 %vm4402_vm11, %v4352_v13  ;;  %v2360_v14 = vpop.f32.mrb[135].mxu0  ;;  %v3256_v12 = vadd.f32 %v12239_v3, %v2993_v19  ;;  %v2994_v17 = vmul.f32 %v12228_v59, %v10501_v30  ;;  %v12345_v5 = vsel %vm3508_vm0, %v3252_v43, %v3764_v49  ;;  %v12347_v11 = vsel %vm3506_vm4, %v3250_v28, %v3762_v61  ;;  %v12376_v43 = vld [vmem:[%s15818_s6] ss:$0 sm:$0xff] }
 0x1f7   : > { %v3254_v41 = vadd.f32 %v12239_v3, %v2991_v7  ;;  %v2992_v15 = vmul.f32 %v12228_v59, %v2360_v14  ;;  %v12350_v62 = vsel %vm3509_vm5, %v3253_v24, %v3765_v48  ;;  %v12352_v58 = vsel %vm3507_vm6, %v3251_v40, %v3763_v34  ;;  %v10856_v34 = vld [vmem:[%s15819_s7 + $0x20] ss:$8 sps:$4 sm:$0xff]  }
 0x1f8   : > { %10659 = vmatmul.mubr.msk.bf16.gmra.mrb[48].mxu1 %vm4402_vm11, %v4353_v6  ;;  %v3768_v20 = vmul.f32 0.1, %v3256_v12  ;;  %v3257_v38 = vadd.f32 %v12239_v3, %v2994_v17  ;;  %vm3512_vm7 = vcmp.ge.f32.partialorder %v3256_v12, 0.0 }
 0x1f9   : > { %v3766_v2 = vmul.f32 0.1, %v3254_v41  ;;  %vm3510_vm8 = vcmp.ge.f32.partialorder %v3254_v41, 0.0  ;;  %v12356_v10 = vadd.f32 %v12239_v3, %v2992_v15 }
 0x1fa   : > { %v12360_v55 = vsel %vm3512_vm7, %v3256_v12, %v3768_v20  ;;  %vm3513_vm9 = vcmp.ge.f32.partialorder %v3257_v38, 0.0  ;;  %v3769_v27 = vmul.f32 0.1, %v3257_v38 }
 0x1fb   : > { %v10504_v39 = vpop.f32.mrb[136].mxu0  ;;  %v12370_v13 = vsel %vm3510_vm8, %v3254_v41, %v3766_v2  ;;  %vm3511_vm15 = vcmp.ge.f32.partialorder %v12356_v10, 0.0  ;;  %v10858_v41 = vld [vmem:[%s15819_s7 + $0x24] ss:$8 sps:$4 sm:$0xff]   ;;  %v10859_v2 = vld [vmem:[%s15822_s10 + $0x68] ss:$16 sps:$4 sm:$0xff]  }
 0x1fc   : > { %v2997_v52 = vmul.f32 %v12228_v59, %v10504_v39  ;;  %v2373_v42 = vpop.f32.mrb[137].mxu0  ;;  %v12398_v15 = vsel %vm3513_vm9, %v3257_v38, %v3769_v27  ;;  %5254 = vmatprep.subr.bf16.mxu1 %v10858_v41 }
 0x1fd   : > { %v2995_v60 = vmul.f32 %v12228_v59, %v2373_v42  ;;  %v10505_v47 = vpop.f32.mrb[138].mxu0  ;;  %5255 = vmatpush1.bf16.msra.mxu1 %v10856_v34 }
 0x1fe   : > { %v3260_v33 = vadd.f32 %v12239_v3, %v2997_v52  ;;  %v2998_v18 = vmul.f32 %v12228_v59, %v10505_v47  ;;  %v2376_v36 = vpop.f32.mrb[139].mxu0 }
 0x1ff   : > { %v3258_v1 = vadd.f32 %v12239_v3, %v2995_v60  ;;  %v2996_v23 = vmul.f32 %v12228_v59, %v2376_v36  ;;  %v10861_v60 = vld [vmem:[%s15822_s10 + $0x6c] ss:$16 sps:$4 sm:$0xff]  }
 0x200   : > { %vm3516_vm10 = vcmp.ge.f32.partialorder %v3260_v33, 0.0  ;;  %v3772_v22 = vmul.f32 0.1, %v3260_v33  ;;  %v3261_v16 = vadd.f32 %v12239_v3, %v2998_v18  ;;  %v10632_v6 = vpop.f32.mrb[20].mxu1  ;;  %7074 = vmatprep.subr.bf16.mxu0 %v10861_v60 }
 0x201   : > { %vm3514_vm12 = vcmp.ge.f32.partialorder %v3258_v1, 0.0  ;;  %v3770_v50 = vmul.f32 0.1, %v3258_v1  ;;  %v3259_v29 = vadd.f32 %v12239_v3, %v2996_v23  ;;  %v4533_v28 = vpop.f32.mrb[21].mxu1  ;;  %v4797_v47 = vmul.f32 %v10632_v6, %v12367_v54  ;;  %7075 = vmatpush1.bf16.msra.mxu0 %v10859_v2 }
 0x202   : > { %v12378_v19 = vsel %vm3516_vm10, %v3260_v33, %v3772_v22  ;;  %vm3517_vm13 = vcmp.ge.f32.partialorder %v3261_v16, 0.0  ;;  %v3773_v35 = vmul.f32 0.1, %v3261_v16  ;;  %v4795_v21 = vmul.f32 %v12367_v54, %v4533_v28  ;;  %v10633_v24 = vpop.f32.mrb[22].mxu1 }
 0x203   : > { %v12383_v7 = vsel %vm3514_vm12, %v3258_v1, %v3770_v50  ;;  %vm3515_vm14 = vcmp.ge.f32.partialorder %v3259_v29, 0.0  ;;  %v3771_v30 = vmul.f32 0.1, %v3259_v29  ;;  %v10508_v14 = vpop.f32.mrb[140].mxu0  ;;  %v4536_v12 = vpop.f32.mrb[23].mxu1 }
 0x204   : > { %v12388_v49 = vsel %vm3517_vm13, %v3261_v16, %v3773_v35  ;;  %v4866_v61 = vadd.f32 %v12376_v43, %v4795_v21  ;;  %v2389_v48 = vpop.f32.mrb[141].mxu0  ;;  %v3001_v52 = vmul.f32 %v12228_v59, %v10508_v14  ;;  %v4796_v18 = vmul.f32 %v12367_v54, %v4536_v12 }
 0x205   : > { %v12402_v39 = vsel %vm3515_vm14, %v3259_v29, %v3771_v30  ;;  %v10509_v42 = vpop.f32.mrb[142].mxu0  ;;  %v2999_v23 = vmul.f32 %v12228_v59, %v2389_v48  ;;  %v3767_v22 = vmul.f32 0.1, %v12356_v10  ;;  %v4798_v16 = vmul.f32 %v10633_v24, %v12367_v54 }
 0x206   : > { %v4994_v33 = vmul.f32 0.1, %v4866_v61  ;;  %v2392_v36 = vpop.f32.mrb[143].mxu0  ;;  %vm4930_vm1 = vcmp.ge.f32.partialorder %v4866_v61, 0.0  ;;  %v3264_v1 = vadd.f32 %v12239_v3, %v3001_v52  ;;  %v3002_v27 = vmul.f32 %v12228_v59, %v10509_v42 }
 0x207   : > { %v4867_v50 = vadd.f32 %v12376_v43, %v4796_v18  ;;  %v3000_v6 = vmul.f32 %v12228_v59, %v2392_v36  ;;  %v3262_v35 = vadd.f32 %v12239_v3, %v2999_v23 }
 0x208   : > { %v10636_v29 = vpop.f32.mrb[24].mxu1  ;;  %vm3520_vm2 = vcmp.ge.f32.partialorder %v3264_v1, 0.0  ;;  %v3776_v28 = vmul.f32 0.1, %v3264_v1  ;;  %v3265_v21 = vadd.f32 %v12239_v3, %v3002_v27  ;;  %v12425_v14 = vsel %vm4930_vm1, %v4866_v61, %v4994_v33 }
 0x209   : > { %v4549_v30 = vpop.f32.mrb[25].mxu1  ;;  %15881 = vst [vmem:[#allocation11_spill] sm:$0xff] %v12425_v14  ;;  %vm4931_vm3 = vcmp.ge.f32.partialorder %v4867_v50, 0.0  ;;  %v4995_v12 = vmul.f32 0.1, %v4867_v50  ;;  %v3263_v24 = vadd.f32 %v12239_v3, %v3000_v6  ;;  %vm3518_vm0 = vcmp.ge.f32.partialorder %v3262_v35, 0.0 }
 0x20a   : > { %v10637_v48 = vpop.f32.mrb[26].mxu1  ;;  %v12428_v41 = vsel %vm3520_vm2, %v3264_v1, %v3776_v28  ;;  %v3774_v34 = vmul.f32 0.1, %v3262_v35  ;;  %vm3521_vm4 = vcmp.ge.f32.partialorder %v3265_v21, 0.0  ;;  %v3777_v18 = vmul.f32 0.1, %v3265_v21 }
 0x20b   : > { %v10512_v52 = vpop.f32.mrb[144].mxu0  ;;  %v4552_v42 = vpop.f32.mrb[27].mxu1  ;;  %v12432_v60 = vsel %vm4931_vm3, %v4867_v50, %v4995_v12  ;;  %vm3519_vm5 = vcmp.ge.f32.partialorder %v3263_v24, 0.0  ;;  %v12437_v33 = vsel %vm3511_vm15, %v12356_v10, %v3767_v22  ;;  %v3775_v23 = vmul.f32 0.1, %v3263_v24 }
 0x20c   : > { %15882 = vst [vmem:[#allocation12_spill] sm:$0xff] %v12432_v60  ;;  %v2405_v61 = vpop.f32.mrb[145].mxu0  ;;  %v12441_v1 = vsel %vm3518_vm0, %v3262_v35, %v3774_v34  ;;  %v4868_v6 = vadd.f32 %v12376_v43, %v4797_v47  ;;  %v4869_v50 = vadd.f32 %v12376_v43, %v4798_v16  ;;  %v12448_v12 = vsel %vm3521_vm4, %v3265_v21, %v3777_v18 }
 0x20d   : > { %v10513_v27 = vpop.f32.mrb[146].mxu0  ;;  %v12452_v22 = vsel %vm3519_vm5, %v3263_v24, %v3775_v23  ;;  %v4801_v35 = vmul.f32 %v10636_v29, %v12367_v54  ;;  %v3005_v34 = vmul.f32 %v12228_v59, %v10512_v52  ;;  %v4799_v16 = vmul.f32 %v12367_v54, %v4549_v30 }
 0x20e   : > { %v2408_v2 = vpop.f32.mrb[147].mxu0  ;;  %v3003_v36 = vmul.f32 %v12228_v59, %v2405_v61  ;;  %v4800_v18 = vmul.f32 %v12367_v54, %v4552_v42  ;;  %v3006_v28 = vmul.f32 %v12228_v59, %v10513_v27  ;;  %vm4932_vm6 = vcmp.ge.f32.partialorder %v4868_v6, 0.0 }
 0x20f   : > { %v3268_v21 = vadd.f32 %v12239_v3, %v3005_v34  ;;  %v3004_v24 = vmul.f32 %v12228_v59, %v2408_v2  ;;  %v4996_v29 = vmul.f32 0.1, %v4868_v6  ;;  %v12466_v52 = vadd.f32 %v12376_v43, %v4801_v35 }
 0x210   : > { %v3266_v23 = vadd.f32 %v12239_v3, %v3003_v36  ;;  %v3269_v47 = vadd.f32 %v12239_v3, %v3006_v28  ;;  %v4997_v10 = vmul.f32 0.1, %v4869_v50  ;;  %v4870_v34 = vadd.f32 %v12376_v43, %v4799_v16 }
 0x211   : > { %v3267_v30 = vadd.f32 %v12239_v3, %v3004_v24  ;;  %v4802_v42 = vmul.f32 %v10637_v48, %v12367_v54  ;;  %vm4933_vm7 = vcmp.ge.f32.partialorder %v4869_v50, 0.0  ;;  %vm3524_vm8 = vcmp.ge.f32.partialorder %v3268_v21, 0.0  ;;  %v10862_v48 = vld [vmem:[%s15819_s7 + $0x30] ss:$8 sps:$4 sm:$0xff]  }
 0x212   : > { %v3780_v36 = vmul.f32 0.1, %v3268_v21  ;;  %v4871_v38 = vadd.f32 %v12376_v43, %v4800_v18  ;;  %vm3522_vm9 = vcmp.ge.f32.partialorder %v3266_v23, 0.0  ;;  %v3778_v20 = vmul.f32 0.1, %v3266_v23 }
 0x213   : > { %v10516_v61 = vpop.f32.mrb[148].mxu0  ;;  %v12480_v16 = vsel %vm4932_vm6, %v4868_v6, %v4996_v29  ;;  %v3779_v40 = vmul.f32 0.1, %v3267_v30  ;;  %v10864_v18 = vld [vmem:[%s15819_s7 + $0x34] ss:$8 sps:$4 sm:$0xff]   ;;  %vm3525_vm10 = vcmp.ge.f32.partialorder %v3269_v47, 0.0  ;;  %v4873_v57 = vadd.f32 %v12376_v43, %v4802_v42 }
 0x214   : > { %v3009_v27 = vmul.f32 %v12228_v59, %v10516_v61  ;;  %v2421_v2 = vpop.f32.mrb[149].mxu0  ;;  %15883 = vst [vmem:[#allocation13_spill] sm:$0xff] %v12480_v16  ;;  %v3781_v61 = vmul.f32 0.1, %v3269_v47  ;;  %vm3523_vm12 = vcmp.ge.f32.partialorder %v3267_v30, 0.0  ;;  %5256 = vmatprep.subr.bf16.mxu1 %v10864_v18  ;;  %vm4934_vm14 = vcmp.ge.f32.partialorder %v4870_v34, 0.0 }
 0x215   : > { %v10517_v35 = vpop.f32.mrb[150].mxu0  ;;  %v3007_v24 = vmul.f32 %v12228_v59, %v2421_v2  ;;  %5257 = vmatpush1.bf16.msra.mxu1 %v10862_v48  ;;  %vm4935_vm15 = vcmp.ge.f32.partialorder %v4871_v38, 0.0  ;;  %v4998_v42 = vmul.f32 0.1, %v4870_v34  ;;  %v4999_v16 = vmul.f32 0.1, %v4871_v38 }
 0x216   : > { %v3272_v28 = vadd.f32 %v12239_v3, %v3009_v27  ;;  %v2424_v17 = vpop.f32.mrb[151].mxu0  ;;  %v3010_v14 = vmul.f32 %v12228_v59, %v10517_v35  ;;  %v12487_v27 = vsel %vm4933_vm7, %v4869_v50, %v4997_v10  ;;  %v12500_v50 = vsel %vm3524_vm8, %v3268_v21, %v3780_v36  ;;  %v10867_v36 = vld [vmem:[%s15822_s10 + $0x8c] ss:$16 sps:$4 sm:$0xff]  }
 0x217   : > { %15884 = vst [vmem:[#allocation14_spill] sm:$0xff] %v12487_v27  ;;  %v3008_v60 = vmul.f32 %v12228_v59, %v2424_v17  ;;  %v12491_v6 = vadd.f32 %v12239_v3, %v3007_v24  ;;  %v12503_v10 = vsel %vm3522_vm9, %v3266_v23, %v3778_v20  ;;  %v12505_v17 = vsel %vm3525_vm10, %v3269_v47, %v3781_v61 }
 0x218   : > { %v3784_v2 = vmul.f32 0.1, %v3272_v28  ;;  %vm3528_vm13 = vcmp.ge.f32.partialorder %v3272_v28, 0.0  ;;  %v12494_v29 = vadd.f32 %v12239_v3, %v3010_v14  ;;  %v12507_v24 = vsel %vm3523_vm12, %v3267_v30, %v3779_v40  ;;  %7076 = vmatprep.subr.bf16.mxu0 %v10867_v36 }
 0x219   : > { %v12512_v18 = vadd.f32 %v12239_v3, %v3008_v60  ;;  %vm3526_vm1 = vcmp.ge.f32.partialorder %v12491_v6, 0.0  ;;  %v3782_v20 = vmul.f32 0.1, %v12491_v6  ;;  %vm4936_vm2 = vcmp.ge.f32.partialorder %v12466_v52, 0.0  ;;  %v10865_v60 = vld [vmem:[%s15822_s10 + $0x88] ss:$16 sps:$4 sm:$0xff]  }
 0x21a   : > { %v12509_v14 = vsel %vm3528_vm13, %v3272_v28, %v3784_v2  ;;  %v12517_v21 = vmul.f32 0.1, %v12494_v29  ;;  %v12529_v28 = vsel %vm4934_vm14, %v4870_v34, %v4998_v42  ;;  %v12532_v48 = vsel %vm4935_vm15, %v4871_v38, %v4999_v16  ;;  %7077 = vmatpush1.bf16.msra.mxu0 %v10865_v60 }
 0x21b   : > { %v10520_v35 = vpop.f32.mrb[152].mxu0  ;;  %15885 = vst [vmem:[#allocation15_spill] sm:$0xff] %v12529_v28  ;;  %15886 = vst [vmem:[#allocation16_spill] sm:$0xff] %v12532_v48  ;;  %vm4937_vm3 = vcmp.ge.f32.partialorder %v4873_v57, 0.0  ;;  %v5000_v27 = vmul.f32 0.1, %v12466_v52 }
 0x21c   : > { %v3013_v40 = vmul.f32 %v12228_v59, %v10520_v35  ;;  %v2437_v47 = vpop.f32.mrb[153].mxu0  ;;  %vm3529_vm0 = vcmp.ge.f32.partialorder %v12494_v29, 0.0  ;;  %v12541_v4 = vmul.f32 0.1, %v12512_v18  ;;  %v5001_v16 = vmul.f32 0.1, %v4873_v57 }
 0x21d   : > { %v3011_v23 = vmul.f32 %v12228_v59, %v2437_v47  ;;  %v10521_v30 = vpop.f32.mrb[154].mxu0  ;;  %vm3527_vm7 = vcmp.ge.f32.partialorder %v12512_v18, 0.0 }
 0x21e   : > { %v3276_v61 = vadd.f32 %v12239_v3, %v3013_v40  ;;  %v3014_v2 = vmul.f32 %v12228_v59, %v10521_v30  ;;  %v2440_v35 = vpop.f32.mrb[155].mxu0  ;;  %v12549_v30 = vsel %vm4936_vm2, %v12466_v52, %v5000_v27 }
 0x21f   : > { %v3274_v34 = vadd.f32 %v12239_v3, %v3011_v23  ;;  %v3012_v38 = vmul.f32 %v12228_v59, %v2440_v35  ;;  %15887 = vst [vmem:[#allocation17_spill] sm:$0xff] %v12549_v30  ;;  %v12553_v23 = vsel %vm4937_vm3, %v4873_v57, %v5001_v16  ;;  %v10868_v57 = vld [vmem:[%s15819_s7 + $0x40] ss:$8 sps:$4 sm:$0xff]  }
 0x220   : > { %vm3532_vm4 = vcmp.ge.f32.partialorder %v3276_v61, 0.0  ;;  %v3788_v42 = vmul.f32 0.1, %v3276_v61  ;;  %v3277_v40 = vadd.f32 %v12239_v3, %v3014_v2  ;;  %15888 = vst [vmem:[#allocation18_spill] sm:$0xff] %v12553_v23  ;;  %v15889_v23 = vmax.f32 %v12345_v5, %v12378_v19 }
 0x221   : > { %vm3530_vm5 = vcmp.ge.f32.partialorder %v3274_v34, 0.0  ;;  %v3786_v47 = vmul.f32 0.1, %v3274_v34  ;;  %v3275_v28 = vadd.f32 %v12239_v3, %v3012_v38  ;;  %v15891_v19 = vmax.f32 %v12350_v62, %v12388_v49 }
 0x222   : > { %v4044_v35 = vsel %vm3532_vm4, %v3276_v61, %v3788_v42  ;;  %vm3533_vm6 = vcmp.ge.f32.partialorder %v3277_v40, 0.0  ;;  %v3789_v36 = vmul.f32 0.1, %v3277_v40 }
 0x223   : > { %v10524_v48 = vpop.f32.mrb[156].mxu0  ;;  %v4244_v60 = vmax.f32 %v12500_v50, %v4044_v35  ;;  %v4042_v52 = vsel %vm3530_vm5, %v3274_v34, %v3786_v47  ;;  %vm3531_vm8 = vcmp.ge.f32.partialorder %v3275_v28, 0.0  ;;  %v3787_v27 = vmul.f32 0.1, %v3275_v28  ;;  %v10870_v50 = vld [vmem:[%s15819_s7 + $0x44] ss:$8 sps:$4 sm:$0xff]  }
 0x224   : > { %v2453_v8 = vpop.f32.mrb[157].mxu0  ;;  %v4242_v61 = vmax.f32 %v12503_v10, %v4042_v52  ;;  %v4045_v38 = vsel %vm3533_vm6, %v3277_v40, %v3789_v36  ;;  %v3017_v16 = vmul.f32 %v12228_v59, %v10524_v48  ;;  %5258 = vmatprep.subr.bf16.mxu1 %v10870_v50 }
 0x225   : > { %v3015_v42 = vmul.f32 %v12228_v59, %v2453_v8  ;;  %v10525_v2 = vpop.f32.mrb[158].mxu0  ;;  %v4245_v47 = vmax.f32 %v12505_v17, %v4045_v38  ;;  %v4043_v34 = vsel %vm3531_vm8, %v3275_v28, %v3787_v27  ;;  %v4308_v10 = vmax.f32 %v15889_v23, %v4244_v60  ;;  %5259 = vmatpush1.bf16.msra.mxu1 %v10868_v57 }
 0x226   : > { %v3018_v35 = vmul.f32 %v12228_v59, %v10525_v2  ;;  %v2456_v30 = vpop.f32.mrb[159].mxu0  ;;  %v4243_v40 = vmax.f32 %v12507_v24, %v4043_v34  ;;  %v3280_v48 = vadd.f32 %v12239_v3, %v3017_v16  ;;  %v4038_v17 = vsel %vm3526_vm1, %v12491_v6, %v3782_v20 }
 0x227   : > { %v3278_v8 = vadd.f32 %v12239_v3, %v3015_v42  ;;  %v3016_v36 = vmul.f32 %v12228_v59, %v2456_v30  ;;  %v15890_v2 = vmax.f32 %v12347_v11, %v12383_v7  ;;  %v4309_v24 = vmax.f32 %v15891_v19, %v4245_v47 }
 0x228   : > { %v3281_v28 = vadd.f32 %v12239_v3, %v3018_v35  ;;  %vm3536_vm9 = vcmp.ge.f32.partialorder %v3280_v48, 0.0  ;;  %v3792_v23 = vmul.f32 0.1, %v3280_v48  ;;  %v15892_v6 = vmax.f32 %v12352_v58, %v12402_v39 }
 0x229   : > { %v4306_v5 = vmax.f32 %v15890_v2, %v4242_v61  ;;  %vm3534_vm10 = vcmp.ge.f32.partialorder %v3278_v8, 0.0  ;;  %v3790_v30 = vmul.f32 0.1, %v3278_v8  ;;  %v3279_v52 = vadd.f32 %v12239_v3, %v3016_v36 }
 0x22a   : > { %vm3537_vm12 = vcmp.ge.f32.partialorder %v3281_v28, 0.0  ;;  %v3793_v60 = vmul.f32 0.1, %v3281_v28  ;;  %v4307_v20 = vmax.f32 %v15892_v6, %v4243_v40  ;;  %v4041_v11 = vsel %vm3529_vm0, %v12494_v29, %v12517_v21 }
 0x22b   : > { %v4048_v62 = vsel %vm3536_vm9, %v3280_v48, %v3792_v23  ;;  %v4046_v7 = vsel %vm3534_vm10, %v3278_v8, %v3790_v30  ;;  %v10528_v49 = vpop.f32.mrb[160].mxu0  ;;  %v4355_v27 = vpack.c.bf16 %v4309_v24, %v4308_v10  ;;  %vm3535_vm13 = vcmp.ge.f32.partialorder %v3279_v52, 0.0 }
 0x22c   : > { %v4248_v57 = vmax.f32 %v12509_v14, %v4048_v62  ;;  %v4246_v61 = vmax.f32 %v4038_v17, %v4046_v7  ;;  %v4049_v38 = vsel %vm3537_vm12, %v3281_v28, %v3793_v60  ;;  %v2469_v16 = vpop.f32.mrb[161].mxu0  ;;  %v3791_v50 = vmul.f32 0.1, %v3279_v52  ;;  %v10871_v28 = vld [vmem:[%s15819_s7 + $0x50] ss:$8 sps:$4 sm:$0xff]  }
 0x22d   : > { %v4249_v42 = vmax.f32 %v4041_v11, %v4049_v38  ;;  %v10529_v47 = vpop.f32.mrb[162].mxu0  ;;  %v4354_v58 = vpack.c.bf16 %v4307_v20, %v4306_v5  ;;  %v15893_v34 = vmax.f32 %v12370_v13, %v12441_v1  ;;  %v15894_v29 = vmax.f32 %v12360_v55, %v12428_v41 }
 0x22e   : > { %v2472_v39 = vpop.f32.mrb[163].mxu0  ;;  %v4039_v14 = vsel %vm3527_vm7, %v12512_v18, %v12541_v4  ;;  %v4047_v10 = vsel %vm3535_vm13, %v3279_v52, %v3791_v50  ;;  %v3021_v48 = vmul.f32 %v12228_v59, %v10528_v49  ;;  %v3019_v8 = vmul.f32 %v12228_v59, %v2469_v16 }
 0x22f   : > { %v4310_v35 = vmax.f32 %v15893_v34, %v4246_v61  ;;  %v4312_v21 = vmax.f32 %v15894_v29, %v4248_v57  ;;  %v4247_v40 = vmax.f32 %v4039_v14, %v4047_v10  ;;  %10662 = vmatprep.mubr.msk.bf16.mxu1 %vm4402_vm11, %v4354_v58  ;;  %v15895_v13 = vmax.f32 %v12398_v15, %v12448_v12  ;;  %v10873_v15 = vld [vmem:[%s15819_s7 + $0x54] ss:$8 sps:$4 sm:$0xff]  }
 0x230   : > { %v3022_v55 = vmul.f32 %v12228_v59, %v10529_v47  ;;  %10663 = vmatmul.mubr.msk.bf16.gmra.mrb[52].mxu1 %vm4402_vm11, %v4355_v27  ;;  %v3020_v41 = vmul.f32 %v12228_v59, %v2472_v39  ;;  %v15896_v4 = vmax.f32 %v12437_v33, %v12452_v22  ;;  %v3284_v12 = vadd.f32 %v12239_v3, %v3021_v48  ;;  %v10876_v48 = vld [vmem:[%s15822_s10 + $0xac] ss:$16 sps:$4 sm:$0xff]  }
 0x231   : > { %v4313_v1 = vmax.f32 %v15895_v13, %v4249_v42  ;;  %v3282_v2 = vadd.f32 %v12239_v3, %v3019_v8  ;;  %5260 = vmatprep.subr.bf16.mxu1 %v10873_v15  ;;  %7078 = vmatprep.subr.bf16.mxu0 %v10876_v48 }
 0x232   : > { %v4311_v18 = vmax.f32 %v15896_v4, %v4247_v40  ;;  %v3285_v33 = vadd.f32 %v12239_v3, %v3022_v55  ;;  %v3283_v22 = vadd.f32 %v12239_v3, %v3020_v41  ;;  %5261 = vmatpush1.bf16.msra.mxu1 %v10871_v28  ;;  %vm3540_vm14 = vcmp.ge.f32.partialorder %v3284_v12, 0.0  ;;  %v10874_v40 = vld [vmem:[%s15822_s10 + $0xa8] ss:$16 sps:$4 sm:$0xff]  }
 0x233   : > { %v10532_v36 = vpop.f32.mrb[164].mxu0  ;;  %v4357_v17 = vpack.c.bf16 %v4313_v1, %v4312_v21  ;;  %v3796_v6 = vmul.f32 0.1, %v3284_v12  ;;  %vm3538_vm15 = vcmp.ge.f32.partialorder %v3282_v2, 0.0  ;;  %v3794_v11 = vmul.f32 0.1, %v3282_v2  ;;  %7079 = vmatpush1.bf16.msra.mxu0 %v10874_v40 }
 0x234   : > { %v3025_v5 = vmul.f32 %v12228_v59, %v10532_v36  ;;  %v2485_v19 = vpop.f32.mrb[165].mxu0  ;;  %v4356_v24 = vpack.c.bf16 %v4311_v18, %v4310_v35  ;;  %v3797_v62 = vmul.f32 0.1, %v3285_v33  ;;  %v3795_v7 = vmul.f32 0.1, %v3283_v22 }
 0x235   : > { %v10533_v23 = vpop.f32.mrb[166].mxu0  ;;  %v3023_v30 = vmul.f32 %v12228_v59, %v2485_v19  ;;  %vm3541_vm1 = vcmp.ge.f32.partialorder %v3285_v33, 0.0  ;;  %vm3539_vm2 = vcmp.ge.f32.partialorder %v3283_v22, 0.0  ;;  %v12636_v38 = vsel %vm3540_vm14, %v3284_v12, %v3796_v6 }
 0x236   : > { %v2488_v60 = vpop.f32.mrb[167].mxu0  ;;  %v3288_v52 = vadd.f32 %v12239_v3, %v3025_v5  ;;  %10666 = vmatprep.mubr.msk.bf16.mxu1 %vm4402_vm11, %v4356_v24  ;;  %v3026_v20 = vmul.f32 %v12228_v59, %v10533_v23  ;;  %v12641_v47 = vsel %vm3538_vm15, %v3282_v2, %v3794_v11  ;;  %v12643_v58 = vsel %vm3541_vm1, %v3285_v33, %v3797_v62  ;;  %v10877_v11 = vld [vmem:[%s15819_s7 + $0x60] ss:$8 sps:$4 sm:$0xff]   ;;  %v10879_v62 = vld [vmem:[%s15819_s7 + $0x64] ss:$8 sps:$4 sm:$0xff]  }
 0x237   : > { %v3286_v49 = vadd.f32 %v12239_v3, %v3023_v30  ;;  %v3024_v27 = vmul.f32 %v12228_v59, %v2488_v60  ;;  %v12645_v39 = vsel %vm3539_vm2, %v3283_v22, %v3795_v7  ;;  %5262 = vmatprep.subr.bf16.mxu1 %v10879_v62 }
 0x238   : > { %10667 = vmatmul.mubr.msk.bf16.gmra.mrb[56].mxu1 %vm4402_vm11, %v4357_v17  ;;  %v3800_v57 = vmul.f32 0.1, %v3288_v52  ;;  %vm3544_vm3 = vcmp.ge.f32.partialorder %v3288_v52, 0.0  ;;  %v3289_v16 = vadd.f32 %v12239_v3, %v3026_v20 }
 0x239   : > { %vm3542_vm0 = vcmp.ge.f32.partialorder %v3286_v49, 0.0  ;;  %v3287_v29 = vadd.f32 %v12239_v3, %v3024_v27  ;;  %v3798_v13 = vmul.f32 0.1, %v3286_v49  ;;  %5263 = vmatpush1.bf16.msra.mxu1 %v10877_v11 }
 0x23a   : > { %v12658_v8 = vsel %vm3544_vm3, %v3288_v52, %v3800_v57  ;;  %vm3545_vm4 = vcmp.ge.f32.partialorder %v3289_v16, 0.0  ;;  %v3801_v36 = vmul.f32 0.1, %v3289_v16 }
 0x23b   : > { %v10536_v61 = vpop.f32.mrb[168].mxu0  ;;  %v3799_v12 = vmul.f32 0.1, %v3287_v29  ;;  %vm3543_vm9 = vcmp.ge.f32.partialorder %v3287_v29, 0.0 }
 0x23c   : > { %v3029_v42 = vmul.f32 %v12228_v59, %v10536_v61  ;;  %v2501_v50 = vpop.f32.mrb[169].mxu0 }
 0x23d   : > { %v3027_v34 = vmul.f32 %v12228_v59, %v2501_v50  ;;  %v10537_v35 = vpop.f32.mrb[170].mxu0  ;;  %v12688_v50 = vsel %vm3542_vm0, %v3286_v49, %v3798_v13  ;;  %v12698_v40 = vsel %vm3543_vm9, %v3287_v29, %v3799_v12  ;;  %v12704_v49 = vld [vmem:[%s15814_s2] ss:$0 sm:$0xff] }
 0x23e   : > { %v3292_v21 = vadd.f32 %v12239_v3, %v3029_v42  ;;  %v3030_v14 = vmul.f32 %v12228_v59, %v10537_v35  ;;  %v2504_v10 = vpop.f32.mrb[171].mxu0 }
 0x23f   : > { %v3290_v1 = vadd.f32 %v12239_v3, %v3027_v34  ;;  %v3028_v55 = vmul.f32 %v12228_v59, %v2504_v10  ;;  %v12695_v10 = vsel %vm3545_vm4, %v3289_v16, %v3801_v36 }
 0x240   : > { %vm3548_vm5 = vcmp.ge.f32.partialorder %v3292_v21, 0.0  ;;  %v3804_v41 = vmul.f32 0.1, %v3292_v21  ;;  %v3293_v4 = vadd.f32 %v12239_v3, %v3030_v14  ;;  %v10640_v18 = vpop.f32.mrb[28].mxu1 }
 0x241   : > { %vm3546_vm6 = vcmp.ge.f32.partialorder %v3290_v1, 0.0  ;;  %v3802_v17 = vmul.f32 0.1, %v3290_v1  ;;  %v3291_v28 = vadd.f32 %v12239_v3, %v3028_v55  ;;  %v4565_v15 = vpop.f32.mrb[29].mxu1  ;;  %v4805_v6 = vmul.f32 %v10640_v18, %v12367_v54 }
 0x242   : > { %v12664_v2 = vsel %vm3548_vm5, %v3292_v21, %v3804_v41  ;;  %vm3549_vm7 = vcmp.ge.f32.partialorder %v3293_v4, 0.0  ;;  %v3805_v5 = vmul.f32 0.1, %v3293_v4  ;;  %v10641_v19 = vpop.f32.mrb[30].mxu1  ;;  %v4803_v57 = vmul.f32 %v12367_v54, %v4565_v15 }
 0x243   : > { %v12668_v22 = vsel %vm3546_vm6, %v3290_v1, %v3802_v17  ;;  %vm3547_vm8 = vcmp.ge.f32.partialorder %v3291_v28, 0.0  ;;  %v3803_v24 = vmul.f32 0.1, %v3291_v28  ;;  %v10540_v23 = vpop.f32.mrb[172].mxu0  ;;  %v4568_v30 = vpop.f32.mrb[31].mxu1  ;;  %v4806_v15 = vmul.f32 %v10641_v19, %v12367_v54 }
 0x244   : > { %v12672_v52 = vsel %vm3549_vm7, %v3293_v4, %v3805_v5  ;;  %v2517_v20 = vpop.f32.mrb[173].mxu0  ;;  %v3033_v61 = vmul.f32 %v12228_v59, %v10540_v23  ;;  %v4804_v1 = vmul.f32 %v12367_v54, %v4568_v30  ;;  %v4874_v41 = vadd.f32 %v12376_v43, %v4803_v57 }
 0x245   : > { %v12683_v27 = vsel %vm3547_vm8, %v3291_v28, %v3803_v24  ;;  %v10541_v42 = vpop.f32.mrb[174].mxu0  ;;  %v3031_v35 = vmul.f32 %v12228_v59, %v2517_v20 }
 0x246   : > { %v3034_v21 = vmul.f32 %v12228_v59, %v10541_v42  ;;  %v2520_v14 = vpop.f32.mrb[175].mxu0  ;;  %v3296_v48 = vadd.f32 %v12239_v3, %v3033_v61  ;;  %v12708_v59 = vadd.f32 %v12376_v43, %v4805_v6  ;;  %v4875_v6 = vadd.f32 %v12376_v43, %v4804_v1 }
 0x247   : > { %v3032_v13 = vmul.f32 %v12704_v49, %v2520_v14  ;;  %v3294_v16 = vadd.f32 %v12239_v3, %v3031_v35  ;;  %v5002_v35 = vmul.f32 0.1, %v4874_v41  ;;  %vm4938_vm15 = vcmp.ge.f32.partialorder %v4874_v41, 0.0 }
 0x248   : > { %v3297_v29 = vadd.f32 %v12239_v3, %v3034_v21  ;;  %v10644_v55 = vpop.f32.mrb[32].mxu1  ;;  %vm3552_vm10 = vcmp.ge.f32.partialorder %v3296_v48, 0.0  ;;  %v3808_v4 = vmul.f32 0.1, %v3296_v48  ;;  %vm4939_vm1 = vcmp.ge.f32.partialorder %v4875_v6, 0.0 }
 0x249   : > { %v3295_v18 = vadd.f32 %v12239_v3, %v3032_v13  ;;  %v4581_v36 = vpop.f32.mrb[33].mxu1  ;;  %vm3550_vm12 = vcmp.ge.f32.partialorder %v3294_v16, 0.0  ;;  %v3806_v17 = vmul.f32 0.1, %v3294_v16  ;;  %v4809_v14 = vmul.f32 %v10644_v55, %v12367_v54 }
 0x24a   : > { %vm3553_vm13 = vcmp.ge.f32.partialorder %v3297_v29, 0.0  ;;  %v3809_v28 = vmul.f32 0.1, %v3297_v29  ;;  %v12716_v12 = vsel %vm3552_vm10, %v3296_v48, %v3808_v4  ;;  %v10645_v24 = vpop.f32.mrb[34].mxu1  ;;  %v4807_v48 = vmul.f32 %v12367_v54, %v4581_v36  ;;  %v10883_v36 = vld [vmem:[%s15822_s10 + $0xc8] ss:$16 sps:$4 sm:$0xff]  }
 0x24b   : > { %vm3551_vm14 = vcmp.ge.f32.partialorder %v3295_v18, 0.0  ;;  %v3807_v5 = vmul.f32 0.1, %v3295_v18  ;;  %v10544_v23 = vpop.f32.mrb[176].mxu0  ;;  %v12721_v20 = vsel %vm3550_vm12, %v3294_v16, %v3806_v17  ;;  %v4584_v11 = vpop.f32.mrb[35].mxu1  ;;  %v4810_v4 = vmul.f32 %v10645_v24, %v12367_v54 }
 0x24c   : > { %v12723_v3 = vsel %vm3553_vm13, %v3297_v29, %v3809_v28  ;;  %v2533_v62 = vpop.f32.mrb[177].mxu0  ;;  %v3037_v13 = vmul.f32 %v12704_v49, %v10544_v23  ;;  %v10880_v16 = vld [vmem:[%s15819_s7 + $0x70] ss:$8 sps:$4 sm:$0xff]   ;;  %v10882_v29 = vld [vmem:[%s15819_s7 + $0x74] ss:$8 sps:$4 sm:$0xff]   ;;  %v4808_v21 = vmul.f32 %v12367_v54, %v4584_v11  ;;  %vm4940_vm3 = vcmp.ge.f32.partialorder %v12708_v59, 0.0 }
 0x24d   : > { %v12729_v61 = vsel %vm3551_vm14, %v3295_v18, %v3807_v5  ;;  %v10545_v42 = vpop.f32.mrb[178].mxu0  ;;  %v3035_v18 = vmul.f32 %v12704_v49, %v2533_v62  ;;  %v10885_v28 = vld [vmem:[%s15822_s10 + $0xcc] ss:$16 sps:$4 sm:$0xff]   ;;  %v12755_v5 = vld [vmem:[%s15815_s3] ss:$0 sm:$0xff]  ;;  %5264 = vmatprep.subr.bf16.mxu1 %v10882_v29  ;;  %v4878_v29 = vadd.f32 %v12376_v43, %v4807_v48 }
 0x24e   : > { %v2536_v1 = vpop.f32.mrb[179].mxu0  ;;  %v3038_v17 = vmul.f32 %v12704_v49, %v10545_v42  ;;  %v3300_v24 = vadd.f32 %v12755_v5, %v3037_v13  ;;  %v5003_v23 = vmul.f32 0.1, %v4875_v6  ;;  %5265 = vmatpush1.bf16.msra.mxu1 %v10880_v16  ;;  %7080 = vmatprep.subr.bf16.mxu0 %v10885_v28  ;;  %v12766_v13 = vadd.f32 %v12376_v43, %v4809_v14 }
 0x24f   : > { %v3036_v55 = vmul.f32 %v12704_v49, %v2536_v1  ;;  %v3298_v62 = vadd.f32 %v12755_v5, %v3035_v18  ;;  %v4877_v1 = vadd.f32 %v12376_v43, %v4806_v15  ;;  %7081 = vmatpush1.bf16.msra.mxu0 %v10883_v36  ;;  %v12770_v18 = vadd.f32 %v12376_v43, %v4810_v4  ;;  %v10888_v36 = vld [vmem:[%s15822_s10 + $0x4] ss:$16 sps:$4 sm:$0xff]  }
 0x250   : > { %v3301_v42 = vadd.f32 %v12755_v5, %v3038_v17  ;;  %v12763_v19 = vsel %vm4939_vm1, %v4875_v6, %v5003_v23  ;;  %v12772_v17 = vsel %vm4938_vm15, %v4874_v41, %v5002_v35  ;;  %vm3556_vm2 = vcmp.ge.f32.partialorder %v3300_v24, 0.0  ;;  %6715 = vmatprep.subr.bf16.mxu1 %v10888_v36 }
 0x251   : > { %v3299_v57 = vadd.f32 %v12755_v5, %v3036_v55  ;;  %15897 = vst [vmem:[#allocation19_spill] sm:$0xff] %v12763_v19  ;;  %15898 = vst [vmem:[#allocation20_spill] sm:$0xff] %v12772_v17  ;;  %v3812_v16 = vmul.f32 0.1, %v3300_v24  ;;  %vm3554_vm0 = vcmp.ge.f32.partialorder %v3298_v62, 0.0  ;;  %v4879_v48 = vadd.f32 %v12376_v43, %v4808_v21 }
 0x252   : > { %v3810_v6 = vmul.f32 0.1, %v3298_v62  ;;  %v3813_v11 = vmul.f32 0.1, %v3301_v42  ;;  %vm4941_vm4 = vcmp.ge.f32.partialorder %v4877_v1, 0.0  ;;  %vm3557_vm5 = vcmp.ge.f32.partialorder %v3301_v42, 0.0 }
 0x253   : > { %v10548_v15 = vpop.f32.mrb[180].mxu0  ;;  %v3811_v4 = vmul.f32 0.1, %v3299_v57  ;;  %v5004_v30 = vmul.f32 0.1, %v12708_v59  ;;  %vm3555_vm6 = vcmp.ge.f32.partialorder %v3299_v57, 0.0 }
 0x254   : > { %v3041_v14 = vmul.f32 %v12704_v49, %v10548_v15  ;;  %v2549_v55 = vpop.f32.mrb[181].mxu0  ;;  %v5005_v15 = vmul.f32 0.1, %v4877_v1  ;;  %v12790_v34 = vsel %vm3554_vm0, %v3298_v62, %v3810_v6  ;;  %vm4942_vm9 = vcmp.ge.f32.partialorder %v4878_v29, 0.0 }
 0x255   : > { %v3039_v41 = vmul.f32 %v12704_v49, %v2549_v55  ;;  %v10549_v35 = vpop.f32.mrb[182].mxu0  ;;  %v4068_v55 = vsel %vm3556_vm2, %v3300_v24, %v3812_v16  ;;  %v12798_v60 = vsel %vm4940_vm3, %v12708_v59, %v5004_v30  ;;  %v12803_v36 = vsel %vm3555_vm6, %v3299_v57, %v3811_v4 }
 0x256   : > { %v3304_v28 = vadd.f32 %v12755_v5, %v3041_v14  ;;  %v3042_v23 = vmul.f32 %v12704_v49, %v10549_v35  ;;  %v2552_v54 = vpop.f32.mrb[183].mxu0  ;;  %15899 = vst [vmem:[#allocation21_spill] sm:$0xff] %v12798_v60  ;;  %vm4943_vm10 = vcmp.ge.f32.partialorder %v4879_v48, 0.0  ;;  %vm4945_vm2 = vcmp.ge.f32.partialorder %v12770_v18, 0.0 }
 0x257   : > { %v3302_v43 = vadd.f32 %v12755_v5, %v3039_v41  ;;  %v3040_v21 = vmul.f32 %v12704_v49, %v2552_v54  ;;  %v12801_v41 = vsel %vm4941_vm4, %v4877_v1, %v5005_v15  ;;  %v4069_v54 = vsel %vm3557_vm5, %v3301_v42, %v3813_v11 }
 0x258   : > { %vm3560_vm7 = vcmp.ge.f32.partialorder %v3304_v28, 0.0  ;;  %v3816_v14 = vmul.f32 0.1, %v3304_v28  ;;  %v12793_v35 = vadd.f32 %v12755_v5, %v3042_v23  ;;  %15900 = vst [vmem:[#allocation22_spill] sm:$0xff] %v12801_v41  ;;  %v5006_v42 = vmul.f32 0.1, %v4878_v29 }
 0x259   : > { %v3814_v7 = vmul.f32 0.1, %v3302_v43  ;;  %vm3558_vm8 = vcmp.ge.f32.partialorder %v3302_v43, 0.0  ;;  %v12808_v16 = vadd.f32 %v12755_v5, %v3040_v21  ;;  %v5007_v1 = vmul.f32 0.1, %v4879_v48 }
 0x25a   : > { %v12812_v59 = vsel %vm3560_vm7, %v3304_v28, %v3816_v14  ;;  %v12818_v4 = vmul.f32 0.1, %v12793_v35  ;;  %v12824_v14 = vsel %vm4942_vm9, %v4878_v29, %v5006_v42  ;;  %vm3561_vm13 = vcmp.ge.f32.partialorder %v12793_v35, 0.0 }
 0x25b   : > { %v10552_v24 = vpop.f32.mrb[184].mxu0  ;;  %v12815_v11 = vsel %vm3558_vm8, %v3302_v43, %v3814_v7  ;;  %15901 = vst [vmem:[#allocation23_spill] sm:$0xff] %v12824_v14  ;;  %vm3559_vm15 = vcmp.ge.f32.partialorder %v12808_v16, 0.0  ;;  %vm4944_vm0 = vcmp.ge.f32.partialorder %v12766_v13, 0.0  ;;  %v5008_v60 = vmul.f32 0.1, %v12766_v13 }
 0x25c   : > { %v3045_v6 = vmul.f32 %v12704_v49, %v10552_v24  ;;  %v2565_v23 = vpop.f32.mrb[185].mxu0 }
 0x25d   : > { %v3043_v30 = vmul.f32 %v12704_v49, %v2565_v23  ;;  %v10553_v57 = vpop.f32.mrb[186].mxu0  ;;  %v12826_v23 = vsel %vm4943_vm10, %v4879_v48, %v5007_v1 }
 0x25e   : > { %v3308_v15 = vadd.f32 %v12755_v5, %v3045_v6  ;;  %v3046_v21 = vmul.f32 %v12704_v49, %v10553_v57  ;;  %v2568_v24 = vpop.f32.mrb[187].mxu0  ;;  %15902 = vst [vmem:[#allocation24_spill] sm:$0xff] %v12826_v23  ;;  %v3815_v6 = vmul.f32 0.1, %v12808_v16 }
 0x25f   : > { %v3306_v62 = vadd.f32 %v12755_v5, %v3043_v30  ;;  %v3044_v28 = vmul.f32 %v12704_v49, %v2568_v24 }
 0x260   : > { %vm3564_vm12 = vcmp.ge.f32.partialorder %v3308_v15, 0.0  ;;  %v3820_v33 = vmul.f32 0.1, %v3308_v15  ;;  %v3309_v7 = vadd.f32 %v12755_v5, %v3046_v21 }
 0x261   : > { %vm3562_vm14 = vcmp.ge.f32.partialorder %v3306_v62, 0.0  ;;  %v3818_v57 = vmul.f32 0.1, %v3306_v62  ;;  %v3307_v30 = vadd.f32 %v12755_v5, %v3044_v28 }
 0x262   : > { %v4076_v29 = vsel %vm3564_vm12, %v3308_v15, %v3820_v33  ;;  %vm3565_vm1 = vcmp.ge.f32.partialorder %v3309_v7, 0.0  ;;  %v3821_v48 = vmul.f32 0.1, %v3309_v7 }
 0x263   : > { %v4252_v42 = vmax.f32 %v4068_v55, %v4076_v29  ;;  %v4074_v1 = vsel %vm3562_vm14, %v3306_v62, %v3818_v57  ;;  %vm3563_vm3 = vcmp.ge.f32.partialorder %v3307_v30, 0.0  ;;  %v3819_v21 = vmul.f32 0.1, %v3307_v30  ;;  %v10556_v24 = vpop.f32.mrb[188].mxu0 }
 0x264   : > { %v4250_v43 = vmax.f32 %v12790_v34, %v4074_v1  ;;  %v4077_v14 = vsel %vm3565_vm1, %v3309_v7, %v3821_v48  ;;  %v3049_v23 = vmul.f32 %v12704_v49, %v10556_v24  ;;  %v2581_v28 = vpop.f32.mrb[189].mxu0  ;;  %v15903_v55 = vmax.f32 %v12636_v38, %v12664_v2 }
 0x265   : > { %v4253_v33 = vmax.f32 %v4069_v54, %v4077_v14  ;;  %v4075_v15 = vsel %vm3563_vm3, %v3307_v30, %v3819_v21  ;;  %v3047_v41 = vmul.f32 %v12704_v49, %v2581_v28  ;;  %v10557_v17 = vpop.f32.mrb[190].mxu0  ;;  %v15904_v48 = vmax.f32 %v12641_v47, %v12668_v22 }
 0x266   : > { %v4316_v62 = vmax.f32 %v15903_v55, %v4252_v42  ;;  %v4251_v57 = vmax.f32 %v12803_v36, %v4075_v15  ;;  %v3312_v29 = vadd.f32 %v12755_v5, %v3049_v23  ;;  %v3050_v34 = vmul.f32 %v12704_v49, %v10557_v17  ;;  %v2584_v7 = vpop.f32.mrb[191].mxu0 }
 0x267   : > { %v4314_v1 = vmax.f32 %v15904_v48, %v4250_v43  ;;  %v3310_v54 = vadd.f32 %v12755_v5, %v3047_v41  ;;  %v3048_v14 = vmul.f32 %v12704_v49, %v2584_v7  ;;  %v15905_v30 = vmax.f32 %v12643_v58, %v12672_v52 }
 0x268   : > { %v5009_v2 = vmul.f32 0.1, %v12770_v18  ;;  %vm3568_vm4 = vcmp.ge.f32.partialorder %v3312_v29, 0.0  ;;  %v3824_v36 = vmul.f32 0.1, %v3312_v29  ;;  %v3313_v23 = vadd.f32 %v12755_v5, %v3050_v34 }
 0x269   : > { %v4317_v38 = vmax.f32 %v15905_v30, %v4253_v33  ;;  %v15906_v17 = vmax.f32 %v12645_v39, %v12683_v27  ;;  %vm3566_vm5 = vcmp.ge.f32.partialorder %v3310_v54, 0.0  ;;  %v3822_v47 = vmul.f32 0.1, %v3310_v54 }
 0x26a   : > { %v3311_v22 = vadd.f32 %v12755_v5, %v3048_v14  ;;  %v4080_v43 = vsel %vm3568_vm4, %v3312_v29, %v3824_v36  ;;  %vm3569_vm6 = vcmp.ge.f32.partialorder %v3313_v23, 0.0  ;;  %v3825_v21 = vmul.f32 0.1, %v3313_v23 }
 0x26b   : > { %v4315_v42 = vmax.f32 %v15906_v17, %v4251_v57  ;;  %v4359_v41 = vpack.c.bf16 %v4317_v38, %v4316_v62  ;;  %v4256_v52 = vmax.f32 %v12812_v59, %v4080_v43  ;;  %v4078_v24 = vsel %vm3566_vm5, %v3310_v54, %v3822_v47  ;;  %v10560_v33 = vpop.f32.mrb[192].mxu0 }
 0x26c   : > { %vm3567_vm7 = vcmp.ge.f32.partialorder %v3311_v22, 0.0  ;;  %v3823_v28 = vmul.f32 0.1, %v3311_v22  ;;  %v4073_v39 = vsel %vm3561_vm13, %v12793_v35, %v12818_v4  ;;  %v4254_v27 = vmax.f32 %v12815_v11, %v4078_v24  ;;  %v2597_v55 = vpop.f32.mrb[193].mxu0  ;;  %v10892_v4 = vld [vmem:[%s15822_s10 + $0xe8] ss:$16 sps:$4 sm:$0xff]  }
 0x26d   : > { %v4358_v58 = vpack.c.bf16 %v4315_v42, %v4314_v1  ;;  %v4081_v15 = vsel %vm3569_vm6, %v3313_v23, %v3825_v21  ;;  %v12871_v62 = vsel %vm4945_vm2, %v12770_v18, %v5009_v2  ;;  %v4071_v59 = vsel %vm3559_vm15, %v12808_v16, %v3815_v6  ;;  %v10561_v34 = vpop.f32.mrb[194].mxu0  ;;  %v10894_v18 = vld [vmem:[%s15822_s10 + $0xec] ss:$16 sps:$4 sm:$0xff]   ;;  %v15913_v2 = vld [vmem:[#allocation3_spill] sm:$0xff] }
 0x26e   : > { %15907 = vst [vmem:[#allocation25_spill] sm:$0xff] %v12871_v62  ;;  %v4257_v57 = vmax.f32 %v4073_v39, %v4081_v15  ;;  %v4079_v29 = vsel %vm3567_vm7, %v3311_v22, %v3823_v28  ;;  %v15908_v35 = vmax.f32 %v12658_v8, %v12716_v12  ;;  %v2600_v48 = vpop.f32.mrb[195].mxu0  ;;  %v15909_v16 = vmax.f32 %v12688_v50, %v12721_v20  ;;  %v15914_v28 = vld [vmem:[#allocation4_spill] sm:$0xff]  ;;  %v15915_v15 = vld [vmem:[#allocation5_spill] sm:$0xff] }
 0x26f   : > { %10670 = vmatprep.mubr.msk.bf16.mxu1 %vm4402_vm11, %v4358_v58  ;;  %v4255_v7 = vmax.f32 %v4071_v59, %v4079_v29  ;;  %v12892_v1 = vsel %vm4944_vm0, %v12766_v13, %v5008_v60  ;;  %v15911_v8 = vmax.f32 %v12695_v10, %v12723_v3  ;;  %7082 = vmatprep.subr.bf16.mxu0 %v10894_v18 }
 0x270   : > { %10671 = vmatmul.mubr.msk.bf16.gmra.mrb[60].mxu1 %vm4402_vm11, %v4359_v41  ;;  %v4320_v11 = vmax.f32 %v15908_v35, %v4256_v52  ;;  %v4318_v6 = vmax.f32 %v15909_v16, %v4254_v27  ;;  %15910 = vst [vmem:[#allocation26_spill] sm:$0xff] %v12892_v1  ;;  %v3053_v14 = vmul.f32 %v12704_v49, %v10560_v33  ;;  %v10903_v1 = vld [vmem:[%s15822_s10 + $0x10c] ss:$16 sps:$4 sm:$0xff]  }
 0x271   : > { %v4321_v12 = vmax.f32 %v15911_v8, %v4257_v57  ;;  %v3051_v30 = vmul.f32 %v12704_v49, %v2597_v55  ;;  %v15912_v50 = vmax.f32 %v12698_v40, %v12729_v61  ;;  %7083 = vmatpush1.bf16.msra.mxu0 %v10892_v4  ;;  %v3054_v60 = vmul.f32 %v12704_v49, %v10561_v34 }
 0x272   : > { %v3052_v13 = vmul.f32 %v12704_v49, %v2600_v48  ;;  %v3097_v10 = vmul.f32 %v12704_v49, %v11645_v63  ;;  %v3095_v36 = vmul.f32 %v12704_v49, %v15913_v2  ;;  %v3316_v17 = vadd.f32 %v12755_v5, %v3053_v14  ;;  %7084 = vmatprep.subr.bf16.mxu0 %v10903_v1 }
 0x273   : > { %v4319_v20 = vmax.f32 %v15912_v50, %v4255_v7  ;;  %v4361_v38 = vpack.c.bf16 %v4321_v12, %v4320_v11  ;;  %v10564_v23 = vpop.f32.mrb[196].mxu0  ;;  %v3314_v42 = vadd.f32 %v12755_v5, %v3051_v30  ;;  %v3317_v47 = vadd.f32 %v12755_v5, %v3054_v60 }
 0x274   : > { %v3057_v40 = vmul.f32 %v12704_v49, %v10564_v23  ;;  %v2613_v61 = vpop.f32.mrb[197].mxu0  ;;  %v3315_v22 = vadd.f32 %v12755_v5, %v3052_v13  ;;  %v12919_v43 = vadd.f32 %v12755_v5, %v3097_v10  ;;  %v12924_v24 = vadd.f32 %v12755_v5, %v3095_v36 }
 0x275   : > { %v4360_v3 = vpack.c.bf16 %v4319_v20, %v4318_v6  ;;  %v3055_v63 = vmul.f32 %v12704_v49, %v2613_v61  ;;  %v10565_v41 = vpop.f32.mrb[198].mxu0  ;;  %v3098_v33 = vmul.f32 %v12704_v49, %v15914_v28  ;;  %v12932_v55 = vmul.f32 %v12704_v49, %v15915_v15 }
 0x276   : > { %v3320_v21 = vadd.f32 %v12755_v5, %v3057_v40  ;;  %v3058_v58 = vmul.f32 %v12704_v49, %v10565_v41  ;;  %v2616_v52 = vpop.f32.mrb[199].mxu0  ;;  %v3828_v59 = vmul.f32 0.1, %v3316_v17  ;;  %v3826_v57 = vmul.f32 0.1, %v3314_v42 }
 0x277   : > { %10674 = vmatprep.mubr.msk.bf16.mxu1 %vm4402_vm11, %v4360_v3  ;;  %v3318_v39 = vadd.f32 %v12755_v5, %v3055_v63  ;;  %v3056_v27 = vmul.f32 %v12704_v49, %v2616_v52  ;;  %vm3572_vm8 = vcmp.ge.f32.partialorder %v3316_v17, 0.0  ;;  %vm3570_vm9 = vcmp.ge.f32.partialorder %v3314_v42, 0.0  ;;  %v12964_v41 = vld [vmem:[%s15817_s5] ss:$0 sm:$0xff] }
 0x278   : > { %10675 = vmatmul.mubr.msk.bf16.gmra.mrb[64].mxu1 %vm4402_vm11, %v4361_v38  ;;  %v3321_v29 = vadd.f32 %v12755_v5, %v3058_v58  ;;  %v3829_v34 = vmul.f32 0.1, %v3317_v47  ;;  %v3827_v35 = vmul.f32 0.1, %v3315_v22  ;;  %vm3573_vm10 = vcmp.ge.f32.partialorder %v3317_v47, 0.0 }
 0x279   : > { %vm3571_vm12 = vcmp.ge.f32.partialorder %v3315_v22, 0.0  ;;  %v3832_v11 = vmul.f32 0.1, %v3320_v21  ;;  %v3830_v4 = vmul.f32 0.1, %v3318_v39  ;;  %v12936_v18 = vadd.f32 %v12755_v5, %v3098_v33 }
 0x27a   : > { %vm3576_vm13 = vcmp.ge.f32.partialorder %v3320_v21, 0.0  ;;  %vm3574_vm14 = vcmp.ge.f32.partialorder %v3318_v39, 0.0  ;;  %v3319_v7 = vadd.f32 %v12755_v5, %v3056_v27  ;;  %v12939_v16 = vsel %vm3572_vm8, %v3316_v17, %v3828_v59 }
 0x27b   : > { %v10568_v48 = vpop.f32.mrb[200].mxu0  ;;  %v12941_v6 = vsel %vm3570_vm9, %v3314_v42, %v3826_v57  ;;  %v3833_v8 = vmul.f32 0.1, %v3321_v29  ;;  %v12944_v30 = vsel %vm3573_vm10, %v3317_v47, %v3829_v34  ;;  %v12946_v50 = vsel %vm3571_vm12, %v3315_v22, %v3827_v35 }
 0x27c   : > { %v3061_v12 = vmul.f32 %v12704_v49, %v10568_v48  ;;  %v2629_v14 = vpop.f32.mrb[201].mxu0  ;;  %vm3577_vm15 = vcmp.ge.f32.partialorder %v3321_v29, 0.0  ;;  %v12949_v13 = vsel %vm3576_vm13, %v3320_v21, %v3832_v11  ;;  %v12951_v38 = vsel %vm3574_vm14, %v3318_v39, %v3830_v4  ;;  %v12984_v4 = vld [vmem:[%s15818_s6] ss:$0 sm:$0xff] }
 0x27d   : > { %v3059_v20 = vmul.f32 %v12704_v49, %v2629_v14  ;;  %v10569_v60 = vpop.f32.mrb[202].mxu0  ;;  %vm3575_vm1 = vcmp.ge.f32.partialorder %v3319_v7, 0.0  ;;  %v3831_v36 = vmul.f32 0.1, %v3319_v7  ;;  %v12957_v42 = vsel %vm3577_vm15, %v3321_v29, %v3833_v8 }
 0x27e   : > { %v3324_v10 = vadd.f32 %v12755_v5, %v3061_v12  ;;  %v3062_v3 = vmul.f32 %v12704_v49, %v10569_v60  ;;  %v2632_v2 = vpop.f32.mrb[203].mxu0 }
 0x27f   : > { %v3322_v23 = vadd.f32 %v12755_v5, %v3059_v20  ;;  %v3060_v17 = vmul.f32 %v12704_v49, %v2632_v2  ;;  %v12975_v34 = vsel %vm3575_vm1, %v3319_v7, %v3831_v36 }
 0x280   : > { %vm3580_vm2 = vcmp.ge.f32.partialorder %v3324_v10, 0.0  ;;  %v3836_v40 = vmul.f32 0.1, %v3324_v10  ;;  %v3325_v61 = vadd.f32 %v12755_v5, %v3062_v3 }
 0x281   : > { %vm3578_vm3 = vcmp.ge.f32.partialorder %v3322_v23, 0.0  ;;  %v3834_v22 = vmul.f32 0.1, %v3322_v23  ;;  %v3323_v63 = vadd.f32 %v12755_v5, %v3060_v17 }
 0x282   : > { %v10648_v47 = vpop.f32.mrb[36].mxu1  ;;  %v12967_v52 = vsel %vm3580_vm2, %v3324_v10, %v3836_v40  ;;  %vm3581_vm0 = vcmp.ge.f32.partialorder %v3325_v61, 0.0  ;;  %v3837_v28 = vmul.f32 0.1, %v3325_v61 }
 0x283   : > { %v4813_v21 = vmul.f32 %v12964_v41, %v10648_v47  ;;  %v4597_v58 = vpop.f32.mrb[37].mxu1  ;;  %v12972_v15 = vsel %vm3578_vm3, %v3322_v23, %v3834_v22  ;;  %vm3579_vm4 = vcmp.ge.f32.partialorder %v3323_v63, 0.0  ;;  %v3835_v59 = vmul.f32 0.1, %v3323_v63  ;;  %v10572_v57 = vpop.f32.mrb[204].mxu0 }
 0x284   : > { %v4811_v33 = vmul.f32 %v12964_v41, %v4597_v58  ;;  %v10649_v39 = vpop.f32.mrb[38].mxu1  ;;  %v12979_v11 = vsel %vm3581_vm0, %v3325_v61, %v3837_v28  ;;  %v2645_v8 = vpop.f32.mrb[205].mxu0  ;;  %v3065_v20 = vmul.f32 %v12704_v49, %v10572_v57 }
 0x285   : > { %v4600_v29 = vpop.f32.mrb[39].mxu1  ;;  %v12991_v14 = vsel %vm3579_vm4, %v3323_v63, %v3835_v59  ;;  %v4814_v7 = vmul.f32 %v12964_v41, %v10649_v39  ;;  %v10573_v60 = vpop.f32.mrb[206].mxu0  ;;  %v12998_v3 = vadd.f32 %v12984_v4, %v4813_v21  ;;  %v3063_v2 = vmul.f32 %v12704_v49, %v2645_v8 }
 0x286   : > { %v12987_v48 = vadd.f32 %v12984_v4, %v4811_v33  ;;  %v3066_v36 = vmul.f32 %v12704_v49, %v10573_v60  ;;  %v2648_v23 = vpop.f32.mrb[207].mxu0  ;;  %v3328_v40 = vadd.f32 %v12755_v5, %v3065_v20  ;;  %v4812_v61 = vmul.f32 %v12964_v41, %v4600_v29 }
 0x287   : > { %v13003_v17 = vadd.f32 %v12984_v4, %v4814_v7  ;;  %v3064_v47 = vmul.f32 %v12704_v49, %v2648_v23  ;;  %v3326_v22 = vadd.f32 %v12755_v5, %v3063_v2  ;;  %vm4948_vm1 = vcmp.ge.f32.partialorder %v12998_v3, 0.0 }
 0x288   : > { %v3329_v63 = vadd.f32 %v12755_v5, %v3066_v36  ;;  %vm4946_vm5 = vcmp.ge.f32.partialorder %v12987_v48, 0.0  ;;  %v5010_v58 = vmul.f32 0.1, %v12987_v48  ;;  %vm3584_vm6 = vcmp.ge.f32.partialorder %v3328_v40, 0.0 }
 0x289   : > { %v3840_v28 = vmul.f32 0.1, %v3328_v40  ;;  %v3327_v33 = vadd.f32 %v12755_v5, %v3064_v47  ;;  %vm3582_vm7 = vcmp.ge.f32.partialorder %v3326_v22, 0.0  ;;  %v3838_v57 = vmul.f32 0.1, %v3326_v22 }
 0x28a   : > { %vm3585_vm8 = vcmp.ge.f32.partialorder %v3329_v63, 0.0  ;;  %v3841_v29 = vmul.f32 0.1, %v3329_v63  ;;  %v4883_v7 = vadd.f32 %v12984_v4, %v4812_v61  ;;  %vm4949_vm2 = vcmp.ge.f32.partialorder %v13003_v17, 0.0 }
 0x28b   : > { %v10652_v21 = vpop.f32.mrb[40].mxu1  ;;  %v13014_v8 = vsel %vm3584_vm6, %v3328_v40, %v3840_v28  ;;  %vm3583_vm9 = vcmp.ge.f32.partialorder %v3327_v33, 0.0  ;;  %v3839_v20 = vmul.f32 0.1, %v3327_v33  ;;  %v10576_v2 = vpop.f32.mrb[208].mxu0  ;;  %v13019_v23 = vsel %vm3582_vm7, %v3326_v22, %v3838_v57 }
 0x28c   : > { %v4817_v39 = vmul.f32 %v12964_v41, %v10652_v21  ;;  %v4613_v59 = vpop.f32.mrb[41].mxu1  ;;  %v13021_v47 = vsel %vm3585_vm8, %v3329_v63, %v3841_v29  ;;  %v2661_v10 = vpop.f32.mrb[209].mxu0  ;;  %vm4947_vm10 = vcmp.ge.f32.partialorder %v4883_v7, 0.0  ;;  %v5011_v22 = vmul.f32 0.1, %v4883_v7 }
 0x28d   : > { %v10653_v60 = vpop.f32.mrb[42].mxu1  ;;  %v4815_v21 = vmul.f32 %v12964_v41, %v4613_v59  ;;  %v13028_v28 = vsel %vm3583_vm9, %v3327_v33, %v3839_v20  ;;  %v10577_v35 = vpop.f32.mrb[210].mxu0  ;;  %v3069_v59 = vmul.f32 %v12704_v49, %v10576_v2  ;;  %v3067_v33 = vmul.f32 %v12704_v49, %v2661_v10 }
 0x28e   : > { %v4616_v54 = vpop.f32.mrb[43].mxu1  ;;  %v4818_v12 = vmul.f32 %v12964_v41, %v10653_v60  ;;  %v13034_v63 = vadd.f32 %v12984_v4, %v4817_v39  ;;  %v2664_v29 = vpop.f32.mrb[211].mxu0  ;;  %v3070_v20 = vmul.f32 %v12704_v49, %v10577_v35 }
 0x28f   : > { %v4816_v57 = vmul.f32 %v12964_v41, %v4616_v54  ;;  %v13039_v40 = vadd.f32 %v12984_v4, %v4815_v21  ;;  %v3068_v60 = vmul.f32 %v12704_v49, %v2664_v29  ;;  %v3332_v39 = vadd.f32 %v12755_v5, %v3069_v59 }
 0x290   : > { %v13045_v61 = vadd.f32 %v12984_v4, %v4818_v12  ;;  %v3330_v54 = vadd.f32 %v12755_v5, %v3067_v33  ;;  %v3333_v21 = vadd.f32 %v12755_v5, %v3070_v20  ;;  %v13057_v12 = vsel %vm4946_vm5, %v12987_v48, %v5010_v58 }
 0x291   : > { %v13049_v2 = vadd.f32 %v12984_v4, %v4816_v57  ;;  %v3331_v10 = vadd.f32 %v12755_v5, %v3068_v60  ;;  %vm3588_vm12 = vcmp.ge.f32.partialorder %v3332_v39, 0.0  ;;  %v3844_v35 = vmul.f32 0.1, %v3332_v39  ;;  %15916 = vst [vmem:[#allocation3_spill] sm:$0xff] %v13057_v12 }
 0x292   : > { %v13059_v29 = vsel %vm4947_vm10, %v4883_v7, %v5011_v22  ;;  %vm3586_vm13 = vcmp.ge.f32.partialorder %v3330_v54, 0.0  ;;  %v3842_v59 = vmul.f32 0.1, %v3330_v54  ;;  %vm3589_vm14 = vcmp.ge.f32.partialorder %v3333_v21, 0.0  ;;  %v10901_v22 = vld [vmem:[%s15822_s10 + $0x108] ss:$16 sps:$4 sm:$0xff]  }
 0x293   : > { %15917 = vst [vmem:[#allocation4_spill] sm:$0xff] %v13059_v29  ;;  %v3845_v57 = vmul.f32 0.1, %v3333_v21  ;;  %vm3587_vm15 = vcmp.ge.f32.partialorder %v3331_v10, 0.0  ;;  %v3843_v36 = vmul.f32 0.1, %v3331_v10  ;;  %v13064_v60 = vsel %vm3588_vm12, %v3332_v39, %v3844_v35  ;;  %7085 = vmatpush1.bf16.msra.mxu0 %v10901_v22 }
 0x294   : > { %v10580_v33 = vpop.f32.mrb[212].mxu0  ;;  %v13066_v27 = vsel %vm3586_vm13, %v3330_v54, %v3842_v59  ;;  %vm4950_vm3 = vcmp.ge.f32.partialorder %v13039_v40, 0.0  ;;  %vm4951_vm0 = vcmp.ge.f32.partialorder %v13049_v2, 0.0  ;;  %vm4952_vm8 = vcmp.ge.f32.partialorder %v13034_v63, 0.0 }
 0x295   : > { %v13068_v48 = vsel %vm3589_vm14, %v3333_v21, %v3845_v57  ;;  %v3073_v58 = vmul.f32 %v12704_v49, %v10580_v33  ;;  %v2677_v7 = vpop.f32.mrb[213].mxu0  ;;  %v13077_v20 = vsel %vm3587_vm15, %v3331_v10, %v3843_v36  ;;  %v5012_v57 = vmul.f32 0.1, %v12998_v3 }
 0x296   : > { %v3071_v39 = vmul.f32 %v12704_v49, %v2677_v7  ;;  %v10581_v35 = vpop.f32.mrb[214].mxu0  ;;  %v5013_v33 = vmul.f32 0.1, %v13003_v17  ;;  %v5014_v7 = vmul.f32 0.1, %v13039_v40  ;;  %vm4953_vm9 = vcmp.ge.f32.partialorder %v13045_v61, 0.0 }
 0x297   : > { %v3336_v54 = vadd.f32 %v12755_v5, %v3073_v58  ;;  %v3074_v21 = vmul.f32 %v12704_v49, %v10581_v35  ;;  %v2680_v59 = vpop.f32.mrb[215].mxu0  ;;  %v13094_v1 = vsel %vm4948_vm1, %v12998_v3, %v5012_v57 }
 0x298   : > { %v3334_v36 = vadd.f32 %v12755_v5, %v3071_v39  ;;  %v3072_v10 = vmul.f32 %v12704_v49, %v2680_v59  ;;  %15918 = vst [vmem:[#allocation5_spill] sm:$0xff] %v13094_v1  ;;  %v13100_v22 = vsel %vm4949_vm2, %v13003_v17, %v5013_v33 }
 0x299   : > { %vm3592_vm4 = vcmp.ge.f32.partialorder %v3336_v54, 0.0  ;;  %v3848_v12 = vmul.f32 0.1, %v3336_v54  ;;  %v3337_v58 = vadd.f32 %v12755_v5, %v3074_v21  ;;  %15919 = vst [vmem:[#allocation27_spill] sm:$0xff] %v13100_v22 }
 0x29a   : > { %vm3590_vm5 = vcmp.ge.f32.partialorder %v3334_v36, 0.0  ;;  %v3846_v35 = vmul.f32 0.1, %v3334_v36  ;;  %v3335_v39 = vadd.f32 %v12755_v5, %v3072_v10 }
 0x29b   : > { %v13102_v59 = vsel %vm3592_vm4, %v3336_v54, %v3848_v12  ;;  %vm3593_vm6 = vcmp.ge.f32.partialorder %v3337_v58, 0.0  ;;  %v3849_v29 = vmul.f32 0.1, %v3337_v58  ;;  %v10584_v62 = vpop.f32.mrb[216].mxu0  ;;  %v5015_v12 = vmul.f32 0.1, %v13049_v2 }
 0x29c   : > { %v13106_v19 = vsel %vm3590_vm5, %v3334_v36, %v3846_v35  ;;  %vm3591_vm7 = vcmp.ge.f32.partialorder %v3335_v39, 0.0  ;;  %v3847_v3 = vmul.f32 0.1, %v3335_v39  ;;  %v3077_v57 = vmul.f32 %v12704_v49, %v10584_v62  ;;  %v2693_v10 = vpop.f32.mrb[217].mxu0 }
 0x29d   : > { %v13109_v51 = vsel %vm3593_vm6, %v3337_v58, %v3849_v29  ;;  %v3075_v17 = vmul.f32 %v12704_v49, %v2693_v10  ;;  %v10585_v33 = vpop.f32.mrb[218].mxu0  ;;  %v13116_v54 = vsel %vm4950_vm3, %v13039_v40, %v5014_v7  ;;  %v13128_v10 = vsel %vm4951_vm0, %v13049_v2, %v5015_v12 }
 0x29e   : > { %15920 = vst [vmem:[#allocation28_spill] sm:$0xff] %v13116_v54  ;;  %v13118_v21 = vsel %vm3591_vm7, %v3335_v39, %v3847_v3  ;;  %v3340_v36 = vadd.f32 %v12755_v5, %v3077_v57  ;;  %v3078_v35 = vmul.f32 %v12704_v49, %v10585_v33  ;;  %v2696_v62 = vpop.f32.mrb[219].mxu0  ;;  %15921 = vst [vmem:[#allocation29_spill] sm:$0xff] %v13128_v10  ;;  %v5017_v2 = vmul.f32 0.1, %v13045_v61 }
 0x29f   : > { %v3338_v29 = vadd.f32 %v12755_v5, %v3075_v17  ;;  %v3076_v58 = vmul.f32 %v12704_v49, %v2696_v62  ;;  %v5016_v17 = vmul.f32 0.1, %v13034_v63  ;;  %vm3616_vm0 = vcmp.ge.f32.partialorder %v12919_v43, 0.0 }
 0x2a0   : > { %vm3596_vm10 = vcmp.ge.f32.partialorder %v3340_v36, 0.0  ;;  %v3852_v40 = vmul.f32 0.1, %v3340_v36  ;;  %v3341_v7 = vadd.f32 %v12755_v5, %v3078_v35  ;;  %vm3614_vm4 = vcmp.ge.f32.partialorder %v12924_v24, 0.0 }
 0x2a1   : > { %vm3594_vm12 = vcmp.ge.f32.partialorder %v3338_v29, 0.0  ;;  %v3850_v3 = vmul.f32 0.1, %v3338_v29  ;;  %v3339_v57 = vadd.f32 %v12755_v5, %v3076_v58  ;;  %vm3617_vm5 = vcmp.ge.f32.partialorder %v12936_v18, 0.0 }
 0x2a2   : > { %v4108_v33 = vsel %vm3596_vm10, %v3340_v36, %v3852_v40  ;;  %vm3597_vm13 = vcmp.ge.f32.partialorder %v3341_v7, 0.0  ;;  %v3853_v62 = vmul.f32 0.1, %v3341_v7  ;;  %v13143_v36 = vsel %vm4952_vm8, %v13034_v63, %v5016_v17 }
 0x2a3   : > { %v4260_v12 = vmax.f32 %v13064_v60, %v4108_v33  ;;  %v4106_v1 = vsel %vm3594_vm12, %v3338_v29, %v3850_v3  ;;  %vm3595_vm14 = vcmp.ge.f32.partialorder %v3339_v57, 0.0  ;;  %v3851_v22 = vmul.f32 0.1, %v3339_v57  ;;  %v10588_v35 = vpop.f32.mrb[220].mxu0 }
 0x2a4   : > { %v4258_v45 = vmax.f32 %v13066_v27, %v4106_v1  ;;  %v4109_v39 = vsel %vm3597_vm13, %v3341_v7, %v3853_v62  ;;  %v3081_v54 = vmul.f32 %v12704_v49, %v10588_v35  ;;  %v2709_v10 = vpop.f32.mrb[221].mxu0  ;;  %v15922_v3 = vmax.f32 %v12939_v16, %v12967_v52 }
 0x2a5   : > { %v4261_v58 = vmax.f32 %v13068_v48, %v4109_v39  ;;  %v4107_v40 = vsel %vm3595_vm14, %v3339_v57, %v3851_v22  ;;  %v3079_v60 = vmul.f32 %v12704_v49, %v2709_v10  ;;  %v10589_v29 = vpop.f32.mrb[222].mxu0  ;;  %v15923_v63 = vmax.f32 %v12941_v6, %v12972_v15 }
 0x2a6   : > { %v4324_v33 = vmax.f32 %v15922_v3, %v4260_v12  ;;  %v4259_v27 = vmax.f32 %v13077_v20, %v4107_v40  ;;  %v3344_v1 = vadd.f32 %v12755_v5, %v3081_v54  ;;  %v3082_v7 = vmul.f32 %v12704_v49, %v10589_v29  ;;  %v2712_v62 = vpop.f32.mrb[223].mxu0 }
 0x2a7   : > { %v4322_v17 = vmax.f32 %v15923_v63, %v4258_v45  ;;  %v3342_v48 = vadd.f32 %v12755_v5, %v3079_v60  ;;  %v3080_v22 = vmul.f32 %v12704_v49, %v2712_v62  ;;  %v15924_v10 = vmax.f32 %v12944_v30, %v12979_v11  ;;  %v10912_v62 = vld [vmem:[%s15822_s10 + $0x12c] ss:$16 sps:$4 sm:$0xff]  }
 0x2a8   : > { %v13164_v52 = vsel %vm4953_vm9, %v13045_v61, %v5017_v2  ;;  %vm3600_vm15 = vcmp.ge.f32.partialorder %v3344_v1, 0.0  ;;  %v3856_v20 = vmul.f32 0.1, %v3344_v1  ;;  %v3345_v54 = vadd.f32 %v12755_v5, %v3082_v7  ;;  %v10910_v7 = vld [vmem:[%s15822_s10 + $0x128] ss:$16 sps:$4 sm:$0xff]   ;;  %7086 = vmatprep.subr.bf16.mxu0 %v10912_v62 }
 0x2a9   : > { %v4325_v16 = vmax.f32 %v15924_v10, %v4261_v58  ;;  %v15925_v45 = vmax.f32 %v12946_v50, %v12991_v14  ;;  %vm3598_vm1 = vcmp.ge.f32.partialorder %v3342_v48, 0.0  ;;  %v3854_v15 = vmul.f32 0.1, %v3342_v48  ;;  %7087 = vmatpush1.bf16.msra.mxu0 %v10910_v7 }
 0x2aa   : > { %v3343_v39 = vadd.f32 %v12755_v5, %v3080_v22  ;;  %v4112_v30 = vsel %vm3600_vm15, %v3344_v1, %v3856_v20  ;;  %vm3601_vm2 = vcmp.ge.f32.partialorder %v3345_v54, 0.0  ;;  %v3857_v11 = vmul.f32 0.1, %v3345_v54 }
 0x2ab   : > { %v4323_v6 = vmax.f32 %v15925_v45, %v4259_v27  ;;  %v4363_v57 = vpack.c.bf16 %v4325_v16, %v4324_v33  ;;  %v4264_v61 = vmax.f32 %v13102_v59, %v4112_v30  ;;  %v4110_v2 = vsel %vm3598_vm1, %v3342_v48, %v3854_v15  ;;  %v10592_v58 = vpop.f32.mrb[224].mxu0 }
 0x2ac   : > { %vm3599_vm3 = vcmp.ge.f32.partialorder %v3343_v39, 0.0  ;;  %v3855_v35 = vmul.f32 0.1, %v3343_v39  ;;  %v4262_v40 = vmax.f32 %v13106_v19, %v4110_v2  ;;  %v4113_v60 = vsel %vm3601_vm2, %v3345_v54, %v3857_v11  ;;  %v2725_v14 = vpop.f32.mrb[225].mxu0 }
 0x2ad   : > { %v4362_v12 = vpack.c.bf16 %v4323_v6, %v4322_v17  ;;  %v3085_v50 = vmul.f32 %v12704_v49, %v10592_v58  ;;  %v5133_v29 = vpack.c.bf16 %v13164_v52, %v13143_v36  ;;  %v4265_v3 = vmax.f32 %v13109_v51, %v4113_v60  ;;  %v10593_v27 = vpop.f32.mrb[226].mxu0  ;;  %v10952_v36 = vld [vmem:[%s15822_s10 + $0x1e8] ss:$16 sps:$4 sm:$0xff]   ;;  %v10954_v52 = vld [vmem:[%s15822_s10 + $0x1ec] ss:$16 sps:$4 sm:$0xff]  }
 0x2ae   : > { %v4111_v33 = vsel %vm3599_vm3, %v3343_v39, %v3855_v35  ;;  %v3083_v59 = vmul.f32 %v12704_v49, %v2725_v14  ;;  %v15926_v19 = vmax.f32 %v12949_v13, %v13014_v8  ;;  %v3359_v51 = vadd.f32 %v12755_v5, %v12932_v55  ;;  %v2728_v48 = vpop.f32.mrb[227].mxu0 }
 0x2af   : > { %10678 = vmatprep.mubr.msk.bf16.mxu1 %vm4402_vm11, %v4362_v12  ;;  %v4263_v63 = vmax.f32 %v13118_v21, %v4111_v33  ;;  %v3348_v17 = vadd.f32 %v12755_v5, %v3085_v50  ;;  %v15927_v13 = vmax.f32 %v12951_v38, %v13019_v23  ;;  %v3086_v22 = vmul.f32 %v12704_v49, %v10593_v27 }
 0x2b0   : > { %10679 = vmatmul.mubr.msk.bf16.gmra.mrb[68].mxu1 %vm4402_vm11, %v4363_v57  ;;  %v4328_v1 = vmax.f32 %v15926_v19, %v4264_v61  ;;  %v15928_v10 = vmax.f32 %v12957_v42, %v13021_v47  ;;  %v3872_v55 = vmul.f32 0.1, %v12919_v43  ;;  %v3870_v21 = vmul.f32 0.1, %v12924_v24 }
 0x2b1   : > { %v4326_v8 = vmax.f32 %v15927_v13, %v4262_v40  ;;  %v3346_v20 = vadd.f32 %v12755_v5, %v3083_v59  ;;  %v15929_v54 = vmax.f32 %v12975_v34, %v13028_v28  ;;  %v3873_v23 = vmul.f32 0.1, %v12936_v18  ;;  %v11001_v28 = vld [vmem:[%s15814_s2] ss:$0 sm:$0xff] }
 0x2b2   : > { %v4329_v16 = vmax.f32 %v15928_v10, %v4265_v3  ;;  %v3084_v45 = vmul.f32 %v12704_v49, %v2728_v48  ;;  %v3871_v47 = vmul.f32 0.1, %v3359_v51  ;;  %v3860_v6 = vmul.f32 0.1, %v3348_v17 }
 0x2b3   : > { %v4327_v38 = vmax.f32 %v15929_v54, %v4263_v63  ;;  %vm3615_vm6 = vcmp.ge.f32.partialorder %v3359_v51, 0.0  ;;  %vm3604_vm7 = vcmp.ge.f32.partialorder %v3348_v17, 0.0  ;;  %v3349_v39 = vadd.f32 %v12755_v5, %v3086_v22  ;;  %v10596_v57 = vpop.f32.mrb[228].mxu0 }
 0x2b4   : > { %v4365_v42 = vpack.c.bf16 %v4329_v16, %v4328_v1  ;;  %v3858_v34 = vmul.f32 0.1, %v3346_v20  ;;  %v3089_v30 = vmul.f32 %v11001_v28, %v10596_v57  ;;  %v4128_v49 = vsel %vm3616_vm0, %v12919_v43, %v3872_v55  ;;  %v2741_v11 = vpop.f32.mrb[229].mxu0 }
 0x2b5   : > { %v4364_v15 = vpack.c.bf16 %v4327_v38, %v4326_v8  ;;  %v4126_v12 = vsel %vm3614_vm4, %v12924_v24, %v3870_v21  ;;  %vm3602_vm8 = vcmp.ge.f32.partialorder %v3346_v20, 0.0  ;;  %v3347_v61 = vadd.f32 %v12755_v5, %v3084_v45  ;;  %v10597_v35 = vpop.f32.mrb[230].mxu0 }
 0x2b6   : > { %v3087_v2 = vmul.f32 %v11001_v28, %v2741_v11  ;;  %v4129_v58 = vsel %vm3617_vm5, %v12936_v18, %v3873_v23  ;;  %v13228_v43 = vsel %vm3604_vm7, %v3348_v17, %v3860_v6  ;;  %v3352_v40 = vadd.f32 %v12755_v5, %v3089_v30  ;;  %v2744_v24 = vpop.f32.mrb[231].mxu0 }
 0x2b7   : > { %10682 = vmatprep.mubr.msk.bf16.mxu1 %vm4402_vm11, %v4364_v15  ;;  %v3090_v60 = vmul.f32 %v11001_v28, %v10597_v35  ;;  %v4127_v50 = vsel %vm3615_vm6, %v3359_v51, %v3871_v47  ;;  %vm3605_vm9 = vcmp.ge.f32.partialorder %v3349_v39, 0.0  ;;  %v3861_v14 = vmul.f32 0.1, %v3349_v39 }
 0x2b8   : > { %10683 = vmatmul.mubr.msk.bf16.gmra.mrb[72].mxu1 %vm4402_vm11, %v4365_v42  ;;  %v3350_v3 = vadd.f32 %v12755_v5, %v3087_v2  ;;  %v3088_v33 = vmul.f32 %v11001_v28, %v2744_v24  ;;  %v13233_v59 = vsel %vm3602_vm8, %v3346_v20, %v3858_v34  ;;  %vm3608_vm10 = vcmp.ge.f32.partialorder %v3352_v40, 0.0  ;;  %v11002_v42 = vld [vmem:[%s15815_s3] ss:$0 sm:$0xff] }
 0x2b9   : > { %v3864_v18 = vmul.f32 0.1, %v3352_v40  ;;  %v3353_v27 = vadd.f32 %v12755_v5, %v3090_v60  ;;  %vm3603_vm12 = vcmp.ge.f32.partialorder %v3347_v61, 0.0  ;;  %v3859_v7 = vmul.f32 0.1, %v3347_v61 }
 0x2ba   : > { %vm3606_vm13 = vcmp.ge.f32.partialorder %v3350_v3, 0.0  ;;  %v3862_v19 = vmul.f32 0.1, %v3350_v3  ;;  %v3351_v1 = vadd.f32 %v12755_v5, %v3088_v33  ;;  %v4117_v8 = vsel %vm3605_vm9, %v3349_v39, %v3861_v14 }
 0x2bb   : > { %v4120_v62 = vsel %vm3608_vm10, %v3352_v40, %v3864_v18  ;;  %vm3609_vm14 = vcmp.ge.f32.partialorder %v3353_v27, 0.0  ;;  %v3865_v51 = vmul.f32 0.1, %v3353_v27  ;;  %v10600_v13 = vpop.f32.mrb[232].mxu0  ;;  %v15930_v5 = vmax.f32 %v11892_v56, %v12099_v46 }
 0x2bc   : > { %v4208_v63 = vmax.f32 %v4120_v62, %v4128_v49  ;;  %v4118_v17 = vsel %vm3606_vm13, %v3350_v3, %v3862_v19  ;;  %vm3607_vm15 = vcmp.ge.f32.partialorder %v3351_v1, 0.0  ;;  %v3863_v48 = vmul.f32 0.1, %v3351_v1  ;;  %v2757_v55 = vpop.f32.mrb[233].mxu0 }
 0x2bd   : > { %v4206_v22 = vmax.f32 %v4118_v17, %v4126_v12  ;;  %v4121_v10 = vsel %vm3609_vm14, %v3353_v27, %v3865_v51  ;;  %v3093_v16 = vmul.f32 %v11001_v28, %v10600_v13  ;;  %v3091_v54 = vmul.f32 %v11001_v28, %v2757_v55  ;;  %v10601_v38 = vpop.f32.mrb[234].mxu0 }
 0x2be   : > { %v4209_v21 = vmax.f32 %v4121_v10, %v4129_v58  ;;  %v4119_v20 = vsel %vm3607_vm15, %v3351_v1, %v3863_v48  ;;  %v13241_v23 = vmax.f32 %v4208_v63, %v15930_v5  ;;  %v3094_v6 = vmul.f32 %v11001_v28, %v10601_v38  ;;  %v2760_v15 = vpop.f32.mrb[235].mxu0  ;;  %v15935_v63 = vld [vmem:[#allocation8_spill] sm:$0xff]  ;;  %v15938_v10 = vld [vmem:[#allocation9_spill] sm:$0xff] }
 0x2bf   : > { %v4207_v45 = vmax.f32 %v4119_v20, %v4127_v50  ;;  %v3356_v47 = vadd.f32 %v11002_v42, %v3093_v16  ;;  %v15931_v39 = vmax.f32 %v11895_v26, %v12128_v53  ;;  %v4115_v34 = vsel %vm3603_vm12, %v3347_v61, %v3859_v7  ;;  %v15941_v20 = vld [vmem:[#allocation10_spill] sm:$0xff] }
 0x2c0   : > { %v3354_v30 = vadd.f32 %v11002_v42, %v3091_v54  ;;  %v3092_v49 = vmul.f32 %v11001_v28, %v2760_v15  ;;  %v15932_v56 = vmax.f32 %v12055_v37, %v12182_v32  ;;  %v3357_v12 = vadd.f32 %v11002_v42, %v3094_v6 }
 0x2c1   : > { %v13249_v57 = vmax.f32 %v4206_v22, %v15931_v39  ;;  %vm3612_vm1 = vcmp.ge.f32.partialorder %v3356_v47, 0.0  ;;  %v3868_v11 = vmul.f32 0.1, %v3356_v47  ;;  %v15933_v35 = vmax.f32 %v12203_v31, %v12210_v0  ;;  %v15937_v22 = vld [vmem:[#allocation6_spill] sm:$0xff] }
 0x2c2   : > { %v13255_v46 = vmax.f32 %v4209_v21, %v15932_v56  ;;  %vm3610_vm2 = vcmp.ge.f32.partialorder %v3354_v30, 0.0  ;;  %v3866_v26 = vmul.f32 0.1, %v3354_v30  ;;  %v3355_v53 = vadd.f32 %v11002_v42, %v3092_v49 }
 0x2c3   : > { %v10656_v2 = vpop.f32.mrb[44].mxu1  ;;  %v13260_v58 = vmax.f32 %v4207_v45, %v15933_v35  ;;  %v4124_v40 = vsel %vm3612_vm1, %v3356_v47, %v3868_v11  ;;  %vm3613_vm3 = vcmp.ge.f32.partialorder %v3357_v12, 0.0  ;;  %v3869_v37 = vmul.f32 0.1, %v3357_v12 }
 0x2c4   : > { %v4821_v61 = vmul.f32 %v12964_v41, %v10656_v2  ;;  %v4629_v28 = vpop.f32.mrb[45].mxu1  ;;  %v4204_v24 = vmax.f32 %v13228_v43, %v4124_v40  ;;  %v4122_v50 = vsel %vm3610_vm2, %v3354_v30, %v3866_v26  ;;  %vm3611_vm0 = vcmp.ge.f32.partialorder %v3355_v53, 0.0  ;;  %v10916_v26 = vld [vmem:[%s15822_s10 + $0x148] ss:$16 sps:$4 sm:$0xff]  }
 0x2c5   : > { %v4819_v32 = vmul.f32 %v12964_v41, %v4629_v28  ;;  %v10657_v60 = vpop.f32.mrb[46].mxu1  ;;  %v3867_v14 = vmul.f32 0.1, %v3355_v53  ;;  %v4202_v0 = vmax.f32 %v13233_v59, %v4122_v50  ;;  %v4125_v3 = vsel %vm3613_vm3, %v3357_v12, %v3869_v37 }
 0x2c6   : > { %v4632_v31 = vpop.f32.mrb[47].mxu1  ;;  %v4892_v33 = vadd.f32 %v12984_v4, %v4821_v61  ;;  %v4205_v27 = vmax.f32 %v4117_v8, %v4125_v3  ;;  %v4822_v1 = vmul.f32 %v12964_v41, %v10657_v60  ;;  %v15934_v43 = vmax.f32 %v11853_v25, %v12019_v9  ;;  %v15940_v9 = vld [vmem:[#allocation7_spill] sm:$0xff] }
 0x2c7   : > { %v4890_v18 = vadd.f32 %v12984_v4, %v4819_v32  ;;  %v4123_v19 = vsel %vm3611_vm0, %v3355_v53, %v3867_v14  ;;  %v4820_v7 = vmul.f32 %v12964_v41, %v4632_v31  ;;  %v15936_v17 = vmax.f32 %v11850_v44, %v15935_v63  ;;  %v10918_v53 = vld [vmem:[%s15822_s10 + $0x14c] ss:$16 sps:$4 sm:$0xff]   ;;  %v10895_v63 = vld [vmem:[%s15822_s10 + $0x40] ss:$16 sps:$4 sm:$0xff]  }
 0x2c8   : > { %v4203_v62 = vmax.f32 %v4115_v34, %v4123_v19  ;;  %v4330_v51 = vmax.f32 %v4202_v0, %v15934_v43  ;;  %v4368_v48 = vpack.c.bf16 %v13260_v58, %v13249_v57  ;;  %v4893_v13 = vadd.f32 %v12984_v4, %v4822_v1  ;;  %7088 = vmatprep.subr.bf16.mxu0 %v10918_v53  ;;  %v10891_v19 = vld [vmem:[%s15822_s10 + $0x24] ss:$16 sps:$4 sm:$0xff]   ;;  %v15943_v1 = vld [vmem:[#allocation12_spill] sm:$0xff] }
 0x2c9   : > { %v4332_v59 = vmax.f32 %v4204_v24, %v15936_v17  ;;  %v4891_v8 = vadd.f32 %v12984_v4, %v4820_v7  ;;  %v15939_v16 = vmax.f32 %v15937_v22, %v15938_v10  ;;  %v4369_v21 = vpack.c.bf16 %v13255_v46, %v13241_v23  ;;  %7089 = vmatpush1.bf16.msra.mxu0 %v10916_v26  ;;  %v15944_v7 = vld [vmem:[#allocation11_spill] sm:$0xff]  ;;  %v10927_v22 = vld [vmem:[%s15822_s10 + $0x16c] ss:$16 sps:$4 sm:$0xff]  }
 0x2ca   : > { %v15942_v54 = vmax.f32 %v15940_v9, %v15941_v20  ;;  %vm4954_vm4 = vcmp.ge.f32.partialorder %v4890_v18, 0.0  ;;  %v5018_v38 = vmul.f32 0.1, %v4890_v18  ;;  %vm4956_vm5 = vcmp.ge.f32.partialorder %v4892_v33, 0.0  ;;  %v10889_v43 = vld [vmem:[%s15822_s10 + $0x20] ss:$16 sps:$4 sm:$0xff]   ;;  %7090 = vmatprep.subr.bf16.mxu0 %v10927_v22 }
 0x2cb   : > { %v4333_v55 = vmax.f32 %v4205_v27, %v15939_v16  ;;  %v10660_v25 = vpop.f32.mrb[48].mxu1  ;;  %vm4955_vm6 = vcmp.ge.f32.partialorder %v4891_v8, 0.0  ;;  %v5019_v47 = vmul.f32 0.1, %v4891_v8  ;;  %vm4957_vm7 = vcmp.ge.f32.partialorder %v4893_v13, 0.0  ;;  %v15950_v9 = vld [vmem:[#allocation15_spill] sm:$0xff] }
 0x2cc   : > { %v4331_v44 = vmax.f32 %v4203_v62, %v15942_v54  ;;  %v4825_v5 = vmul.f32 %v12964_v41, %v10660_v25  ;;  %v4645_v45 = vpop.f32.mrb[49].mxu1  ;;  %v13290_v57 = vsel %vm4954_vm4, %v4890_v18, %v5018_v38  ;;  %v5020_v56 = vmul.f32 0.1, %v4892_v33  ;;  %v10886_v27 = vld [vmem:[%s15822_s10] ss:$16 sps:$4 sm:$0xff]  }
 0x2cd   : > { %v4367_v42 = vpack.c.bf16 %v4333_v55, %v4332_v59  ;;  %v4823_v6 = vmul.f32 %v12964_v41, %v4645_v45  ;;  %v10661_v15 = vpop.f32.mrb[50].mxu1  ;;  %v13294_v49 = vsel %vm4955_vm6, %v4891_v8, %v5019_v47  ;;  %v5021_v2 = vmul.f32 0.1, %v4893_v13  ;;  %v10900_v17 = vld [vmem:[%s15822_s10 + $0x64] ss:$16 sps:$4 sm:$0xff]   ;;  %v15946_v59 = vld [vmem:[#allocation14_spill] sm:$0xff] }
 0x2ce   : > { %v4366_v39 = vpack.c.bf16 %v4331_v44, %v4330_v51  ;;  %v4896_v23 = vadd.f32 %v12984_v4, %v4825_v5  ;;  %v4826_v34 = vmul.f32 %v12964_v41, %v10661_v15  ;;  %v4648_v30 = vpop.f32.mrb[51].mxu1  ;;  %v5134_v12 = vpack.c.bf16 %v13294_v49, %v13290_v57  ;;  %v10897_v51 = vld [vmem:[%s15822_s10 + $0x44] ss:$16 sps:$4 sm:$0xff]   ;;  %v10925_v8 = vld [vmem:[%s15822_s10 + $0x168] ss:$16 sps:$4 sm:$0xff]  }
 0x2cf   : > { %v4894_v46 = vadd.f32 %v12984_v4, %v4823_v6  ;;  %v4824_v11 = vmul.f32 %v12964_v41, %v4648_v30  ;;  %v13304_v58 = vsel %vm4956_vm5, %v4892_v33, %v5020_v56  ;;  %v13315_v28 = vsel %vm4957_vm7, %v4893_v13, %v5021_v2  ;;  %v10898_v10 = vld [vmem:[%s15822_s10 + $0x60] ss:$16 sps:$4 sm:$0xff]   ;;  %v10906_v16 = vld [vmem:[%s15822_s10 + $0x84] ss:$16 sps:$4 sm:$0xff]   ;;  %7091 = vmatpush1.bf16.msra.mxu0 %v10925_v8 }
 0x2d0   : > { %10686 = vmatprep.mubr.msk.bf16.mxu1 %vm4402_vm11, %v4366_v39  ;;  %v4897_v35 = vadd.f32 %v12984_v4, %v4826_v34  ;;  %vm4960_vm9 = vcmp.ge.f32.partialorder %v4896_v23, 0.0  ;;  %v5135_v40 = vpack.c.bf16 %v13315_v28, %v13304_v58  ;;  %v5024_v32 = vmul.f32 0.1, %v4896_v23  ;;  %v10904_v55 = vld [vmem:[%s15822_s10 + $0x80] ss:$16 sps:$4 sm:$0xff]  }
 0x2d1   : > { %10687 = vmatmul.mubr.msk.bf16.gmra.mrb[76].mxu1 %vm4402_vm11, %v4367_v42  ;;  %v4895_v61 = vadd.f32 %v12984_v4, %v4824_v11  ;;  %vm4958_vm8 = vcmp.ge.f32.partialorder %v4894_v46, 0.0  ;;  %v5022_v37 = vmul.f32 0.1, %v4894_v46  ;;  %v11013_v18 = vmov 0   ;;  %v15949_v25 = vld [vmem:[#allocation16_spill] sm:$0xff]  ;;  %v15952_v45 = vld [vmem:[#allocation18_spill] sm:$0xff] }
 0x2d2   : > { %10690 = vmatprep.mubr.msk.bf16.mxu1 %vm4402_vm11, %v4368_v48  ;;  %vm4961_vm10 = vcmp.ge.f32.partialorder %v4897_v35, 0.0  ;;  %v5025_v24 = vmul.f32 0.1, %v4897_v35  ;;  %v13323_v31 = vsel %vm4960_vm9, %v4896_v23, %v5024_v32  ;;  %v15945_v62 = vpack.c.bf16 %v15943_v1, %v15944_v7  ;;  %v15947_v48 = vld [vmem:[#allocation13_spill] sm:$0xff]  ;;  %v15955_v34 = vld [vmem:[#allocation19_spill] sm:$0xff]  ;;  %v15956_v30 = vld [vmem:[#allocation20_spill] sm:$0xff] }
 0x2d3   : > { %vm4959_vm12 = vcmp.ge.f32.partialorder %v4895_v61, 0.0  ;;  %v5023_v60 = vmul.f32 0.1, %v4895_v61  ;;  %v13319_v50 = vsel %vm4958_vm8, %v4894_v46, %v5022_v37  ;;  %v15948_v13 = vpack.c.bf16 %v15946_v59, %v15947_v48  ;;  %v10907_v54 = vld [vmem:[%s15822_s10 + $0xa0] ss:$16 sps:$4 sm:$0xff]  }
 0x2d4   : > { %v13325_v0 = vsel %vm4961_vm10, %v4897_v35, %v5025_v24  ;;  %v15951_v20 = vpack.c.bf16 %v15949_v25, %v15950_v9  ;;  %v10915_v44 = vld [vmem:[%s15822_s10 + $0xc4] ss:$16 sps:$4 sm:$0xff]   ;;  %v10913_v38 = vld [vmem:[%s15822_s10 + $0xc0] ss:$16 sps:$4 sm:$0xff]   ;;  %v15957_v56 = vpack.c.bf16 %v15955_v34, %v15956_v30 }
 0x2d5   : > { %v13321_v14 = vsel %vm4959_vm12, %v4895_v61, %v5023_v60  ;;  %v5137_v33 = vpack.c.bf16 %v13325_v0, %v13323_v31  ;;  %v10921_v5 = vld [vmem:[%s15822_s10 + $0xe4] ss:$16 sps:$4 sm:$0xff]   ;;  %v10919_v6 = vld [vmem:[%s15822_s10 + $0xe0] ss:$16 sps:$4 sm:$0xff]  }
 0x2d6   : > { %v5136_v3 = vpack.c.bf16 %v13321_v14, %v13319_v50  ;;  %v15953_v42 = vld [vmem:[#allocation17_spill] sm:$0xff]  ;;  %v15958_v61 = vld [vmem:[#allocation22_spill] sm:$0xff] }
 0x2d7   : > { %v15954_v47 = vpack.c.bf16 %v15952_v45, %v15953_v42  ;;  %v10924_v15 = vld [vmem:[%s15822_s10 + $0x104] ss:$16 sps:$4 sm:$0xff]   ;;  %v10922_v39 = vld [vmem:[%s15822_s10 + $0x100] ss:$16 sps:$4 sm:$0xff]  }
 0x2d8   : > { %v10930_v23 = vld [vmem:[%s15822_s10 + $0x124] ss:$16 sps:$4 sm:$0xff]   ;;  %v10928_v46 = vld [vmem:[%s15822_s10 + $0x120] ss:$16 sps:$4 sm:$0xff]  }
 0x2d9   : > { %10691 = vmatmul.mubr.msk.bf16.gmra.mrb[80].mxu1 %vm4402_vm11, %v4369_v21  ;;  %v10909_v21 = vld [vmem:[%s15822_s10 + $0xa4] ss:$16 sps:$4 sm:$0xff]   ;;  %v10931_v2 = vld [vmem:[%s15822_s10 + $0x140] ss:$16 sps:$4 sm:$0xff]  }
 0x2da   : > { %5282 = vmatprep.mubr.bf16.mxu1 %v11013_v18  ;;  %v10933_v11 = vld [vmem:[%s15822_s10 + $0x144] ss:$16 sps:$4 sm:$0xff]   ;;  %v10937_v42 = vld [vmem:[%s15822_s10 + $0x160] ss:$16 sps:$4 sm:$0xff]  }
 0x2db   : > { %v15959_v37 = vld [vmem:[#allocation21_spill] sm:$0xff] }
 0x2dc   : > { %v15960_v32 = vpack.c.bf16 %v15958_v61, %v15959_v37  ;;  %v15965_v61 = vld [vmem:[#allocation26_spill] sm:$0xff]  ;;  %v10957_v57 = vld [vmem:[%s15822_s10 + $0x1c4] ss:$16 sps:$4 sm:$0xff]  }
 0x2dd   : > { %v10960_v14 = vld [vmem:[%s15822_s10 + $0x1e4] ss:$16 sps:$4 sm:$0xff]  }
 0x2e1   : > { %5283 = vmatmul.mubr.bf16.vlgmr.msra.gmra.mrb[84].mxu1 %v15945_v62 }
 0x2e2   : > { %6716 = vmatpush1.bf16.msra.mxu1 %v10886_v27  ;;  %5292 = vmatprep.mubr.bf16.mxu1 %v11013_v18  ;;  %v10934_v27 = vld [vmem:[%s15822_s10 + $0x188] ss:$16 sps:$4 sm:$0xff]  }
 0x2e3   : > { %6717 = vmatprep.subr.bf16.mxu1 %v10891_v19  ;;  %v10936_v19 = vld [vmem:[%s15822_s10 + $0x18c] ss:$16 sps:$4 sm:$0xff]  }
 0x2e4   : > { %7092 = vmatprep.subr.bf16.mxu0 %v10936_v19  ;;  %v10942_v19 = vld [vmem:[%s15822_s10 + $0x184] ss:$16 sps:$4 sm:$0xff]  }
 0x2e5   : > { %7093 = vmatpush1.bf16.msra.mxu0 %v10934_v27  ;;  %v10940_v27 = vld [vmem:[%s15822_s10 + $0x180] ss:$16 sps:$4 sm:$0xff]  }
 0x2e6   : > { %6718 = vmatpush1.bf16.msra.mxu1 %v10889_v43 }
 0x2e7   : > { %6719 = vmatprep.subr.bf16.mxu1 %v10897_v51 }
 0x2e9   : > { %5293 = vmatmul.mubr.bf16.gmra.mrb[88].mxu1 %v15948_v13 }
 0x2ea   : > { %5302 = vmatprep.mubr.bf16.mxu1 %v11013_v18  ;;  %6720 = vmatpush1.bf16.msra.mxu1 %v10895_v63 }
 0x2eb   : > { %6721 = vmatprep.subr.bf16.mxu1 %v10900_v17 }
 0x2ee   : > { %6722 = vmatpush1.bf16.msra.mxu1 %v10898_v10 }
 0x2ef   : > { %6723 = vmatprep.subr.bf16.mxu1 %v10906_v16 }
 0x2f1   : > { %5303 = vmatmul.mubr.bf16.gmra.mrb[92].mxu1 %v15951_v20 }
 0x2f2   : > { %5312 = vmatprep.mubr.bf16.mxu1 %v11013_v18  ;;  %6724 = vmatpush1.bf16.msra.mxu1 %v10904_v55  ;;  %v15961_v55 = vld [vmem:[#allocation24_spill] sm:$0xff] }
 0x2f3   : > { %6725 = vmatprep.subr.bf16.mxu1 %v10909_v21  ;;  %v15962_v21 = vld [vmem:[#allocation23_spill] sm:$0xff] }
 0x2f4   : > { %v15963_v25 = vpack.c.bf16 %v15961_v55, %v15962_v21  ;;  %v10949_v55 = vld [vmem:[%s15822_s10 + $0x1c8] ss:$16 sps:$4 sm:$0xff]   ;;  %v10951_v21 = vld [vmem:[%s15822_s10 + $0x1cc] ss:$16 sps:$4 sm:$0xff]  }
 0x2f6   : > { %6726 = vmatpush1.bf16.msra.mxu1 %v10907_v54 }
 0x2f7   : > { %6727 = vmatprep.subr.bf16.mxu1 %v10915_v44 }
 0x2f9   : > { %5313 = vmatmul.mubr.bf16.gmra.mrb[96].mxu1 %v15954_v47  ;;  %v10939_v47 = vld [vmem:[%s15822_s10 + $0x164] ss:$16 sps:$4 sm:$0xff]  }
 0x2fa   : > { %5322 = vmatprep.mubr.bf16.mxu1 %v11013_v18  ;;  %6728 = vmatpush1.bf16.msra.mxu1 %v10913_v38 }
 0x2fb   : > { %6729 = vmatprep.subr.bf16.mxu1 %v10921_v5 }
 0x2fe   : > { %6730 = vmatpush1.bf16.msra.mxu1 %v10919_v6 }
 0x2ff   : > { %6731 = vmatprep.subr.bf16.mxu1 %v10924_v15 }
 0x301   : > { %5323 = vmatmul.mubr.bf16.gmra.mrb[100].mxu1 %v15957_v56 }
 0x302   : > { %5332 = vmatprep.mubr.bf16.mxu1 %v11013_v18  ;;  %6732 = vmatpush1.bf16.msra.mxu1 %v10922_v39 }
 0x303   : > { %6733 = vmatprep.subr.bf16.mxu1 %v10930_v23  ;;  %v10664_v35 = vpop.f32.mrb[52].mxu1 }
 0x304   : > { %v4829_v26 = vmul.f32 %v12964_v41, %v10664_v35  ;;  %v4661_v53 = vpop.f32.mrb[53].mxu1 }
 0x305   : > { %v4827_v60 = vmul.f32 %v12964_v41, %v4661_v53  ;;  %v10665_v24 = vpop.f32.mrb[54].mxu1  ;;  %v15964_v53 = vld [vmem:[#allocation25_spill] sm:$0xff] }
 0x306   : > { %6734 = vmatpush1.bf16.msra.mxu1 %v10928_v46  ;;  %v4900_v1 = vadd.f32 %v12984_v4, %v4829_v26  ;;  %v4830_v7 = vmul.f32 %v12964_v41, %v10665_v24  ;;  %v4664_v62 = vpop.f32.mrb[55].mxu1  ;;  %v15966_v37 = vpack.c.bf16 %v15964_v53, %v15965_v61 }
 0x307   : > { %6735 = vmatprep.subr.bf16.mxu1 %v10933_v11  ;;  %v4898_v43 = vadd.f32 %v12984_v4, %v4827_v60  ;;  %v4828_v51 = vmul.f32 %v12964_v41, %v4664_v62  ;;  %v15968_v62 = vld [vmem:[#allocation3_spill] sm:$0xff] }
 0x308   : > { %v4901_v63 = vadd.f32 %v12984_v4, %v4830_v7  ;;  %v5028_v17 = vmul.f32 0.1, %v4900_v1  ;;  %vm4964_vm11 = vcmp.ge.f32.partialorder %v4900_v1, 0.0  ;;  %v15967_v7 = vld [vmem:[#allocation4_spill] sm:$0xff] }
 0x309   : > { %5333 = vmatmul.mubr.bf16.gmra.mrb[104].mxu1 %v15960_v32  ;;  %v4899_v59 = vadd.f32 %v12984_v4, %v4828_v51  ;;  %v5026_v48 = vmul.f32 0.1, %v4898_v43  ;;  %vm4962_vm13 = vcmp.ge.f32.partialorder %v4898_v43, 0.0  ;;  %v15970_v51 = vld [vmem:[#allocation27_spill] sm:$0xff] }
 0x30a   : > { %5342 = vmatprep.mubr.bf16.mxu1 %v11013_v18  ;;  %6736 = vmatpush1.bf16.msra.mxu1 %v10931_v2  ;;  %vm4965_vm14 = vcmp.ge.f32.partialorder %v4901_v63, 0.0  ;;  %v5029_v13 = vmul.f32 0.1, %v4901_v63  ;;  %v13444_v9 = vsel %vm4964_vm11, %v4900_v1, %v5028_v17 }
 0x30b   : > { %v10668_v8 = vpop.f32.mrb[56].mxu1  ;;  %vm4963_vm15 = vcmp.ge.f32.partialorder %v4899_v59, 0.0  ;;  %v5027_v22 = vmul.f32 0.1, %v4899_v59  ;;  %v13450_v38 = vsel %vm4962_vm13, %v4898_v43, %v5026_v48  ;;  %6737 = vmatprep.subr.bf16.mxu1 %v10939_v47  ;;  %v15969_v43 = vpack.c.bf16 %v15967_v7, %v15968_v62  ;;  %v10945_v48 = vld [vmem:[%s15822_s10 + $0x1ac] ss:$16 sps:$4 sm:$0xff]  }
 0x30c   : > { %v4833_v10 = vmul.f32 %v12964_v41, %v10668_v8  ;;  %v4677_v16 = vpop.f32.mrb[57].mxu1  ;;  %v13446_v20 = vsel %vm4965_vm14, %v4901_v63, %v5029_v13  ;;  %v15971_v63 = vld [vmem:[#allocation5_spill] sm:$0xff]  ;;  %7094 = vmatprep.subr.bf16.mxu0 %v10945_v48  ;;  %v15974_v8 = vld [vmem:[#allocation28_spill] sm:$0xff]  ;;  %v13552_v47 = vld [vmem:[%s15818_s6] ss:$0 sm:$0xff] }
 0x30d   : > { %v4831_v54 = vmul.f32 %v12964_v41, %v4677_v16  ;;  %v10669_v44 = vpop.f32.mrb[58].mxu1  ;;  %v13452_v5 = vsel %vm4963_vm15, %v4899_v59, %v5027_v22  ;;  %v5139_v45 = vpack.c.bf16 %v13446_v20, %v13444_v9  ;;  %v15972_v17 = vpack.c.bf16 %v15970_v51, %v15971_v63  ;;  %v10943_v59 = vld [vmem:[%s15822_s10 + $0x1a8] ss:$16 sps:$4 sm:$0xff]   ;;  %v10948_v16 = vld [vmem:[%s15822_s10 + $0x1a4] ss:$16 sps:$4 sm:$0xff]  }
 0x30e   : > { %v4904_v6 = vadd.f32 %v12984_v4, %v4833_v10  ;;  %v4834_v15 = vmul.f32 %v12964_v41, %v10669_v44  ;;  %v4680_v39 = vpop.f32.mrb[59].mxu1  ;;  %v5138_v23 = vpack.c.bf16 %v13452_v5, %v13450_v38  ;;  %6738 = vmatpush1.bf16.msra.mxu1 %v10937_v42  ;;  %7095 = vmatpush1.bf16.msra.mxu0 %v10943_v59  ;;  %v15973_v13 = vld [vmem:[#allocation29_spill] sm:$0xff] }
 0x30f   : > { %v4902_v34 = vadd.f32 %v12984_v4, %v4831_v54  ;;  %v4832_v30 = vmul.f32 %v12964_v41, %v4680_v39  ;;  %6739 = vmatprep.subr.bf16.mxu1 %v10942_v19  ;;  %v15975_v22 = vpack.c.bf16 %v15973_v13, %v15974_v8  ;;  %v10946_v10 = vld [vmem:[%s15822_s10 + $0x1a0] ss:$16 sps:$4 sm:$0xff]   ;;  %7096 = vmatprep.subr.bf16.mxu0 %v10951_v21 }
 0x310   : > { %v4905_v56 = vadd.f32 %v12984_v4, %v4834_v15  ;;  %v5032_v46 = vmul.f32 0.1, %v4904_v6  ;;  %vm4968_vm1 = vcmp.ge.f32.partialorder %v4904_v6, 0.0  ;;  %v10958_v21 = vld [vmem:[%s15822_s10 + $0x1e0] ss:$16 sps:$4 sm:$0xff]  }
 0x311   : > { %5343 = vmatmul.mubr.bf16.gmra.mrb[108].mxu1 %v15963_v25  ;;  %v4903_v11 = vadd.f32 %v12984_v4, %v4832_v30  ;;  %v5030_v2 = vmul.f32 0.1, %v4902_v34  ;;  %vm4966_vm2 = vcmp.ge.f32.partialorder %v4902_v34, 0.0 }
 0x312   : > { %5352 = vmatprep.mubr.bf16.mxu1 %v11013_v18  ;;  %vm4969_vm3 = vcmp.ge.f32.partialorder %v4905_v56, 0.0  ;;  %v5033_v35 = vmul.f32 0.1, %v4905_v56  ;;  %v13473_v32 = vsel %vm4968_vm1, %v4904_v6, %v5032_v46  ;;  %6740 = vmatpush1.bf16.msra.mxu1 %v10940_v27 }
 0x313   : > { %vm4967_vm0 = vcmp.ge.f32.partialorder %v4903_v11, 0.0  ;;  %v5031_v26 = vmul.f32 0.1, %v4903_v11  ;;  %v13478_v60 = vsel %vm4966_vm2, %v4902_v34, %v5030_v2  ;;  %6741 = vmatprep.subr.bf16.mxu1 %v10948_v16  ;;  %7097 = vmatpush1.bf16.msra.mxu0 %v10949_v55 }
 0x314   : > { %v13475_v41 = vsel %vm4969_vm3, %v4905_v56, %v5033_v35  ;;  %7098 = vmatprep.subr.bf16.mxu0 %v10954_v52 }
 0x315   : > { %v13480_v4 = vsel %vm4967_vm0, %v4903_v11, %v5031_v26  ;;  %v5141_v24 = vpack.c.bf16 %v13475_v41, %v13473_v32 }
 0x316   : > { %v5140_v1 = vpack.c.bf16 %v13480_v4, %v13478_v60  ;;  %6742 = vmatpush1.bf16.msra.mxu1 %v10946_v10 }
 0x317   : > { %6743 = vmatprep.subr.bf16.mxu1 %v10957_v57  ;;  %7099 = vmatpush1.bf16.msra.mxu0 %v10952_v36 }
 0x319   : > { %5353 = vmatmul.mubr.bf16.gmra.mrb[112].mxu1 %v15966_v37 }
 0x31a   : > { %5362 = vmatprep.mubr.bf16.mxu1 %v11013_v18 }
 0x321   : > { %5363 = vmatmul.mubr.bf16.gmra.mrb[116].mxu1 %v15969_v43 }
 0x322   : > { %5372 = vmatprep.mubr.bf16.mxu1 %v11013_v18 }
 0x329   : > { %5373 = vmatmul.mubr.bf16.gmra.mrb[120].mxu1 %v15972_v17 }
 0x32a   : > { %5382 = vmatprep.mubr.bf16.mxu1 %v11013_v18 }
 0x331   : > { %5383 = vmatmul.mubr.bf16.gmra.mrb[124].mxu1 %v15975_v22 }
 0x332   : > { %5392 = vmatprep.mubr.bf16.mxu1 %v11013_v18 }
 0x339   : > { %5393 = vmatmul.mubr.bf16.gmra.mrb[128].mxu1 %v5133_v29  ;;  %v10955_v29 = vld [vmem:[%s15822_s10 + $0x1c0] ss:$16 sps:$4 sm:$0xff]  }
 0x33a   : > { %5402 = vmatprep.mubr.bf16.mxu1 %v11013_v18  ;;  %6744 = vmatpush1.bf16.msra.mxu1 %v10955_v29 }
 0x33b   : > { %6745 = vmatprep.subr.bf16.mxu1 %v10960_v14 }
 0x33e   : > { %6746 = vmatpush1.bf16.msra.mxu1 %v10958_v21 }
 0x341   : > { %5403 = vmatmul.mubr.bf16.gmra.mrb[132].mxu1 %v5134_v12  ;;  %v13545_v12 = vld [vmem:[%s15817_s5] ss:$0 sm:$0xff] }
 0x342   : > { %5412 = vmatprep.mubr.bf16.mxu1 %v11013_v18 }
 0x343   : > { %v10672_v49 = vpop.f32.mrb[60].mxu1 }
 0x344   : > { %v4837_v25 = vmul.f32 %v13545_v12, %v10672_v49  ;;  %v4693_v54 = vpop.f32.mrb[61].mxu1 }
 0x345   : > { %v4835_v44 = vmul.f32 %v13545_v12, %v4693_v54  ;;  %v10673_v42 = vpop.f32.mrb[62].mxu1 }
 0x346   : > { %v4908_v6 = vadd.f32 %v13552_v47, %v4837_v25  ;;  %v4838_v15 = vmul.f32 %v13545_v12, %v10673_v42  ;;  %v4696_v39 = vpop.f32.mrb[63].mxu1 }
 0x347   : > { %v4906_v34 = vadd.f32 %v13552_v47, %v4835_v44  ;;  %v4836_v30 = vmul.f32 %v13545_v12, %v4696_v39 }
 0x348   : > { %v4909_v56 = vadd.f32 %v13552_v47, %v4838_v15  ;;  %v5036_v46 = vmul.f32 0.1, %v4908_v6  ;;  %vm4972_vm4 = vcmp.ge.f32.partialorder %v4908_v6, 0.0 }
 0x349   : > { %5413 = vmatmul.mubr.bf16.gmra.mrb[136].mxu1 %v5135_v40  ;;  %v4907_v11 = vadd.f32 %v13552_v47, %v4836_v30  ;;  %v5034_v2 = vmul.f32 0.1, %v4906_v34  ;;  %vm4970_vm5 = vcmp.ge.f32.partialorder %v4906_v34, 0.0 }
 0x34a   : > { %5422 = vmatprep.mubr.bf16.mxu1 %v11013_v18  ;;  %vm4973_vm6 = vcmp.ge.f32.partialorder %v4909_v56, 0.0  ;;  %v5037_v35 = vmul.f32 0.1, %v4909_v56  ;;  %v5100_v27 = vsel %vm4972_vm4, %v4908_v6, %v5036_v46 }
 0x34b   : > { %v10676_v26 = vpop.f32.mrb[64].mxu1  ;;  %vm4971_vm7 = vcmp.ge.f32.partialorder %v4907_v11, 0.0  ;;  %v5035_v53 = vmul.f32 0.1, %v4907_v11  ;;  %v5098_v40 = vsel %vm4970_vm5, %v4906_v34, %v5034_v2 }
 0x34c   : > { %v4841_v61 = vmul.f32 %v13545_v12, %v10676_v26  ;;  %v4709_v37 = vpop.f32.mrb[65].mxu1  ;;  %v5101_v19 = vsel %vm4973_vm6, %v4909_v56, %v5037_v35 }
 0x34d   : > { %v4839_v58 = vmul.f32 %v13545_v12, %v4709_v37  ;;  %v10677_v28 = vpop.f32.mrb[66].mxu1  ;;  %v5099_v7 = vsel %vm4971_vm7, %v4907_v11, %v5035_v53  ;;  %v5143_v62 = vpack.c.bf16 %v5101_v19, %v5100_v27 }
 0x34e   : > { %v4912_v43 = vadd.f32 %v13552_v47, %v4841_v61  ;;  %v4842_v51 = vmul.f32 %v13545_v12, %v10677_v28  ;;  %v4712_v63 = vpop.f32.mrb[67].mxu1  ;;  %v5142_v17 = vpack.c.bf16 %v5099_v7, %v5098_v40 }
 0x34f   : > { %v4910_v59 = vadd.f32 %v13552_v47, %v4839_v58  ;;  %v4840_v48 = vmul.f32 %v13545_v12, %v4712_v63 }
 0x350   : > { %v4913_v13 = vadd.f32 %v13552_v47, %v4842_v51  ;;  %v5040_v8 = vmul.f32 0.1, %v4912_v43  ;;  %vm4976_vm8 = vcmp.ge.f32.partialorder %v4912_v43, 0.0 }
 0x351   : > { %5423 = vmatmul.mubr.bf16.gmra.mrb[140].mxu1 %v5136_v3  ;;  %v4911_v22 = vadd.f32 %v13552_v47, %v4840_v48  ;;  %v5038_v10 = vmul.f32 0.1, %v4910_v59  ;;  %vm4974_vm9 = vcmp.ge.f32.partialorder %v4910_v59, 0.0 }
 0x352   : > { %5432 = vmatprep.mubr.bf16.mxu1 %v11013_v18  ;;  %vm4977_vm10 = vcmp.ge.f32.partialorder %v4913_v13, 0.0  ;;  %v5041_v16 = vmul.f32 0.1, %v4913_v13  ;;  %v13579_v36 = vsel %vm4976_vm8, %v4912_v43, %v5040_v8 }
 0x353   : > { %vm4975_vm12 = vcmp.ge.f32.partialorder %v4911_v22, 0.0  ;;  %v5039_v55 = vmul.f32 0.1, %v4911_v22  ;;  %v5102_v3 = vsel %vm4974_vm9, %v4910_v59, %v5038_v10  ;;  %v5605_v59 = vlaneseq }
 0x354   : > { %v13581_v50 = vsel %vm4977_vm10, %v4913_v13, %v5041_v16 }
 0x355   : > { %v5103_v52 = vsel %vm4975_vm12, %v4911_v22, %v5039_v55  ;;  %v5145_v29 = vpack.c.bf16 %v13581_v50, %v13579_v36  ;;  %v13644_v50 = vshrl.u32 %v5605_v59, 7 }
 0x356   : > { %v5144_v57 = vpack.c.bf16 %v5103_v52, %v5102_v3 }
 0x359   : > { %5433 = vmatmul.mubr.bf16.gmra.mrb[144].mxu1 %v5137_v33 }
 0x35a   : > { %5442 = vmatprep.mubr.bf16.mxu1 %v11013_v18 }
 0x361   : > { %5443 = vmatmul.mubr.bf16.gmra.mrb[148].mxu1 %v5138_v23 }
 0x362   : > { %5452 = vmatprep.mubr.bf16.mxu1 %v11013_v18 }
 0x369   : > { %5453 = vmatmul.mubr.bf16.gmra.mrb[152].mxu1 %v5139_v45 }
 0x36a   : > { %5462 = vmatprep.mubr.bf16.mxu1 %v11013_v18 }
 0x371   : > { %5463 = vmatmul.mubr.bf16.gmra.mrb[156].mxu1 %v5140_v1 }
 0x372   : > { %5472 = vmatprep.mubr.bf16.mxu1 %v11013_v18 }
 0x379   : > { %5473 = vmatmul.mubr.bf16.gmra.mrb[160].mxu1 %v5141_v24 }
 0x37a   : > { %5482 = vmatprep.mubr.bf16.mxu1 %v11013_v18 }
 0x381   : > { %5483 = vmatmul.mubr.bf16.gmra.mrb[164].mxu1 %v5142_v17 }
 0x382   : > { %5492 = vmatprep.mubr.bf16.mxu1 %v11013_v18 }
 0x383   : > { %v10680_v31 = vpop.f32.mrb[68].mxu1 }
 0x384   : > { %v4845_v0 = vmul.f32 %v13545_v12, %v10680_v31  ;;  %v4725_v33 = vpop.f32.mrb[69].mxu1 }
 0x385   : > { %v4843_v9 = vmul.f32 %v13545_v12, %v4725_v33  ;;  %v10681_v20 = vpop.f32.mrb[70].mxu1 }
 0x386   : > { %v4916_v38 = vadd.f32 %v13552_v47, %v4845_v0  ;;  %v4846_v5 = vmul.f32 %v13545_v12, %v10681_v20  ;;  %v4728_v45 = vpop.f32.mrb[71].mxu1  ;;  %v13650_v0 = vsub.s32 0, %v13644_v50 }
 0x387   : > { %v4914_v23 = vadd.f32 %v13552_v47, %v4843_v9  ;;  %v4844_v32 = vmul.f32 %v13545_v12, %v4728_v45 }
 0x388   : > { %v4917_v41 = vadd.f32 %v13552_v47, %v4846_v5  ;;  %v5044_v60 = vmul.f32 0.1, %v4916_v38  ;;  %vm4980_vm11 = vcmp.ge.f32.partialorder %v4916_v38, 0.0 }
 0x389   : > { %5493 = vmatmul.mubr.bf16.gmra.mrb[168].mxu1 %v5143_v62  ;;  %v4915_v4 = vadd.f32 %v13552_v47, %v4844_v32  ;;  %v5042_v24 = vmul.f32 0.1, %v4914_v23  ;;  %vm4978_vm13 = vcmp.ge.f32.partialorder %v4914_v23, 0.0 }
 0x38a   : > { %5502 = vmatprep.mubr.bf16.mxu1 %v11013_v18  ;;  %vm4981_vm14 = vcmp.ge.f32.partialorder %v4917_v41, 0.0  ;;  %v5045_v1 = vmul.f32 0.1, %v4917_v41  ;;  %v5108_v42 = vsel %vm4980_vm11, %v4916_v38, %v5044_v60  ;;  %v13654_v38 = vsub.s32 1, %v13644_v50 }
 0x38b   : > { %v10684_v49 = vpop.f32.mrb[72].mxu1  ;;  %vm4979_vm15 = vcmp.ge.f32.partialorder %v4915_v4, 0.0  ;;  %v5043_v25 = vmul.f32 0.1, %v4915_v4  ;;  %v5106_v34 = vsel %vm4978_vm13, %v4914_v23, %v5042_v24 }
 0x38c   : > { %v4849_v54 = vmul.f32 %v13545_v12, %v10684_v49  ;;  %v4741_v44 = vpop.f32.mrb[73].mxu1  ;;  %v5109_v6 = vsel %vm4981_vm14, %v4917_v41, %v5045_v1  ;;  %v5603_v41 = vld [vmem:[%s15820_s8] sm:$0x3] }
 0x38d   : > { %v4847_v15 = vmul.f32 %v13545_v12, %v4741_v44  ;;  %v10685_v39 = vpop.f32.mrb[74].mxu1  ;;  %v5107_v30 = vsel %vm4979_vm15, %v4915_v4, %v5043_v25  ;;  %v5147_v56 = vpack.c.bf16 %v5109_v6, %v5108_v42  ;;  %v5743_v6 = vld [vmem:[%s15821_s9] sm:$0x3] }
 0x38e   : > { %v4920_v46 = vadd.f32 %v13552_v47, %v4849_v54  ;;  %v4850_v11 = vmul.f32 %v13545_v12, %v10685_v39  ;;  %v4744_v2 = vpop.f32.mrb[75].mxu1  ;;  %v5146_v35 = vpack.c.bf16 %v5107_v30, %v5106_v34  ;;  %v13681_v39 = vrot.slane %v5603_v41, %v13650_v0 }
 0x38f   : > { %v4918_v26 = vadd.f32 %v13552_v47, %v4847_v15  ;;  %v4848_v53 = vmul.f32 %v13545_v12, %v4744_v2 }
 0x390   : > { %v4921_v61 = vadd.f32 %v13552_v47, %v4850_v11  ;;  %v5048_v37 = vmul.f32 0.1, %v4920_v46  ;;  %vm4984_vm1 = vcmp.ge.f32.partialorder %v4920_v46, 0.0 }
 0x391   : > { %5503 = vmatmul.mubr.bf16.gmra.mrb[172].mxu1 %v5144_v57  ;;  %v4919_v27 = vadd.f32 %v13552_v47, %v4848_v53  ;;  %v5046_v19 = vmul.f32 0.1, %v4918_v26  ;;  %vm4982_vm2 = vcmp.ge.f32.partialorder %v4918_v26, 0.0 }
 0x392   : > { %5512 = vmatprep.mubr.bf16.mxu1 %v11013_v18  ;;  %vm4985_vm3 = vcmp.ge.f32.partialorder %v4921_v61, 0.0  ;;  %v5049_v58 = vmul.f32 0.1, %v4921_v61  ;;  %v13627_v40 = vsel %vm4984_vm1, %v4920_v46, %v5048_v37 }
 0x393   : > { %vm4983_vm0 = vcmp.ge.f32.partialorder %v4919_v27, 0.0  ;;  %v5047_v28 = vmul.f32 0.1, %v4919_v27  ;;  %v5110_v62 = vsel %vm4982_vm2, %v4918_v26, %v5046_v19 }
 0x394   : > { %v13629_v7 = vsel %vm4985_vm3, %v4921_v61, %v5049_v58 }
 0x395   : > { %v5111_v43 = vsel %vm4983_vm0, %v4919_v27, %v5047_v28  ;;  %v5149_v51 = vpack.c.bf16 %v13629_v7, %v13627_v40 }
 0x396   : > { %v5148_v63 = vpack.c.bf16 %v5111_v43, %v5110_v62 }
 0x399   : > { %5513 = vmatmul.mubr.bf16.gmra.mrb[176].mxu1 %v5145_v29 }
 0x39a   : > { %5522 = vmatprep.mubr.bf16.mxu1 %v11013_v18 }
 0x3a1   : > { %5523 = vmatmul.mubr.bf16.gmra.mrb[180].mxu1 %v5146_v35  ;;  %v13692_v35 = vrot.slane %v5743_v6, %v13654_v38 }
 0x3a2   : > { %5532 = vmatprep.mubr.bf16.mxu1 %v11013_v18 }
 0x3a4   : > { %v10688_v17 = vpop.f32.mrb[76].mxu1 }
 0x3a5   : > { %v4853_v48 = vmul.f32 %v13545_v12, %v10688_v17  ;;  %v4757_v13 = vpop.f32.mrb[77].mxu1 }
 0x3a6   : > { %v4851_v8 = vmul.f32 %v13545_v12, %v4757_v13  ;;  %v10689_v22 = vpop.f32.mrb[78].mxu1 }
 0x3a7   : > { %v4924_v10 = vadd.f32 %v13552_v47, %v4853_v48  ;;  %v4854_v16 = vmul.f32 %v13545_v12, %v10689_v22  ;;  %v4760_v55 = vpop.f32.mrb[79].mxu1 }
 0x3a8   : > { %v4922_v21 = vadd.f32 %v13552_v47, %v4851_v8  ;;  %v4852_v36 = vmul.f32 %v13545_v12, %v4760_v55 }
 0x3a9   : > { %v4925_v14 = vadd.f32 %v13552_v47, %v4854_v16  ;;  %5533 = vmatmul.mubr.bf16.gmra.mrb[184].mxu1 %v5147_v56  ;;  %v5052_v3 = vmul.f32 0.1, %v4924_v10  ;;  %vm4988_vm4 = vcmp.ge.f32.partialorder %v4924_v10, 0.0  ;;  %v13685_v56 = vrot.slane %v5603_v41, %v13654_v38 }
 0x3aa   : > { %v4923_v52 = vadd.f32 %v13552_v47, %v4852_v36  ;;  %5542 = vmatprep.mubr.bf16.mxu1 %v11013_v18  ;;  %v5050_v29 = vmul.f32 0.1, %v4922_v21  ;;  %vm4986_vm5 = vcmp.ge.f32.partialorder %v4922_v21, 0.0 }
 0x3ab   : > { %vm4989_vm6 = vcmp.ge.f32.partialorder %v4925_v14, 0.0  ;;  %v5053_v57 = vmul.f32 0.1, %v4925_v14  ;;  %v13656_v5 = vsel %vm4988_vm4, %v4924_v10, %v5052_v3 }
 0x3ac   : > { %v10692_v31 = vpop.f32.mrb[80].mxu1  ;;  %vm4987_vm7 = vcmp.ge.f32.partialorder %v4923_v52, 0.0  ;;  %v5051_v33 = vmul.f32 0.1, %v4923_v52  ;;  %v13664_v60 = vsel %vm4986_vm5, %v4922_v21, %v5050_v29 }
 0x3ad   : > { %v4857_v9 = vmul.f32 %v13545_v12, %v10692_v31  ;;  %v4773_v20 = vpop.f32.mrb[81].mxu1  ;;  %v13658_v45 = vsel %vm4989_vm6, %v4925_v14, %v5053_v57 }
 0x3ae   : > { %v4855_v23 = vmul.f32 %v13545_v12, %v4773_v20  ;;  %v10693_v32 = vpop.f32.mrb[82].mxu1  ;;  %v13666_v4 = vsel %vm4987_vm7, %v4923_v52, %v5051_v33  ;;  %v5151_v24 = vpack.c.bf16 %v13658_v45, %v13656_v5 }
 0x3af   : > { %v4928_v1 = vadd.f32 %v13552_v47, %v4857_v9  ;;  %v4858_v49 = vmul.f32 %v13545_v12, %v10693_v32  ;;  %v4776_v25 = vpop.f32.mrb[83].mxu1  ;;  %v5150_v54 = vpack.c.bf16 %v13666_v4, %v13664_v60 }
 0x3b0   : > { %v4926_v44 = vadd.f32 %v13552_v47, %v4855_v23  ;;  %v4856_v42 = vmul.f32 %v13545_v12, %v4776_v25  ;;  %v13689_v12 = vrot.slane %v5743_v6, %v13650_v0 }
 0x3b1   : > { %v4929_v15 = vadd.f32 %v13552_v47, %v4858_v49  ;;  %5543 = vmatmul.mubr.bf16.gmra.mrb[188].mxu1 %v5148_v63  ;;  %v5056_v34 = vmul.f32 0.1, %v4928_v1  ;;  %vm4992_vm8 = vcmp.ge.f32.partialorder %v4928_v1, 0.0 }
 0x3b2   : > { %v4927_v30 = vadd.f32 %v13552_v47, %v4856_v42  ;;  %5552 = vmatprep.mubr.bf16.mxu1 %v11013_v18  ;;  %v5054_v46 = vmul.f32 0.1, %v4926_v44  ;;  %vm4990_vm9 = vcmp.ge.f32.partialorder %v4926_v44, 0.0 }
 0x3b3   : > { %vm4993_vm10 = vcmp.ge.f32.partialorder %v4929_v15, 0.0  ;;  %v5057_v11 = vmul.f32 0.1, %v4929_v15  ;;  %v13695_v61 = vsel %vm4992_vm8, %v4928_v1, %v5056_v34 }
 0x3b4   : > { %v5284_v2 = vpop.f32.mrb[84].mxu1  ;;  %vm4991_vm12 = vcmp.ge.f32.partialorder %v4927_v30, 0.0  ;;  %v5055_v26 = vmul.f32 0.1, %v4927_v30  ;;  %v13700_v58 = vsel %vm4990_vm9, %v4926_v44, %v5054_v46 }
 0x3b5   : > { %v5615_v47 = vmul.f32 %v13681_v39, %v5284_v2  ;;  %v5286_v53 = vpop.f32.mrb[85].mxu1  ;;  %v13697_v37 = vsel %vm4993_vm10, %v4929_v15, %v5057_v11 }
 0x3b6   : > { %v5616_v27 = vmul.f32 %v13685_v56, %v5286_v53  ;;  %v5288_v19 = vpop.f32.mrb[86].mxu1  ;;  %v13702_v28 = vsel %vm4991_vm12, %v4927_v30, %v5055_v26  ;;  %v5153_v62 = vpack.c.bf16 %v13697_v37, %v13695_v61 }
 0x3b7   : > { %v5755_v43 = vadd.f32 %v13689_v12, %v5615_v47  ;;  %v5617_v63 = vmul.f32 %v13681_v39, %v5288_v19  ;;  %v5290_v17 = vpop.f32.mrb[87].mxu1  ;;  %v5152_v59 = vpack.c.bf16 %v13702_v28, %v13700_v58 }
 0x3b8   : > { %v5756_v48 = vadd.f32 %v13692_v35, %v5616_v27  ;;  %v5618_v13 = vmul.f32 %v13685_v56, %v5290_v17 }
 0x3b9   : > { %v6011_v8 = vmul.f32 0.1, %v5755_v43  ;;  %v5757_v22 = vadd.f32 %v13689_v12, %v5617_v63  ;;  %5553 = vmatmul.mubr.bf16.gmra.mrb[192].mxu1 %v5149_v51  ;;  %vm5883_vm11 = vcmp.ge.f32.partialorder %v5755_v43, 0.0 }
 0x3ba   : > { %v5758_v10 = vadd.f32 %v13692_v35, %v5618_v13  ;;  %5562 = vmatprep.mubr.bf16.mxu1 %v11013_v18  ;;  %v6012_v16 = vmul.f32 0.1, %v5756_v48  ;;  %vm5884_vm14 = vcmp.ge.f32.partialorder %v5756_v48, 0.0 }
 0x3bb   : > { %vm5885_vm13 = vcmp.ge.f32.partialorder %v5757_v22, 0.0  ;;  %v6013_v55 = vmul.f32 0.1, %v5757_v22  ;;  %v6139_v14 = vsel %vm5883_vm11, %v5755_v43, %v6011_v8 }
 0x3bc   : > { %v5294_v21 = vpop.f32.mrb[88].mxu1  ;;  %vm5886_vm15 = vcmp.ge.f32.partialorder %v5758_v10, 0.0  ;;  %v6014_v36 = vmul.f32 0.1, %v5758_v10  ;;  %v6140_v51 = vsel %vm5884_vm14, %v5756_v48, %v6012_v16 }
 0x3bd   : > { %v6141_v3 = vsel %vm5885_vm13, %v5757_v22, %v6013_v55  ;;  %v5619_v52 = vmul.f32 %v13681_v39, %v5294_v21  ;;  %v5296_v29 = vpop.f32.mrb[89].mxu1 }
 0x3be   : > { %v13719_v57 = vpack.c.bf16 %v6141_v3, %v6139_v14  ;;  %v5620_v40 = vmul.f32 %v13685_v56, %v5296_v29  ;;  %v5298_v7 = vpop.f32.mrb[90].mxu1  ;;  %v6142_v31 = vsel %vm5886_vm15, %v5758_v10, %v6014_v36 }
 0x3bf   : > { %v5759_v33 = vadd.f32 %v13689_v12, %v5619_v52  ;;  %v5621_v9 = vmul.f32 %v13681_v39, %v5298_v7  ;;  %v5300_v20 = vpop.f32.mrb[91].mxu1  ;;  %v13724_v23 = vpack.c.bf16 %v6142_v31, %v6140_v51 }
 0x3c0   : > { %v5760_v32 = vadd.f32 %v13692_v35, %v5620_v40  ;;  %v5622_v41 = vmul.f32 %v13685_v56, %v5300_v20 }
 0x3c1   : > { %v5761_v1 = vadd.f32 %v13689_v12, %v5621_v9  ;;  %5563 = vmatmul.mubr.bf16.gmra.mrb[196].mxu1 %v5150_v54  ;;  %7100 = vmatprep.mubr.bf16.mxu0 %v13724_v23  ;;  %v6015_v49 = vmul.f32 0.1, %v5759_v33  ;;  %vm5887_vm1 = vcmp.ge.f32.partialorder %v5759_v33, 0.0 }
 0x3c2   : > { %v5762_v25 = vadd.f32 %v13692_v35, %v5622_v41  ;;  %7101 = vmatmul.mubr.bf16.vlgmr.msra.gmra.mrb[236].mxu0 %v13719_v57  ;;  %5572 = vmatprep.mubr.bf16.mxu1 %v11013_v18  ;;  %v6016_v44 = vmul.f32 0.1, %v5760_v32  ;;  %vm5888_vm2 = vcmp.ge.f32.partialorder %v5760_v32, 0.0 }
 0x3c3   : > { %vm5889_vm3 = vcmp.ge.f32.partialorder %v5761_v1, 0.0  ;;  %v6017_v42 = vmul.f32 0.1, %v5761_v1  ;;  %v6143_v54 = vsel %vm5887_vm1, %v5759_v33, %v6015_v49 }
 0x3c4   : > { %v5304_v6 = vpop.f32.mrb[92].mxu1  ;;  %vm5890_vm0 = vcmp.ge.f32.partialorder %v5762_v25, 0.0  ;;  %v6018_v15 = vmul.f32 0.1, %v5762_v25  ;;  %v6144_v11 = vsel %vm5888_vm2, %v5760_v32, %v6016_v44 }
 0x3c5   : > { %v5623_v60 = vmul.f32 %v13681_v39, %v5304_v6  ;;  %v5306_v4 = vpop.f32.mrb[93].mxu1  ;;  %v6145_v34 = vsel %vm5889_vm3, %v5761_v1, %v6017_v42 }
 0x3c6   : > { %v5624_v30 = vmul.f32 %v13685_v56, %v5306_v4  ;;  %v5308_v46 = vpop.f32.mrb[94].mxu1  ;;  %v6146_v2 = vsel %vm5890_vm0, %v5762_v25, %v6018_v15  ;;  %v13738_v26 = vpack.c.bf16 %v6145_v34, %v6143_v54 }
 0x3c7   : > { %v5763_v47 = vadd.f32 %v13689_v12, %v5623_v60  ;;  %v5625_v53 = vmul.f32 %v13681_v39, %v5308_v46  ;;  %v5310_v27 = vpop.f32.mrb[95].mxu1  ;;  %v13742_v19 = vpack.c.bf16 %v6146_v2, %v6144_v11 }
 0x3c8   : > { %v5764_v43 = vadd.f32 %v13692_v35, %v5624_v30  ;;  %v5626_v63 = vmul.f32 %v13685_v56, %v5310_v27 }
 0x3c9   : > { %v6019_v17 = vmul.f32 0.1, %v5763_v47  ;;  %v5765_v48 = vadd.f32 %v13689_v12, %v5625_v53  ;;  %5573 = vmatmul.mubr.bf16.gmra.mrb[200].mxu1 %v5151_v24  ;;  %7110 = vmatprep.mubr.bf16.mxu0 %v13742_v19  ;;  %vm5891_vm4 = vcmp.ge.f32.partialorder %v5763_v47, 0.0 }
 0x3ca   : > { %v6020_v13 = vmul.f32 0.1, %v5764_v43  ;;  %v5766_v8 = vadd.f32 %v13692_v35, %v5626_v63  ;;  %7111 = vmatmul.mubr.bf16.gmra.mrb[240].mxu0 %v13738_v26  ;;  %5582 = vmatprep.mubr.bf16.mxu1 %v11013_v18  ;;  %vm5892_vm5 = vcmp.ge.f32.partialorder %v5764_v43, 0.0 }
 0x3cb   : > { %vm5893_vm6 = vcmp.ge.f32.partialorder %v5765_v48, 0.0  ;;  %v6021_v22 = vmul.f32 0.1, %v5765_v48  ;;  %v6147_v45 = vsel %vm5891_vm4, %v5763_v47, %v6019_v17 }
 0x3cc   : > { %vm5894_vm7 = vcmp.ge.f32.partialorder %v5766_v8, 0.0  ;;  %v6022_v10 = vmul.f32 0.1, %v5766_v8  ;;  %v5314_v16 = vpop.f32.mrb[96].mxu1  ;;  %v6148_v14 = vsel %vm5892_vm5, %v5764_v43, %v6020_v13 }
 0x3cd   : > { %v5627_v55 = vmul.f32 %v13681_v39, %v5314_v16  ;;  %v5316_v5 = vpop.f32.mrb[97].mxu1  ;;  %v6149_v24 = vsel %vm5893_vm6, %v5765_v48, %v6021_v22 }
 0x3ce   : > { %v5628_v21 = vmul.f32 %v13685_v56, %v5316_v5  ;;  %v5318_v36 = vpop.f32.mrb[98].mxu1  ;;  %v6150_v3 = vsel %vm5894_vm7, %v5766_v8, %v6022_v10  ;;  %v13756_v52 = vpack.c.bf16 %v6149_v24, %v6147_v45 }
 0x3cf   : > { %v5767_v29 = vadd.f32 %v13689_v12, %v5627_v55  ;;  %v5629_v40 = vmul.f32 %v13681_v39, %v5318_v36  ;;  %v5320_v7 = vpop.f32.mrb[99].mxu1  ;;  %v13760_v51 = vpack.c.bf16 %v6150_v3, %v6148_v14 }
 0x3d0   : > { %v5768_v31 = vadd.f32 %v13692_v35, %v5628_v21  ;;  %v5630_v33 = vmul.f32 %v13685_v56, %v5320_v7 }
 0x3d1   : > { %v6023_v9 = vmul.f32 0.1, %v5767_v29  ;;  %v5769_v20 = vadd.f32 %v13689_v12, %v5629_v40  ;;  %5583 = vmatmul.mubr.bf16.gmra.mrb[204].mxu1 %v5152_v59  ;;  %7120 = vmatprep.mubr.bf16.mxu0 %v13760_v51  ;;  %vm5895_vm8 = vcmp.ge.f32.partialorder %v5767_v29, 0.0 }
 0x3d2   : > { %v6024_v32 = vmul.f32 0.1, %v5768_v31  ;;  %v5770_v41 = vadd.f32 %v13692_v35, %v5630_v33  ;;  %7121 = vmatmul.mubr.bf16.gmra.mrb[244].mxu0 %v13756_v52  ;;  %5592 = vmatprep.mubr.bf16.mxu1 %v11013_v18  ;;  %vm5896_vm9 = vcmp.ge.f32.partialorder %v5768_v31, 0.0 }
 0x3d3   : > { %vm5897_vm10 = vcmp.ge.f32.partialorder %v5769_v20, 0.0  ;;  %v6025_v1 = vmul.f32 0.1, %v5769_v20  ;;  %v6151_v28 = vsel %vm5895_vm8, %v5767_v29, %v6023_v9 }
 0x3d4   : > { %vm5898_vm12 = vcmp.ge.f32.partialorder %v5770_v41, 0.0  ;;  %v6026_v49 = vmul.f32 0.1, %v5770_v41  ;;  %v5324_v25 = vpop.f32.mrb[100].mxu1  ;;  %v6152_v15 = vsel %vm5896_vm9, %v5768_v31, %v6024_v32 }
 0x3d5   : > { %v5631_v44 = vmul.f32 %v13681_v39, %v5324_v25  ;;  %v5326_v58 = vpop.f32.mrb[101].mxu1  ;;  %v6153_v59 = vsel %vm5897_vm10, %v5769_v20, %v6025_v1 }
 0x3d6   : > { %v5632_v42 = vmul.f32 %v13685_v56, %v5326_v58  ;;  %v5328_v6 = vpop.f32.mrb[102].mxu1  ;;  %v6154_v60 = vsel %vm5898_vm12, %v5770_v41, %v6026_v49  ;;  %v13774_v4 = vpack.c.bf16 %v6153_v59, %v6151_v28 }
 0x3d7   : > { %v5771_v18 = vadd.f32 %v13689_v12, %v5631_v44  ;;  %v5633_v54 = vmul.f32 %v13681_v39, %v5328_v6  ;;  %v5330_v34 = vpop.f32.mrb[103].mxu1  ;;  %v13778_v30 = vpack.c.bf16 %v6154_v60, %v6152_v15 }
 0x3d8   : > { %v5772_v46 = vadd.f32 %v13692_v35, %v5632_v42  ;;  %v5634_v11 = vmul.f32 %v13685_v56, %v5330_v34 }
 0x3d9   : > { %v6027_v2 = vmul.f32 0.1, %v5771_v18  ;;  %v5773_v47 = vadd.f32 %v13689_v12, %v5633_v54  ;;  %5593 = vmatmul.mubr.bf16.gmra.mrb[208].mxu1 %v5153_v62  ;;  %7130 = vmatprep.mubr.bf16.mxu0 %v13778_v30  ;;  %vm5899_vm11 = vcmp.ge.f32.partialorder %v5771_v18, 0.0 }
 0x3da   : > { %v6028_v53 = vmul.f32 0.1, %v5772_v46  ;;  %v5774_v27 = vadd.f32 %v13692_v35, %v5634_v11  ;;  %6747 = vmatprep.mubr.bf16.mxu1 %v13724_v23  ;;  %7131 = vmatmul.mubr.bf16.gmra.mrb[248].mxu0 %v13774_v4  ;;  %vm5900_vm13 = vcmp.ge.f32.partialorder %v5772_v46, 0.0 }
 0x3db   : > { %vm5901_vm14 = vcmp.ge.f32.partialorder %v5773_v47, 0.0  ;;  %v6029_v43 = vmul.f32 0.1, %v5773_v47  ;;  %v6155_v37 = vsel %vm5899_vm11, %v5771_v18, %v6027_v2 }
 0x3dc   : > { %vm5902_vm15 = vcmp.ge.f32.partialorder %v5774_v27, 0.0  ;;  %v6030_v63 = vmul.f32 0.1, %v5774_v27  ;;  %v5334_v17 = vpop.f32.mrb[104].mxu1  ;;  %v6156_v22 = vsel %vm5900_vm13, %v5772_v46, %v6028_v53 }
 0x3dd   : > { %v5635_v48 = vmul.f32 %v13681_v39, %v5334_v17  ;;  %v5336_v61 = vpop.f32.mrb[105].mxu1  ;;  %v6157_v62 = vsel %vm5901_vm14, %v5773_v47, %v6029_v43 }
 0x3de   : > { %v5636_v13 = vmul.f32 %v13685_v56, %v5336_v61  ;;  %v5338_v8 = vpop.f32.mrb[106].mxu1  ;;  %v6158_v10 = vsel %vm5902_vm15, %v5774_v27, %v6030_v63  ;;  %v13792_v16 = vpack.c.bf16 %v6157_v62, %v6155_v37 }
 0x3df   : > { %v5775_v23 = vadd.f32 %v13689_v12, %v5635_v48  ;;  %v5637_v55 = vmul.f32 %v13681_v39, %v5338_v8  ;;  %v5340_v5 = vpop.f32.mrb[107].mxu1  ;;  %v13796_v45 = vpack.c.bf16 %v6158_v10, %v6156_v22 }
 0x3e0   : > { %v5776_v24 = vadd.f32 %v13692_v35, %v5636_v13  ;;  %v5638_v21 = vmul.f32 %v13685_v56, %v5340_v5 }
 0x3e1   : > { %v6031_v36 = vmul.f32 0.1, %v5775_v23  ;;  %v5777_v14 = vadd.f32 %v13689_v12, %v5637_v55  ;;  %6748 = vmatmul.mubr.bf16.vlgmr.msra.gmra.mrb[212].mxu1 %v13719_v57  ;;  %7140 = vmatprep.mubr.bf16.mxu0 %v13796_v45  ;;  %vm5903_vm1 = vcmp.ge.f32.partialorder %v5775_v23, 0.0 }
 0x3e2   : > { %v6032_v3 = vmul.f32 0.1, %v5776_v24  ;;  %v5778_v29 = vadd.f32 %v13692_v35, %v5638_v21  ;;  %6757 = vmatprep.mubr.bf16.mxu1 %v13742_v19  ;;  %7141 = vmatmul.mubr.bf16.gmra.mrb[252].mxu0 %v13792_v16  ;;  %vm5904_vm2 = vcmp.ge.f32.partialorder %v5776_v24, 0.0 }
 0x3e3   : > { %vm5905_vm3 = vcmp.ge.f32.partialorder %v5777_v14, 0.0  ;;  %v6033_v40 = vmul.f32 0.1, %v5777_v14  ;;  %v6159_v33 = vsel %vm5903_vm1, %v5775_v23, %v6031_v36 }
 0x3e4   : > { %vm5906_vm0 = vcmp.ge.f32.partialorder %v5778_v29, 0.0  ;;  %v6034_v7 = vmul.f32 0.1, %v5778_v29  ;;  %v5344_v31 = vpop.f32.mrb[108].mxu1  ;;  %v6160_v49 = vsel %vm5904_vm2, %v5776_v24, %v6032_v3 }
 0x3e5   : > { %v6161_v9 = vsel %vm5905_vm3, %v5777_v14, %v6033_v40  ;;  %v5639_v57 = vmul.f32 %v13681_v39, %v5344_v31  ;;  %v5346_v20 = vpop.f32.mrb[109].mxu1 }
 0x3e6   : > { %v13807_v32 = vpack.c.bf16 %v6161_v9, %v6159_v33  ;;  %v5640_v41 = vmul.f32 %v13685_v56, %v5346_v20  ;;  %v5348_v1 = vpop.f32.mrb[110].mxu1  ;;  %v6162_v19 = vsel %vm5906_vm0, %v5778_v29, %v6034_v7 }
 0x3e7   : > { %v5779_v25 = vadd.f32 %v13689_v12, %v5639_v57  ;;  %v5641_v44 = vmul.f32 %v13681_v39, %v5348_v1  ;;  %v5350_v58 = vpop.f32.mrb[111].mxu1  ;;  %v13812_v28 = vpack.c.bf16 %v6162_v19, %v6160_v49 }
 0x3e8   : > { %v5780_v59 = vadd.f32 %v13692_v35, %v5640_v41  ;;  %v5642_v42 = vmul.f32 %v13685_v56, %v5350_v58 }
 0x3e9   : > { %v6035_v6 = vmul.f32 0.1, %v5779_v25  ;;  %v5781_v15 = vadd.f32 %v13689_v12, %v5641_v44  ;;  %6758 = vmatmul.mubr.bf16.gmra.mrb[216].mxu1 %v13738_v26  ;;  %7150 = vmatprep.mubr.bf16.mxu0 %v13812_v28  ;;  %vm5907_vm4 = vcmp.ge.f32.partialorder %v5779_v25, 0.0 }
 0x3ea   : > { %v6036_v60 = vmul.f32 0.1, %v5780_v59  ;;  %v5782_v18 = vadd.f32 %v13692_v35, %v5642_v42  ;;  %6767 = vmatprep.mubr.bf16.mxu1 %v13760_v51  ;;  %7151 = vmatmul.mubr.bf16.gmra.mrb[0].mxu0 %v13807_v32  ;;  %vm5908_vm5 = vcmp.ge.f32.partialorder %v5780_v59, 0.0 }
 0x3eb   : > { %vm5909_vm6 = vcmp.ge.f32.partialorder %v5781_v15, 0.0  ;;  %v6037_v54 = vmul.f32 0.1, %v5781_v15  ;;  %v6163_v11 = vsel %vm5907_vm4, %v5779_v25, %v6035_v6 }
 0x3ec   : > { %vm5910_vm7 = vcmp.ge.f32.partialorder %v5782_v18, 0.0  ;;  %v6038_v34 = vmul.f32 0.1, %v5782_v18  ;;  %v5354_v46 = vpop.f32.mrb[112].mxu1  ;;  %v6164_v63 = vsel %vm5908_vm5, %v5780_v59, %v6036_v60 }
 0x3ed   : > { %v6165_v2 = vsel %vm5909_vm6, %v5781_v15, %v6037_v54  ;;  %v5643_v26 = vmul.f32 %v13681_v39, %v5354_v46  ;;  %v5356_v47 = vpop.f32.mrb[113].mxu1 }
 0x3ee   : > { %v13823_v53 = vpack.c.bf16 %v6165_v2, %v6163_v11  ;;  %v5644_v27 = vmul.f32 %v13685_v56, %v5356_v47  ;;  %v5358_v43 = vpop.f32.mrb[114].mxu1  ;;  %v6166_v51 = vsel %vm5910_vm7, %v5782_v18, %v6038_v34 }
 0x3ef   : > { %v5783_v17 = vadd.f32 %v13689_v12, %v5643_v26  ;;  %v5645_v48 = vmul.f32 %v13681_v39, %v5358_v43  ;;  %v5360_v61 = vpop.f32.mrb[115].mxu1  ;;  %v13828_v37 = vpack.c.bf16 %v6166_v51, %v6164_v63 }
 0x3f0   : > { %v5784_v62 = vadd.f32 %v13692_v35, %v5644_v27  ;;  %v5646_v13 = vmul.f32 %v13685_v56, %v5360_v61 }
 0x3f1   : > { %v6039_v8 = vmul.f32 0.1, %v5783_v17  ;;  %v5785_v22 = vadd.f32 %v13689_v12, %v5645_v48  ;;  %6768 = vmatmul.mubr.bf16.gmra.mrb[220].mxu1 %v13756_v52  ;;  %7160 = vmatprep.mubr.bf16.mxu0 %v13828_v37  ;;  %vm5911_vm8 = vcmp.ge.f32.partialorder %v5783_v17, 0.0 }
 0x3f2   : > { %v6040_v10 = vmul.f32 0.1, %v5784_v62  ;;  %v5786_v23 = vadd.f32 %v13692_v35, %v5646_v13  ;;  %6777 = vmatprep.mubr.bf16.mxu1 %v13778_v30  ;;  %7161 = vmatmul.mubr.bf16.gmra.mrb[4].mxu0 %v13823_v53  ;;  %vm5912_vm9 = vcmp.ge.f32.partialorder %v5784_v62, 0.0 }
 0x3f3   : > { %vm5913_vm10 = vcmp.ge.f32.partialorder %v5785_v22, 0.0  ;;  %v6041_v55 = vmul.f32 0.1, %v5785_v22  ;;  %v6167_v21 = vsel %vm5911_vm8, %v5783_v17, %v6039_v8 }
 0x3f4   : > { %vm5914_vm12 = vcmp.ge.f32.partialorder %v5786_v23, 0.0  ;;  %v6042_v5 = vmul.f32 0.1, %v5786_v23  ;;  %v5364_v24 = vpop.f32.mrb[116].mxu1  ;;  %v6168_v7 = vsel %vm5912_vm9, %v5784_v62, %v6040_v10 }
 0x3f5   : > { %v6169_v36 = vsel %vm5913_vm10, %v5785_v22, %v6041_v55  ;;  %v5647_v52 = vmul.f32 %v13681_v39, %v5364_v24  ;;  %v5366_v14 = vpop.f32.mrb[117].mxu1 }
 0x3f6   : > { %v13839_v3 = vpack.c.bf16 %v6169_v36, %v6167_v21  ;;  %v5648_v29 = vmul.f32 %v13685_v56, %v5366_v14  ;;  %v5368_v40 = vpop.f32.mrb[118].mxu1  ;;  %v6170_v30 = vsel %vm5914_vm12, %v5786_v23, %v6042_v5 }
 0x3f7   : > { %v5787_v31 = vadd.f32 %v13689_v12, %v5647_v52  ;;  %v5649_v33 = vmul.f32 %v13681_v39, %v5368_v40  ;;  %v5370_v9 = vpop.f32.mrb[119].mxu1  ;;  %v13844_v57 = vpack.c.bf16 %v6170_v30, %v6168_v7 }
 0x3f8   : > { %v5788_v20 = vadd.f32 %v13692_v35, %v5648_v29  ;;  %v5650_v41 = vmul.f32 %v13685_v56, %v5370_v9 }
 0x3f9   : > { %v6043_v1 = vmul.f32 0.1, %v5787_v31  ;;  %v5789_v49 = vadd.f32 %v13689_v12, %v5649_v33  ;;  %6778 = vmatmul.mubr.bf16.gmra.mrb[224].mxu1 %v13774_v4  ;;  %7170 = vmatprep.mubr.bf16.mxu0 %v13844_v57  ;;  %vm5915_vm11 = vcmp.ge.f32.partialorder %v5787_v31, 0.0 }
 0x3fa   : > { %v6044_v19 = vmul.f32 0.1, %v5788_v20  ;;  %v5790_v25 = vadd.f32 %v13692_v35, %v5650_v41  ;;  %6787 = vmatprep.mubr.bf16.mxu1 %v13796_v45  ;;  %7171 = vmatmul.mubr.bf16.gmra.mrb[8].mxu0 %v13839_v3  ;;  %vm5916_vm13 = vcmp.ge.f32.partialorder %v5788_v20, 0.0 }
 0x3fb   : > { %vm5917_vm14 = vcmp.ge.f32.partialorder %v5789_v49, 0.0  ;;  %v6045_v44 = vmul.f32 0.1, %v5789_v49  ;;  %v6171_v42 = vsel %vm5915_vm11, %v5787_v31, %v6043_v1 }
 0x3fc   : > { %vm5918_vm15 = vcmp.ge.f32.partialorder %v5790_v25, 0.0  ;;  %v6046_v58 = vmul.f32 0.1, %v5790_v25  ;;  %v5374_v59 = vpop.f32.mrb[120].mxu1  ;;  %v6172_v34 = vsel %vm5916_vm13, %v5788_v20, %v6044_v19 }
 0x3fd   : > { %v6173_v6 = vsel %vm5917_vm14, %v5789_v49, %v6045_v44  ;;  %v5651_v4 = vmul.f32 %v13681_v39, %v5374_v59  ;;  %v5376_v15 = vpop.f32.mrb[121].mxu1 }
 0x3fe   : > { %v13855_v60 = vpack.c.bf16 %v6173_v6, %v6171_v42  ;;  %v5652_v18 = vmul.f32 %v13685_v56, %v5376_v15  ;;  %v5378_v54 = vpop.f32.mrb[122].mxu1  ;;  %v6174_v45 = vsel %vm5918_vm15, %v5790_v25, %v6046_v58 }
 0x3ff   : > { %v5791_v46 = vadd.f32 %v13689_v12, %v5651_v4  ;;  %v5653_v11 = vmul.f32 %v13681_v39, %v5378_v54  ;;  %v5380_v2 = vpop.f32.mrb[123].mxu1  ;;  %v13860_v26 = vpack.c.bf16 %v6174_v45, %v6172_v34 }
 0x400   : > { %v5792_v47 = vadd.f32 %v13692_v35, %v5652_v18  ;;  %v5654_v27 = vmul.f32 %v13685_v56, %v5380_v2 }
 0x401   : > { %v6047_v43 = vmul.f32 0.1, %v5791_v46  ;;  %v5793_v63 = vadd.f32 %v13689_v12, %v5653_v11  ;;  %6788 = vmatmul.mubr.bf16.gmra.mrb[228].mxu1 %v13792_v16  ;;  %7180 = vmatprep.mubr.bf16.mxu0 %v13860_v26  ;;  %vm5919_vm1 = vcmp.ge.f32.partialorder %v5791_v46, 0.0 }
 0x402   : > { %v6048_v51 = vmul.f32 0.1, %v5792_v47  ;;  %v5794_v17 = vadd.f32 %v13692_v35, %v5654_v27  ;;  %6797 = vmatprep.mubr.bf16.mxu1 %v13812_v28  ;;  %7181 = vmatmul.mubr.bf16.gmra.mrb[12].mxu0 %v13855_v60  ;;  %vm5920_vm2 = vcmp.ge.f32.partialorder %v5792_v47, 0.0 }
 0x403   : > { %vm5921_vm3 = vcmp.ge.f32.partialorder %v5793_v63, 0.0  ;;  %v6049_v48 = vmul.f32 0.1, %v5793_v63  ;;  %v6175_v13 = vsel %vm5919_vm1, %v5791_v46, %v6047_v43 }
 0x404   : > { %vm5922_vm0 = vcmp.ge.f32.partialorder %v5794_v17, 0.0  ;;  %v6050_v61 = vmul.f32 0.1, %v5794_v17  ;;  %v5384_v62 = vpop.f32.mrb[124].mxu1  ;;  %v6176_v5 = vsel %vm5920_vm2, %v5792_v47, %v6048_v51 }
 0x405   : > { %v6177_v8 = vsel %vm5921_vm3, %v5793_v63, %v6049_v48  ;;  %v5655_v16 = vmul.f32 %v13681_v39, %v5384_v62  ;;  %v5386_v22 = vpop.f32.mrb[125].mxu1 }
 0x406   : > { %v13871_v10 = vpack.c.bf16 %v6177_v8, %v6175_v13  ;;  %v5656_v23 = vmul.f32 %v13685_v56, %v5386_v22  ;;  %v5388_v55 = vpop.f32.mrb[126].mxu1  ;;  %v6178_v28 = vsel %vm5922_vm0, %v5794_v17, %v6050_v61 }
 0x407   : > { %v5795_v24 = vadd.f32 %v13689_v12, %v5655_v16  ;;  %v5657_v21 = vmul.f32 %v13681_v39, %v5388_v55  ;;  %v5390_v36 = vpop.f32.mrb[127].mxu1  ;;  %v13876_v52 = vpack.c.bf16 %v6178_v28, %v6176_v5 }
 0x408   : > { %v5796_v14 = vadd.f32 %v13692_v35, %v5656_v23  ;;  %v5658_v29 = vmul.f32 %v13685_v56, %v5390_v36 }
 0x409   : > { %v6051_v40 = vmul.f32 0.1, %v5795_v24  ;;  %v5797_v7 = vadd.f32 %v13689_v12, %v5657_v21  ;;  %6798 = vmatmul.mubr.bf16.gmra.mrb[232].mxu1 %v13807_v32  ;;  %7190 = vmatprep.mubr.bf16.mxu0 %v13876_v52  ;;  %vm5923_vm4 = vcmp.ge.f32.partialorder %v5795_v24, 0.0 }
 0x40a   : > { %v6052_v30 = vmul.f32 0.1, %v5796_v14  ;;  %v5798_v31 = vadd.f32 %v13692_v35, %v5658_v29  ;;  %6807 = vmatprep.mubr.bf16.mxu1 %v13828_v37  ;;  %7191 = vmatmul.mubr.bf16.gmra.mrb[16].mxu0 %v13871_v10  ;;  %vm5924_vm5 = vcmp.ge.f32.partialorder %v5796_v14, 0.0 }
 0x40b   : > { %vm5925_vm6 = vcmp.ge.f32.partialorder %v5797_v7, 0.0  ;;  %v6053_v33 = vmul.f32 0.1, %v5797_v7  ;;  %v6179_v41 = vsel %vm5923_vm4, %v5795_v24, %v6051_v40 }
 0x40c   : > { %vm5926_vm7 = vcmp.ge.f32.partialorder %v5798_v31, 0.0  ;;  %v6054_v9 = vmul.f32 0.1, %v5798_v31  ;;  %v5394_v20 = vpop.f32.mrb[128].mxu1  ;;  %v6180_v58 = vsel %vm5924_vm5, %v5796_v14, %v6052_v30 }
 0x40d   : > { %v6181_v1 = vsel %vm5925_vm6, %v5797_v7, %v6053_v33  ;;  %v5659_v32 = vmul.f32 %v13681_v39, %v5394_v20  ;;  %v5396_v49 = vpop.f32.mrb[129].mxu1 }
 0x40e   : > { %v13887_v19 = vpack.c.bf16 %v6181_v1, %v6179_v41  ;;  %v5660_v25 = vmul.f32 %v13685_v56, %v5396_v49  ;;  %v5398_v44 = vpop.f32.mrb[130].mxu1  ;;  %v6182_v37 = vsel %vm5926_vm7, %v5798_v31, %v6054_v9 }
 0x40f   : > { %v5799_v59 = vadd.f32 %v13689_v12, %v5659_v32  ;;  %v5661_v42 = vmul.f32 %v13681_v39, %v5398_v44  ;;  %v5400_v6 = vpop.f32.mrb[131].mxu1  ;;  %v13892_v4 = vpack.c.bf16 %v6182_v37, %v6180_v58 }
 0x410   : > { %v5800_v15 = vadd.f32 %v13692_v35, %v5660_v25  ;;  %v5662_v18 = vmul.f32 %v13685_v56, %v5400_v6 }
 0x411   : > { %v6055_v54 = vmul.f32 0.1, %v5799_v59  ;;  %v5801_v34 = vadd.f32 %v13689_v12, %v5661_v42  ;;  %6808 = vmatmul.mubr.bf16.gmra.mrb[236].mxu1 %v13823_v53  ;;  %7200 = vmatprep.mubr.bf16.mxu0 %v13892_v4  ;;  %vm5927_vm8 = vcmp.ge.f32.partialorder %v5799_v59, 0.0 }
 0x412   : > { %v6056_v45 = vmul.f32 0.1, %v5800_v15  ;;  %v5802_v46 = vadd.f32 %v13692_v35, %v5662_v18  ;;  %6817 = vmatprep.mubr.bf16.mxu1 %v13844_v57  ;;  %7201 = vmatmul.mubr.bf16.gmra.mrb[20].mxu0 %v13887_v19  ;;  %vm5928_vm9 = vcmp.ge.f32.partialorder %v5800_v15, 0.0 }
 0x413   : > { %vm5929_vm10 = vcmp.ge.f32.partialorder %v5801_v34, 0.0  ;;  %v6057_v11 = vmul.f32 0.1, %v5801_v34  ;;  %v6183_v27 = vsel %vm5927_vm8, %v5799_v59, %v6055_v54 }
 0x414   : > { %vm5930_vm12 = vcmp.ge.f32.partialorder %v5802_v46, 0.0  ;;  %v6058_v2 = vmul.f32 0.1, %v5802_v46  ;;  %v5404_v47 = vpop.f32.mrb[132].mxu1  ;;  %v6184_v61 = vsel %vm5928_vm9, %v5800_v15, %v6056_v45 }
 0x415   : > { %v6185_v43 = vsel %vm5929_vm10, %v5801_v34, %v6057_v11  ;;  %v5663_v53 = vmul.f32 %v13681_v39, %v5404_v47  ;;  %v5406_v63 = vpop.f32.mrb[133].mxu1 }
 0x416   : > { %v13903_v51 = vpack.c.bf16 %v6185_v43, %v6183_v27  ;;  %v5664_v17 = vmul.f32 %v13685_v56, %v5406_v63  ;;  %v5408_v48 = vpop.f32.mrb[134].mxu1  ;;  %v6186_v57 = vsel %vm5930_vm12, %v5802_v46, %v6058_v2 }
 0x417   : > { %v5803_v62 = vadd.f32 %v13689_v12, %v5663_v53  ;;  %v5665_v13 = vmul.f32 %v13681_v39, %v5408_v48  ;;  %v5410_v8 = vpop.f32.mrb[135].mxu1  ;;  %v13908_v16 = vpack.c.bf16 %v6186_v57, %v6184_v61 }
 0x418   : > { %v5804_v22 = vadd.f32 %v13692_v35, %v5664_v17  ;;  %v5666_v23 = vmul.f32 %v13685_v56, %v5410_v8 }
 0x419   : > { %v6059_v55 = vmul.f32 0.1, %v5803_v62  ;;  %v5805_v5 = vadd.f32 %v13689_v12, %v5665_v13  ;;  %6818 = vmatmul.mubr.bf16.gmra.mrb[240].mxu1 %v13839_v3  ;;  %7210 = vmatprep.mubr.bf16.mxu0 %v13908_v16  ;;  %vm5931_vm11 = vcmp.ge.f32.partialorder %v5803_v62, 0.0 }
 0x41a   : > { %v6060_v28 = vmul.f32 0.1, %v5804_v22  ;;  %v5806_v24 = vadd.f32 %v13692_v35, %v5666_v23  ;;  %6827 = vmatprep.mubr.bf16.mxu1 %v13860_v26  ;;  %7211 = vmatmul.mubr.bf16.gmra.mrb[24].mxu0 %v13903_v51  ;;  %vm5932_vm13 = vcmp.ge.f32.partialorder %v5804_v22, 0.0 }
 0x41b   : > { %vm5933_vm14 = vcmp.ge.f32.partialorder %v5805_v5, 0.0  ;;  %v6061_v21 = vmul.f32 0.1, %v5805_v5  ;;  %v6187_v29 = vsel %vm5931_vm11, %v5803_v62, %v6059_v55 }
 0x41c   : > { %vm5934_vm15 = vcmp.ge.f32.partialorder %v5806_v24, 0.0  ;;  %v6062_v36 = vmul.f32 0.1, %v5806_v24  ;;  %v5414_v14 = vpop.f32.mrb[136].mxu1  ;;  %v6188_v9 = vsel %vm5932_vm13, %v5804_v22, %v6060_v28 }
 0x41d   : > { %v6189_v40 = vsel %vm5933_vm14, %v5805_v5, %v6061_v21  ;;  %v5667_v3 = vmul.f32 %v13681_v39, %v5414_v14  ;;  %v5416_v7 = vpop.f32.mrb[137].mxu1 }
 0x41e   : > { %v13919_v30 = vpack.c.bf16 %v6189_v40, %v6187_v29  ;;  %v5668_v31 = vmul.f32 %v13685_v56, %v5416_v7  ;;  %v5418_v33 = vpop.f32.mrb[138].mxu1  ;;  %v6190_v26 = vsel %vm5934_vm15, %v5806_v24, %v6062_v36 }
 0x41f   : > { %v5807_v20 = vadd.f32 %v13689_v12, %v5667_v3  ;;  %v5669_v41 = vmul.f32 %v13681_v39, %v5418_v33  ;;  %v5420_v1 = vpop.f32.mrb[139].mxu1  ;;  %v13924_v32 = vpack.c.bf16 %v6190_v26, %v6188_v9 }
 0x420   : > { %v5808_v49 = vadd.f32 %v13692_v35, %v5668_v31  ;;  %v5670_v25 = vmul.f32 %v13685_v56, %v5420_v1 }
 0x421   : > { %v6063_v44 = vmul.f32 0.1, %v5807_v20  ;;  %v5809_v58 = vadd.f32 %v13689_v12, %v5669_v41  ;;  %6828 = vmatmul.mubr.bf16.gmra.mrb[244].mxu1 %v13855_v60  ;;  %7220 = vmatprep.mubr.bf16.mxu0 %v13924_v32  ;;  %vm5935_vm1 = vcmp.ge.f32.partialorder %v5807_v20, 0.0 }
 0x422   : > { %v6064_v37 = vmul.f32 0.1, %v5808_v49  ;;  %v5810_v59 = vadd.f32 %v13692_v35, %v5670_v25  ;;  %6837 = vmatprep.mubr.bf16.mxu1 %v13876_v52  ;;  %7221 = vmatmul.mubr.bf16.gmra.mrb[28].mxu0 %v13919_v30  ;;  %vm5936_vm2 = vcmp.ge.f32.partialorder %v5808_v49, 0.0 }
 0x423   : > { %vm5937_vm3 = vcmp.ge.f32.partialorder %v5809_v58, 0.0  ;;  %v6065_v42 = vmul.f32 0.1, %v5809_v58  ;;  %v6191_v18 = vsel %vm5935_vm1, %v5807_v20, %v6063_v44 }
 0x424   : > { %vm5938_vm0 = vcmp.ge.f32.partialorder %v5810_v59, 0.0  ;;  %v6066_v6 = vmul.f32 0.1, %v5810_v59  ;;  %v5424_v15 = vpop.f32.mrb[140].mxu1  ;;  %v6192_v2 = vsel %vm5936_vm2, %v5808_v49, %v6064_v37 }
 0x425   : > { %v6193_v54 = vsel %vm5937_vm3, %v5809_v58, %v6065_v42  ;;  %v5671_v60 = vmul.f32 %v13681_v39, %v5424_v15  ;;  %v5426_v34 = vpop.f32.mrb[141].mxu1 }
 0x426   : > { %v13935_v45 = vpack.c.bf16 %v6193_v54, %v6191_v18  ;;  %v5672_v46 = vmul.f32 %v13685_v56, %v5426_v34  ;;  %v5428_v11 = vpop.f32.mrb[142].mxu1  ;;  %v6194_v52 = vsel %vm5938_vm0, %v5810_v59, %v6066_v6 }
 0x427   : > { %v5811_v47 = vadd.f32 %v13689_v12, %v5671_v60  ;;  %v5673_v27 = vmul.f32 %v13681_v39, %v5428_v11  ;;  %v5430_v43 = vpop.f32.mrb[143].mxu1  ;;  %v13940_v53 = vpack.c.bf16 %v6194_v52, %v6192_v2 }
 0x428   : > { %v5812_v63 = vadd.f32 %v13692_v35, %v5672_v46  ;;  %v5674_v17 = vmul.f32 %v13685_v56, %v5430_v43 }
 0x429   : > { %v6067_v48 = vmul.f32 0.1, %v5811_v47  ;;  %v5813_v61 = vadd.f32 %v13689_v12, %v5673_v27  ;;  %6838 = vmatmul.mubr.bf16.gmra.mrb[248].mxu1 %v13871_v10  ;;  %7230 = vmatprep.mubr.bf16.mxu0 %v13940_v53  ;;  %vm5939_vm4 = vcmp.ge.f32.partialorder %v5811_v47, 0.0 }
 0x42a   : > { %v6068_v57 = vmul.f32 0.1, %v5812_v63  ;;  %v5814_v62 = vadd.f32 %v13692_v35, %v5674_v17  ;;  %6847 = vmatprep.mubr.bf16.mxu1 %v13892_v4  ;;  %7231 = vmatmul.mubr.bf16.gmra.mrb[32].mxu0 %v13935_v45  ;;  %vm5940_vm5 = vcmp.ge.f32.partialorder %v5812_v63, 0.0 }
 0x42b   : > { %vm5941_vm6 = vcmp.ge.f32.partialorder %v5813_v61, 0.0  ;;  %v6069_v13 = vmul.f32 0.1, %v5813_v61  ;;  %v6195_v23 = vsel %vm5939_vm4, %v5811_v47, %v6067_v48 }
 0x42c   : > { %vm5942_vm7 = vcmp.ge.f32.partialorder %v5814_v62, 0.0  ;;  %v6070_v8 = vmul.f32 0.1, %v5814_v62  ;;  %v5434_v22 = vpop.f32.mrb[144].mxu1  ;;  %v6196_v36 = vsel %vm5940_vm5, %v5812_v63, %v6068_v57 }
 0x42d   : > { %v6197_v55 = vsel %vm5941_vm6, %v5813_v61, %v6069_v13  ;;  %v5675_v10 = vmul.f32 %v13681_v39, %v5434_v22  ;;  %v5436_v5 = vpop.f32.mrb[145].mxu1 }
 0x42e   : > { %v13951_v28 = vpack.c.bf16 %v6197_v55, %v6195_v23  ;;  %v5676_v24 = vmul.f32 %v13685_v56, %v5436_v5  ;;  %v5438_v21 = vpop.f32.mrb[146].mxu1  ;;  %v6198_v4 = vsel %vm5942_vm7, %v5814_v62, %v6070_v8 }
 0x42f   : > { %v5815_v14 = vadd.f32 %v13689_v12, %v5675_v10  ;;  %v5677_v29 = vmul.f32 %v13681_v39, %v5438_v21  ;;  %v5440_v40 = vpop.f32.mrb[147].mxu1  ;;  %v13956_v3 = vpack.c.bf16 %v6198_v4, %v6196_v36 }
 0x430   : > { %v5816_v7 = vadd.f32 %v13692_v35, %v5676_v24  ;;  %v5678_v31 = vmul.f32 %v13685_v56, %v5440_v40 }
 0x431   : > { %v6071_v33 = vmul.f32 0.1, %v5815_v14  ;;  %v5817_v9 = vadd.f32 %v13689_v12, %v5677_v29  ;;  %6848 = vmatmul.mubr.bf16.gmra.mrb[252].mxu1 %v13887_v19  ;;  %7240 = vmatprep.mubr.bf16.mxu0 %v13956_v3  ;;  %vm5943_vm8 = vcmp.ge.f32.partialorder %v5815_v14, 0.0 }
 0x432   : > { %v6072_v26 = vmul.f32 0.1, %v5816_v7  ;;  %v5818_v20 = vadd.f32 %v13692_v35, %v5678_v31  ;;  %6857 = vmatprep.mubr.bf16.mxu1 %v13908_v16  ;;  %7241 = vmatmul.mubr.bf16.gmra.mrb[36].mxu0 %v13951_v28  ;;  %vm5944_vm9 = vcmp.ge.f32.partialorder %v5816_v7, 0.0 }
 0x433   : > { %vm5945_vm10 = vcmp.ge.f32.partialorder %v5817_v9, 0.0  ;;  %v6073_v41 = vmul.f32 0.1, %v5817_v9  ;;  %v6199_v25 = vsel %vm5943_vm8, %v5815_v14, %v6071_v33 }
 0x434   : > { %vm5946_vm12 = vcmp.ge.f32.partialorder %v5818_v20, 0.0  ;;  %v6074_v1 = vmul.f32 0.1, %v5818_v20  ;;  %v5444_v49 = vpop.f32.mrb[148].mxu1  ;;  %v6200_v6 = vsel %vm5944_vm9, %v5816_v7, %v6072_v26 }
 0x435   : > { %v6201_v44 = vsel %vm5945_vm10, %v5817_v9, %v6073_v41  ;;  %v5679_v19 = vmul.f32 %v13681_v39, %v5444_v49  ;;  %v5446_v58 = vpop.f32.mrb[149].mxu1 }
 0x436   : > { %v13967_v37 = vpack.c.bf16 %v6201_v44, %v6199_v25  ;;  %v5680_v59 = vmul.f32 %v13685_v56, %v5446_v58  ;;  %v5448_v42 = vpop.f32.mrb[150].mxu1  ;;  %v6202_v16 = vsel %vm5946_vm12, %v5818_v20, %v6074_v1 }
 0x437   : > { %v5819_v15 = vadd.f32 %v13689_v12, %v5679_v19  ;;  %v5681_v18 = vmul.f32 %v13681_v39, %v5448_v42  ;;  %v5450_v54 = vpop.f32.mrb[151].mxu1  ;;  %v13972_v60 = vpack.c.bf16 %v6202_v16, %v6200_v6 }
 0x438   : > { %v5820_v34 = vadd.f32 %v13692_v35, %v5680_v59  ;;  %v5682_v46 = vmul.f32 %v13685_v56, %v5450_v54 }
 0x439   : > { %v6075_v11 = vmul.f32 0.1, %v5819_v15  ;;  %v5821_v2 = vadd.f32 %v13689_v12, %v5681_v18  ;;  %6858 = vmatmul.mubr.bf16.gmra.mrb[0].mxu1 %v13903_v51  ;;  %7250 = vmatprep.mubr.bf16.mxu0 %v13972_v60  ;;  %vm5947_vm11 = vcmp.ge.f32.partialorder %v5819_v15, 0.0 }
 0x43a   : > { %v6076_v52 = vmul.f32 0.1, %v5820_v34  ;;  %v5822_v47 = vadd.f32 %v13692_v35, %v5682_v46  ;;  %6867 = vmatprep.mubr.bf16.mxu1 %v13924_v32  ;;  %7251 = vmatmul.mubr.bf16.gmra.mrb[40].mxu0 %v13967_v37  ;;  %vm5948_vm13 = vcmp.ge.f32.partialorder %v5820_v34, 0.0 }
 0x43b   : > { %vm5949_vm14 = vcmp.ge.f32.partialorder %v5821_v2, 0.0  ;;  %v6077_v27 = vmul.f32 0.1, %v5821_v2  ;;  %v6203_v17 = vsel %vm5947_vm11, %v5819_v15, %v6075_v11 }
 0x43c   : > { %vm5950_vm15 = vcmp.ge.f32.partialorder %v5822_v47, 0.0  ;;  %v6078_v43 = vmul.f32 0.1, %v5822_v47  ;;  %v5454_v63 = vpop.f32.mrb[152].mxu1  ;;  %v6204_v8 = vsel %vm5948_vm13, %v5820_v34, %v6076_v52 }
 0x43d   : > { %v6205_v48 = vsel %vm5949_vm14, %v5821_v2, %v6077_v27  ;;  %v5683_v51 = vmul.f32 %v13681_v39, %v5454_v63  ;;  %v5456_v61 = vpop.f32.mrb[153].mxu1 }
 0x43e   : > { %v13983_v57 = vpack.c.bf16 %v6205_v48, %v6203_v17  ;;  %v5684_v62 = vmul.f32 %v13685_v56, %v5456_v61  ;;  %v5458_v13 = vpop.f32.mrb[154].mxu1  ;;  %v6206_v32 = vsel %vm5950_vm15, %v5822_v47, %v6078_v43 }
 0x43f   : > { %v5823_v22 = vadd.f32 %v13689_v12, %v5683_v51  ;;  %v5685_v23 = vmul.f32 %v13681_v39, %v5458_v13  ;;  %v5460_v55 = vpop.f32.mrb[155].mxu1  ;;  %v13988_v10 = vpack.c.bf16 %v6206_v32, %v6204_v8 }
 0x440   : > { %v5824_v5 = vadd.f32 %v13692_v35, %v5684_v62  ;;  %v5686_v24 = vmul.f32 %v13685_v56, %v5460_v55 }
 0x441   : > { %v6079_v21 = vmul.f32 0.1, %v5823_v22  ;;  %v5825_v36 = vadd.f32 %v13689_v12, %v5685_v23  ;;  %6868 = vmatmul.mubr.bf16.gmra.mrb[4].mxu1 %v13919_v30  ;;  %7260 = vmatprep.mubr.bf16.mxu0 %v13988_v10  ;;  %vm5951_vm1 = vcmp.ge.f32.partialorder %v5823_v22, 0.0 }
 0x442   : > { %v6080_v4 = vmul.f32 0.1, %v5824_v5  ;;  %v5826_v14 = vadd.f32 %v13692_v35, %v5686_v24  ;;  %6877 = vmatprep.mubr.bf16.mxu1 %v13940_v53  ;;  %7261 = vmatmul.mubr.bf16.gmra.mrb[44].mxu0 %v13983_v57  ;;  %vm5952_vm2 = vcmp.ge.f32.partialorder %v5824_v5, 0.0 }
 0x443   : > { %vm5953_vm3 = vcmp.ge.f32.partialorder %v5825_v36, 0.0  ;;  %v6081_v29 = vmul.f32 0.1, %v5825_v36  ;;  %v6207_v31 = vsel %vm5951_vm1, %v5823_v22, %v6079_v21 }
 0x444   : > { %vm5954_vm0 = vcmp.ge.f32.partialorder %v5826_v14, 0.0  ;;  %v6082_v40 = vmul.f32 0.1, %v5826_v14  ;;  %v5464_v7 = vpop.f32.mrb[156].mxu1  ;;  %v6208_v1 = vsel %vm5952_vm2, %v5824_v5, %v6080_v4 }
 0x445   : > { %v6209_v33 = vsel %vm5953_vm3, %v5825_v36, %v6081_v29  ;;  %v5687_v30 = vmul.f32 %v13681_v39, %v5464_v7  ;;  %v5466_v9 = vpop.f32.mrb[157].mxu1 }
 0x446   : > { %v13999_v26 = vpack.c.bf16 %v6209_v33, %v6207_v31  ;;  %v5688_v20 = vmul.f32 %v13685_v56, %v5466_v9  ;;  %v5468_v41 = vpop.f32.mrb[158].mxu1  ;;  %v6210_v53 = vsel %vm5954_vm0, %v5826_v14, %v6082_v40 }
 0x447   : > { %v5827_v49 = vadd.f32 %v13689_v12, %v5687_v30  ;;  %v5689_v25 = vmul.f32 %v13681_v39, %v5468_v41  ;;  %v5470_v44 = vpop.f32.mrb[159].mxu1  ;;  %v14004_v19 = vpack.c.bf16 %v6210_v53, %v6208_v1 }
 0x448   : > { %v5828_v58 = vadd.f32 %v13692_v35, %v5688_v20  ;;  %v5690_v59 = vmul.f32 %v13685_v56, %v5470_v44 }
 0x449   : > { %v6083_v42 = vmul.f32 0.1, %v5827_v49  ;;  %v5829_v6 = vadd.f32 %v13689_v12, %v5689_v25  ;;  %6878 = vmatmul.mubr.bf16.gmra.mrb[8].mxu1 %v13935_v45  ;;  %7270 = vmatprep.mubr.bf16.mxu0 %v14004_v19  ;;  %vm5955_vm4 = vcmp.ge.f32.partialorder %v5827_v49, 0.0 }
 0x44a   : > { %v6084_v16 = vmul.f32 0.1, %v5828_v58  ;;  %v5830_v15 = vadd.f32 %v13692_v35, %v5690_v59  ;;  %6887 = vmatprep.mubr.bf16.mxu1 %v13956_v3  ;;  %7271 = vmatmul.mubr.bf16.gmra.mrb[48].mxu0 %v13999_v26  ;;  %vm5956_vm5 = vcmp.ge.f32.partialorder %v5828_v58, 0.0 }
 0x44b   : > { %vm5957_vm6 = vcmp.ge.f32.partialorder %v5829_v6, 0.0  ;;  %v6085_v18 = vmul.f32 0.1, %v5829_v6  ;;  %v6211_v46 = vsel %vm5955_vm4, %v5827_v49, %v6083_v42 }
 0x44c   : > { %vm5958_vm7 = vcmp.ge.f32.partialorder %v5830_v15, 0.0  ;;  %v6086_v54 = vmul.f32 0.1, %v5830_v15  ;;  %v5474_v34 = vpop.f32.mrb[160].mxu1  ;;  %v6212_v43 = vsel %vm5956_vm5, %v5828_v58, %v6084_v16 }
 0x44d   : > { %v6213_v11 = vsel %vm5957_vm6, %v5829_v6, %v6085_v18  ;;  %v5691_v45 = vmul.f32 %v13681_v39, %v5474_v34  ;;  %v5476_v2 = vpop.f32.mrb[161].mxu1 }
 0x44e   : > { %v14015_v52 = vpack.c.bf16 %v6213_v11, %v6211_v46  ;;  %v5692_v47 = vmul.f32 %v13685_v56, %v5476_v2  ;;  %v5478_v27 = vpop.f32.mrb[162].mxu1  ;;  %v6214_v3 = vsel %vm5958_vm7, %v5830_v15, %v6086_v54 }
 0x44f   : > { %v5831_v63 = vadd.f32 %v13689_v12, %v5691_v45  ;;  %v5693_v17 = vmul.f32 %v13681_v39, %v5478_v27  ;;  %v5480_v48 = vpop.f32.mrb[163].mxu1  ;;  %v14020_v51 = vpack.c.bf16 %v6214_v3, %v6212_v43 }
 0x450   : > { %v5832_v61 = vadd.f32 %v13692_v35, %v5692_v47  ;;  %v5694_v62 = vmul.f32 %v13685_v56, %v5480_v48 }
 0x451   : > { %v6087_v13 = vmul.f32 0.1, %v5831_v63  ;;  %v5833_v8 = vadd.f32 %v13689_v12, %v5693_v17  ;;  %6888 = vmatmul.mubr.bf16.gmra.mrb[12].mxu1 %v13951_v28  ;;  %7280 = vmatprep.mubr.bf16.mxu0 %v14020_v51  ;;  %vm5959_vm8 = vcmp.ge.f32.partialorder %v5831_v63, 0.0 }
 0x452   : > { %v6088_v32 = vmul.f32 0.1, %v5832_v61  ;;  %v5834_v22 = vadd.f32 %v13692_v35, %v5694_v62  ;;  %6897 = vmatprep.mubr.bf16.mxu1 %v13972_v60  ;;  %7281 = vmatmul.mubr.bf16.gmra.mrb[52].mxu0 %v14015_v52  ;;  %vm5960_vm9 = vcmp.ge.f32.partialorder %v5832_v61, 0.0 }
 0x453   : > { %vm5961_vm10 = vcmp.ge.f32.partialorder %v5833_v8, 0.0  ;;  %v6089_v23 = vmul.f32 0.1, %v5833_v8  ;;  %v6215_v24 = vsel %vm5959_vm8, %v5831_v63, %v6087_v13 }
 0x454   : > { %vm5962_vm12 = vcmp.ge.f32.partialorder %v5834_v22, 0.0  ;;  %v6090_v55 = vmul.f32 0.1, %v5834_v22  ;;  %v5484_v5 = vpop.f32.mrb[164].mxu1  ;;  %v6216_v40 = vsel %vm5960_vm9, %v5832_v61, %v6088_v32 }
 0x455   : > { %v6217_v21 = vsel %vm5961_vm10, %v5833_v8, %v6089_v23  ;;  %v5695_v28 = vmul.f32 %v13681_v39, %v5484_v5  ;;  %v5486_v36 = vpop.f32.mrb[165].mxu1 }
 0x456   : > { %v14031_v4 = vpack.c.bf16 %v6217_v21, %v6215_v24  ;;  %v5696_v14 = vmul.f32 %v13685_v56, %v5486_v36  ;;  %v5488_v29 = vpop.f32.mrb[166].mxu1  ;;  %v6218_v60 = vsel %vm5962_vm12, %v5834_v22, %v6090_v55 }
 0x457   : > { %v5835_v7 = vadd.f32 %v13689_v12, %v5695_v28  ;;  %v5697_v31 = vmul.f32 %v13681_v39, %v5488_v29  ;;  %v5490_v33 = vpop.f32.mrb[167].mxu1  ;;  %v14036_v30 = vpack.c.bf16 %v6218_v60, %v6216_v40 }
 0x458   : > { %v5836_v9 = vadd.f32 %v13692_v35, %v5696_v14  ;;  %v5698_v20 = vmul.f32 %v13685_v56, %v5490_v33 }
 0x459   : > { %v6091_v41 = vmul.f32 0.1, %v5835_v7  ;;  %v5837_v1 = vadd.f32 %v13689_v12, %v5697_v31  ;;  %6898 = vmatmul.mubr.bf16.gmra.mrb[16].mxu1 %v13967_v37  ;;  %7290 = vmatprep.mubr.bf16.mxu0 %v14036_v30  ;;  %vm5963_vm11 = vcmp.ge.f32.partialorder %v5835_v7, 0.0 }
 0x45a   : > { %v6092_v53 = vmul.f32 0.1, %v5836_v9  ;;  %v5838_v49 = vadd.f32 %v13692_v35, %v5698_v20  ;;  %6907 = vmatprep.mubr.bf16.mxu1 %v13988_v10  ;;  %7291 = vmatmul.mubr.bf16.gmra.mrb[56].mxu0 %v14031_v4  ;;  %vm5964_vm13 = vcmp.ge.f32.partialorder %v5836_v9, 0.0 }
 0x45b   : > { %vm5965_vm14 = vcmp.ge.f32.partialorder %v5837_v1, 0.0  ;;  %v6093_v25 = vmul.f32 0.1, %v5837_v1  ;;  %v6219_v59 = vsel %vm5963_vm11, %v5835_v7, %v6091_v41 }
 0x45c   : > { %vm5966_vm15 = vcmp.ge.f32.partialorder %v5838_v49, 0.0  ;;  %v6094_v44 = vmul.f32 0.1, %v5838_v49  ;;  %v5494_v58 = vpop.f32.mrb[168].mxu1  ;;  %v6220_v54 = vsel %vm5964_vm13, %v5836_v9, %v6092_v53 }
 0x45d   : > { %v6221_v42 = vsel %vm5965_vm14, %v5837_v1, %v6093_v25  ;;  %v5699_v37 = vmul.f32 %v13681_v39, %v5494_v58  ;;  %v5496_v6 = vpop.f32.mrb[169].mxu1 }
 0x45e   : > { %v14047_v16 = vpack.c.bf16 %v6221_v42, %v6219_v59  ;;  %v5700_v15 = vmul.f32 %v13685_v56, %v5496_v6  ;;  %v5498_v18 = vpop.f32.mrb[170].mxu1  ;;  %v6222_v10 = vsel %vm5966_vm15, %v5838_v49, %v6094_v44 }
 0x45f   : > { %v5839_v34 = vadd.f32 %v13689_v12, %v5699_v37  ;;  %v5701_v46 = vmul.f32 %v13681_v39, %v5498_v18  ;;  %v5500_v11 = vpop.f32.mrb[171].mxu1  ;;  %v14052_v45 = vpack.c.bf16 %v6222_v10, %v6220_v54 }
 0x460   : > { %v5840_v2 = vadd.f32 %v13692_v35, %v5700_v15  ;;  %v5702_v47 = vmul.f32 %v13685_v56, %v5500_v11 }
 0x461   : > { %v6095_v27 = vmul.f32 0.1, %v5839_v34  ;;  %v5841_v43 = vadd.f32 %v13689_v12, %v5701_v46  ;;  %6908 = vmatmul.mubr.bf16.gmra.mrb[20].mxu1 %v13983_v57  ;;  %7300 = vmatprep.mubr.bf16.mxu0 %v14052_v45  ;;  %vm5967_vm1 = vcmp.ge.f32.partialorder %v5839_v34, 0.0 }
 0x462   : > { %v6096_v3 = vmul.f32 0.1, %v5840_v2  ;;  %v5842_v63 = vadd.f32 %v13692_v35, %v5702_v47  ;;  %6917 = vmatprep.mubr.bf16.mxu1 %v14004_v19  ;;  %7301 = vmatmul.mubr.bf16.gmra.mrb[60].mxu0 %v14047_v16  ;;  %vm5968_vm2 = vcmp.ge.f32.partialorder %v5840_v2, 0.0 }
 0x463   : > { %vm5969_vm3 = vcmp.ge.f32.partialorder %v5841_v43, 0.0  ;;  %v6097_v17 = vmul.f32 0.1, %v5841_v43  ;;  %v6223_v62 = vsel %vm5967_vm1, %v5839_v34, %v6095_v27 }
 0x464   : > { %vm5970_vm0 = vcmp.ge.f32.partialorder %v5842_v63, 0.0  ;;  %v6098_v48 = vmul.f32 0.1, %v5842_v63  ;;  %v5504_v61 = vpop.f32.mrb[172].mxu1  ;;  %v6224_v55 = vsel %vm5968_vm2, %v5840_v2, %v6096_v3 }
 0x465   : > { %v6225_v13 = vsel %vm5969_vm3, %v5841_v43, %v6097_v17  ;;  %v5703_v57 = vmul.f32 %v13681_v39, %v5504_v61  ;;  %v5506_v8 = vpop.f32.mrb[173].mxu1 }
 0x466   : > { %v14063_v32 = vpack.c.bf16 %v6225_v13, %v6223_v62  ;;  %v5704_v22 = vmul.f32 %v13685_v56, %v5506_v8  ;;  %v5508_v23 = vpop.f32.mrb[174].mxu1  ;;  %v6226_v19 = vsel %vm5970_vm0, %v5842_v63, %v6098_v48 }
 0x467   : > { %v5843_v5 = vadd.f32 %v13689_v12, %v5703_v57  ;;  %v5705_v24 = vmul.f32 %v13681_v39, %v5508_v23  ;;  %v5510_v21 = vpop.f32.mrb[175].mxu1  ;;  %v14068_v28 = vpack.c.bf16 %v6226_v19, %v6224_v55 }
 0x468   : > { %v5844_v36 = vadd.f32 %v13692_v35, %v5704_v22  ;;  %v5706_v14 = vmul.f32 %v13685_v56, %v5510_v21 }
 0x469   : > { %v6099_v29 = vmul.f32 0.1, %v5843_v5  ;;  %v5845_v40 = vadd.f32 %v13689_v12, %v5705_v24  ;;  %6918 = vmatmul.mubr.bf16.gmra.mrb[24].mxu1 %v13999_v26  ;;  %7310 = vmatprep.mubr.bf16.mxu0 %v14068_v28  ;;  %vm5971_vm4 = vcmp.ge.f32.partialorder %v5843_v5, 0.0 }
 0x46a   : > { %v6100_v60 = vmul.f32 0.1, %v5844_v36  ;;  %v5846_v7 = vadd.f32 %v13692_v35, %v5706_v14  ;;  %6927 = vmatprep.mubr.bf16.mxu1 %v14020_v51  ;;  %7311 = vmatmul.mubr.bf16.gmra.mrb[64].mxu0 %v14063_v32  ;;  %vm5972_vm5 = vcmp.ge.f32.partialorder %v5844_v36, 0.0 }
 0x46b   : > { %vm5973_vm6 = vcmp.ge.f32.partialorder %v5845_v40, 0.0  ;;  %v6101_v31 = vmul.f32 0.1, %v5845_v40  ;;  %v6227_v20 = vsel %vm5971_vm4, %v5843_v5, %v6099_v29 }
 0x46c   : > { %vm5974_vm7 = vcmp.ge.f32.partialorder %v5846_v7, 0.0  ;;  %v6102_v33 = vmul.f32 0.1, %v5846_v7  ;;  %v5514_v9 = vpop.f32.mrb[176].mxu1  ;;  %v6228_v44 = vsel %vm5972_vm5, %v5844_v36, %v6100_v60 }
 0x46d   : > { %v6229_v41 = vsel %vm5973_vm6, %v5845_v40, %v6101_v31  ;;  %v5707_v26 = vmul.f32 %v13681_v39, %v5514_v9  ;;  %v5516_v1 = vpop.f32.mrb[177].mxu1 }
 0x46e   : > { %v14079_v53 = vpack.c.bf16 %v6229_v41, %v6227_v20  ;;  %v5708_v49 = vmul.f32 %v13685_v56, %v5516_v1  ;;  %v5518_v25 = vpop.f32.mrb[178].mxu1  ;;  %v6230_v51 = vsel %vm5974_vm7, %v5846_v7, %v6102_v33 }
 0x46f   : > { %v5847_v58 = vadd.f32 %v13689_v12, %v5707_v26  ;;  %v5709_v59 = vmul.f32 %v13681_v39, %v5518_v25  ;;  %v5520_v42 = vpop.f32.mrb[179].mxu1  ;;  %v14084_v37 = vpack.c.bf16 %v6230_v51, %v6228_v44 }
 0x470   : > { %v5848_v6 = vadd.f32 %v13692_v35, %v5708_v49  ;;  %v5710_v15 = vmul.f32 %v13685_v56, %v5520_v42 }
 0x471   : > { %v6103_v18 = vmul.f32 0.1, %v5847_v58  ;;  %v5849_v54 = vadd.f32 %v13689_v12, %v5709_v59  ;;  %6928 = vmatmul.mubr.bf16.gmra.mrb[28].mxu1 %v14015_v52  ;;  %7320 = vmatprep.mubr.bf16.mxu0 %v14084_v37  ;;  %vm5975_vm8 = vcmp.ge.f32.partialorder %v5847_v58, 0.0 }
 0x472   : > { %v6104_v10 = vmul.f32 0.1, %v5848_v6  ;;  %v5850_v34 = vadd.f32 %v13692_v35, %v5710_v15  ;;  %6937 = vmatprep.mubr.bf16.mxu1 %v14036_v30  ;;  %7321 = vmatmul.mubr.bf16.gmra.mrb[68].mxu0 %v14079_v53  ;;  %vm5976_vm9 = vcmp.ge.f32.partialorder %v5848_v6, 0.0 }
 0x473   : > { %vm5977_vm10 = vcmp.ge.f32.partialorder %v5849_v54, 0.0  ;;  %v6105_v46 = vmul.f32 0.1, %v5849_v54  ;;  %v6231_v47 = vsel %vm5975_vm8, %v5847_v58, %v6103_v18 }
 0x474   : > { %vm5978_vm12 = vcmp.ge.f32.partialorder %v5850_v34, 0.0  ;;  %v6106_v11 = vmul.f32 0.1, %v5850_v34  ;;  %v5524_v2 = vpop.f32.mrb[180].mxu1  ;;  %v6232_v48 = vsel %vm5976_vm9, %v5848_v6, %v6104_v10 }
 0x475   : > { %v6233_v27 = vsel %vm5977_vm10, %v5849_v54, %v6105_v46  ;;  %v5711_v52 = vmul.f32 %v13681_v39, %v5524_v2  ;;  %v5526_v43 = vpop.f32.mrb[181].mxu1  ;;  %v10961_v2 = vld [vmem:[%s15825_s13 + $0x40] sm:$0xff]  }
 0x476   : > { %v14095_v3 = vpack.c.bf16 %v6233_v27, %v6231_v47  ;;  %v5712_v63 = vmul.f32 %v13685_v56, %v5526_v43  ;;  %v5528_v17 = vpop.f32.mrb[182].mxu1  ;;  %v6234_v30 = vsel %vm5978_vm12, %v5850_v34, %v6106_v11  ;;  %10318 = vmatprep.subr.bf16.mxu1 %v10961_v2 }
 0x477   : > { %v5851_v61 = vadd.f32 %v13689_v12, %v5711_v52  ;;  %v5713_v62 = vmul.f32 %v13681_v39, %v5528_v17  ;;  %v5530_v13 = vpop.f32.mrb[183].mxu1  ;;  %v14100_v57 = vpack.c.bf16 %v6234_v30, %v6232_v48 }
 0x478   : > { %v5852_v8 = vadd.f32 %v13692_v35, %v5712_v63  ;;  %v5714_v22 = vmul.f32 %v13685_v56, %v5530_v13 }
 0x479   : > { %v6107_v23 = vmul.f32 0.1, %v5851_v61  ;;  %v5853_v55 = vadd.f32 %v13689_v12, %v5713_v62  ;;  %6938 = vmatmul.mubr.bf16.gmra.mrb[32].mxu1 %v14031_v4  ;;  %7330 = vmatprep.mubr.bf16.mxu0 %v14100_v57  ;;  %vm5979_vm11 = vcmp.ge.f32.partialorder %v5851_v61, 0.0 }
 0x47a   : > { %v6108_v19 = vmul.f32 0.1, %v5852_v8  ;;  %v5854_v5 = vadd.f32 %v13692_v35, %v5714_v22  ;;  %6947 = vmatprep.mubr.bf16.mxu1 %v14052_v45  ;;  %7331 = vmatmul.mubr.bf16.gmra.mrb[72].mxu0 %v14095_v3  ;;  %vm5980_vm13 = vcmp.ge.f32.partialorder %v5852_v8, 0.0 }
 0x47b   : > { %vm5981_vm14 = vcmp.ge.f32.partialorder %v5853_v55, 0.0  ;;  %v6109_v24 = vmul.f32 0.1, %v5853_v55  ;;  %v6235_v14 = vsel %vm5979_vm11, %v5851_v61, %v6107_v23  ;;  %v7433_v23 = vsub.s32 2, %v13644_v50 }
 0x47c   : > { %vm5982_vm15 = vcmp.ge.f32.partialorder %v5854_v5, 0.0  ;;  %v6110_v21 = vmul.f32 0.1, %v5854_v5  ;;  %v5534_v36 = vpop.f32.mrb[184].mxu1  ;;  %v6236_v33 = vsel %vm5980_vm13, %v5852_v8, %v6108_v19 }
 0x47d   : > { %v6237_v29 = vsel %vm5981_vm14, %v5853_v55, %v6109_v24  ;;  %v5715_v4 = vmul.f32 %v13681_v39, %v5534_v36  ;;  %v5536_v40 = vpop.f32.mrb[185].mxu1 }
 0x47e   : > { %v14111_v60 = vpack.c.bf16 %v6237_v29, %v6235_v14  ;;  %v5716_v7 = vmul.f32 %v13685_v56, %v5536_v40  ;;  %v5538_v31 = vpop.f32.mrb[186].mxu1  ;;  %v6238_v45 = vsel %vm5982_vm15, %v5854_v5, %v6110_v21 }
 0x47f   : > { %v5855_v9 = vadd.f32 %v13689_v12, %v5715_v4  ;;  %v5717_v20 = vmul.f32 %v13681_v39, %v5538_v31  ;;  %v5540_v41 = vpop.f32.mrb[187].mxu1  ;;  %v14116_v26 = vpack.c.bf16 %v6238_v45, %v6236_v33  ;;  %v7421_v4 = vld [vmem:[%s15823_s11] sm:$0xf]  ;;  %v7437_v45 = vsub.s32 3, %v13644_v50 }
 0x480   : > { %v5856_v1 = vadd.f32 %v13692_v35, %v5716_v7  ;;  %v5718_v49 = vmul.f32 %v13685_v56, %v5540_v41  ;;  %v14166_v41 = vld [vmem:[%s15824_s12] sm:$0xf] }
 0x481   : > { %v6111_v25 = vmul.f32 0.1, %v5855_v9  ;;  %v5857_v44 = vadd.f32 %v13689_v12, %v5717_v20  ;;  %6948 = vmatmul.mubr.bf16.gmra.mrb[36].mxu1 %v14047_v16  ;;  %7340 = vmatprep.mubr.bf16.mxu0 %v14116_v26  ;;  %vm5983_vm1 = vcmp.ge.f32.partialorder %v5855_v9, 0.0 }
 0x482   : > { %v6112_v51 = vmul.f32 0.1, %v5856_v1  ;;  %v5858_v58 = vadd.f32 %v13692_v35, %v5718_v49  ;;  %6957 = vmatprep.mubr.bf16.mxu1 %v14068_v28  ;;  %7341 = vmatmul.mubr.bf16.gmra.mrb[76].mxu0 %v14111_v60  ;;  %vm5984_vm2 = vcmp.ge.f32.partialorder %v5856_v1, 0.0 }
 0x483   : > { %vm5985_vm3 = vcmp.ge.f32.partialorder %v5857_v44, 0.0  ;;  %v6113_v59 = vmul.f32 0.1, %v5857_v44  ;;  %v6239_v15 = vsel %vm5983_vm1, %v5855_v9, %v6111_v25  ;;  %v14171_v25 = vrot.slane %v7421_v4, %v7433_v23 }
 0x484   : > { %vm5986_vm0 = vcmp.ge.f32.partialorder %v5858_v58, 0.0  ;;  %v6114_v42 = vmul.f32 0.1, %v5858_v58  ;;  %v5544_v6 = vpop.f32.mrb[188].mxu1  ;;  %v6240_v11 = vsel %vm5984_vm2, %v5856_v1, %v6112_v51 }
 0x485   : > { %v6241_v18 = vsel %vm5985_vm3, %v5857_v44, %v6113_v59  ;;  %v5719_v16 = vmul.f32 %v13681_v39, %v5544_v6  ;;  %v5546_v54 = vpop.f32.mrb[189].mxu1  ;;  %v14179_v59 = vrot.slane %v7421_v4, %v7437_v45  ;;  %v14182_v6 = vrot.slane %v14166_v41, %v7437_v45 }
 0x486   : > { %v14127_v10 = vpack.c.bf16 %v6241_v18, %v6239_v15  ;;  %v5720_v34 = vmul.f32 %v13685_v56, %v5546_v54  ;;  %v5548_v46 = vpop.f32.mrb[190].mxu1  ;;  %v6242_v28 = vsel %vm5986_vm0, %v5858_v58, %v6114_v42  ;;  %v14177_v58 = vrot.slane %v14166_v41, %v7433_v23 }
 0x487   : > { %v5859_v47 = vadd.f32 %v13689_v12, %v5719_v16  ;;  %v5721_v27 = vmul.f32 %v13681_v39, %v5548_v46  ;;  %v5550_v52 = vpop.f32.mrb[191].mxu1  ;;  %v14135_v43 = vpack.c.bf16 %v6242_v28, %v6240_v11  ;;  %v14185_v15 = vrot.slane %v7421_v4, %v13650_v0 }
 0x488   : > { %v5860_v63 = vadd.f32 %v13692_v35, %v5720_v34  ;;  %v5722_v17 = vmul.f32 %v13685_v56, %v5550_v52  ;;  %v14203_v23 = vrot.slane %v7421_v4, %v13654_v38 }
 0x489   : > { %v6115_v48 = vmul.f32 0.1, %v5859_v47  ;;  %v5861_v30 = vadd.f32 %v13689_v12, %v5721_v27  ;;  %6958 = vmatmul.mubr.bf16.gmra.mrb[40].mxu1 %v14063_v32  ;;  %7350 = vmatprep.mubr.bf16.mxu0 %v14135_v43  ;;  %vm5987_vm4 = vcmp.ge.f32.partialorder %v5859_v47, 0.0  ;;  %v10962_v32 = vld [vmem:[%s15825_s13] sm:$0xff]  }
 0x48a   : > { %v6116_v61 = vmul.f32 0.1, %v5860_v63  ;;  %v5862_v62 = vadd.f32 %v13692_v35, %v5722_v17  ;;  %6967 = vmatprep.mubr.bf16.mxu1 %v14084_v37  ;;  %7351 = vmatmul.mubr.bf16.gmra.mrb[80].mxu0 %v14127_v10  ;;  %vm5988_vm5 = vcmp.ge.f32.partialorder %v5860_v63, 0.0 }
 0x48b   : > { %vm5989_vm6 = vcmp.ge.f32.partialorder %v5861_v30, 0.0  ;;  %v6117_v13 = vmul.f32 0.1, %v5861_v30  ;;  %v6243_v55 = vsel %vm5987_vm4, %v5859_v47, %v6115_v48  ;;  %10319 = vmatpush3.bf16.msra.mxu1 %v10962_v32 }
 0x48c   : > { %vm5990_vm7 = vcmp.ge.f32.partialorder %v5862_v62, 0.0  ;;  %v6118_v8 = vmul.f32 0.1, %v5862_v62  ;;  %v5554_v22 = vpop.f32.mrb[192].mxu1  ;;  %v6244_v14 = vsel %vm5988_vm5, %v5860_v63, %v6116_v61 }
 0x48d   : > { %v6245_v19 = vsel %vm5989_vm6, %v5861_v30, %v6117_v13  ;;  %v5723_v5 = vmul.f32 %v13681_v39, %v5554_v22  ;;  %v5556_v24 = vpop.f32.mrb[193].mxu1 }
 0x48e   : > { %v14150_v37 = vpack.c.bf16 %v6245_v19, %v6243_v55  ;;  %v5724_v21 = vmul.f32 %v13685_v56, %v5556_v24  ;;  %v5558_v36 = vpop.f32.mrb[194].mxu1  ;;  %v6246_v29 = vsel %vm5990_vm7, %v5862_v62, %v6118_v8 }
 0x48f   : > { %v5863_v40 = vadd.f32 %v13689_v12, %v5723_v5  ;;  %v5725_v7 = vmul.f32 %v13681_v39, %v5558_v36  ;;  %v5560_v31 = vpop.f32.mrb[195].mxu1  ;;  %v14158_v33 = vpack.c.bf16 %v6246_v29, %v6244_v14  ;;  %v14214_v14 = vrot.slane %v14166_v41, %v13650_v0 }
 0x490   : > { %v5864_v9 = vadd.f32 %v13692_v35, %v5724_v21  ;;  %v5726_v20 = vmul.f32 %v13685_v56, %v5560_v31 }
 0x491   : > { %v6119_v1 = vmul.f32 0.1, %v5863_v40  ;;  %v5865_v49 = vadd.f32 %v13689_v12, %v5725_v7  ;;  %6968 = vmatmul.mubr.bf16.gmra.mrb[44].mxu1 %v14079_v53  ;;  %7360 = vmatprep.mubr.bf16.mxu0 %v14158_v33  ;;  %vm5991_vm8 = vcmp.ge.f32.partialorder %v5863_v40, 0.0  ;;  %v14220_v7 = vrot.slane %v14166_v41, %v13654_v38 }
 0x492   : > { %vm5992_vm9 = vcmp.ge.f32.partialorder %v5864_v9, 0.0  ;;  %v6120_v50 = vmul.f32 0.1, %v5864_v9  ;;  %v5866_v44 = vadd.f32 %v13692_v35, %v5726_v20  ;;  %6977 = vmatprep.mubr.bf16.mxu1 %v14100_v57  ;;  %7361 = vmatmul.mubr.bf16.gmra.mrb[84].mxu0 %v14150_v37 }
 0x493   : > { %vm5993_vm10 = vcmp.ge.f32.partialorder %v5865_v49, 0.0  ;;  %v6121_v51 = vmul.f32 0.1, %v5865_v49  ;;  %v6247_v18 = vsel %vm5991_vm8, %v5863_v40, %v6119_v1 }
 0x494   : > { %vm5994_vm12 = vcmp.ge.f32.partialorder %v5866_v44, 0.0  ;;  %v6122_v53 = vmul.f32 0.1, %v5866_v44  ;;  %v5564_v42 = vpop.f32.mrb[196].mxu1  ;;  %v6248_v46 = vsel %vm5992_vm9, %v5864_v9, %v6120_v50 }
 0x495   : > { %v6249_v57 = vsel %vm5993_vm10, %v5865_v49, %v6121_v51  ;;  %v5727_v16 = vmul.f32 %v13681_v39, %v5564_v42  ;;  %v5566_v54 = vpop.f32.mrb[197].mxu1  ;;  %v7102_v34 = vpop.f32.mrb[236].mxu0 }
 0x496   : > { %v14189_v11 = vpack.c.bf16 %v6249_v57, %v6247_v18  ;;  %v5728_v28 = vmul.f32 %v13685_v56, %v5566_v54  ;;  %v7445_v2 = vmul.f32 %v14171_v25, %v7102_v34  ;;  %v5568_v47 = vpop.f32.mrb[198].mxu1  ;;  %v7104_v27 = vpop.f32.mrb[237].mxu0  ;;  %v6250_v52 = vsel %vm5994_vm12, %v5866_v44, %v6122_v53 }
 0x497   : > { %v5867_v63 = vadd.f32 %v13689_v12, %v5727_v16  ;;  %v5729_v17 = vmul.f32 %v13681_v39, %v5568_v47  ;;  %v7446_v48 = vmul.f32 %v14179_v59, %v7104_v27  ;;  %v5570_v30 = vpop.f32.mrb[199].mxu1  ;;  %v7106_v61 = vpop.f32.mrb[238].mxu0  ;;  %v14197_v62 = vpack.c.bf16 %v6250_v52, %v6248_v46 }
 0x498   : > { %v5868_v13 = vadd.f32 %v13692_v35, %v5728_v28  ;;  %v7723_v8 = vadd.f32 %v14177_v58, %v7445_v2  ;;  %v7449_v22 = vmul.f32 %v14171_v25, %v7106_v61  ;;  %v7108_v32 = vpop.f32.mrb[239].mxu0  ;;  %v5730_v36 = vmul.f32 %v13685_v56, %v5570_v30 }
 0x499   : > { %vm5995_vm11 = vcmp.ge.f32.partialorder %v5867_v63, 0.0  ;;  %v6123_v55 = vmul.f32 0.1, %v5867_v63  ;;  %v5869_v19 = vadd.f32 %v13689_v12, %v5729_v17  ;;  %v7724_v5 = vadd.f32 %v14182_v6, %v7446_v48  ;;  %6978 = vmatmul.mubr.bf16.gmra.mrb[48].mxu1 %v14095_v3  ;;  %7370 = vmatprep.mubr.bf16.mxu0 %v14197_v62 }
 0x49a   : > { %v6124_v24 = vmul.f32 0.1, %v5868_v13  ;;  %v8235_v21 = vmul.f32 0.1, %v7723_v8  ;;  %6987 = vmatprep.mubr.bf16.mxu1 %v14116_v26  ;;  %7371 = vmatmul.mubr.bf16.gmra.mrb[88].mxu0 %v14189_v11  ;;  %vm5996_vm13 = vcmp.ge.f32.partialorder %v5868_v13, 0.0  ;;  %vm7979_vm14 = vcmp.ge.f32.partialorder %v7723_v8, 0.0 }
 0x49b   : > { %vm5997_vm15 = vcmp.ge.f32.partialorder %v5869_v19, 0.0  ;;  %v6125_v29 = vmul.f32 0.1, %v5869_v19  ;;  %v6251_v3 = vsel %vm5995_vm11, %v5867_v63, %v6123_v55  ;;  %vm7980_vm1 = vcmp.ge.f32.partialorder %v7724_v5, 0.0 }
 0x49c   : > { %v7727_v4 = vadd.f32 %v14177_v58, %v7449_v22  ;;  %v5574_v40 = vpop.f32.mrb[200].mxu1  ;;  %v8236_v31 = vmul.f32 0.1, %v7724_v5  ;;  %v7450_v45 = vmul.f32 %v14179_v59, %v7108_v32  ;;  %v8491_v1 = vsel %vm7979_vm14, %v7723_v8, %v8235_v21 }
 0x49d   : > { %v6253_v26 = vsel %vm5997_vm15, %v5869_v19, %v6125_v29  ;;  %v5731_v0 = vmul.f32 %v13681_v39, %v5574_v40  ;;  %v5576_v9 = vpop.f32.mrb[201].mxu1  ;;  %v7112_v20 = vpop.f32.mrb[240].mxu0  ;;  %v5870_v50 = vadd.f32 %v13692_v35, %v5730_v36  ;;  %v6252_v53 = vsel %vm5996_vm13, %v5868_v13, %v6124_v24 }
 0x49e   : > { %v14224_v49 = vpack.c.bf16 %v6253_v26, %v6251_v3  ;;  %v5578_v44 = vpop.f32.mrb[202].mxu1  ;;  %v7114_v51 = vpop.f32.mrb[241].mxu0  ;;  %vm7983_vm2 = vcmp.ge.f32.partialorder %v7727_v4, 0.0  ;;  %v8239_v38 = vmul.f32 0.1, %v7727_v4  ;;  %v7728_v41 = vadd.f32 %v14182_v6, %v7450_v45 }
 0x49f   : > { %v5871_v42 = vadd.f32 %v13689_v12, %v5731_v0  ;;  %v5580_v18 = vpop.f32.mrb[203].mxu1  ;;  %v7116_v57 = vpop.f32.mrb[242].mxu0  ;;  %v5732_v16 = vmul.f32 %v13685_v56, %v5576_v9  ;;  %v7453_v54 = vmul.f32 %v14171_v25, %v7112_v20  ;;  %v5733_v34 = vmul.f32 %v13681_v39, %v5578_v44 }
 0x4a0   : > { %v7454_v46 = vmul.f32 %v14179_v59, %v7114_v51  ;;  %v7118_v28 = vpop.f32.mrb[243].mxu0  ;;  %v8492_v2 = vsel %vm7980_vm1, %v7724_v5, %v8236_v31  ;;  %v8495_v47 = vsel %vm7983_vm2, %v7727_v4, %v8239_v38  ;;  %vm7984_vm3 = vcmp.ge.f32.partialorder %v7728_v41, 0.0 }
 0x4a1   : > { %v8240_v27 = vmul.f32 0.1, %v7728_v41  ;;  %6988 = vmatmul.mubr.bf16.gmra.mrb[52].mxu1 %v14111_v60  ;;  %v6126_v52 = vmul.f32 0.1, %v5870_v50  ;;  %v8771_v63 = vadd.f32 %v8495_v47, %v8491_v1  ;;  %v6127_v17 = vmul.f32 0.1, %v5871_v42 }
 0x4a2   : > { %v7731_v48 = vadd.f32 %v14177_v58, %v7453_v54  ;;  %6997 = vmatprep.mubr.bf16.mxu1 %v14135_v43  ;;  %vm5999_vm0 = vcmp.ge.f32.partialorder %v5871_v42, 0.0  ;;  %v5873_v61 = vadd.f32 %v13689_v12, %v5733_v34  ;;  %v7732_v13 = vadd.f32 %v14182_v6, %v7454_v46 }
 0x4a3   : > { %v8496_v30 = vsel %vm7984_vm3, %v7728_v41, %v8240_v27  ;;  %vm5998_vm4 = vcmp.ge.f32.partialorder %v5870_v50, 0.0  ;;  %v14241_v22 = vadd.f32 %v13692_v35, %v5732_v16  ;;  %v5734_v60 = vmul.f32 %v13685_v56, %v5580_v18 }
 0x4a4   : > { %v8784_v8 = vadd.f32 %v8496_v30, %v8492_v2  ;;  %v5584_v32 = vpop.f32.mrb[204].mxu1  ;;  %vm7987_vm5 = vcmp.ge.f32.partialorder %v7731_v48, 0.0  ;;  %v8243_v55 = vmul.f32 0.1, %v7731_v48  ;;  %vm6001_vm6 = vcmp.ge.f32.partialorder %v5873_v61, 0.0 }
 0x4a5   : > { %v6129_v19 = vmul.f32 0.1, %v5873_v61  ;;  %v6255_v5 = vsel %vm5999_vm0, %v5871_v42, %v6127_v17  ;;  %vm7988_vm7 = vcmp.ge.f32.partialorder %v7732_v13, 0.0  ;;  %v8244_v43 = vmul.f32 0.1, %v7732_v13  ;;  %v5586_v21 = vpop.f32.mrb[205].mxu1 }
 0x4a6   : > { %v7457_v24 = vmul.f32 %v14171_v25, %v7116_v57  ;;  %v7122_v36 = vpop.f32.mrb[244].mxu0  ;;  %v8499_v29 = vsel %vm7987_vm5, %v7731_v48, %v8243_v55  ;;  %v7458_v4 = vmul.f32 %v14179_v59, %v7118_v28  ;;  %v6254_v40 = vsel %vm5998_vm4, %v5870_v50, %v6126_v52  ;;  %v5588_v26 = vpop.f32.mrb[206].mxu1 }
 0x4a7   : > { %v6257_v3 = vsel %vm6001_vm6, %v5873_v61, %v6129_v19  ;;  %v7124_v31 = vpop.f32.mrb[245].mxu0  ;;  %vm6000_vm8 = vcmp.ge.f32.partialorder %v14241_v22, 0.0  ;;  %v8772_v45 = vadd.f32 %v8771_v63, %v8499_v29  ;;  %v8500_v9 = vsel %vm7988_vm7, %v7732_v13, %v8244_v43  ;;  %v5590_v20 = vpop.f32.mrb[207].mxu1 }
 0x4a8   : > { %v14248_v0 = vpack.c.bf16 %v6257_v3, %v6255_v5  ;;  %v7126_v1 = vpop.f32.mrb[246].mxu0  ;;  %v8785_v44 = vadd.f32 %v8784_v8, %v8500_v9  ;;  %v5874_v51 = vadd.f32 %v13692_v35, %v5734_v60  ;;  %v7735_v38 = vadd.f32 %v14177_v58, %v7457_v24 }
 0x4a9   : > { %v7736_v41 = vadd.f32 %v14182_v6, %v7458_v4  ;;  %v7128_v42 = vpop.f32.mrb[247].mxu0  ;;  %6998 = vmatmul.mubr.bf16.gmra.mrb[56].mxu1 %v14127_v10  ;;  %v14254_v50 = vpack.c.bf16 %v6254_v40, %v6252_v53  ;;  %v5735_v18 = vmul.f32 %v13681_v39, %v5584_v32  ;;  %v5736_v57 = vmul.f32 %v13685_v56, %v5586_v21 }
 0x4aa   : > { %v7461_v16 = vmul.f32 %v14171_v25, %v7122_v36  ;;  %7007 = vmatprep.mubr.bf16.mxu1 %v14158_v33  ;;  %vm7991_vm9 = vcmp.ge.f32.partialorder %v7735_v38, 0.0  ;;  %v8247_v54 = vmul.f32 0.1, %v7735_v38  ;;  %v5737_v28 = vmul.f32 %v13681_v39, %v5588_v26 }
 0x4ab   : > { %vm7992_vm10 = vcmp.ge.f32.partialorder %v7736_v41, 0.0  ;;  %v8248_v34 = vmul.f32 0.1, %v7736_v41  ;;  %7380 = vmatprep.mubr.bf16.mxu0 %v14254_v50  ;;  %v5875_v46 = vadd.f32 %v13689_v12, %v5735_v18  ;;  %v14263_v10 = vadd.f32 %v13692_v35, %v5736_v57 }
 0x4ac   : > { %v7739_v53 = vadd.f32 %v14177_v58, %v7461_v16  ;;  %v5594_v2 = vpop.f32.mrb[208].mxu1  ;;  %v6128_v47 = vmul.f32 0.1, %v14241_v22  ;;  %v8503_v27 = vsel %vm7991_vm9, %v7735_v38, %v8247_v54  ;;  %7381 = vmatmul.mubr.bf16.gmra.mrb[92].mxu0 %v14224_v49  ;;  %v7462_v52 = vmul.f32 %v14179_v59, %v7124_v31 }
 0x4ad   : > { %v8504_v33 = vsel %vm7992_vm10, %v7736_v41, %v8248_v34  ;;  %v5596_v63 = vpop.f32.mrb[209].mxu1  ;;  %v7132_v17 = vpop.f32.mrb[248].mxu0  ;;  %v8773_v48 = vadd.f32 %v8772_v45, %v8503_v27  ;;  %vm6003_vm12 = vcmp.ge.f32.partialorder %v5875_v46, 0.0  ;;  %v6131_v61 = vmul.f32 0.1, %v5875_v46 }
 0x4ae   : > { %v8786_v30 = vadd.f32 %v8785_v44, %v8504_v33  ;;  %v5598_v13 = vpop.f32.mrb[210].mxu1  ;;  %v7134_v8 = vpop.f32.mrb[249].mxu0  ;;  %vm6002_vm11 = vcmp.ge.f32.partialorder %v5874_v51, 0.0  ;;  %vm7995_vm13 = vcmp.ge.f32.partialorder %v7739_v53, 0.0  ;;  %v8251_v60 = vmul.f32 0.1, %v7739_v53 }
 0x4af   : > { %v5738_v32 = vmul.f32 %v13685_v56, %v5590_v20  ;;  %v6130_v55 = vmul.f32 0.1, %v5874_v51  ;;  %v14272_v19 = vmul.f32 0.1, %v14263_v10  ;;  %v5877_v5 = vadd.f32 %v13689_v12, %v5737_v28  ;;  %v5600_v24 = vpop.f32.mrb[211].mxu1  ;;  %v7136_v21 = vpop.f32.mrb[250].mxu0 }
 0x4b0   : > { %v7740_v43 = vadd.f32 %v14182_v6, %v7462_v52  ;;  %v6259_v36 = vsel %vm6003_vm12, %v5875_v46, %v6131_v61  ;;  %v8507_v29 = vsel %vm7995_vm13, %v7739_v53, %v8251_v60  ;;  %v7465_v3 = vmul.f32 %v14171_v25, %v7126_v1  ;;  %v14278_v40 = vpop.f32.mrb[251].mxu0 }
 0x4b1   : > { %v7466_v4 = vmul.f32 %v14179_v59, %v7128_v42  ;;  %7008 = vmatmul.mubr.bf16.gmra.mrb[60].mxu1 %v14150_v37  ;;  %v8774_v26 = vadd.f32 %v8773_v48, %v8507_v29  ;;  %vm6005_vm14 = vcmp.ge.f32.partialorder %v5877_v5, 0.0  ;;  %v6133_v31 = vmul.f32 0.1, %v5877_v5 }
 0x4b2   : > { %vm7996_vm15 = vcmp.ge.f32.partialorder %v7740_v43, 0.0  ;;  %7017 = vmatprep.mubr.bf16.mxu1 %v14197_v62  ;;  %v8252_v45 = vmul.f32 0.1, %v7740_v43  ;;  %v14283_v9 = vadd.f32 %v13692_v35, %v5738_v32  ;;  %v7743_v20 = vadd.f32 %v14177_v58, %v7465_v3 }
 0x4b3   : > { %v6256_v1 = vsel %vm6000_vm8, %v14241_v22, %v6128_v47  ;;  %vm6004_vm1 = vcmp.ge.f32.partialorder %v14263_v10, 0.0  ;;  %v6261_v44 = vsel %vm6005_vm14, %v5877_v5, %v6133_v31  ;;  %v7744_v37 = vadd.f32 %v14182_v6, %v7466_v4 }
 0x4b4   : > { %v6258_v38 = vsel %vm6002_vm11, %v5874_v51, %v6130_v55  ;;  %v5739_v41 = vmul.f32 %v13681_v39, %v5594_v2  ;;  %v14293_v62 = vpop.f32.mrb[212].mxu1  ;;  %v14295_v42 = vpack.c.bf16 %v6261_v44, %v6259_v36  ;;  %v8508_v18 = vsel %vm7996_vm15, %v7740_v43, %v8252_v45 }
 0x4b5   : > { %vm7999_vm2 = vcmp.ge.f32.partialorder %v7743_v20, 0.0  ;;  %v8255_v57 = vmul.f32 0.1, %v7743_v20  ;;  %v14297_v16 = vpop.f32.mrb[213].mxu1  ;;  %v14299_v54 = vpop.f32.mrb[252].mxu0  ;;  %v8787_v22 = vadd.f32 %v8786_v30, %v8508_v18  ;;  %vm8000_vm3 = vcmp.ge.f32.partialorder %v7744_v37, 0.0 }
 0x4b6   : > { %v8256_v34 = vmul.f32 0.1, %v7744_v37  ;;  %v14301_v46 = vpack.c.bf16 %v6258_v38, %v6256_v1  ;;  %v14303_v53 = vpop.f32.mrb[214].mxu1  ;;  %v14305_v51 = vpop.f32.mrb[253].mxu0  ;;  %v5879_v2 = vadd.f32 %v13689_v12, %v5739_v41  ;;  %v5740_v47 = vmul.f32 %v13685_v56, %v5596_v63 }
 0x4b7   : > { %v8511_v28 = vsel %vm7999_vm2, %v7743_v20, %v8255_v57  ;;  %v7469_v27 = vmul.f32 %v14171_v25, %v7132_v17  ;;  %v14310_v33 = vpop.f32.mrb[215].mxu1  ;;  %v14312_v52 = vpop.f32.mrb[254].mxu0  ;;  %v5741_v61 = vmul.f32 %v13681_v39, %v5598_v13  ;;  %v7470_v60 = vmul.f32 %v14179_v59, %v7134_v8 }
 0x4b8   : > { %v8775_v48 = vadd.f32 %v8774_v26, %v8511_v28  ;;  %v8512_v30 = vsel %vm8000_vm3, %v7744_v37, %v8256_v34  ;;  %7390 = vmatprep.mubr.bf16.mxu0 %v14301_v46  ;;  %v14317_v32 = vpop.f32.mrb[255].mxu0  ;;  %vm6007_vm0 = vcmp.ge.f32.partialorder %v5879_v2, 0.0  ;;  %v6135_v63 = vmul.f32 0.1, %v5879_v2 }
 0x4b9   : > { %v8788_v55 = vadd.f32 %v8787_v22, %v8512_v30  ;;  %7391 = vmatmul.mubr.bf16.gmra.mrb[96].mxu0 %v14248_v0  ;;  %v14321_v17 = vadd.f32 %v13692_v35, %v5740_v47  ;;  %7018 = vmatmul.mubr.bf16.gmra.mrb[64].mxu1 %v14189_v11  ;;  %v7747_v5 = vadd.f32 %v14177_v58, %v7469_v27  ;;  %vm6006_vm4 = vcmp.ge.f32.partialorder %v14283_v9, 0.0  ;;  %v10963_v27 = vld [vmem:[%s15825_s13 + $0x48] sm:$0xff]  }
 0x4ba   : > { %v5881_v43 = vadd.f32 %v13689_v12, %v5741_v61  ;;  %v7748_v39 = vadd.f32 %v14182_v6, %v7470_v60  ;;  %v5742_v13 = vmul.f32 %v13685_v56, %v5600_v24  ;;  %7027 = vmatprep.mubr.bf16.mxu1 %v14254_v50  ;;  %v6134_v8 = vmul.f32 0.1, %v14283_v9  ;;  %10320 = vmatprep.subr.bf16.mxu1 %v10963_v27 }
 0x4bb   : > { %v6263_v36 = vsel %vm6007_vm0, %v5879_v2, %v6135_v63  ;;  %v7473_v29 = vmul.f32 %v14171_v25, %v7136_v21  ;;  %vm8003_vm5 = vcmp.ge.f32.partialorder %v7747_v5, 0.0  ;;  %v8259_v3 = vmul.f32 0.1, %v7747_v5 }
 0x4bc   : > { %vm6009_vm6 = vcmp.ge.f32.partialorder %v5881_v43, 0.0  ;;  %v6137_v11 = vmul.f32 0.1, %v5881_v43  ;;  %vm8004_vm7 = vcmp.ge.f32.partialorder %v7748_v39, 0.0  ;;  %v8260_v4 = vmul.f32 0.1, %v7748_v39 }
 0x4bd   : > { %v14333_v12 = vadd.f32 %v13692_v35, %v5742_v13  ;;  %v7751_v56 = vadd.f32 %v14177_v58, %v7473_v29  ;;  %v14336_v24 = vpop.f32.mrb[216].mxu1  ;;  %v14338_v50 = vpop.f32.mrb[0].mxu0  ;;  %v14341_v26 = vmul.f32 0.1, %v14321_v17  ;;  %v8515_v31 = vsel %vm8003_vm5, %v7747_v5, %v8259_v3 }
 0x4be   : > { %v6265_v21 = vsel %vm6009_vm6, %v5881_v43, %v6137_v11  ;;  %v7474_v45 = vmul.f32 %v14179_v59, %v14278_v40  ;;  %v14345_v20 = vpop.f32.mrb[217].mxu1  ;;  %v14347_v1 = vpop.f32.mrb[1].mxu0  ;;  %v8776_v35 = vadd.f32 %v8775_v48, %v8515_v31  ;;  %v8516_v37 = vsel %vm8004_vm7, %v7748_v39, %v8260_v4 }
 0x4bf   : > { %v14349_v44 = vpack.c.bf16 %v6265_v21, %v6263_v36  ;;  %v6260_v38 = vsel %vm6004_vm1, %v14263_v10, %v14272_v19  ;;  %v14355_v41 = vpop.f32.mrb[218].mxu1  ;;  %v14357_v18 = vpop.f32.mrb[2].mxu0  ;;  %v8789_v57 = vadd.f32 %v8788_v55, %v8516_v37  ;;  %v14360_v40 = vmul.f32 0.1, %v14333_v12 }
 0x4c0   : > { %vm8007_vm8 = vcmp.ge.f32.partialorder %v7751_v56, 0.0  ;;  %v8263_v22 = vmul.f32 0.1, %v7751_v56  ;;  %v14362_v34 = vpop.f32.mrb[219].mxu1  ;;  %vm6008_vm9 = vcmp.ge.f32.partialorder %v14321_v17, 0.0  ;;  %v7752_v28 = vadd.f32 %v14182_v6, %v7474_v45  ;;  %v14373_v47 = vpop.f32.mrb[3].mxu0 }
 0x4c1   : > { %v6262_v10 = vsel %vm6006_vm4, %v14283_v9, %v6134_v8  ;;  %v7443_v19 = vmul.f32 %v14185_v15, %v14293_v62  ;;  %v7444_v2 = vmul.f32 %v14203_v23, %v14297_v16  ;;  %7028 = vmatmul.mubr.bf16.gmra.mrb[68].mxu1 %v14224_v49  ;;  %v7477_v61 = vmul.f32 %v14171_v25, %v14299_v54 }
 0x4c2   : > { %v8519_v48 = vsel %vm8007_vm8, %v7751_v56, %v8263_v22  ;;  %v6328_v30 = vpack.c.bf16 %v6262_v10, %v6260_v38  ;;  %v7447_v9 = vmul.f32 %v14185_v15, %v14303_v53  ;;  %7037 = vmatprep.mubr.bf16.mxu1 %v14301_v46  ;;  %vm6010_vm10 = vcmp.ge.f32.partialorder %v14333_v12, 0.0  ;;  %v10964_v46 = vld [vmem:[%s15825_s13 + $0x8] sm:$0xff]  }
 0x4c3   : > { %v8777_v62 = vadd.f32 %v8776_v35, %v8519_v48  ;;  %vm8008_vm12 = vcmp.ge.f32.partialorder %v7752_v28, 0.0  ;;  %v8264_v16 = vmul.f32 0.1, %v7752_v28  ;;  %v7721_v49 = vadd.f32 %v14214_v14, %v7443_v19  ;;  %10321 = vmatpush3.bf16.msra.mxu1 %v10964_v46 }
 0x4c4   : > { %7400 = vmatprep.mubr.bf16.mxu0 %v6328_v30  ;;  %v7722_v60 = vadd.f32 %v14220_v7, %v7444_v2  ;;  %v7755_v55 = vadd.f32 %v14177_v58, %v7477_v61  ;;  %v7725_v54 = vadd.f32 %v14214_v14, %v7447_v9  ;;  %v7478_v53 = vmul.f32 %v14179_v59, %v14305_v51  ;;  %v14391_v63 = vpop.f32.mrb[220].mxu1 }
 0x4c5   : > { %v8778_v5 = vrot.slane %v8777_v62, 4  ;;  %v8520_v43 = vsel %vm8008_vm12, %v7752_v28, %v8264_v16  ;;  %7401 = vmatmul.mubr.bf16.gmra.mrb[100].mxu0 %v14295_v42  ;;  %vm7977_vm11 = vcmp.ge.f32.partialorder %v7721_v49, 0.0  ;;  %v8233_v39 = vmul.f32 0.1, %v7721_v49  ;;  %v14397_v13 = vpop.f32.mrb[221].mxu1  ;;  %v14399_v8 = vpop.f32.mrb[4].mxu0 }
 0x4c6   : > { %v8790_v36 = vadd.f32 %v8789_v57, %v8520_v43  ;;  %vm7978_vm13 = vcmp.ge.f32.partialorder %v7722_v60, 0.0  ;;  %v8234_v29 = vmul.f32 0.1, %v7722_v60  ;;  %vm8011_vm14 = vcmp.ge.f32.partialorder %v7755_v55, 0.0  ;;  %v14401_v51 = vpop.f32.mrb[222].mxu1  ;;  %v14403_v3 = vpop.f32.mrb[5].mxu0 }
 0x4c7   : > { %v8779_v11 = vadd.f32 %v8778_v5, %v8777_v62  ;;  %v8489_v4 = vsel %vm7977_vm11, %v7721_v49, %v8233_v39  ;;  %v8267_v56 = vmul.f32 0.1, %v7755_v55  ;;  %vm7981_vm15 = vcmp.ge.f32.partialorder %v7725_v54, 0.0  ;;  %v14405_v31 = vpop.f32.mrb[223].mxu1  ;;  %v14407_v21 = vpop.f32.mrb[6].mxu0 }
 0x4c8   : > { %v8791_v45 = vrot.slane %v8790_v36, 4  ;;  %v8490_v35 = vsel %vm7978_vm13, %v7722_v60, %v8234_v29  ;;  %v8237_v37 = vmul.f32 0.1, %v7725_v54  ;;  %v7756_v38 = vadd.f32 %v14182_v6, %v7478_v53  ;;  %v14410_v57 = vpop.f32.mrb[7].mxu0 }
 0x4c9   : > { %v8780_v22 = vrot.slane %v8779_v11, 2  ;;  %v8523_v28 = vsel %vm8011_vm14, %v7755_v55, %v8267_v56  ;;  %v7448_v10 = vmul.f32 %v14203_v23, %v14310_v33  ;;  %v7481_v19 = vmul.f32 %v14171_v25, %v14312_v52  ;;  %7038 = vmatmul.mubr.bf16.gmra.mrb[72].mxu1 %v14248_v0 }
 0x4ca   : > { %v8792_v2 = vadd.f32 %v8791_v45, %v8790_v36  ;;  %v8493_v27 = vsel %vm7981_vm15, %v7725_v54, %v8237_v37  ;;  %vm8012_vm1 = vcmp.ge.f32.partialorder %v7756_v38, 0.0  ;;  %v8268_v48 = vmul.f32 0.1, %v7756_v38  ;;  %7047 = vmatprep.mubr.bf16.mxu1 %v6328_v30 }
 0x4cb   : > { %v8781_v61 = vadd.f32 %v8780_v22, %v8779_v11  ;;  %v8745_v9 = vadd.f32 %v8493_v27, %v8489_v4  ;;  %v7726_v62 = vadd.f32 %v14220_v7, %v7448_v10  ;;  %v7759_v16 = vadd.f32 %v14177_v58, %v7481_v19 }
 0x4cc   : > { %v8793_v49 = vrot.slane %v8792_v2, 2  ;;  %v8524_v60 = vsel %vm8012_vm1, %v7756_v38, %v8268_v48  ;;  %v7482_v33 = vmul.f32 %v14179_v59, %v14317_v32  ;;  %v6264_v0 = vsel %vm6008_vm9, %v14321_v17, %v14341_v26  ;;  %v14426_v52 = vpop.f32.mrb[224].mxu1 }
 0x4cd   : > { %v8782_v55 = vrot.slane %v8781_v61, 1  ;;  %vm7982_vm2 = vcmp.ge.f32.partialorder %v7726_v62, 0.0  ;;  %v8238_v30 = vmul.f32 0.1, %v7726_v62  ;;  %vm8015_vm3 = vcmp.ge.f32.partialorder %v7759_v16, 0.0  ;;  %v14428_v54 = vpop.f32.mrb[225].mxu1 }
 0x4ce   : > { %v8794_v53 = vadd.f32 %v8793_v49, %v8792_v2  ;;  %v8271_v46 = vmul.f32 0.1, %v7759_v16  ;;  %v7760_v5 = vadd.f32 %v14182_v6, %v7482_v33  ;;  %v6266_v32 = vsel %vm6010_vm10, %v14333_v12, %v14360_v40  ;;  %v14435_v43 = vpop.f32.mrb[8].mxu0  ;;  %v14437_v17 = vpop.f32.mrb[226].mxu1 }
 0x4cf   : > { %v8783_v26 = vadd.f32 %v8782_v55, %v8781_v61  ;;  %v8494_v39 = vsel %vm7982_vm2, %v7726_v62, %v8238_v30  ;;  %v6330_v36 = vpack.c.bf16 %v6266_v32, %v6264_v0  ;;  %v7451_v29 = vmul.f32 %v14185_v15, %v14336_v24  ;;  %v14441_v11 = vpop.f32.mrb[9].mxu0  ;;  %v14443_v4 = vpop.f32.mrb[227].mxu1 }
 0x4d0   : > { %v8795_v56 = vrot.slane %v8794_v53, 1  ;;  %v8758_v45 = vadd.f32 %v8494_v39, %v8490_v35  ;;  %v8527_v37 = vsel %vm8015_vm3, %v7759_v16, %v8271_v46  ;;  %vm8016_vm0 = vcmp.ge.f32.partialorder %v7760_v5, 0.0  ;;  %v14446_v12 = vpop.f32.mrb[10].mxu0 }
 0x4d1   : > { %v9164_v40 = vmul.f32 0.015625, %v8783_v26  ;;  %v8823_v38 = vadd.f32 %v8527_v37, %v8523_v28  ;;  %v8272_v22 = vmul.f32 0.1, %v7760_v5  ;;  %7410 = vmatprep.mubr.bf16.mxu0 %v6330_v36  ;;  %v7729_v10 = vadd.f32 %v14214_v14, %v7451_v29  ;;  %v14449_v19 = vpop.f32.mrb[11].mxu0  ;;  %7048 = vmatmul.mubr.bf16.gmra.mrb[76].mxu1 %v14295_v42 }
 0x4d2   : > { %v8796_v24 = vadd.f32 %v8795_v56, %v8794_v53  ;;  %7411 = vmatmul.mubr.bf16.gmra.mrb[104].mxu0 %v14349_v44  ;;  %v7452_v35 = vmul.f32 %v14203_v23, %v14345_v20  ;;  %v7485_v2 = vmul.f32 %v14171_v25, %v14338_v50  ;;  %v7455_v28 = vmul.f32 %v14185_v15, %v14355_v41 }
 0x4d3   : > { %v9196_v27 = vpack.c.bf16 %v9164_v40, %v9164_v40  ;;  %v8528_v48 = vsel %vm8016_vm0, %v7760_v5, %v8272_v22  ;;  %vm7985_vm4 = vcmp.ge.f32.partialorder %v7729_v10, 0.0  ;;  %v8241_v61 = vmul.f32 0.1, %v7729_v10  ;;  %7057 = vmatprep.mubr.bf16.mxu1 %v6330_v36 }
 0x4d4   : > { %v9165_v62 = vmul.f32 0.015625, %v8796_v24  ;;  %v8836_v16 = vadd.f32 %v8528_v48, %v8524_v60  ;;  %v7730_v42 = vadd.f32 %v14220_v7, %v7452_v35  ;;  %v7763_v49 = vadd.f32 %v14177_v58, %v7485_v2  ;;  %v14461_v33 = vpop.f32.mrb[228].mxu1 }
 0x4d5   : > { %v14463_v20 = vunpack.c.l.b16 %v9196_v27  ;;  %v8497_v0 = vsel %vm7985_vm4, %v7729_v10, %v8241_v61  ;;  %v7733_v50 = vadd.f32 %v14214_v14, %v7455_v28  ;;  %v7486_v41 = vmul.f32 %v14179_v59, %v14347_v1  ;;  %v14468_v55 = vpop.f32.mrb[229].mxu1  ;;  %v14470_v30 = vpop.f32.mrb[12].mxu0 }
 0x4d6   : > { %v9197_v53 = vpack.c.bf16 %v9165_v62, %v9165_v62  ;;  %v8746_v60 = vadd.f32 %v8745_v9, %v8497_v0  ;;  %vm7986_vm5 = vcmp.ge.f32.partialorder %v7730_v42, 0.0  ;;  %v8242_v46 = vmul.f32 0.1, %v7730_v42  ;;  %v14472_v5 = vpop.f32.mrb[230].mxu1  ;;  %v14474_v32 = vpop.f32.mrb[13].mxu0 }
 0x4d7   : > { %vm8019_vm6 = vcmp.ge.f32.partialorder %v7763_v49, 0.0  ;;  %v8275_v26 = vmul.f32 0.1, %v7763_v49  ;;  %vm7989_vm7 = vcmp.ge.f32.partialorder %v7733_v50, 0.0  ;;  %v8245_v39 = vmul.f32 0.1, %v7733_v50 }
 0x4d8   : > { %v14476_v36 = vunpack.c.l.b16 %v9197_v53  ;;  %v8498_v29 = vsel %vm7986_vm5, %v7730_v42, %v8242_v46  ;;  %v7764_v1 = vadd.f32 %v14182_v6, %v7486_v41  ;;  %v7456_v56 = vmul.f32 %v14203_v23, %v14362_v34  ;;  %v14481_v37 = vpop.f32.mrb[231].mxu1  ;;  %v14483_v9 = vpop.f32.mrb[14].mxu0 }
 0x4d9   : > { %v8759_v40 = vadd.f32 %v8758_v45, %v8498_v29  ;;  %v8531_v22 = vsel %vm8019_vm6, %v7763_v49, %v8275_v26  ;;  %v8501_v10 = vsel %vm7989_vm7, %v7733_v50, %v8245_v39  ;;  %v7489_v24 = vmul.f32 %v14171_v25, %v14357_v18  ;;  %v14487_v35 = vpop.f32.mrb[15].mxu0  ;;  %7058 = vmatmul.mubr.bf16.gmra.mrb[80].mxu1 %v14349_v44 }
 0x4da   : > { %15976 = vst [vmem:[#allocation8_spill] sm:$0xff] %v14476_v36  ;;  %v8824_v2 = vadd.f32 %v8823_v38, %v8531_v22  ;;  %v8747_v28 = vadd.f32 %v8746_v60, %v8501_v10  ;;  %vm8020_vm8 = vcmp.ge.f32.partialorder %v7764_v1, 0.0  ;;  %v8276_v27 = vmul.f32 0.1, %v7764_v1 }
 0x4db   : > { %v7734_v34 = vadd.f32 %v14220_v7, %v7456_v56  ;;  %v7767_v48 = vadd.f32 %v14177_v58, %v7489_v24  ;;  %v7490_v45 = vmul.f32 %v14179_v59, %v14373_v47  ;;  %v7459_v61 = vmul.f32 %v14185_v15, %v14391_v63 }
 0x4dc   : > { %v8532_v62 = vsel %vm8020_vm8, %v7764_v1, %v8276_v27  ;;  %v7460_v18 = vmul.f32 %v14203_v23, %v14397_v13  ;;  %v7493_v44 = vmul.f32 %v14171_v25, %v14399_v8  ;;  %v7463_v38 = vmul.f32 %v14185_v15, %v14401_v51  ;;  %v14502_v42 = vpop.f32.mrb[232].mxu1 }
 0x4dd   : > { %v8837_v49 = vadd.f32 %v8836_v16, %v8532_v62  ;;  %vm7990_vm9 = vcmp.ge.f32.partialorder %v7734_v34, 0.0  ;;  %v8246_v0 = vmul.f32 0.1, %v7734_v34  ;;  %vm8023_vm10 = vcmp.ge.f32.partialorder %v7767_v48, 0.0  ;;  %v14504_v47 = vpop.f32.mrb[233].mxu1  ;;  %v14506_v50 = vpop.f32.mrb[16].mxu0 }
 0x4de   : > { %v8279_v63 = vmul.f32 0.1, %v7767_v48  ;;  %v7768_v41 = vadd.f32 %v14182_v6, %v7490_v45  ;;  %v7737_v13 = vadd.f32 %v14214_v14, %v7459_v61  ;;  %v7738_v8 = vadd.f32 %v14220_v7, %v7460_v18  ;;  %v14511_v53 = vpop.f32.mrb[234].mxu1  ;;  %v14513_v51 = vpop.f32.mrb[17].mxu0 }
 0x4df   : > { %v8502_v60 = vsel %vm7990_vm9, %v7734_v34, %v8246_v0  ;;  %v7771_v16 = vadd.f32 %v14177_v58, %v7493_v44  ;;  %v7741_v46 = vadd.f32 %v14214_v14, %v7463_v38  ;;  %v7494_v26 = vmul.f32 %v14179_v59, %v14403_v3  ;;  %v14519_v39 = vpop.f32.mrb[235].mxu1  ;;  %v14521_v29 = vpop.f32.mrb[18].mxu0 }
 0x4e0   : > { %v8760_v1 = vadd.f32 %v8759_v40, %v8502_v60  ;;  %v8535_v56 = vsel %vm8023_vm10, %v7767_v48, %v8279_v63  ;;  %vm8024_vm12 = vcmp.ge.f32.partialorder %v7768_v41, 0.0  ;;  %v8280_v22 = vmul.f32 0.1, %v7768_v41  ;;  %v14524_v10 = vpop.f32.mrb[19].mxu0 }
 0x4e1   : > { %v8825_v24 = vadd.f32 %v8824_v2, %v8535_v56  ;;  %vm7993_vm11 = vcmp.ge.f32.partialorder %v7737_v13, 0.0  ;;  %v8249_v27 = vmul.f32 0.1, %v7737_v13  ;;  %vm7994_vm13 = vcmp.ge.f32.partialorder %v7738_v8, 0.0 }
 0x4e2   : > { %v8536_v34 = vsel %vm8024_vm12, %v7768_v41, %v8280_v22  ;;  %v8250_v45 = vmul.f32 0.1, %v7738_v8  ;;  %vm8027_vm14 = vcmp.ge.f32.partialorder %v7771_v16, 0.0  ;;  %v8283_v61 = vmul.f32 0.1, %v7771_v16 }
 0x4e3   : > { %v8838_v3 = vadd.f32 %v8837_v49, %v8536_v34  ;;  %v8505_v62 = vsel %vm7993_vm11, %v7737_v13, %v8249_v27  ;;  %vm7997_vm15 = vcmp.ge.f32.partialorder %v7741_v46, 0.0  ;;  %v8253_v18 = vmul.f32 0.1, %v7741_v46 }
 0x4e4   : > { %v8748_v44 = vadd.f32 %v8747_v28, %v8505_v62  ;;  %v8506_v40 = vsel %vm7994_vm13, %v7738_v8, %v8250_v45  ;;  %v8539_v38 = vsel %vm8027_vm14, %v7771_v16, %v8283_v61  ;;  %v7772_v48 = vadd.f32 %v14182_v6, %v7494_v26  ;;  %v14527_v0 = vpop.f32.mrb[236].mxu1 }
 0x4e5   : > { %v8761_v63 = vadd.f32 %v8760_v1, %v8506_v40  ;;  %v8826_v2 = vadd.f32 %v8825_v24, %v8539_v38  ;;  %v8509_v60 = vsel %vm7997_vm15, %v7741_v46, %v8253_v18  ;;  %v7464_v41 = vmul.f32 %v14203_v23, %v14405_v31  ;;  %v14531_v56 = vpop.f32.mrb[237].mxu1  ;;  %v14533_v22 = vpop.f32.mrb[20].mxu0 }
 0x4e6   : > { %v8749_v49 = vadd.f32 %v8748_v44, %v8509_v60  ;;  %vm8028_vm1 = vcmp.ge.f32.partialorder %v7772_v48, 0.0  ;;  %v8284_v13 = vmul.f32 0.1, %v7772_v48  ;;  %v7497_v28 = vmul.f32 %v14171_v25, %v14407_v21  ;;  %v14537_v8 = vpop.f32.mrb[238].mxu1  ;;  %v14539_v16 = vpop.f32.mrb[21].mxu0 }
 0x4e7   : > { %v7742_v26 = vadd.f32 %v14220_v7, %v7464_v41  ;;  %v7498_v46 = vmul.f32 %v14179_v59, %v14410_v57  ;;  %v7467_v31 = vmul.f32 %v14185_v15, %v14426_v52  ;;  %v7468_v1 = vmul.f32 %v14203_v23, %v14428_v54  ;;  %v14548_v24 = vpop.f32.mrb[239].mxu1  ;;  %v14550_v27 = vpop.f32.mrb[22].mxu0 }
 0x4e8   : > { %v8540_v21 = vsel %vm8028_vm1, %v7772_v48, %v8284_v13  ;;  %v7775_v34 = vadd.f32 %v14177_v58, %v7497_v28  ;;  %v7501_v45 = vmul.f32 %v14171_v25, %v14435_v43  ;;  %v7471_v61 = vmul.f32 %v14185_v15, %v14437_v17  ;;  %v14557_v57 = vpop.f32.mrb[23].mxu0 }
 0x4e9   : > { %v8839_v62 = vadd.f32 %v8838_v3, %v8540_v21  ;;  %vm7998_vm2 = vcmp.ge.f32.partialorder %v7742_v26, 0.0  ;;  %v8254_v52 = vmul.f32 0.1, %v7742_v26  ;;  %v7776_v54 = vadd.f32 %v14182_v6, %v7498_v46 }
 0x4ea   : > { %vm8031_vm3 = vcmp.ge.f32.partialorder %v7775_v34, 0.0  ;;  %v8287_v18 = vmul.f32 0.1, %v7775_v34  ;;  %v7745_v44 = vadd.f32 %v14214_v14, %v7467_v31  ;;  %v7746_v40 = vadd.f32 %v14220_v7, %v7468_v1 }
 0x4eb   : > { %v8510_v38 = vsel %vm7998_vm2, %v7742_v26, %v8254_v52  ;;  %vm8032_vm0 = vcmp.ge.f32.partialorder %v7776_v54, 0.0  ;;  %v8288_v48 = vmul.f32 0.1, %v7776_v54  ;;  %v7779_v43 = vadd.f32 %v14177_v58, %v7501_v45 }
 0x4ec   : > { %v8762_v60 = vadd.f32 %v8761_v63, %v8510_v38  ;;  %v8543_v17 = vsel %vm8031_vm3, %v7775_v34, %v8287_v18  ;;  %vm8001_vm4 = vcmp.ge.f32.partialorder %v7745_v44, 0.0  ;;  %v8257_v41 = vmul.f32 0.1, %v7745_v44  ;;  %v14563_v3 = vpop.f32.mrb[240].mxu1 }
 0x4ed   : > { %v8827_v13 = vadd.f32 %v8826_v2, %v8543_v17  ;;  %v8544_v28 = vsel %vm8032_vm0, %v7776_v54, %v8288_v48  ;;  %vm8002_vm5 = vcmp.ge.f32.partialorder %v7746_v40, 0.0  ;;  %v8258_v46 = vmul.f32 0.1, %v7746_v40  ;;  %v14565_v21 = vpop.f32.mrb[241].mxu1  ;;  %v14567_v31 = vpop.f32.mrb[24].mxu0 }
 0x4ee   : > { %v8840_v1 = vadd.f32 %v8839_v62, %v8544_v28  ;;  %v8513_v26 = vsel %vm8001_vm4, %v7745_v44, %v8257_v41  ;;  %vm8035_vm6 = vcmp.ge.f32.partialorder %v7779_v43, 0.0  ;;  %v8291_v52 = vmul.f32 0.1, %v7779_v43  ;;  %v14569_v36 = vpop.f32.mrb[242].mxu1  ;;  %v14571_v63 = vpop.f32.mrb[25].mxu0 }
 0x4ef   : > { %v8750_v34 = vadd.f32 %v8749_v49, %v8513_v26  ;;  %v8514_v45 = vsel %vm8002_vm5, %v7746_v40, %v8258_v46  ;;  %v7749_v18 = vadd.f32 %v14214_v14, %v7471_v61  ;;  %v7502_v2 = vmul.f32 %v14179_v59, %v14441_v11  ;;  %v14576_v54 = vpop.f32.mrb[243].mxu1  ;;  %v14578_v38 = vpop.f32.mrb[26].mxu0 }
 0x4f0   : > { %v8763_v48 = vadd.f32 %v8762_v60, %v8514_v45  ;;  %v8547_v62 = vsel %vm8035_vm6, %v7779_v43, %v8291_v52  ;;  %v7472_v44 = vmul.f32 %v14203_v23, %v14443_v4  ;;  %v7505_v17 = vmul.f32 %v14171_v25, %v14446_v12  ;;  %v14584_v41 = vpop.f32.mrb[27].mxu0 }
 0x4f1   : > { %15977 = vst [vmem:[#allocation6_spill] sm:$0xff] %v14584_v41  ;;  %v8828_v49 = vadd.f32 %v8827_v13, %v8547_v62  ;;  %vm8005_vm7 = vcmp.ge.f32.partialorder %v7749_v18, 0.0  ;;  %v8261_v61 = vmul.f32 0.1, %v7749_v18  ;;  %v7780_v40 = vadd.f32 %v14182_v6, %v7502_v2 }
 0x4f2   : > { %v7750_v11 = vadd.f32 %v14220_v7, %v7472_v44  ;;  %v7783_v28 = vadd.f32 %v14177_v58, %v7505_v17  ;;  %v7506_v43 = vmul.f32 %v14179_v59, %v14449_v19  ;;  %v7475_v4 = vmul.f32 %v14185_v15, %v14461_v33 }
 0x4f3   : > { %v8517_v60 = vsel %vm8005_vm7, %v7749_v18, %v8261_v61  ;;  %vm8036_vm8 = vcmp.ge.f32.partialorder %v7780_v40, 0.0  ;;  %v8292_v12 = vmul.f32 0.1, %v7780_v40  ;;  %v7476_v13 = vmul.f32 %v14203_v23, %v14468_v55 }
 0x4f4   : > { %v8751_v46 = vadd.f32 %v8750_v34, %v8517_v60  ;;  %vm8006_vm9 = vcmp.ge.f32.partialorder %v7750_v11, 0.0  ;;  %v8262_v26 = vmul.f32 0.1, %v7750_v11  ;;  %vm8039_vm10 = vcmp.ge.f32.partialorder %v7783_v28, 0.0  ;;  %v14595_v52 = vpop.f32.mrb[244].mxu1 }
 0x4f5   : > { %15978 = vst [vmem:[#allocation9_spill] sm:$0xff] %v14595_v52  ;;  %v8548_v45 = vsel %vm8036_vm8, %v7780_v40, %v8292_v12  ;;  %v8295_v2 = vmul.f32 0.1, %v7783_v28  ;;  %v7784_v62 = vadd.f32 %v14182_v6, %v7506_v43  ;;  %v7753_v19 = vadd.f32 %v14214_v14, %v7475_v4  ;;  %v14599_v44 = vpop.f32.mrb[245].mxu1  ;;  %v14601_v33 = vpop.f32.mrb[28].mxu0  ;;  %v10965_v40 = vld [vmem:[%s15825_s13 + $0x50] sm:$0xff]  }
 0x4f6   : > { %15979 = vst [vmem:[#allocation7_spill] sm:$0xff] %v14599_v44  ;;  %15980 = vst [vmem:[#allocation10_spill] sm:$0xff] %v14601_v33  ;;  %v8752_v18 = vrot.slane %v8751_v46, 4  ;;  %v8841_v17 = vadd.f32 %v8840_v1, %v8548_v45  ;;  %v8518_v61 = vsel %vm8006_vm9, %v7750_v11, %v8262_v26  ;;  %v7754_v55 = vadd.f32 %v14220_v7, %v7476_v13  ;;  %v14604_v34 = vpop.f32.mrb[246].mxu1  ;;  %v14606_v60 = vpop.f32.mrb[29].mxu0 }
 0x4f7   : > { %15981 = vst [vmem:[#allocation12_spill] sm:$0xff] %v14604_v34  ;;  %15982 = vst [vmem:[#allocation11_spill] sm:$0xff] %v14606_v60  ;;  %v8764_v43 = vadd.f32 %v8763_v48, %v8518_v61  ;;  %v8551_v4 = vsel %vm8039_vm10, %v7783_v28, %v8295_v2  ;;  %vm8040_vm12 = vcmp.ge.f32.partialorder %v7784_v62, 0.0  ;;  %v8296_v12 = vmul.f32 0.1, %v7784_v62  ;;  %v14612_v44 = vpop.f32.mrb[247].mxu1  ;;  %10322 = vmatprep.subr.bf16.mxu1 %v10965_v40 }
 0x4f8   : > { %v14614_v33 = vpop.f32.mrb[30].mxu0  ;;  %v8753_v1 = vadd.f32 %v8752_v18, %v8751_v46  ;;  %v8829_v11 = vadd.f32 %v8828_v49, %v8551_v4  ;;  %vm8009_vm11 = vcmp.ge.f32.partialorder %v7753_v19, 0.0  ;;  %v8265_v13 = vmul.f32 0.1, %v7753_v19  ;;  %v10966_v18 = vld [vmem:[%s15825_s13 + $0x10] sm:$0xff]  }
 0x4f9   : > { %v14616_v26 = vpop.f32.mrb[31].mxu0  ;;  %v8765_v45 = vrot.slane %v8764_v43, 4  ;;  %v8552_v60 = vsel %vm8040_vm12, %v7784_v62, %v8296_v12  ;;  %vm8010_vm13 = vcmp.ge.f32.partialorder %v7754_v55, 0.0  ;;  %v8266_v34 = vmul.f32 0.1, %v7754_v55  ;;  %10323 = vmatpush3.bf16.msra.mxu1 %v10966_v18 }
 0x4fa   : > { %15983 = vst [vmem:[#allocation14_spill] sm:$0xff] %v14616_v26  ;;  %v8754_v48 = vrot.slane %v8753_v1, 2  ;;  %v8830_v61 = vrot.slane %v8829_v11, 4  ;;  %v8842_v28 = vadd.f32 %v8841_v17, %v8552_v60  ;;  %v8521_v2 = vsel %vm8009_vm11, %v7753_v19, %v8265_v13 }
 0x4fb   : > { %v8766_v52 = vadd.f32 %v8765_v45, %v8764_v43  ;;  %v14618_v41 = vsel %vm8010_vm13, %v7754_v55, %v8266_v34  ;;  %v7509_v46 = vmul.f32 %v14171_v25, %v14470_v30  ;;  %v7479_v49 = vmul.f32 %v14185_v15, %v14472_v5 }
 0x4fc   : > { %v8755_v62 = vadd.f32 %v8754_v48, %v8753_v1  ;;  %v8831_v40 = vadd.f32 %v8830_v61, %v8829_v11  ;;  %v8843_v4 = vrot.slane %v8842_v28, 4  ;;  %v7510_v17 = vmul.f32 %v14179_v59, %v14474_v32  ;;  %v14629_v19 = vpop.f32.mrb[248].mxu1 }
 0x4fd   : > { %15984 = vst [vmem:[#allocation13_spill] sm:$0xff] %v14629_v19  ;;  %v8767_v55 = vrot.slane %v8766_v52, 2  ;;  %v7787_v34 = vadd.f32 %v14177_v58, %v7509_v46  ;;  %v7757_v30 = vadd.f32 %v14214_v14, %v7479_v49  ;;  %v7480_v5 = vmul.f32 %v14203_v23, %v14481_v37  ;;  %v14635_v60 = vpop.f32.mrb[249].mxu1  ;;  %v14637_v43 = vpop.f32.mrb[32].mxu0 }
 0x4fe   : > { %15985 = vst [vmem:[#allocation16_spill] sm:$0xff] %v14635_v60  ;;  %15986 = vst [vmem:[#allocation15_spill] sm:$0xff] %v14637_v43  ;;  %v8756_v12 = vrot.slane %v8755_v62, 1  ;;  %v8832_v1 = vrot.slane %v8831_v40, 2  ;;  %v8844_v11 = vadd.f32 %v8843_v4, %v8842_v28  ;;  %v7788_v32 = vadd.f32 %v14182_v6, %v7510_v17  ;;  %v14640_v13 = vpop.f32.mrb[250].mxu1  ;;  %v14642_v45 = vpop.f32.mrb[33].mxu0 }
 0x4ff   : > { %15987 = vst [vmem:[#allocation18_spill] sm:$0xff] %v14640_v13  ;;  %15988 = vst [vmem:[#allocation17_spill] sm:$0xff] %v14642_v45  ;;  %v8768_v48 = vadd.f32 %v8767_v55, %v8766_v52  ;;  %vm8043_vm14 = vcmp.ge.f32.partialorder %v7787_v34, 0.0  ;;  %v8299_v61 = vmul.f32 0.1, %v7787_v34  ;;  %vm8013_vm15 = vcmp.ge.f32.partialorder %v7757_v30, 0.0 }
 0x500   : > { %v14644_v46 = vpop.f32.mrb[251].mxu1  ;;  %v14646_v37 = vpop.f32.mrb[34].mxu0  ;;  %v8757_v49 = vadd.f32 %v8756_v12, %v8755_v62  ;;  %v8833_v43 = vadd.f32 %v8832_v1, %v8831_v40  ;;  %v8845_v18 = vrot.slane %v8844_v11, 2  ;;  %v8269_v60 = vmul.f32 0.1, %v7757_v30 }
 0x501   : > { %15989 = vst [vmem:[#allocation19_spill] sm:$0xff] %v14644_v46  ;;  %15990 = vst [vmem:[#allocation20_spill] sm:$0xff] %v14646_v37  ;;  %v14648_v19 = vpop.f32.mrb[35].mxu0  ;;  %v8769_v28 = vrot.slane %v8768_v48, 1  ;;  %vm9361_vm1 = vcmask 1041409   ;;  %v8555_v4 = vsel %vm8043_vm14, %v7787_v34, %v8299_v61  ;;  %vm8044_vm2 = vcmp.ge.f32.partialorder %v7788_v32, 0.0 }
 0x502   : > { %15991 = vst [vmem:[#allocation22_spill] sm:$0xff] %v14648_v19  ;;  %v8300_v17 = vmul.f32 0.1, %v7788_v32  ;;  %v9162_v45 = vmul.f32 0.015625, %v8757_v49  ;;  %v8834_v52 = vrot.slane %v8833_v43, 1  ;;  %v8846_v55 = vadd.f32 %v8845_v18, %v8844_v11 }
 0x503   : > { %v8525_v13 = vsel %vm8013_vm15, %v7757_v30, %v8269_v60  ;;  %v8770_v26 = vadd.f32 %v8769_v28, %v8768_v48  ;;  %v7758_v62 = vadd.f32 %v14220_v7, %v7480_v5  ;;  %v7513_v19 = vmul.f32 %v14171_v25, %v14483_v9 }
 0x504   : > { %v14651_v46 = vadd.f32 %v8525_v13, %v8521_v2  ;;  %v8556_v37 = vsel %vm8044_vm2, %v7788_v32, %v8300_v17  ;;  %v9194_v40 = vpack.c.bf16 %v9162_v45, %v9162_v45  ;;  %v8835_v12 = vadd.f32 %v8834_v52, %v8833_v43  ;;  %v14656_v34 = vpop.f32.mrb[252].mxu1 }
 0x505   : > { %v8847_v1 = vrot.slane %v8846_v55, 1  ;;  %v9163_v61 = vmul.f32 0.015625, %v8770_v26  ;;  %vm8014_vm3 = vcmp.ge.f32.partialorder %v7758_v62, 0.0  ;;  %v8270_v49 = vmul.f32 0.1, %v7758_v62  ;;  %v14660_v60 = vpop.f32.mrb[253].mxu1 }
 0x506   : > { %v7514_v30 = vmul.f32 %v14179_v59, %v14487_v35  ;;  %v14662_v2 = vpop.f32.mrb[36].mxu0  ;;  %v14664_v11 = vunpack.c.l.b16 %v9194_v40  ;;  %v9168_v5 = vmul.f32 0.015625, %v8835_v12  ;;  %v7791_v32 = vadd.f32 %v14177_v58, %v7513_v19  ;;  %v14667_v13 = vpop.f32.mrb[254].mxu1 }
 0x507   : > { %v8848_v43 = vadd.f32 %v8847_v1, %v8846_v55  ;;  %v14669_v9 = vpop.f32.mrb[37].mxu0  ;;  %v9195_v26 = vpack.c.bf16 %v9163_v61, %v9163_v61  ;;  %v8526_v45 = vsel %vm8014_vm3, %v7758_v62, %v8270_v49  ;;  %v7483_v35 = vmul.f32 %v14185_v15, %v14502_v42  ;;  %v14674_v18 = vpop.f32.mrb[255].mxu1 }
 0x508   : > { %v7792_v48 = vadd.f32 %v14182_v6, %v7514_v30  ;;  %v14676_v28 = vpop.f32.mrb[38].mxu0  ;;  %v9200_v17 = vpack.c.bf16 %v9168_v5, %v9168_v5  ;;  %v8810_v55 = vadd.f32 %v8526_v45, %v14618_v41  ;;  %vm8047_vm0 = vcmp.ge.f32.partialorder %v7791_v32, 0.0 }
 0x509   : > { %v9169_v52 = vmul.f32 0.015625, %v8848_v43  ;;  %v14679_v19 = vpop.f32.mrb[39].mxu0  ;;  %v14681_v40 = vunpack.c.l.b16 %v9195_v26  ;;  %v8303_v12 = vmul.f32 0.1, %v7791_v32  ;;  %v7761_v42 = vadd.f32 %v14214_v14, %v7483_v35 }
 0x50a   : > { %vm8048_vm4 = vcmp.ge.f32.partialorder %v7792_v48, 0.0  ;;  %v8304_v62 = vmul.f32 0.1, %v7792_v48  ;;  %v9335_v1 = vunpack.c.l.b16 %v9200_v17  ;;  %v7484_v49 = vmul.f32 %v14203_v23, %v14504_v47 }
 0x50b   : > { %15992 = vst [vmem:[#allocation21_spill] sm:$0xff] %v14681_v40  ;;  %v9201_v61 = vpack.c.bf16 %v9169_v52, %v9169_v52  ;;  %v8559_v30 = vsel %vm8047_vm0, %v7791_v32, %v8303_v12  ;;  %v7517_v41 = vmul.f32 %v14171_v25, %v14506_v50  ;;  %v7487_v43 = vmul.f32 %v14185_v15, %v14511_v53 }
 0x50c   : > { %v8560_v5 = vsel %vm8048_vm4, %v7792_v48, %v8304_v62  ;;  %v14692_v26 = vsel %vm9361_vm1, %v9335_v1, %v14463_v20  ;;  %v8875_v17 = vadd.f32 %v8559_v30, %v8555_v4  ;;  %v14696_v35 = vpop.f32.mrb[0].mxu1  ;;  %vm8017_vm5 = vcmp.ge.f32.partialorder %v7761_v42, 0.0 }
 0x50d   : > { %15993 = vst [vmem:[#allocation24_spill] sm:$0xff] %v14692_v26  ;;  %v14694_v45 = vunpack.c.l.b16 %v9201_v61  ;;  %v8888_v52 = vadd.f32 %v8560_v5, %v8556_v37  ;;  %v8273_v47 = vmul.f32 0.1, %v7761_v42  ;;  %v7762_v32 = vadd.f32 %v14220_v7, %v7484_v49  ;;  %v14700_v50 = vpop.f32.mrb[1].mxu1  ;;  %v14702_v12 = vpop.f32.mrb[40].mxu0 }
 0x50e   : > { %v7795_v48 = vadd.f32 %v14177_v58, %v7517_v41  ;;  %v7765_v53 = vadd.f32 %v14214_v14, %v7487_v43  ;;  %v7518_v20 = vmul.f32 %v14179_v59, %v14513_v51  ;;  %v7488_v37 = vmul.f32 %v14203_v23, %v14519_v39  ;;  %v14711_v62 = vpop.f32.mrb[2].mxu1  ;;  %v14713_v1 = vpop.f32.mrb[41].mxu0 }
 0x50f   : > { %15994 = vst [vmem:[#allocation23_spill] sm:$0xff] %v14694_v45  ;;  %v7521_v4 = vmul.f32 %v14171_v25, %v14521_v29  ;;  %15995 = vst [vmem:[#allocation25_spill] sm:$0xff] %v14711_v62  ;;  %v8529_v61 = vsel %vm8017_vm5, %v7761_v42, %v8273_v47  ;;  %vm8018_vm6 = vcmp.ge.f32.partialorder %v7762_v32, 0.0  ;;  %v8274_v49 = vmul.f32 0.1, %v7762_v32  ;;  %v14715_v30 = vpop.f32.mrb[3].mxu1 }
 0x510   : > { %15996 = vst [vmem:[#allocation26_spill] sm:$0xff] %v14713_v1  ;;  %vm8051_vm7 = vcmp.ge.f32.partialorder %v7795_v48, 0.0  ;;  %15997 = vst [vmem:[#allocation4_spill] sm:$0xff] %v14715_v30  ;;  %v14717_v5 = vpop.f32.mrb[42].mxu0  ;;  %v8798_v51 = vadd.f32 %v14651_v46, %v8529_v61  ;;  %v8307_v41 = vmul.f32 0.1, %v7795_v48  ;;  %v7796_v45 = vadd.f32 %v14182_v6, %v7518_v20 }
 0x511   : > { %15998 = vst [vmem:[#allocation3_spill] sm:$0xff] %v14717_v5  ;;  %vm8021_vm8 = vcmp.ge.f32.partialorder %v7765_v53, 0.0  ;;  %v8277_v39 = vmul.f32 0.1, %v7765_v53  ;;  %v14720_v43 = vpop.f32.mrb[43].mxu0  ;;  %v8530_v29 = vsel %vm8018_vm6, %v7762_v32, %v8274_v49  ;;  %v7766_v26 = vadd.f32 %v14220_v7, %v7488_v37 }
 0x512   : > { %v7799_v42 = vadd.f32 %v14177_v58, %v7521_v4  ;;  %v8811_v47 = vadd.f32 %v8810_v55, %v8530_v29  ;;  %v8563_v40 = vsel %vm8051_vm7, %v7795_v48, %v8307_v41  ;;  %v7522_v5 = vmul.f32 %v14179_v59, %v14524_v10 }
 0x513   : > { %v8533_v1 = vsel %vm8021_vm8, %v7765_v53, %v8277_v39  ;;  %v8876_v30 = vadd.f32 %v8875_v17, %v8563_v40  ;;  %vm8052_vm9 = vcmp.ge.f32.partialorder %v7796_v45, 0.0  ;;  %v8308_v61 = vmul.f32 0.1, %v7796_v45 }
 0x514   : > { %v8799_v46 = vadd.f32 %v8798_v51, %v8533_v1  ;;  %vm8022_vm10 = vcmp.ge.f32.partialorder %v7766_v26, 0.0  ;;  %v8278_v62 = vmul.f32 0.1, %v7766_v26  ;;  %vm8055_vm12 = vcmp.ge.f32.partialorder %v7799_v42, 0.0  ;;  %v14732_v48 = vpop.f32.mrb[4].mxu1 }
 0x515   : > { %v8311_v32 = vmul.f32 0.1, %v7799_v42  ;;  %v8564_v49 = vsel %vm8052_vm9, %v7796_v45, %v8308_v61  ;;  %v7800_v20 = vadd.f32 %v14182_v6, %v7522_v5  ;;  %v7491_v37 = vmul.f32 %v14185_v15, %v14527_v0  ;;  %v14734_v10 = vpop.f32.mrb[44].mxu0  ;;  %v14738_v1 = vpop.f32.mrb[5].mxu1 }
 0x516   : > { %v7492_v55 = vmul.f32 %v14203_v23, %v14531_v56  ;;  %v8889_v40 = vadd.f32 %v8888_v52, %v8564_v49  ;;  %v8534_v17 = vsel %vm8022_vm10, %v7766_v26, %v8278_v62  ;;  %v7525_v4 = vmul.f32 %v14171_v25, %v14533_v22  ;;  %v14740_v45 = vpop.f32.mrb[45].mxu0  ;;  %v14742_v41 = vpop.f32.mrb[6].mxu1 }
 0x517   : > { %v8567_v53 = vsel %vm8055_vm12, %v7799_v42, %v8311_v32  ;;  %v8812_v5 = vadd.f32 %v8811_v47, %v8534_v17  ;;  %vm8056_vm11 = vcmp.ge.f32.partialorder %v7800_v20, 0.0  ;;  %v8312_v0 = vmul.f32 0.1, %v7800_v20  ;;  %v14744_v56 = vpop.f32.mrb[46].mxu0  ;;  %v14751_v62 = vpop.f32.mrb[7].mxu1 }
 0x518   : > { %v8877_v51 = vadd.f32 %v8876_v30, %v8567_v53  ;;  %15999 = vst [vmem:[#allocation27_spill] sm:$0xff] %v14744_v56  ;;  %v7769_v39 = vadd.f32 %v14214_v14, %v7491_v37  ;;  %v7770_v26 = vadd.f32 %v14220_v7, %v7492_v55  ;;  %v7803_v52 = vadd.f32 %v14177_v58, %v7525_v4  ;;  %v14753_v29 = vpop.f32.mrb[47].mxu0 }
 0x519   : > { %v7495_v22 = vmul.f32 %v14185_v15, %v14537_v8  ;;  %16000 = vst [vmem:[#allocation5_spill] sm:$0xff] %v14753_v29  ;;  %v8568_v30 = vsel %vm8056_vm11, %v7800_v20, %v8312_v0  ;;  %v7526_v42 = vmul.f32 %v14179_v59, %v14539_v16  ;;  %v7496_v47 = vmul.f32 %v14203_v23, %v14548_v24 }
 0x51a   : > { %v7529_v61 = vmul.f32 %v14171_v25, %v14550_v27  ;;  %v8890_v32 = vadd.f32 %v8889_v40, %v8568_v30  ;;  %vm8025_vm13 = vcmp.ge.f32.partialorder %v7769_v39, 0.0  ;;  %v8281_v49 = vmul.f32 0.1, %v7769_v39 }
 0x51b   : > { %vm8026_vm14 = vcmp.ge.f32.partialorder %v7770_v26, 0.0  ;;  %v8282_v37 = vmul.f32 0.1, %v7770_v26  ;;  %vm8059_vm15 = vcmp.ge.f32.partialorder %v7803_v52, 0.0  ;;  %v8315_v8 = vmul.f32 0.1, %v7803_v52 }
 0x51c   : > { %v7773_v55 = vadd.f32 %v14214_v14, %v7495_v22  ;;  %v8537_v17 = vsel %vm8025_vm13, %v7769_v39, %v8281_v49  ;;  %v7804_v20 = vadd.f32 %v14182_v6, %v7526_v42  ;;  %v7774_v16 = vadd.f32 %v14220_v7, %v7496_v47  ;;  %v14765_v24 = vpop.f32.mrb[8].mxu1 }
 0x51d   : > { %v7807_v53 = vadd.f32 %v14177_v58, %v7529_v61  ;;  %v8800_v4 = vadd.f32 %v8799_v46, %v8537_v17  ;;  %v8538_v27 = vsel %vm8026_vm14, %v7770_v26, %v8282_v37  ;;  %v8571_v40 = vsel %vm8059_vm15, %v7803_v52, %v8315_v8  ;;  %v14767_v0 = vpop.f32.mrb[9].mxu1  ;;  %v14769_v30 = vpop.f32.mrb[48].mxu0 }
 0x51e   : > { %vm8029_vm2 = vcmp.ge.f32.partialorder %v7773_v55, 0.0  ;;  %v8813_v29 = vadd.f32 %v8812_v5, %v8538_v27  ;;  %v8878_v56 = vadd.f32 %v8877_v51, %v8571_v40  ;;  %v8285_v22 = vmul.f32 0.1, %v7773_v55  ;;  %v14771_v39 = vpop.f32.mrb[10].mxu1  ;;  %v14773_v42 = vpop.f32.mrb[49].mxu0 }
 0x51f   : > { %vm8060_vm3 = vcmp.ge.f32.partialorder %v7804_v20, 0.0  ;;  %16001 = vst [vmem:[#allocation29_spill] sm:$0xff] %v14771_v39  ;;  %16002 = vst [vmem:[#allocation28_spill] sm:$0xff] %v14773_v42  ;;  %v8316_v47 = vmul.f32 0.1, %v7804_v20  ;;  %vm8030_vm0 = vcmp.ge.f32.partialorder %v7774_v16, 0.0  ;;  %v7530_v52 = vmul.f32 %v14179_v59, %v14557_v57 }
 0x520   : > { %v8286_v61 = vmul.f32 0.1, %v7774_v16  ;;  %vm8063_vm4 = vcmp.ge.f32.partialorder %v7807_v53, 0.0  ;;  %v8541_v46 = vsel %vm8029_vm2, %v7773_v55, %v8285_v22  ;;  %v8319_v26 = vmul.f32 0.1, %v7807_v53  ;;  %v14779_v5 = vpop.f32.mrb[11].mxu1 }
 0x521   : > { %v7499_v49 = vmul.f32 %v14185_v15, %v14563_v3  ;;  %16003 = vst [vmem:[#allocation30_spill] sm:$0xff] %v14779_v5  ;;  %v14781_v51 = vpop.f32.mrb[50].mxu0  ;;  %v8801_v37 = vadd.f32 %v8800_v4, %v8541_v46  ;;  %v8572_v8 = vsel %vm8060_vm3, %v7804_v20, %v8316_v47  ;;  %v7500_v27 = vmul.f32 %v14203_v23, %v14565_v21 }
 0x522   : > { %v8542_v17 = vsel %vm8030_vm0, %v7774_v16, %v8286_v61  ;;  %v14785_v40 = vpop.f32.mrb[51].mxu0  ;;  %v8891_v55 = vadd.f32 %v8890_v32, %v8572_v8  ;;  %v8575_v42 = vsel %vm8063_vm4, %v7807_v53, %v8319_v26  ;;  %v7808_v57 = vadd.f32 %v14182_v6, %v7530_v52 }
 0x523   : > { %v8814_v22 = vadd.f32 %v8813_v29, %v8542_v17  ;;  %v8879_v39 = vadd.f32 %v8878_v56, %v8575_v42  ;;  %v7777_v3 = vadd.f32 %v14214_v14, %v7499_v49  ;;  %v7778_v5 = vadd.f32 %v14220_v7, %v7500_v27 }
 0x524   : > { %v7533_v4 = vmul.f32 %v14171_v25, %v14567_v31  ;;  %vm8064_vm5 = vcmp.ge.f32.partialorder %v7808_v57, 0.0  ;;  %v8320_v20 = vmul.f32 0.1, %v7808_v57  ;;  %v7503_v21 = vmul.f32 %v14185_v15, %v14569_v36  ;;  %v14796_v29 = vpop.f32.mrb[12].mxu1 }
 0x525   : > { %v7534_v32 = vmul.f32 %v14179_v59, %v14571_v63  ;;  %vm8033_vm6 = vcmp.ge.f32.partialorder %v7777_v3, 0.0  ;;  %v8289_v16 = vmul.f32 0.1, %v7777_v3  ;;  %vm8034_vm7 = vcmp.ge.f32.partialorder %v7778_v5, 0.0  ;;  %v14801_v61 = vpop.f32.mrb[13].mxu1  ;;  %v14803_v46 = vpop.f32.mrb[52].mxu0 }
 0x526   : > { %v8290_v56 = vmul.f32 0.1, %v7778_v5  ;;  %v8576_v53 = vsel %vm8064_vm5, %v7808_v57, %v8320_v20  ;;  %v7811_v42 = vadd.f32 %v14177_v58, %v7533_v4  ;;  %v7781_v47 = vadd.f32 %v14214_v14, %v7503_v21  ;;  %16004 = vst [vmem:[#allocation31_spill] sm:$0xff] %v14803_v46  ;;  %v14807_v49 = vpop.f32.mrb[14].mxu1  ;;  %v14809_v8 = vpop.f32.mrb[53].mxu0 }
 0x527   : > { %v7812_v31 = vadd.f32 %v14182_v6, %v7534_v32  ;;  %v8892_v36 = vadd.f32 %v8891_v55, %v8576_v53  ;;  %v8545_v26 = vsel %vm8033_vm6, %v7777_v3, %v8289_v16  ;;  %v7504_v52 = vmul.f32 %v14203_v23, %v14576_v54  ;;  %16005 = vst [vmem:[#allocation32_spill] sm:$0xff] %v14807_v49  ;;  %v14811_v4 = vpop.f32.mrb[15].mxu1  ;;  %v14813_v20 = vpop.f32.mrb[54].mxu0  ;;  %v16009_v32 = vld [vmem:[#allocation6_spill] sm:$0xff] }
 0x528   : > { %v8546_v63 = vsel %vm8034_vm7, %v7778_v5, %v8290_v56  ;;  %16006 = vst [vmem:[#allocation33_spill] sm:$0xff] %v14809_v8  ;;  %v8802_v17 = vadd.f32 %v8801_v37, %v8545_v26  ;;  %vm8067_vm8 = vcmp.ge.f32.partialorder %v7811_v42, 0.0  ;;  %v8323_v57 = vmul.f32 0.1, %v7811_v42  ;;  %16007 = vst [vmem:[#allocation34_spill] sm:$0xff] %v14811_v4  ;;  %v16011_v26 = vld [vmem:[#allocation9_spill] sm:$0xff] }
 0x529   : > { %v8815_v27 = vadd.f32 %v8814_v22, %v8546_v63  ;;  %16008 = vst [vmem:[#allocation35_spill] sm:$0xff] %v14813_v20  ;;  %vm8037_vm9 = vcmp.ge.f32.partialorder %v7781_v47, 0.0  ;;  %v8293_v21 = vmul.f32 0.1, %v7781_v47  ;;  %vm8068_vm10 = vcmp.ge.f32.partialorder %v7812_v31, 0.0  ;;  %v14820_v22 = vpop.f32.mrb[55].mxu0 }
 0x52a   : > { %v8324_v55 = vmul.f32 0.1, %v7812_v31  ;;  %v8579_v5 = vsel %vm8067_vm8, %v7811_v42, %v8323_v57  ;;  %v7782_v3 = vadd.f32 %v14220_v7, %v7504_v52  ;;  %v7537_v54 = vmul.f32 %v14171_v25, %v14578_v38  ;;  %16010 = vst [vmem:[#allocation6_spill] sm:$0xff] %v14820_v22  ;;  %v16013_v8 = vld [vmem:[#allocation7_spill] sm:$0xff] }
 0x52b   : > { %v7538_v37 = vmul.f32 %v14179_v59, %v16009_v32  ;;  %v8880_v16 = vadd.f32 %v8879_v39, %v8579_v5  ;;  %v8549_v56 = vsel %vm8037_vm9, %v7781_v47, %v8293_v21  ;;  %v7507_v63 = vmul.f32 %v14185_v15, %v16011_v26 }
 0x52c   : > { %v8580_v53 = vsel %vm8068_vm10, %v7812_v31, %v8324_v55  ;;  %v8803_v20 = vadd.f32 %v8802_v17, %v8549_v56  ;;  %vm8038_vm12 = vcmp.ge.f32.partialorder %v7782_v3, 0.0  ;;  %v8294_v42 = vmul.f32 0.1, %v7782_v3  ;;  %v14824_v57 = vpop.f32.mrb[16].mxu1  ;;  %v16016_v55 = vld [vmem:[#allocation10_spill] sm:$0xff] }
 0x52d   : > { %v8893_v4 = vadd.f32 %v8892_v36, %v8580_v53  ;;  %16012 = vst [vmem:[#allocation9_spill] sm:$0xff] %v14824_v57  ;;  %v7815_v52 = vadd.f32 %v14177_v58, %v7537_v54  ;;  %v7816_v38 = vadd.f32 %v14182_v6, %v7538_v37  ;;  %v7785_v32 = vadd.f32 %v14214_v14, %v7507_v63  ;;  %v14831_v47 = vpop.f32.mrb[17].mxu1  ;;  %v14833_v31 = vpop.f32.mrb[56].mxu0  ;;  %v10967_v36 = vld [vmem:[%s15825_s13 + $0x58] sm:$0xff]   ;;  %v16017_v54 = vld [vmem:[#allocation12_spill] sm:$0xff] }
 0x52e   : > { %v7508_v39 = vmul.f32 %v14203_v23, %v16013_v8  ;;  %16014 = vst [vmem:[#allocation7_spill] sm:$0xff] %v14831_v47  ;;  %16015 = vst [vmem:[#allocation36_spill] sm:$0xff] %v14833_v31  ;;  %v8804_v17 = vrot.slane %v8803_v20, 4  ;;  %v8550_v21 = vsel %vm8038_vm12, %v7782_v3, %v8294_v42  ;;  %v7541_v5 = vmul.f32 %v14171_v25, %v16016_v55  ;;  %v14842_v56 = vpop.f32.mrb[18].mxu1  ;;  %v14844_v53 = vpop.f32.mrb[57].mxu0 }
 0x52f   : > { %v7511_v37 = vmul.f32 %v14185_v15, %v16017_v54  ;;  %16018 = vst [vmem:[#allocation10_spill] sm:$0xff] %v14842_v56  ;;  %16019 = vst [vmem:[#allocation12_spill] sm:$0xff] %v14844_v53  ;;  %v8816_v8 = vadd.f32 %v8815_v27, %v8550_v21  ;;  %vm8071_vm11 = vcmp.ge.f32.partialorder %v7815_v52, 0.0  ;;  %v8327_v26 = vmul.f32 0.1, %v7815_v52  ;;  %10324 = vmatprep.subr.bf16.mxu1 %v10967_v36  ;;  %v14846_v63 = vpop.f32.mrb[19].mxu1 }
 0x530   : > { %vm8072_vm13 = vcmp.ge.f32.partialorder %v7816_v38, 0.0  ;;  %16020 = vst [vmem:[#allocation37_spill] sm:$0xff] %v14846_v63  ;;  %v14848_v31 = vpop.f32.mrb[58].mxu0  ;;  %v8805_v3 = vadd.f32 %v8804_v17, %v8803_v20  ;;  %v8328_v42 = vmul.f32 0.1, %v7816_v38  ;;  %vm8041_vm14 = vcmp.ge.f32.partialorder %v7785_v32, 0.0 }
 0x531   : > { %16021 = vst [vmem:[#allocation38_spill] sm:$0xff] %v14848_v31  ;;  %v8297_v55 = vmul.f32 0.1, %v7785_v32  ;;  %v14850_v47 = vpop.f32.mrb[59].mxu0  ;;  %v8817_v54 = vrot.slane %v8816_v8, 4  ;;  %v8583_v57 = vsel %vm8071_vm11, %v7815_v52, %v8327_v26  ;;  %v7786_v56 = vadd.f32 %v14220_v7, %v7508_v39  ;;  %v10968_v20 = vld [vmem:[%s15825_s13 + $0x18] sm:$0xff]  }
 0x532   : > { %16022 = vst [vmem:[#allocation39_spill] sm:$0xff] %v14850_v47  ;;  %v7819_v27 = vadd.f32 %v14177_v58, %v7541_v5  ;;  %v8806_v21 = vrot.slane %v8805_v3, 2  ;;  %v8881_v53 = vadd.f32 %v8880_v16, %v8583_v57  ;;  %v8584_v22 = vsel %vm8072_vm13, %v7816_v38, %v8328_v42  ;;  %10325 = vmatpush3.bf16.msra.mxu1 %v10968_v20 }
 0x533   : > { %v8553_v36 = vsel %vm8041_vm14, %v7785_v32, %v8297_v55  ;;  %v8818_v49 = vadd.f32 %v8817_v54, %v8816_v8  ;;  %v8894_v63 = vadd.f32 %v8893_v4, %v8584_v22  ;;  %vm8042_vm15 = vcmp.ge.f32.partialorder %v7786_v56, 0.0  ;;  %v16024_v8 = vld [vmem:[#allocation11_spill] sm:$0xff] }
 0x534   : > { %v8298_v31 = vmul.f32 0.1, %v7786_v56  ;;  %v8807_v17 = vadd.f32 %v8806_v21, %v8805_v3  ;;  %v8882_v47 = vrot.slane %v8881_v53, 4  ;;  %vm8075_vm2 = vcmp.ge.f32.partialorder %v7819_v27, 0.0  ;;  %v14857_v26 = vpop.f32.mrb[20].mxu1 }
 0x535   : > { %v8331_v52 = vmul.f32 0.1, %v7819_v27  ;;  %v8819_v39 = vrot.slane %v8818_v49, 2  ;;  %v8895_v5 = vrot.slane %v8894_v63, 4  ;;  %v7789_v16 = vadd.f32 %v14214_v14, %v7511_v37  ;;  %v14862_v4 = vpop.f32.mrb[21].mxu1  ;;  %v14864_v22 = vpop.f32.mrb[60].mxu0 }
 0x536   : > { %v14859_v46 = vsel %vm8042_vm15, %v7786_v56, %v8298_v31  ;;  %16023 = vst [vmem:[#allocation40_spill] sm:$0xff] %v14864_v22  ;;  %v8808_v57 = vrot.slane %v8807_v17, 1  ;;  %v8883_v38 = vadd.f32 %v8882_v47, %v8881_v53  ;;  %v7542_v3 = vmul.f32 %v14179_v59, %v16024_v8  ;;  %v14868_v42 = vpop.f32.mrb[22].mxu1  ;;  %v14870_v55 = vpop.f32.mrb[61].mxu0 }
 0x537   : > { %v8587_v32 = vsel %vm8075_vm2, %v7819_v27, %v8331_v52  ;;  %16025 = vst [vmem:[#allocation11_spill] sm:$0xff] %v14868_v42  ;;  %16026 = vst [vmem:[#allocation41_spill] sm:$0xff] %v14870_v55  ;;  %v8820_v54 = vadd.f32 %v8819_v39, %v8818_v49  ;;  %v8896_v31 = vadd.f32 %v8895_v5, %v8894_v63  ;;  %vm8045_vm3 = vcmp.ge.f32.partialorder %v7789_v16, 0.0  ;;  %v14872_v37 = vpop.f32.mrb[23].mxu1  ;;  %v14874_v21 = vpop.f32.mrb[62].mxu0  ;;  %v16030_v42 = vld [vmem:[#allocation14_spill] sm:$0xff] }
 0x538   : > { %v8301_v56 = vmul.f32 0.1, %v7789_v16  ;;  %16027 = vst [vmem:[#allocation42_spill] sm:$0xff] %v14872_v37  ;;  %16028 = vst [vmem:[#allocation43_spill] sm:$0xff] %v14874_v21  ;;  %v8809_v20 = vadd.f32 %v8808_v57, %v8807_v17  ;;  %v8884_v22 = vrot.slane %v8883_v38, 2  ;;  %v7820_v47 = vadd.f32 %v14182_v6, %v7542_v3  ;;  %v14879_v27 = vpop.f32.mrb[63].mxu0 }
 0x539   : > { %v7512_v53 = vmul.f32 %v14203_v23, %v14612_v44  ;;  %16029 = vst [vmem:[#allocation44_spill] sm:$0xff] %v14879_v27  ;;  %v8821_v52 = vrot.slane %v8820_v54, 1  ;;  %v8897_v8 = vrot.slane %v8896_v31, 2  ;;  %v7545_v49 = vmul.f32 %v14171_v25, %v14614_v33 }
 0x53a   : > { %v8557_v55 = vsel %vm8045_vm3, %v7789_v16, %v8301_v56  ;;  %v9166_v63 = vmul.f32 0.015625, %v8809_v20  ;;  %v8885_v39 = vadd.f32 %v8884_v22, %v8883_v38  ;;  %vm8076_vm0 = vcmp.ge.f32.partialorder %v7820_v47, 0.0 }
 0x53b   : > { %v14883_v5 = vadd.f32 %v8557_v55, %v8553_v36  ;;  %v8822_v17 = vadd.f32 %v8821_v52, %v8820_v54  ;;  %v8898_v57 = vadd.f32 %v8897_v8, %v8896_v31  ;;  %v8332_v21 = vmul.f32 0.1, %v7820_v47 }
 0x53c   : > { %v7790_v3 = vadd.f32 %v14220_v7, %v7512_v53  ;;  %v9198_v37 = vpack.c.bf16 %v9166_v63, %v9166_v63  ;;  %v8886_v44 = vrot.slane %v8885_v39, 1  ;;  %v7823_v27 = vadd.f32 %v14177_v58, %v7545_v49  ;;  %v14889_v56 = vpop.f32.mrb[24].mxu1 }
 0x53d   : > { %v7546_v16 = vmul.f32 %v14179_v59, %v16030_v42  ;;  %v9167_v33 = vmul.f32 0.015625, %v8822_v17  ;;  %v8899_v20 = vrot.slane %v8898_v57, 1  ;;  %v8588_v22 = vsel %vm8076_vm0, %v7820_v47, %v8332_v21  ;;  %v14891_v36 = vpop.f32.mrb[25].mxu1  ;;  %v14893_v38 = vpop.f32.mrb[64].mxu0 }
 0x53e   : > { %vm8046_vm4 = vcmp.ge.f32.partialorder %v7790_v3, 0.0  ;;  %16031 = vst [vmem:[#allocation14_spill] sm:$0xff] %v14891_v36  ;;  %16032 = vst [vmem:[#allocation45_spill] sm:$0xff] %v14893_v38  ;;  %v9333_v55 = vunpack.c.l.b16 %v9198_v37  ;;  %v8887_v54 = vadd.f32 %v8886_v44, %v8885_v39  ;;  %v8302_v31 = vmul.f32 0.1, %v7790_v3  ;;  %v14895_v53 = vpop.f32.mrb[26].mxu1 }
 0x53f   : > { %vm8079_vm5 = vcmp.ge.f32.partialorder %v7823_v27, 0.0  ;;  %16033 = vst [vmem:[#allocation46_spill] sm:$0xff] %v14895_v53  ;;  %v14897_v52 = vpop.f32.mrb[65].mxu0  ;;  %v9199_v8 = vpack.c.bf16 %v9167_v33, %v9167_v33  ;;  %v8900_v42 = vadd.f32 %v8899_v20, %v8898_v57  ;;  %v8335_v49 = vmul.f32 0.1, %v7823_v27  ;;  %v14900_v17 = vpop.f32.mrb[27].mxu1 }
 0x540   : > { %16034 = vst [vmem:[#allocation47_spill] sm:$0xff] %v14897_v52  ;;  %v7824_v63 = vadd.f32 %v14182_v6, %v7546_v16  ;;  %16035 = vst [vmem:[#allocation48_spill] sm:$0xff] %v14900_v17  ;;  %v14902_v21 = vpop.f32.mrb[66].mxu0  ;;  %v14906_v47 = vsel %vm9361_vm1, %v9333_v55, %v14664_v11  ;;  %v9172_v37 = vmul.f32 0.015625, %v8887_v54  ;;  %v8558_v39 = vsel %vm8046_vm4, %v7790_v3, %v8302_v31  ;;  %v16038_v44 = vld [vmem:[#allocation13_spill] sm:$0xff]  ;;  %v16041_v3 = vld [vmem:[#allocation16_spill] sm:$0xff] }
 0x541   : > { %16036 = vst [vmem:[#allocation49_spill] sm:$0xff] %v14902_v21  ;;  %16037 = vst [vmem:[#allocation50_spill] sm:$0xff] %v14906_v47  ;;  %v7515_v53 = vmul.f32 %v14185_v15, %v16038_v44  ;;  %v14911_v52 = vpop.f32.mrb[67].mxu0  ;;  %v14913_v57 = vunpack.c.l.b16 %v9199_v8  ;;  %v9173_v33 = vmul.f32 0.015625, %v8900_v42  ;;  %v8862_v16 = vadd.f32 %v8558_v39, %v14859_v46  ;;  %v16042_v44 = vld [vmem:[#allocation15_spill] sm:$0xff] }
 0x542   : > { %16039 = vst [vmem:[#allocation13_spill] sm:$0xff] %v14911_v52  ;;  %v8591_v20 = vsel %vm8079_vm5, %v7823_v27, %v8335_v49  ;;  %v9204_v21 = vpack.c.bf16 %v9172_v37, %v9172_v37  ;;  %vm8080_vm6 = vcmp.ge.f32.partialorder %v7824_v63, 0.0  ;;  %v8336_v11 = vmul.f32 0.1, %v7824_v63  ;;  %v16045_v27 = vld [vmem:[#allocation17_spill] sm:$0xff] }
 0x543   : > { %16040 = vst [vmem:[#allocation51_spill] sm:$0xff] %v14913_v57  ;;  %v8927_v17 = vadd.f32 %v8591_v20, %v8587_v32  ;;  %v9205_v55 = vpack.c.bf16 %v9173_v33, %v9173_v33  ;;  %v7793_v54 = vadd.f32 %v14214_v14, %v7515_v53  ;;  %v7516_v31 = vmul.f32 %v14203_v23, %v16041_v3  ;;  %v16044_v57 = vld [vmem:[#allocation18_spill] sm:$0xff] }
 0x544   : > { %v7549_v47 = vmul.f32 %v14171_v25, %v16042_v44  ;;  %v14922_v8 = vunpack.c.l.b16 %v9204_v21  ;;  %v8592_v42 = vsel %vm8080_vm6, %v7824_v63, %v8336_v11  ;;  %v7519_v46 = vmul.f32 %v14185_v15, %v16044_v57  ;;  %v14928_v49 = vpop.f32.mrb[28].mxu1 }
 0x545   : > { %v7550_v32 = vmul.f32 %v14179_v59, %v16045_v27  ;;  %16046 = vst [vmem:[#allocation15_spill] sm:$0xff] %v14928_v49  ;;  %v14930_v37 = vunpack.c.l.b16 %v9205_v55  ;;  %v8940_v53 = vadd.f32 %v8592_v42, %v8588_v22  ;;  %vm8049_vm7 = vcmp.ge.f32.partialorder %v7793_v54, 0.0  ;;  %v14932_v33 = vpop.f32.mrb[29].mxu1  ;;  %v14934_v20 = vpop.f32.mrb[68].mxu0  ;;  %v16052_v22 = vld [vmem:[#allocation19_spill] sm:$0xff]  ;;  %v16053_v27 = vld [vmem:[#allocation20_spill] sm:$0xff] }
 0x546   : > { %16043 = vst [vmem:[#allocation16_spill] sm:$0xff] %v14922_v8  ;;  %v8305_v39 = vmul.f32 0.1, %v7793_v54  ;;  %16048 = vst [vmem:[#allocation17_spill] sm:$0xff] %v14932_v33  ;;  %v7794_v21 = vadd.f32 %v14220_v7, %v7516_v31  ;;  %v7827_v63 = vadd.f32 %v14177_v58, %v7549_v47  ;;  %v7797_v57 = vadd.f32 %v14214_v14, %v7519_v46  ;;  %v14940_v3 = vpop.f32.mrb[30].mxu1  ;;  %v14942_v44 = vpop.f32.mrb[69].mxu0 }
 0x547   : > { %16047 = vst [vmem:[#allocation18_spill] sm:$0xff] %v14930_v37  ;;  %16049 = vst [vmem:[#allocation52_spill] sm:$0xff] %v14934_v20  ;;  %v7828_v11 = vadd.f32 %v14182_v6, %v7550_v32  ;;  %v7520_v42 = vmul.f32 %v14203_v23, %v16052_v22  ;;  %v7553_v37 = vmul.f32 %v14171_v25, %v16053_v27  ;;  %v16054_v8 = vld [vmem:[#allocation22_spill] sm:$0xff]  ;;  %v14950_v20 = vpop.f32.mrb[31].mxu1  ;;  %v14952_v47 = vpop.f32.mrb[70].mxu0 }
 0x548   : > { %16050 = vst [vmem:[#allocation53_spill] sm:$0xff] %v14940_v3  ;;  %16051 = vst [vmem:[#allocation54_spill] sm:$0xff] %v14942_v44  ;;  %v8561_v55 = vsel %vm8049_vm7, %v7793_v54, %v8305_v39  ;;  %v7554_v31 = vmul.f32 %v14179_v59, %v16054_v8  ;;  %vm8050_vm8 = vcmp.ge.f32.partialorder %v7794_v21, 0.0  ;;  %v8306_v32 = vmul.f32 0.1, %v7794_v21  ;;  %v14955_v44 = vpop.f32.mrb[71].mxu0 }
 0x549   : > { %16055 = vst [vmem:[#allocation19_spill] sm:$0xff] %v14950_v20  ;;  %16056 = vst [vmem:[#allocation20_spill] sm:$0xff] %v14952_v47  ;;  %v8850_v46 = vadd.f32 %v14883_v5, %v8561_v55  ;;  %vm8083_vm9 = vcmp.ge.f32.partialorder %v7827_v63, 0.0  ;;  %v8339_v54 = vmul.f32 0.1, %v7827_v63  ;;  %vm8053_vm10 = vcmp.ge.f32.partialorder %v7797_v57, 0.0 }
 0x54a   : > { %16057 = vst [vmem:[#allocation22_spill] sm:$0xff] %v14955_v44  ;;  %v8309_v39 = vmul.f32 0.1, %v7797_v57  ;;  %vm8084_vm12 = vcmp.ge.f32.partialorder %v7828_v11, 0.0  ;;  %v8562_v22 = vsel %vm8050_vm8, %v7794_v21, %v8306_v32  ;;  %v8340_v27 = vmul.f32 0.1, %v7828_v11 }
 0x54b   : > { %v7798_v3 = vadd.f32 %v14220_v7, %v7520_v42  ;;  %v7831_v8 = vadd.f32 %v14177_v58, %v7553_v37  ;;  %v8863_v20 = vadd.f32 %v8862_v16, %v8562_v22  ;;  %v8595_v33 = vsel %vm8083_vm9, %v7827_v63, %v8339_v54 }
 0x54c   : > { %v8565_v47 = vsel %vm8053_vm10, %v7797_v57, %v8309_v39  ;;  %v7832_v5 = vadd.f32 %v14182_v6, %v7554_v31  ;;  %v8928_v55 = vadd.f32 %v8927_v17, %v8595_v33  ;;  %v8596_v52 = vsel %vm8084_vm12, %v7828_v11, %v8340_v27  ;;  %v14960_v44 = vpop.f32.mrb[32].mxu1 }
 0x54d   : > { %v8851_v49 = vadd.f32 %v8850_v46, %v8565_v47  ;;  %vm8054_vm11 = vcmp.ge.f32.partialorder %v7798_v3, 0.0  ;;  %v8941_v38 = vadd.f32 %v8940_v53, %v8596_v52  ;;  %v8310_v36 = vmul.f32 0.1, %v7798_v3  ;;  %v14962_v32 = vpop.f32.mrb[33].mxu1  ;;  %v14968_v17 = vpop.f32.mrb[72].mxu0 }
 0x54e   : > { %vm8087_vm13 = vcmp.ge.f32.partialorder %v7831_v8, 0.0  ;;  %v8343_v21 = vmul.f32 0.1, %v7831_v8  ;;  %vm8088_vm14 = vcmp.ge.f32.partialorder %v7832_v5, 0.0  ;;  %v8344_v42 = vmul.f32 0.1, %v7832_v5 }
 0x54f   : > { %v7523_v16 = vmul.f32 %v14185_v15, %v14656_v34  ;;  %v7524_v37 = vmul.f32 %v14203_v23, %v14660_v60  ;;  %v14970_v33 = vpop.f32.mrb[34].mxu1  ;;  %v8566_v63 = vsel %vm8054_vm11, %v7798_v3, %v8310_v36  ;;  %v7557_v52 = vmul.f32 %v14171_v25, %v14662_v2  ;;  %v14976_v11 = vpop.f32.mrb[73].mxu0 }
 0x550   : > { %v8599_v57 = vsel %vm8087_vm13, %v7831_v8, %v8343_v21  ;;  %v7527_v53 = vmul.f32 %v14185_v15, %v14667_v13  ;;  %v14978_v31 = vpop.f32.mrb[35].mxu1  ;;  %v8864_v34 = vadd.f32 %v8863_v20, %v8566_v63  ;;  %v8600_v46 = vsel %vm8088_vm14, %v7832_v5, %v8344_v42  ;;  %v14981_v54 = vpop.f32.mrb[74].mxu0 }
 0x551   : > { %v8929_v47 = vadd.f32 %v8928_v55, %v8599_v57  ;;  %v7801_v60 = vadd.f32 %v14214_v14, %v7523_v16  ;;  %v8942_v39 = vadd.f32 %v8941_v38, %v8600_v46  ;;  %v7802_v36 = vadd.f32 %v14220_v7, %v7524_v37  ;;  %v14986_v22 = vpop.f32.mrb[75].mxu0 }
 0x552   : > { %v7835_v3 = vadd.f32 %v14177_v58, %v7557_v52  ;;  %v7805_v2 = vadd.f32 %v14214_v14, %v7527_v53  ;;  %16058 = vst [vmem:[#allocation55_spill] sm:$0xff] %v14986_v22  ;;  %v7558_v20 = vmul.f32 %v14179_v59, %v14669_v9  ;;  %v7528_v27 = vmul.f32 %v14203_v23, %v14674_v18 }
 0x553   : > { %vm8057_vm15 = vcmp.ge.f32.partialorder %v7801_v60, 0.0  ;;  %v8313_v13 = vmul.f32 0.1, %v7801_v60  ;;  %vm8058_vm2 = vcmp.ge.f32.partialorder %v7802_v36, 0.0  ;;  %v8314_v8 = vmul.f32 0.1, %v7802_v36 }
 0x554   : > { %vm8091_vm3 = vcmp.ge.f32.partialorder %v7835_v3, 0.0  ;;  %v8347_v38 = vmul.f32 0.1, %v7835_v3  ;;  %vm8061_vm0 = vcmp.ge.f32.partialorder %v7805_v2, 0.0  ;;  %v8317_v55 = vmul.f32 0.1, %v7805_v2 }
 0x555   : > { %v8569_v5 = vsel %vm8057_vm15, %v7801_v60, %v8313_v13  ;;  %v7836_v21 = vadd.f32 %v14182_v6, %v7558_v20  ;;  %v8570_v16 = vsel %vm8058_vm2, %v7802_v36, %v8314_v8  ;;  %v7806_v63 = vadd.f32 %v14220_v7, %v7528_v27  ;;  %v14994_v53 = vpop.f32.mrb[36].mxu1  ;;  %v15006_v36 = vpop.f32.mrb[76].mxu0  ;;  %v16059_v27 = vld [vmem:[#allocation25_spill] sm:$0xff] }
 0x556   : > { %v8852_v42 = vadd.f32 %v8851_v49, %v8569_v5  ;;  %v8603_v37 = vsel %vm8091_vm3, %v7835_v3, %v8347_v38  ;;  %v8865_v57 = vadd.f32 %v8864_v34, %v8570_v16  ;;  %v8573_v9 = vsel %vm8061_vm0, %v7805_v2, %v8317_v55  ;;  %v14996_v60 = vpop.f32.mrb[37].mxu1 }
 0x557   : > { %v8930_v52 = vadd.f32 %v8929_v47, %v8603_v37  ;;  %vm8092_vm4 = vcmp.ge.f32.partialorder %v7836_v21, 0.0  ;;  %v8348_v46 = vmul.f32 0.1, %v7836_v21  ;;  %vm8062_vm5 = vcmp.ge.f32.partialorder %v7806_v63, 0.0 }
 0x558   : > { %v8853_v18 = vadd.f32 %v8852_v42, %v8573_v9  ;;  %v8318_v22 = vmul.f32 0.1, %v7806_v63  ;;  %v7561_v13 = vmul.f32 %v14171_v25, %v14676_v28  ;;  %v7562_v49 = vmul.f32 %v14179_v59, %v14679_v19  ;;  %v15012_v28 = vpop.f32.mrb[38].mxu1  ;;  %v15020_v9 = vpop.f32.mrb[77].mxu0 }
 0x559   : > { %v7531_v34 = vmul.f32 %v14185_v15, %v14696_v35  ;;  %v7532_v47 = vmul.f32 %v14203_v23, %v14700_v50  ;;  %v8604_v3 = vsel %vm8092_vm4, %v7836_v21, %v8348_v46  ;;  %v7565_v20 = vmul.f32 %v14171_v25, %v14702_v12  ;;  %16060 = vst [vmem:[#allocation25_spill] sm:$0xff] %v15012_v28 }
 0x55a   : > { %v8574_v2 = vsel %vm8062_vm5, %v7806_v63, %v8318_v22  ;;  %v7535_v8 = vmul.f32 %v14185_v15, %v16059_v27  ;;  %v8943_v38 = vadd.f32 %v8942_v39, %v8604_v3  ;;  %v7839_v5 = vadd.f32 %v14177_v58, %v7561_v13  ;;  %v15024_v27 = vpop.f32.mrb[78].mxu0 }
 0x55b   : > { %v8866_v19 = vadd.f32 %v8865_v57, %v8574_v2  ;;  %v7840_v35 = vadd.f32 %v14182_v6, %v7562_v49  ;;  %v7809_v50 = vadd.f32 %v14214_v14, %v7531_v34  ;;  %v7810_v55 = vadd.f32 %v14220_v7, %v7532_v47  ;;  %v15022_v47 = vpop.f32.mrb[39].mxu1  ;;  %16061 = vst [vmem:[#allocation56_spill] sm:$0xff] %v15024_v27 }
 0x55c   : > { %v7843_v22 = vadd.f32 %v14177_v58, %v7565_v20  ;;  %v7813_v21 = vadd.f32 %v14214_v14, %v7535_v8  ;;  %vm8095_vm6 = vcmp.ge.f32.partialorder %v7839_v5, 0.0  ;;  %v8351_v12 = vmul.f32 0.1, %v7839_v5 }
 0x55d   : > { %vm8096_vm7 = vcmp.ge.f32.partialorder %v7840_v35, 0.0  ;;  %v8352_v42 = vmul.f32 0.1, %v7840_v35  ;;  %vm8065_vm8 = vcmp.ge.f32.partialorder %v7809_v50, 0.0  ;;  %v8321_v16 = vmul.f32 0.1, %v7809_v50 }
 0x55e   : > { %vm8066_vm9 = vcmp.ge.f32.partialorder %v7810_v55, 0.0  ;;  %v8322_v39 = vmul.f32 0.1, %v7810_v55  ;;  %v8607_v37 = vsel %vm8095_vm6, %v7839_v5, %v8351_v12  ;;  %vm8099_vm10 = vcmp.ge.f32.partialorder %v7843_v22, 0.0  ;;  %v16062_v5 = vld [vmem:[#allocation26_spill] sm:$0xff]  ;;  %v16063_v12 = vld [vmem:[#allocation4_spill] sm:$0xff] }
 0x55f   : > { %v8608_v63 = vsel %vm8096_vm7, %v7840_v35, %v8352_v42  ;;  %v8355_v57 = vmul.f32 0.1, %v7843_v22  ;;  %v8931_v46 = vadd.f32 %v8930_v52, %v8607_v37  ;;  %v8577_v49 = vsel %vm8065_vm8, %v7809_v50, %v8321_v16  ;;  %v16064_v52 = vld [vmem:[#allocation3_spill] sm:$0xff] }
 0x560   : > { %v8944_v13 = vadd.f32 %v8943_v38, %v8608_v63  ;;  %v8578_v34 = vsel %vm8066_vm9, %v7810_v55, %v8322_v39  ;;  %v8854_v3 = vadd.f32 %v8853_v18, %v8577_v49  ;;  %vm8069_vm12 = vcmp.ge.f32.partialorder %v7813_v21, 0.0 }
 0x561   : > { %v8867_v2 = vadd.f32 %v8866_v19, %v8578_v34  ;;  %v8611_v20 = vsel %vm8099_vm10, %v7843_v22, %v8355_v57  ;;  %v8325_v28 = vmul.f32 0.1, %v7813_v21  ;;  %v7566_v35 = vmul.f32 %v14179_v59, %v16062_v5 }
 0x562   : > { %v8932_v8 = vadd.f32 %v8931_v46, %v8611_v20  ;;  %v7536_v42 = vmul.f32 %v14203_v23, %v16063_v12  ;;  %v7569_v38 = vmul.f32 %v14171_v25, %v16064_v52  ;;  %v7570_v50 = vmul.f32 %v14179_v59, %v14720_v43  ;;  %v15045_v46 = vpop.f32.mrb[79].mxu0 }
 0x563   : > { %v7539_v18 = vmul.f32 %v14185_v15, %v14732_v48  ;;  %v7540_v19 = vmul.f32 %v14203_v23, %v14738_v1  ;;  %v8581_v55 = vsel %vm8069_vm12, %v7813_v21, %v8325_v28  ;;  %v7844_v22 = vadd.f32 %v14182_v6, %v7566_v35  ;;  %16065 = vst [vmem:[#allocation26_spill] sm:$0xff] %v15045_v46 }
 0x564   : > { %v7814_v16 = vadd.f32 %v14220_v7, %v7536_v42  ;;  %v7573_v39 = vmul.f32 %v14171_v25, %v14734_v10  ;;  %v8855_v37 = vadd.f32 %v8854_v3, %v8581_v55  ;;  %v7847_v63 = vadd.f32 %v14177_v58, %v7569_v38  ;;  %v10969_v10 = vld [vmem:[%s15825_s13 + $0x60] sm:$0xff]  }
 0x565   : > { %v7848_v57 = vadd.f32 %v14182_v6, %v7570_v50  ;;  %v7817_v43 = vadd.f32 %v14214_v14, %v7539_v18  ;;  %vm8100_vm11 = vcmp.ge.f32.partialorder %v7844_v22, 0.0  ;;  %v8356_v48 = vmul.f32 0.1, %v7844_v22  ;;  %10326 = vmatprep.subr.bf16.mxu1 %v10969_v10 }
 0x566   : > { %vm8070_vm13 = vcmp.ge.f32.partialorder %v7814_v16, 0.0  ;;  %v8326_v1 = vmul.f32 0.1, %v7814_v16  ;;  %v8856_v28 = vrot.slane %v8855_v37, 4  ;;  %vm8103_vm14 = vcmp.ge.f32.partialorder %v7847_v63, 0.0 }
 0x567   : > { %v8359_v21 = vmul.f32 0.1, %v7847_v63  ;;  %vm8104_vm15 = vcmp.ge.f32.partialorder %v7848_v57, 0.0  ;;  %v8612_v49 = vsel %vm8100_vm11, %v7844_v22, %v8356_v48  ;;  %v8360_v3 = vmul.f32 0.1, %v7848_v57  ;;  %v10970_v22 = vld [vmem:[%s15825_s13 + $0x20] sm:$0xff]  }
 0x568   : > { %v8582_v34 = vsel %vm8070_vm13, %v7814_v16, %v8326_v1  ;;  %vm8073_vm2 = vcmp.ge.f32.partialorder %v7817_v43, 0.0  ;;  %v8857_v20 = vadd.f32 %v8856_v28, %v8855_v37  ;;  %v8945_v5 = vadd.f32 %v8944_v13, %v8612_v49  ;;  %v15055_v16 = vpop.f32.mrb[40].mxu1  ;;  %10327 = vmatpush3.bf16.msra.mxu1 %v10970_v22 }
 0x569   : > { %v8868_v35 = vadd.f32 %v8867_v2, %v8582_v34  ;;  %v8615_v12 = vsel %vm8103_vm14, %v7847_v63, %v8359_v21  ;;  %v8616_v52 = vsel %vm8104_vm15, %v7848_v57, %v8360_v3  ;;  %v8329_v38 = vmul.f32 0.1, %v7817_v43  ;;  %v15058_v37 = vpop.f32.mrb[41].mxu1  ;;  %v15060_v63 = vpop.f32.mrb[80].mxu0 }
 0x56a   : > { %v8933_v42 = vadd.f32 %v8932_v8, %v8615_v12  ;;  %v7818_v50 = vadd.f32 %v14220_v7, %v7540_v19  ;;  %v8858_v18 = vrot.slane %v8857_v20, 2  ;;  %v8946_v46 = vadd.f32 %v8945_v5, %v8616_v52  ;;  %v15064_v1 = vpop.f32.mrb[81].mxu0 }
 0x56b   : > { %v8869_v55 = vrot.slane %v8868_v35, 4  ;;  %v7851_v27 = vadd.f32 %v14177_v58, %v7573_v39  ;;  %v8585_v2 = vsel %vm8073_vm2, %v7817_v43, %v8329_v38  ;;  %v15062_v39 = vpop.f32.mrb[42].mxu1  ;;  %v7543_v43 = vmul.f32 %v14185_v15, %v14742_v41 }
 0x56c   : > { %v8934_v13 = vrot.slane %v8933_v42, 4  ;;  %vm8074_vm3 = vcmp.ge.f32.partialorder %v7818_v50, 0.0  ;;  %v8330_v8 = vmul.f32 0.1, %v7818_v50  ;;  %v8859_v19 = vadd.f32 %v8858_v18, %v8857_v20  ;;  %v15068_v49 = vpop.f32.mrb[43].mxu1 }
 0x56d   : > { %v8870_v57 = vadd.f32 %v8869_v55, %v8868_v35  ;;  %v8947_v48 = vrot.slane %v8946_v46, 4  ;;  %vm8107_vm0 = vcmp.ge.f32.partialorder %v7851_v27, 0.0  ;;  %v8363_v10 = vmul.f32 0.1, %v7851_v27  ;;  %16066 = vst [vmem:[#allocation4_spill] sm:$0xff] %v15068_v49  ;;  %v15072_v35 = vpop.f32.mrb[82].mxu0 }
 0x56e   : > { %v8935_v28 = vadd.f32 %v8934_v13, %v8933_v42  ;;  %v8586_v21 = vsel %vm8074_vm3, %v7818_v50, %v8330_v8  ;;  %v8860_v34 = vrot.slane %v8859_v19, 1  ;;  %v7574_v20 = vmul.f32 %v14179_v59, %v14740_v45  ;;  %16067 = vst [vmem:[#allocation3_spill] sm:$0xff] %v15072_v35  ;;  %v15078_v22 = vpop.f32.mrb[83].mxu0  ;;  %v15083_v49 = vpop.f32.mrb[44].mxu1 }
 0x56f   : > { %v8871_v3 = vrot.slane %v8870_v57, 2  ;;  %v8948_v5 = vadd.f32 %v8947_v48, %v8946_v46  ;;  %v8619_v52 = vsel %vm8107_vm0, %v7851_v27, %v8363_v10  ;;  %v7821_v38 = vadd.f32 %v14214_v14, %v7543_v43  ;;  %16068 = vst [vmem:[#allocation57_spill] sm:$0xff] %v15078_v22 }
 0x570   : > { %v8936_v12 = vrot.slane %v8935_v28, 2  ;;  %v7544_v42 = vmul.f32 %v14203_v23, %v14751_v62  ;;  %v8861_v50 = vadd.f32 %v8860_v34, %v8859_v19  ;;  %v7852_v55 = vadd.f32 %v14182_v6, %v7574_v20 }
 0x571   : > { %v8872_v18 = vadd.f32 %v8871_v3, %v8870_v57  ;;  %v8949_v41 = vrot.slane %v8948_v5, 2  ;;  %vm8077_vm4 = vcmp.ge.f32.partialorder %v7821_v38, 0.0  ;;  %v8333_v13 = vmul.f32 0.1, %v7821_v38 }
 0x572   : > { %v8937_v46 = vadd.f32 %v8936_v12, %v8935_v28  ;;  %v7822_v45 = vadd.f32 %v14220_v7, %v7544_v42  ;;  %v9170_v8 = vmul.f32 0.015625, %v8861_v50  ;;  %vm8108_vm5 = vcmp.ge.f32.partialorder %v7852_v55, 0.0  ;;  %v16069_v28 = vld [vmem:[#allocation27_spill] sm:$0xff] }
 0x573   : > { %v8873_v48 = vrot.slane %v8872_v18, 1  ;;  %v8950_v27 = vadd.f32 %v8949_v41, %v8948_v5  ;;  %v8589_v43 = vsel %vm8077_vm4, %v7821_v38, %v8333_v13  ;;  %v8364_v35 = vmul.f32 0.1, %v7852_v55  ;;  %v16071_v41 = vld [vmem:[#allocation5_spill] sm:$0xff]  ;;  %v15089_v13 = vpop.f32.mrb[45].mxu1 }
 0x574   : > { %v8938_v10 = vrot.slane %v8937_v46, 1  ;;  %vm8078_vm6 = vcmp.ge.f32.partialorder %v7822_v45, 0.0  ;;  %v9202_v62 = vpack.c.bf16 %v9170_v8, %v9170_v8  ;;  %v8901_v34 = vadd.f32 %v8589_v43, %v8585_v2  ;;  %v15097_v8 = vpop.f32.mrb[46].mxu1 }
 0x575   : > { %v8874_v19 = vadd.f32 %v8873_v48, %v8872_v18  ;;  %v8951_v57 = vrot.slane %v8950_v27, 1  ;;  %v8620_v20 = vsel %vm8108_vm5, %v7852_v55, %v8364_v35  ;;  %v8334_v22 = vmul.f32 0.1, %v7822_v45  ;;  %v15091_v18 = vpop.f32.mrb[84].mxu0 }
 0x576   : > { %v8939_v3 = vadd.f32 %v8938_v10, %v8937_v46  ;;  %v7577_v12 = vmul.f32 %v14171_v25, %v16069_v28  ;;  %v15085_v42 = vunpack.c.l.b16 %v9202_v62  ;;  %v7578_v38 = vmul.f32 %v14179_v59, %v16071_v41  ;;  %v15099_v48 = vpop.f32.mrb[85].mxu0 }
 0x577   : > { %v9171_v5 = vmul.f32 0.015625, %v8874_v19  ;;  %v8952_v50 = vadd.f32 %v8951_v57, %v8950_v27  ;;  %v8590_v35 = vsel %vm8078_vm6, %v7822_v45, %v8334_v22  ;;  %v7547_v46 = vmul.f32 %v14185_v15, %v14765_v24  ;;  %v15105_v24 = vpop.f32.mrb[47].mxu1 }
 0x578   : > { %16070 = vst [vmem:[#allocation27_spill] sm:$0xff] %v15085_v42  ;;  %v9176_v2 = vmul.f32 0.015625, %v8939_v3  ;;  %v7855_v55 = vadd.f32 %v14177_v58, %v7577_v12  ;;  %v8914_v43 = vadd.f32 %v8590_v35, %v8586_v21  ;;  %v7856_v62 = vadd.f32 %v14182_v6, %v7578_v38  ;;  %v15107_v12 = vpop.f32.mrb[86].mxu0 }
 0x579   : > { %v9203_v27 = vpack.c.bf16 %v9171_v5, %v9171_v5  ;;  %v9177_v10 = vmul.f32 0.015625, %v8952_v50  ;;  %v7825_v3 = vadd.f32 %v14214_v14, %v7547_v46  ;;  %16073 = vst [vmem:[#allocation58_spill] sm:$0xff] %v15107_v12  ;;  %v7548_v35 = vmul.f32 %v14203_v23, %v14767_v0 }
 0x57a   : > { %v9208_v19 = vpack.c.bf16 %v9176_v2, %v9176_v2  ;;  %vm8111_vm7 = vcmp.ge.f32.partialorder %v7855_v55, 0.0  ;;  %v8367_v57 = vmul.f32 0.1, %v7855_v55  ;;  %vm8112_vm8 = vcmp.ge.f32.partialorder %v7856_v62, 0.0 }
 0x57b   : > { %v15103_v22 = vunpack.c.l.b16 %v9203_v27  ;;  %v9209_v45 = vpack.c.bf16 %v9177_v10, %v9177_v10  ;;  %v8368_v28 = vmul.f32 0.1, %v7856_v62  ;;  %vm8081_vm9 = vcmp.ge.f32.partialorder %v7825_v3, 0.0 }
 0x57c   : > { %v15109_v41 = vunpack.c.l.b16 %v9208_v19  ;;  %v8623_v5 = vsel %vm8111_vm7, %v7855_v55, %v8367_v57  ;;  %v8337_v21 = vmul.f32 0.1, %v7825_v3  ;;  %v7581_v10 = vmul.f32 %v14171_v25, %v14769_v30  ;;  %v15119_v19 = vpop.f32.mrb[87].mxu0 }
 0x57d   : > { %16072 = vst [vmem:[#allocation5_spill] sm:$0xff] %v15103_v22  ;;  %v15111_v50 = vunpack.c.l.b16 %v9209_v45  ;;  %v8979_v38 = vadd.f32 %v8623_v5, %v8619_v52  ;;  %v8624_v2 = vsel %vm8112_vm8, %v7856_v62, %v8368_v28  ;;  %v16076_v22 = vld [vmem:[#allocation29_spill] sm:$0xff]  ;;  %v7826_v57 = vadd.f32 %v14220_v7, %v7548_v35  ;;  %v16078_v45 = vld [vmem:[#allocation28_spill] sm:$0xff]  ;;  %v16079_v62 = vld [vmem:[#allocation30_spill] sm:$0xff] }
 0x57e   : > { %16074 = vst [vmem:[#allocation59_spill] sm:$0xff] %v15109_v41  ;;  %v8992_v46 = vadd.f32 %v8624_v2, %v8620_v20  ;;  %v8593_v27 = vsel %vm8081_vm9, %v7825_v3, %v8337_v21  ;;  %v7551_v42 = vmul.f32 %v14185_v15, %v16076_v22  ;;  %16077 = vst [vmem:[#allocation29_spill] sm:$0xff] %v15119_v19  ;;  %v15139_v19 = vpop.f32.mrb[88].mxu0 }
 0x57f   : > { %16075 = vst [vmem:[#allocation60_spill] sm:$0xff] %v15111_v50  ;;  %v8902_v55 = vadd.f32 %v8901_v34, %v8593_v27  ;;  %v7582_v52 = vmul.f32 %v14179_v59, %v16078_v45  ;;  %v7552_v28 = vmul.f32 %v14203_v23, %v16079_v62  ;;  %v7859_v0 = vadd.f32 %v14177_v58, %v7581_v10  ;;  %v15134_v62 = vpop.f32.mrb[48].mxu1 }
 0x580   : > { %v7829_v20 = vadd.f32 %v14214_v14, %v7551_v42  ;;  %v7585_v30 = vmul.f32 %v14171_v25, %v14781_v51  ;;  %v7586_v3 = vmul.f32 %v14179_v59, %v14785_v40  ;;  %vm8082_vm10 = vcmp.ge.f32.partialorder %v7826_v57, 0.0 }
 0x581   : > { %v8338_v34 = vmul.f32 0.1, %v7826_v57  ;;  %v7860_v22 = vadd.f32 %v14182_v6, %v7582_v52  ;;  %v7830_v5 = vadd.f32 %v14220_v7, %v7552_v28  ;;  %vm8115_vm12 = vcmp.ge.f32.partialorder %v7859_v0, 0.0  ;;  %v15137_v28 = vpop.f32.mrb[49].mxu1 }
 0x582   : > { %v8371_v21 = vmul.f32 0.1, %v7859_v0  ;;  %vm8085_vm11 = vcmp.ge.f32.partialorder %v7829_v20, 0.0  ;;  %v8341_v2 = vmul.f32 0.1, %v7829_v20  ;;  %v7863_v52 = vadd.f32 %v14177_v58, %v7585_v30 }
 0x583   : > { %v8594_v35 = vsel %vm8082_vm10, %v7826_v57, %v8338_v34  ;;  %vm8116_vm13 = vcmp.ge.f32.partialorder %v7860_v22, 0.0  ;;  %v8372_v27 = vmul.f32 0.1, %v7860_v22  ;;  %vm8086_vm14 = vcmp.ge.f32.partialorder %v7830_v5, 0.0 }
 0x584   : > { %v8915_v42 = vadd.f32 %v8914_v43, %v8594_v35  ;;  %v8627_v10 = vsel %vm8115_vm12, %v7859_v0, %v8371_v21  ;;  %v8597_v51 = vsel %vm8085_vm11, %v7829_v20, %v8341_v2  ;;  %v8342_v45 = vmul.f32 0.1, %v7830_v5  ;;  %v15144_v0 = vpop.f32.mrb[50].mxu1  ;;  %v15146_v20 = vpop.f32.mrb[89].mxu0  ;;  %v16085_v35 = vld [vmem:[#allocation32_spill] sm:$0xff] }
 0x585   : > { %v8980_v40 = vadd.f32 %v8979_v38, %v8627_v10  ;;  %v8903_v50 = vadd.f32 %v8902_v55, %v8597_v51  ;;  %v8628_v41 = vsel %vm8116_vm13, %v7860_v22, %v8372_v27  ;;  %v7864_v34 = vadd.f32 %v14182_v6, %v7586_v3  ;;  %16080 = vst [vmem:[#allocation28_spill] sm:$0xff] %v15144_v0  ;;  %v15150_v22 = vpop.f32.mrb[51].mxu1  ;;  %v15152_v21 = vpop.f32.mrb[90].mxu0  ;;  %v16084_v3 = vld [vmem:[#allocation31_spill] sm:$0xff] }
 0x586   : > { %v8993_v12 = vadd.f32 %v8992_v46, %v8628_v41  ;;  %v8598_v57 = vsel %vm8086_vm14, %v7830_v5, %v8342_v45  ;;  %v7555_v43 = vmul.f32 %v14185_v15, %v14796_v29  ;;  %16081 = vst [vmem:[#allocation30_spill] sm:$0xff] %v15146_v20  ;;  %vm8119_vm15 = vcmp.ge.f32.partialorder %v7863_v52, 0.0  ;;  %16082 = vst [vmem:[#allocation61_spill] sm:$0xff] %v15150_v22  ;;  %v15163_v22 = vpop.f32.mrb[91].mxu0 }
 0x587   : > { %v8916_v38 = vadd.f32 %v8915_v42, %v8598_v57  ;;  %v8375_v55 = vmul.f32 0.1, %v7863_v52  ;;  %v7556_v30 = vmul.f32 %v14203_v23, %v14801_v61  ;;  %16083 = vst [vmem:[#allocation62_spill] sm:$0xff] %v15152_v21  ;;  %vm8120_vm2 = vcmp.ge.f32.partialorder %v7864_v34, 0.0  ;;  %v16086_v42 = vld [vmem:[#allocation33_spill] sm:$0xff]  ;;  %16087 = vst [vmem:[#allocation31_spill] sm:$0xff] %v15163_v22 }
 0x588   : > { %v8376_v41 = vmul.f32 0.1, %v7864_v34  ;;  %v7833_v46 = vadd.f32 %v14214_v14, %v7555_v43  ;;  %v7589_v29 = vmul.f32 %v14171_v25, %v16084_v3  ;;  %v7559_v27 = vmul.f32 %v14185_v15, %v16085_v35  ;;  %v16088_v3 = vld [vmem:[#allocation34_spill] sm:$0xff] }
 0x589   : > { %v8631_v5 = vsel %vm8119_vm15, %v7863_v52, %v8375_v55  ;;  %v7834_v2 = vadd.f32 %v14220_v7, %v7556_v30  ;;  %v7590_v61 = vmul.f32 %v14179_v59, %v16086_v42  ;;  %v7560_v35 = vmul.f32 %v14203_v23, %v16088_v3  ;;  %v16091_v3 = vld [vmem:[#allocation6_spill] sm:$0xff] }
 0x58a   : > { %v8981_v10 = vadd.f32 %v8980_v40, %v8631_v5  ;;  %v8632_v51 = vsel %vm8120_vm2, %v7864_v34, %v8376_v41  ;;  %vm8089_vm3 = vcmp.ge.f32.partialorder %v7833_v46, 0.0  ;;  %v8345_v45 = vmul.f32 0.1, %v7833_v46 }
 0x58b   : > { %v8994_v57 = vadd.f32 %v8993_v12, %v8632_v51  ;;  %vm8090_vm0 = vcmp.ge.f32.partialorder %v7834_v2, 0.0  ;;  %v8346_v21 = vmul.f32 0.1, %v7834_v2  ;;  %v7867_v43 = vadd.f32 %v14177_v58, %v7589_v29 }
 0x58c   : > { %v8601_v52 = vsel %vm8089_vm3, %v7833_v46, %v8345_v45  ;;  %v7837_v55 = vadd.f32 %v14214_v14, %v7559_v27  ;;  %v7868_v30 = vadd.f32 %v14182_v6, %v7590_v61  ;;  %v7838_v51 = vadd.f32 %v14220_v7, %v7560_v35  ;;  %v16089_v46 = vld [vmem:[#allocation35_spill] sm:$0xff]  ;;  %v15172_v45 = vpop.f32.mrb[52].mxu1 }
 0x58d   : > { %v8904_v42 = vadd.f32 %v8903_v50, %v8601_v52  ;;  %v8602_v40 = vsel %vm8090_vm0, %v7834_v2, %v8346_v21  ;;  %vm8123_vm4 = vcmp.ge.f32.partialorder %v7867_v43, 0.0  ;;  %v8379_v34 = vmul.f32 0.1, %v7867_v43  ;;  %16090 = vst [vmem:[#allocation32_spill] sm:$0xff] %v15172_v45  ;;  %v16092_v21 = vld [vmem:[#allocation9_spill] sm:$0xff]  ;;  %v15178_v2 = vpop.f32.mrb[53].mxu1 }
 0x58e   : > { %v8917_v41 = vadd.f32 %v8916_v38, %v8602_v40  ;;  %vm8093_vm5 = vcmp.ge.f32.partialorder %v7837_v55, 0.0  ;;  %v8349_v12 = vmul.f32 0.1, %v7837_v55  ;;  %vm8124_vm6 = vcmp.ge.f32.partialorder %v7868_v30, 0.0  ;;  %16093 = vst [vmem:[#allocation33_spill] sm:$0xff] %v15178_v2  ;;  %v15180_v52 = vpop.f32.mrb[92].mxu0 }
 0x58f   : > { %v8635_v5 = vsel %vm8123_vm4, %v7867_v43, %v8379_v34  ;;  %v8380_v29 = vmul.f32 0.1, %v7868_v30  ;;  %v7593_v27 = vmul.f32 %v14171_v25, %v16089_v46  ;;  %v7594_v50 = vmul.f32 %v14179_v59, %v16091_v3  ;;  %16094 = vst [vmem:[#allocation34_spill] sm:$0xff] %v15180_v52  ;;  %v16096_v3 = vld [vmem:[#allocation7_spill] sm:$0xff]  ;;  %v16097_v2 = vld [vmem:[#allocation36_spill] sm:$0xff] }
 0x590   : > { %v8982_v61 = vadd.f32 %v8981_v10, %v8635_v5  ;;  %v8605_v22 = vsel %vm8093_vm5, %v7837_v55, %v8349_v12  ;;  %v7563_v38 = vmul.f32 %v14185_v15, %v16092_v21  ;;  %vm8094_vm7 = vcmp.ge.f32.partialorder %v7838_v51, 0.0  ;;  %v15185_v12 = vpop.f32.mrb[54].mxu1 }
 0x591   : > { %v8905_v43 = vadd.f32 %v8904_v42, %v8605_v22  ;;  %v8636_v40 = vsel %vm8124_vm6, %v7868_v30, %v8380_v29  ;;  %v8350_v35 = vmul.f32 0.1, %v7838_v51  ;;  %v7871_v46 = vadd.f32 %v14177_v58, %v7593_v27  ;;  %16095 = vst [vmem:[#allocation35_spill] sm:$0xff] %v15185_v12  ;;  %v16098_v22 = vld [vmem:[#allocation10_spill] sm:$0xff]  ;;  %v15193_v42 = vpop.f32.mrb[93].mxu0 }
 0x592   : > { %v8995_v34 = vadd.f32 %v8994_v57, %v8636_v40  ;;  %v7872_v10 = vadd.f32 %v14182_v6, %v7594_v50  ;;  %v7841_v55 = vadd.f32 %v14214_v14, %v7563_v38  ;;  %v7564_v21 = vmul.f32 %v14203_v23, %v16096_v3  ;;  %16099 = vst [vmem:[#allocation6_spill] sm:$0xff] %v15193_v42  ;;  %v15202_v12 = vpop.f32.mrb[94].mxu0 }
 0x593   : > { %v8606_v5 = vsel %vm8094_vm7, %v7838_v51, %v8350_v35  ;;  %v7597_v52 = vmul.f32 %v14171_v25, %v16097_v2  ;;  %v7567_v30 = vmul.f32 %v14185_v15, %v16098_v22  ;;  %vm8127_vm8 = vcmp.ge.f32.partialorder %v7871_v46, 0.0  ;;  %v16100_v2 = vld [vmem:[#allocation12_spill] sm:$0xff]  ;;  %v15200_v22 = vpop.f32.mrb[55].mxu1  ;;  %16102 = vst [vmem:[#allocation7_spill] sm:$0xff] %v15202_v12 }
 0x594   : > { %v8918_v57 = vadd.f32 %v8917_v41, %v8606_v5  ;;  %v8383_v29 = vmul.f32 0.1, %v7871_v46  ;;  %vm8128_vm9 = vcmp.ge.f32.partialorder %v7872_v10, 0.0  ;;  %v8384_v27 = vmul.f32 0.1, %v7872_v10  ;;  %16101 = vst [vmem:[#allocation9_spill] sm:$0xff] %v15200_v22 }
 0x595   : > { %vm8097_vm10 = vcmp.ge.f32.partialorder %v7841_v55, 0.0  ;;  %v8353_v50 = vmul.f32 0.1, %v7841_v55  ;;  %v7842_v51 = vadd.f32 %v14220_v7, %v7564_v21  ;;  %v7875_v40 = vadd.f32 %v14177_v58, %v7597_v52  ;;  %v16104_v22 = vld [vmem:[#allocation38_spill] sm:$0xff] }
 0x596   : > { %v8639_v38 = vsel %vm8127_vm8, %v7871_v46, %v8383_v29  ;;  %v7845_v35 = vadd.f32 %v14214_v14, %v7567_v30  ;;  %v7598_v3 = vmul.f32 %v14179_v59, %v16100_v2  ;;  %v8640_v41 = vsel %vm8128_vm9, %v7872_v10, %v8384_v27  ;;  %v16103_v29 = vld [vmem:[#allocation37_spill] sm:$0xff]  ;;  %v16105_v10 = vld [vmem:[#allocation39_spill] sm:$0xff] }
 0x597   : > { %v8983_v42 = vadd.f32 %v8982_v61, %v8639_v38  ;;  %v8609_v5 = vsel %vm8097_vm10, %v7841_v55, %v8353_v50  ;;  %vm8098_vm12 = vcmp.ge.f32.partialorder %v7842_v51, 0.0  ;;  %v8996_v45 = vadd.f32 %v8995_v34, %v8640_v41 }
 0x598   : > { %v8906_v20 = vadd.f32 %v8905_v43, %v8609_v5  ;;  %v8354_v0 = vmul.f32 0.1, %v7842_v51  ;;  %vm8131_vm11 = vcmp.ge.f32.partialorder %v7875_v40, 0.0  ;;  %v8387_v46 = vmul.f32 0.1, %v7875_v40 }
 0x599   : > { %vm8101_vm13 = vcmp.ge.f32.partialorder %v7845_v35, 0.0  ;;  %v8357_v52 = vmul.f32 0.1, %v7845_v35  ;;  %v7876_v21 = vadd.f32 %v14182_v6, %v7598_v3  ;;  %v7568_v2 = vmul.f32 %v14203_v23, %v16103_v29 }
 0x59a   : > { %v8610_v30 = vsel %vm8098_vm12, %v7842_v51, %v8354_v0  ;;  %v7601_v61 = vmul.f32 %v14171_v25, %v16104_v22  ;;  %v7602_v55 = vmul.f32 %v14179_v59, %v16105_v10  ;;  %v8643_v34 = vsel %vm8131_vm11, %v7875_v40, %v8387_v46  ;;  %v15221_v40 = vpop.f32.mrb[95].mxu0 }
 0x59b   : > { %v8919_v27 = vadd.f32 %v8918_v57, %v8610_v30  ;;  %v8613_v43 = vsel %vm8101_vm13, %v7845_v35, %v8357_v52  ;;  %vm8132_vm14 = vcmp.ge.f32.partialorder %v7876_v21, 0.0  ;;  %v8984_v50 = vadd.f32 %v8983_v42, %v8643_v34  ;;  %v10971_v57 = vld [vmem:[%s15825_s13 + $0x68] sm:$0xff]   ;;  %16106 = vst [vmem:[#allocation36_spill] sm:$0xff] %v15221_v40 }
 0x59c   : > { %v8907_v38 = vadd.f32 %v8906_v20, %v8613_v43  ;;  %v8388_v41 = vmul.f32 0.1, %v7876_v21  ;;  %v7846_v5 = vadd.f32 %v14220_v7, %v7568_v2  ;;  %v7879_v0 = vadd.f32 %v14177_v58, %v7601_v61  ;;  %10328 = vmatprep.subr.bf16.mxu1 %v10971_v57 }
 0x59d   : > { %v7880_v51 = vadd.f32 %v14182_v6, %v7602_v55  ;;  %v7571_v3 = vmul.f32 %v14185_v15, %v14857_v26  ;;  %v7572_v22 = vmul.f32 %v14203_v23, %v14862_v4  ;;  %v16107_v55 = vld [vmem:[#allocation40_spill] sm:$0xff] }
 0x59e   : > { %v8908_v20 = vrot.slane %v8907_v38, 4  ;;  %v8644_v42 = vsel %vm8132_vm14, %v7876_v21, %v8388_v41  ;;  %vm8102_vm15 = vcmp.ge.f32.partialorder %v7846_v5, 0.0  ;;  %v8358_v35 = vmul.f32 0.1, %v7846_v5  ;;  %v15227_v21 = vpop.f32.mrb[56].mxu1 }
 0x59f   : > { %v8997_v46 = vadd.f32 %v8996_v45, %v8644_v42  ;;  %vm8135_vm2 = vcmp.ge.f32.partialorder %v7879_v0, 0.0  ;;  %v8391_v52 = vmul.f32 0.1, %v7879_v0  ;;  %vm8136_vm3 = vcmp.ge.f32.partialorder %v7880_v51, 0.0  ;;  %16108 = vst [vmem:[#allocation10_spill] sm:$0xff] %v15227_v21  ;;  %v15229_v42 = vpop.f32.mrb[57].mxu1 }
 0x5a0   : > { %v8909_v30 = vadd.f32 %v8908_v20, %v8907_v38  ;;  %v8614_v26 = vsel %vm8102_vm15, %v7846_v5, %v8358_v35  ;;  %v8392_v29 = vmul.f32 0.1, %v7880_v51  ;;  %v7849_v4 = vadd.f32 %v14214_v14, %v7571_v3  ;;  %16109 = vst [vmem:[#allocation12_spill] sm:$0xff] %v15229_v42  ;;  %v15231_v38 = vpop.f32.mrb[96].mxu0  ;;  %v16118_v21 = vld [vmem:[#allocation43_spill] sm:$0xff] }
 0x5a1   : > { %v8920_v2 = vadd.f32 %v8919_v27, %v8614_v26  ;;  %v8647_v61 = vsel %vm8135_vm2, %v7879_v0, %v8391_v52  ;;  %v7850_v10 = vadd.f32 %v14220_v7, %v7572_v22  ;;  %v7605_v34 = vmul.f32 %v14171_v25, %v16107_v55  ;;  %16110 = vst [vmem:[#allocation37_spill] sm:$0xff] %v15231_v38  ;;  %v15233_v27 = vpop.f32.mrb[58].mxu1  ;;  %v15235_v0 = vpop.f32.mrb[97].mxu0 }
 0x5a2   : > { %v8910_v43 = vrot.slane %v8909_v30, 2  ;;  %v8985_v45 = vadd.f32 %v8984_v50, %v8647_v61  ;;  %v8648_v41 = vsel %vm8136_vm3, %v7880_v51, %v8392_v29  ;;  %vm8105_vm0 = vcmp.ge.f32.partialorder %v7849_v4, 0.0  ;;  %16111 = vst [vmem:[#allocation38_spill] sm:$0xff] %v15233_v27  ;;  %16112 = vst [vmem:[#allocation39_spill] sm:$0xff] %v15235_v0  ;;  %v10972_v50 = vld [vmem:[%s15825_s13 + $0x28] sm:$0xff]  }
 0x5a3   : > { %v8921_v5 = vrot.slane %v8920_v2, 4  ;;  %v8998_v57 = vadd.f32 %v8997_v46, %v8648_v41  ;;  %v8361_v3 = vmul.f32 0.1, %v7849_v4  ;;  %vm8106_vm4 = vcmp.ge.f32.partialorder %v7850_v10, 0.0  ;;  %v16113_v46 = vld [vmem:[#allocation11_spill] sm:$0xff]  ;;  %10329 = vmatpush3.bf16.msra.mxu1 %v10972_v50 }
 0x5a4   : > { %v8911_v22 = vadd.f32 %v8910_v43, %v8909_v30  ;;  %v8986_v20 = vrot.slane %v8985_v45, 4  ;;  %v8362_v35 = vmul.f32 0.1, %v7850_v10  ;;  %v7883_v52 = vadd.f32 %v14177_v58, %v7605_v34  ;;  %v15244_v30 = vpop.f32.mrb[59].mxu1  ;;  %v15246_v43 = vpop.f32.mrb[98].mxu0 }
 0x5a5   : > { %v8922_v51 = vadd.f32 %v8921_v5, %v8920_v2  ;;  %v8999_v26 = vrot.slane %v8998_v57, 4  ;;  %v8617_v29 = vsel %vm8105_vm0, %v7849_v4, %v8361_v3  ;;  %v7575_v61 = vmul.f32 %v14185_v15, %v16113_v46  ;;  %16114 = vst [vmem:[#allocation40_spill] sm:$0xff] %v15244_v30  ;;  %16115 = vst [vmem:[#allocation11_spill] sm:$0xff] %v15246_v43  ;;  %v16116_v4 = vld [vmem:[#allocation41_spill] sm:$0xff]  ;;  %v16117_v46 = vld [vmem:[#allocation42_spill] sm:$0xff] }
 0x5a6   : > { %v8912_v55 = vrot.slane %v8911_v22, 1  ;;  %v8987_v41 = vadd.f32 %v8986_v20, %v8985_v45  ;;  %v8618_v27 = vsel %vm8106_vm4, %v7850_v10, %v8362_v35  ;;  %vm8139_vm5 = vcmp.ge.f32.partialorder %v7883_v52, 0.0  ;;  %v15253_v10 = vpop.f32.mrb[99].mxu0 }
 0x5a7   : > { %v8923_v34 = vrot.slane %v8922_v51, 2  ;;  %v9000_v0 = vadd.f32 %v8999_v26, %v8998_v57  ;;  %v8395_v38 = vmul.f32 0.1, %v7883_v52  ;;  %v7853_v2 = vadd.f32 %v14214_v14, %v7575_v61 }
 0x5a8   : > { %v8913_v5 = vadd.f32 %v8912_v55, %v8911_v22  ;;  %v8988_v42 = vrot.slane %v8987_v41, 2  ;;  %v7606_v3 = vmul.f32 %v14179_v59, %v16116_v4  ;;  %v7576_v45 = vmul.f32 %v14203_v23, %v16117_v46 }
 0x5a9   : > { %v8924_v20 = vadd.f32 %v8923_v34, %v8922_v51  ;;  %v9001_v35 = vrot.slane %v9000_v0, 2  ;;  %v8651_v50 = vsel %vm8139_vm5, %v7883_v52, %v8395_v38  ;;  %vm8109_vm6 = vcmp.ge.f32.partialorder %v7853_v2, 0.0  ;;  %v15259_v51 = vpop.f32.mrb[60].mxu1 }
 0x5aa   : > { %v9174_v43 = vmul.f32 0.015625, %v8913_v5  ;;  %v8989_v30 = vadd.f32 %v8988_v42, %v8987_v41  ;;  %v8365_v57 = vmul.f32 0.1, %v7853_v2  ;;  %v7884_v26 = vadd.f32 %v14182_v6, %v7606_v3  ;;  %v15261_v41 = vpop.f32.mrb[61].mxu1  ;;  %v15263_v5 = vpop.f32.mrb[100].mxu0 }
 0x5ab   : > { %v8925_v61 = vrot.slane %v8924_v20, 1  ;;  %v9002_v22 = vadd.f32 %v9001_v35, %v9000_v0  ;;  %v7854_v55 = vadd.f32 %v14220_v7, %v7576_v45  ;;  %v7609_v4 = vmul.f32 %v14171_v25, %v16118_v21  ;;  %16119 = vst [vmem:[#allocation41_spill] sm:$0xff] %v15261_v41 }
 0x5ac   : > { %v9206_v40 = vpack.c.bf16 %v9174_v43, %v9174_v43  ;;  %v8990_v46 = vrot.slane %v8989_v30, 1  ;;  %v8621_v12 = vsel %vm8109_vm6, %v7853_v2, %v8365_v57  ;;  %vm8140_vm7 = vcmp.ge.f32.partialorder %v7884_v26, 0.0  ;;  %v15268_v57 = vpop.f32.mrb[62].mxu1 }
 0x5ad   : > { %v8926_v38 = vadd.f32 %v8925_v61, %v8924_v20  ;;  %v9003_v52 = vrot.slane %v9002_v22, 1  ;;  %v8953_v34 = vadd.f32 %v8621_v12, %v8617_v29  ;;  %v8396_v42 = vmul.f32 0.1, %v7884_v26  ;;  %v15270_v20 = vpop.f32.mrb[101].mxu0  ;;  %v16121_v61 = vld [vmem:[#allocation44_spill] sm:$0xff] }
 0x5ae   : > { %v15265_v0 = vunpack.c.l.b16 %v9206_v40  ;;  %v8991_v3 = vadd.f32 %v8990_v46, %v8989_v30  ;;  %vm8110_vm8 = vcmp.ge.f32.partialorder %v7854_v55, 0.0  ;;  %v8366_v45 = vmul.f32 0.1, %v7854_v55 }
 0x5af   : > { %v9175_v21 = vmul.f32 0.015625, %v8926_v38  ;;  %v9004_v43 = vadd.f32 %v9003_v52, %v9002_v22  ;;  %v8652_v35 = vsel %vm8140_vm7, %v7884_v26, %v8396_v42  ;;  %v7887_v2 = vadd.f32 %v14177_v58, %v7609_v4  ;;  %v15278_v26 = vpop.f32.mrb[63].mxu1  ;;  %v15280_v22 = vpop.f32.mrb[102].mxu0 }
 0x5b0   : > { %16120 = vst [vmem:[#allocation42_spill] sm:$0xff] %v15265_v0  ;;  %v9180_v12 = vmul.f32 0.015625, %v8991_v3  ;;  %v8622_v29 = vsel %vm8110_vm8, %v7854_v55, %v8366_v45  ;;  %v7610_v41 = vmul.f32 %v14179_v59, %v16121_v61  ;;  %v7579_v40 = vmul.f32 %v14185_v15, %v14889_v56  ;;  %16123 = vst [vmem:[#allocation44_spill] sm:$0xff] %v15278_v26  ;;  %v16126_v45 = vld [vmem:[#allocation14_spill] sm:$0xff] }
 0x5b1   : > { %v9207_v30 = vpack.c.bf16 %v9175_v21, %v9175_v21  ;;  %v15276_v46 = vmul.f32 0.015625, %v9004_v43  ;;  %v8966_v38 = vadd.f32 %v8622_v29, %v8618_v27  ;;  %vm8143_vm9 = vcmp.ge.f32.partialorder %v7887_v2, 0.0  ;;  %16124 = vst [vmem:[#allocation63_spill] sm:$0xff] %v15280_v22  ;;  %v16127_v27 = vld [vmem:[#allocation45_spill] sm:$0xff]  ;;  %v15292_v29 = vpop.f32.mrb[103].mxu0  ;;  %v16131_v22 = vld [vmem:[#allocation47_spill] sm:$0xff] }
 0x5b2   : > { %v9212_v4 = vpack.c.bf16 %v9180_v12, %v9180_v12  ;;  %v8399_v52 = vmul.f32 0.1, %v7887_v2  ;;  %v7888_v42 = vadd.f32 %v14182_v6, %v7610_v41  ;;  %v7857_v55 = vadd.f32 %v14214_v14, %v7579_v40  ;;  %16128 = vst [vmem:[#allocation14_spill] sm:$0xff] %v15292_v29 }
 0x5b3   : > { %16122 = vst [vmem:[#allocation43_spill] sm:$0xff] %v15276_v46  ;;  %v15284_v3 = vunpack.c.l.b16 %v9207_v30  ;;  %v7580_v21 = vmul.f32 %v14203_v23, %v16126_v45  ;;  %v7613_v43 = vmul.f32 %v14171_v25, %v16127_v27  ;;  %v16130_v46 = vld [vmem:[#allocation46_spill] sm:$0xff]  ;;  %v7614_v27 = vmul.f32 %v14179_v59, %v16131_v22  ;;  %v16136_v22 = vld [vmem:[#allocation49_spill] sm:$0xff] }
 0x5b4   : > { %v15294_v61 = vunpack.c.l.b16 %v9212_v4  ;;  %v8655_v12 = vsel %vm8143_vm9, %v7887_v2, %v8399_v52  ;;  %vm8144_vm10 = vcmp.ge.f32.partialorder %v7888_v42, 0.0  ;;  %v8400_v41 = vmul.f32 0.1, %v7888_v42  ;;  %v15302_v52 = vpop.f32.mrb[64].mxu1 }
 0x5b5   : > { %16125 = vst [vmem:[#allocation64_spill] sm:$0xff] %v15284_v3  ;;  %v9031_v0 = vadd.f32 %v8655_v12, %v8651_v50  ;;  %vm8113_vm12 = vcmp.ge.f32.partialorder %v7857_v55, 0.0  ;;  %v8369_v40 = vmul.f32 0.1, %v7857_v55  ;;  %v7858_v30 = vadd.f32 %v14220_v7, %v7580_v21  ;;  %16132 = vst [vmem:[#allocation46_spill] sm:$0xff] %v15302_v52 }
 0x5b6   : > { %16129 = vst [vmem:[#allocation45_spill] sm:$0xff] %v15294_v61  ;;  %v8656_v3 = vsel %vm8144_vm10, %v7888_v42, %v8400_v41  ;;  %v7891_v56 = vadd.f32 %v14177_v58, %v7613_v43  ;;  %v7583_v45 = vmul.f32 %v14185_v15, %v16130_v46  ;;  %v15305_v42 = vpop.f32.mrb[65].mxu1  ;;  %v15307_v43 = vpop.f32.mrb[104].mxu0  ;;  %v7892_v46 = vadd.f32 %v14182_v6, %v7614_v27  ;;  %v16135_v61 = vld [vmem:[#allocation48_spill] sm:$0xff] }
 0x5b7   : > { %v9044_v29 = vadd.f32 %v8656_v3, %v8652_v35  ;;  %v8625_v4 = vsel %vm8113_vm12, %v7857_v55, %v8369_v40  ;;  %vm8114_vm11 = vcmp.ge.f32.partialorder %v7858_v30, 0.0  ;;  %v8370_v2 = vmul.f32 0.1, %v7858_v30  ;;  %16133 = vst [vmem:[#allocation47_spill] sm:$0xff] %v15305_v42  ;;  %16134 = vst [vmem:[#allocation65_spill] sm:$0xff] %v15307_v43 }
 0x5b8   : > { %v8954_v50 = vadd.f32 %v8953_v34, %v8625_v4  ;;  %vm8147_vm13 = vcmp.ge.f32.partialorder %v7891_v56, 0.0  ;;  %v8403_v12 = vmul.f32 0.1, %v7891_v56  ;;  %v7861_v21 = vadd.f32 %v14214_v14, %v7583_v45  ;;  %v15314_v4 = vpop.f32.mrb[66].mxu1  ;;  %v15316_v45 = vpop.f32.mrb[105].mxu0 }
 0x5b9   : > { %v8626_v41 = vsel %vm8114_vm11, %v7858_v30, %v8370_v2  ;;  %v7584_v35 = vmul.f32 %v14203_v23, %v16135_v61  ;;  %v7617_v55 = vmul.f32 %v14171_v25, %v16136_v22  ;;  %16137 = vst [vmem:[#allocation48_spill] sm:$0xff] %v15314_v4  ;;  %16138 = vst [vmem:[#allocation49_spill] sm:$0xff] %v15316_v45  ;;  %vm8148_vm15 = vcmp.ge.f32.partialorder %v7892_v46, 0.0  ;;  %v16139_v61 = vld [vmem:[#allocation13_spill] sm:$0xff]  ;;  %v16140_v22 = vld [vmem:[#allocation15_spill] sm:$0xff]  ;;  %v15324_v4 = vpop.f32.mrb[67].mxu1 }
 0x5ba   : > { %v8967_v3 = vadd.f32 %v8966_v38, %v8626_v41  ;;  %v8659_v40 = vsel %vm8147_vm13, %v7891_v56, %v8403_v12  ;;  %vm8117_vm14 = vcmp.ge.f32.partialorder %v7861_v21, 0.0  ;;  %v8373_v34 = vmul.f32 0.1, %v7861_v21  ;;  %16141 = vst [vmem:[#allocation13_spill] sm:$0xff] %v15324_v4  ;;  %v16147_v4 = vld [vmem:[#allocation54_spill] sm:$0xff] }
 0x5bb   : > { %v9032_v42 = vadd.f32 %v9031_v0, %v8659_v40  ;;  %v8404_v43 = vmul.f32 0.1, %v7892_v46  ;;  %v7862_v30 = vadd.f32 %v14220_v7, %v7584_v35  ;;  %v7895_v2 = vadd.f32 %v14177_v58, %v7617_v55  ;;  %v15326_v0 = vpop.f32.mrb[106].mxu0 }
 0x5bc   : > { %v8629_v27 = vsel %vm8117_vm14, %v7861_v21, %v8373_v34  ;;  %v7618_v52 = vmul.f32 %v14179_v59, %v16139_v61  ;;  %v7587_v38 = vmul.f32 %v14185_v15, %v16140_v22  ;;  %16142 = vst [vmem:[#allocation15_spill] sm:$0xff] %v15326_v0  ;;  %v16143_v61 = vld [vmem:[#allocation17_spill] sm:$0xff]  ;;  %v16144_v22 = vld [vmem:[#allocation52_spill] sm:$0xff] }
 0x5bd   : > { %v8955_v56 = vadd.f32 %v8954_v50, %v8629_v27  ;;  %v8660_v12 = vsel %vm8148_vm15, %v7892_v46, %v8404_v43  ;;  %vm8118_vm2 = vcmp.ge.f32.partialorder %v7862_v30, 0.0  ;;  %v8374_v41 = vmul.f32 0.1, %v7862_v30  ;;  %v15334_v43 = vpop.f32.mrb[107].mxu0 }
 0x5be   : > { %v9045_v40 = vadd.f32 %v9044_v29, %v8660_v12  ;;  %vm8151_vm3 = vcmp.ge.f32.partialorder %v7895_v2, 0.0  ;;  %v8407_v35 = vmul.f32 0.1, %v7895_v2  ;;  %v7896_v21 = vadd.f32 %v14182_v6, %v7618_v52  ;;  %16145 = vst [vmem:[#allocation17_spill] sm:$0xff] %v15334_v43 }
 0x5bf   : > { %v8630_v55 = vsel %vm8118_vm2, %v7862_v30, %v8374_v41  ;;  %v7865_v34 = vadd.f32 %v14214_v14, %v7587_v38  ;;  %v7588_v45 = vmul.f32 %v14203_v23, %v16143_v61  ;;  %v7621_v50 = vmul.f32 %v14171_v25, %v16144_v22  ;;  %v16146_v41 = vld [vmem:[#allocation53_spill] sm:$0xff] }
 0x5c0   : > { %v8968_v46 = vadd.f32 %v8967_v3, %v8630_v55  ;;  %v8663_v27 = vsel %vm8151_vm3, %v7895_v2, %v8407_v35  ;;  %vm8152_vm0 = vcmp.ge.f32.partialorder %v7896_v21, 0.0  ;;  %v8408_v0 = vmul.f32 0.1, %v7896_v21  ;;  %v15343_v55 = vpop.f32.mrb[68].mxu1 }
 0x5c1   : > { %v9033_v29 = vadd.f32 %v9032_v42, %v8663_v27  ;;  %vm8121_vm4 = vcmp.ge.f32.partialorder %v7865_v34, 0.0  ;;  %v8377_v12 = vmul.f32 0.1, %v7865_v34  ;;  %v7866_v52 = vadd.f32 %v14220_v7, %v7588_v45  ;;  %v16149_v27 = vld [vmem:[#allocation20_spill] sm:$0xff] }
 0x5c2   : > { %v8664_v30 = vsel %vm8152_vm0, %v7896_v21, %v8408_v0  ;;  %v7899_v38 = vadd.f32 %v14177_v58, %v7621_v50  ;;  %v7591_v61 = vmul.f32 %v14185_v15, %v16146_v41  ;;  %v7622_v22 = vmul.f32 %v14179_v59, %v16147_v4  ;;  %v16148_v21 = vld [vmem:[#allocation19_spill] sm:$0xff] }
 0x5c3   : > { %v9046_v26 = vadd.f32 %v9045_v40, %v8664_v30  ;;  %v8633_v43 = vsel %vm8121_vm4, %v7865_v34, %v8377_v12  ;;  %vm8122_vm5 = vcmp.ge.f32.partialorder %v7866_v52, 0.0  ;;  %v8378_v3 = vmul.f32 0.1, %v7866_v52  ;;  %v15350_v40 = vpop.f32.mrb[69].mxu1 }
 0x5c4   : > { %v8956_v2 = vadd.f32 %v8955_v56, %v8633_v43  ;;  %vm8155_vm6 = vcmp.ge.f32.partialorder %v7899_v38, 0.0  ;;  %v8411_v42 = vmul.f32 0.1, %v7899_v38  ;;  %v7869_v35 = vadd.f32 %v14214_v14, %v7591_v61  ;;  %v15352_v43 = vpop.f32.mrb[70].mxu1 }
 0x5c5   : > { %v8634_v45 = vsel %vm8122_vm5, %v7866_v52, %v8378_v3  ;;  %v7900_v0 = vadd.f32 %v14182_v6, %v7622_v22  ;;  %v7592_v50 = vmul.f32 %v14203_v23, %v16148_v21  ;;  %v7625_v4 = vmul.f32 %v14171_v25, %v16149_v27  ;;  %v16150_v3 = vld [vmem:[#allocation22_spill] sm:$0xff] }
 0x5c6   : > { %v8969_v34 = vadd.f32 %v8968_v46, %v8634_v45  ;;  %v8667_v12 = vsel %vm8155_vm6, %v7899_v38, %v8411_v42  ;;  %vm8125_vm7 = vcmp.ge.f32.partialorder %v7869_v35, 0.0  ;;  %v8381_v56 = vmul.f32 0.1, %v7869_v35  ;;  %v15360_v45 = vpop.f32.mrb[71].mxu1 }
 0x5c7   : > { %v9034_v30 = vadd.f32 %v9033_v29, %v8667_v12  ;;  %vm8156_vm8 = vcmp.ge.f32.partialorder %v7900_v0, 0.0  ;;  %v8412_v41 = vmul.f32 0.1, %v7900_v0  ;;  %v7870_v52 = vadd.f32 %v14220_v7, %v7592_v50 }
 0x5c8   : > { %v8637_v61 = vsel %vm8125_vm7, %v7869_v35, %v8381_v56  ;;  %v7903_v22 = vadd.f32 %v14177_v58, %v7625_v4  ;;  %v7626_v21 = vmul.f32 %v14179_v59, %v16150_v3  ;;  %v7595_v27 = vmul.f32 %v14185_v15, %v14960_v44 }
 0x5c9   : > { %v8957_v46 = vadd.f32 %v8956_v2, %v8637_v61  ;;  %v8668_v38 = vsel %vm8156_vm8, %v7900_v0, %v8412_v41  ;;  %vm8126_vm9 = vcmp.ge.f32.partialorder %v7870_v52, 0.0  ;;  %v8382_v42 = vmul.f32 0.1, %v7870_v52 }
 0x5ca   : > { %v9047_v29 = vadd.f32 %v9046_v26, %v8668_v38  ;;  %vm8159_vm10 = vcmp.ge.f32.partialorder %v7903_v22, 0.0  ;;  %v8415_v12 = vmul.f32 0.1, %v7903_v22  ;;  %v7904_v50 = vadd.f32 %v14182_v6, %v7626_v21 }
 0x5cb   : > { %v8638_v35 = vsel %vm8126_vm9, %v7870_v52, %v8382_v42  ;;  %v7873_v4 = vadd.f32 %v14214_v14, %v7595_v27  ;;  %v7596_v56 = vmul.f32 %v14203_v23, %v14962_v32  ;;  %v7629_v44 = vmul.f32 %v14171_v25, %v14968_v17  ;;  %v15374_v27 = vpop.f32.mrb[72].mxu1 }
 0x5cc   : > { %v8970_v2 = vadd.f32 %v8969_v34, %v8638_v35  ;;  %v8671_v0 = vsel %vm8159_vm10, %v7903_v22, %v8415_v12  ;;  %vm8160_vm12 = vcmp.ge.f32.partialorder %v7904_v50, 0.0  ;;  %v8416_v41 = vmul.f32 0.1, %v7904_v50 }
 0x5cd   : > { %v9035_v61 = vadd.f32 %v9034_v30, %v8671_v0  ;;  %vm8129_vm11 = vcmp.ge.f32.partialorder %v7873_v4, 0.0  ;;  %v8385_v26 = vmul.f32 0.1, %v7873_v4  ;;  %v7874_v3 = vadd.f32 %v14220_v7, %v7596_v56  ;;  %v15376_v30 = vpop.f32.mrb[73].mxu1 }
 0x5ce   : > { %v8672_v38 = vsel %vm8160_vm12, %v7904_v50, %v8416_v41  ;;  %v7907_v52 = vadd.f32 %v14177_v58, %v7629_v44  ;;  %v7599_v21 = vmul.f32 %v14185_v15, %v14970_v33  ;;  %v7630_v32 = vmul.f32 %v14179_v59, %v14976_v11  ;;  %v15379_v35 = vpop.f32.mrb[74].mxu1 }
 0x5cf   : > { %v9048_v17 = vadd.f32 %v9047_v29, %v8672_v38  ;;  %v8641_v34 = vsel %vm8129_vm11, %v7873_v4, %v8385_v26  ;;  %vm8130_vm13 = vcmp.ge.f32.partialorder %v7874_v3, 0.0  ;;  %v8386_v22 = vmul.f32 0.1, %v7874_v3  ;;  %v15387_v38 = vpop.f32.mrb[75].mxu1 }
 0x5d0   : > { %v8958_v42 = vadd.f32 %v8957_v46, %v8641_v34  ;;  %vm8163_vm14 = vcmp.ge.f32.partialorder %v7907_v52, 0.0  ;;  %v8419_v12 = vmul.f32 0.1, %v7907_v52  ;;  %v7877_v50 = vadd.f32 %v14214_v14, %v7599_v21 }
 0x5d1   : > { %v8642_v56 = vsel %vm8130_vm13, %v7874_v3, %v8386_v22  ;;  %v7908_v33 = vadd.f32 %v14182_v6, %v7630_v32  ;;  %v7600_v11 = vmul.f32 %v14203_v23, %v14978_v31  ;;  %v7633_v29 = vmul.f32 %v14171_v25, %v14981_v54  ;;  %v16151_v32 = vld [vmem:[#allocation55_spill] sm:$0xff] }
 0x5d2   : > { %v8971_v4 = vadd.f32 %v8970_v2, %v8642_v56  ;;  %v8675_v44 = vsel %vm8163_vm14, %v7907_v52, %v8419_v12  ;;  %vm8133_vm15 = vcmp.ge.f32.partialorder %v7877_v50, 0.0  ;;  %v8389_v0 = vmul.f32 0.1, %v7877_v50  ;;  %v10973_v2 = vld [vmem:[%s15825_s13 + $0x70] sm:$0xff]  }
 0x5d3   : > { %v9036_v46 = vadd.f32 %v9035_v61, %v8675_v44  ;;  %vm8164_vm2 = vcmp.ge.f32.partialorder %v7908_v33, 0.0  ;;  %v8420_v41 = vmul.f32 0.1, %v7908_v33  ;;  %v7878_v26 = vadd.f32 %v14220_v7, %v7600_v11  ;;  %10330 = vmatprep.subr.bf16.mxu1 %v10973_v2 }
 0x5d4   : > { %v8645_v3 = vsel %vm8133_vm15, %v7877_v50, %v8389_v0  ;;  %v7911_v21 = vadd.f32 %v14177_v58, %v7633_v29  ;;  %v7634_v31 = vmul.f32 %v14179_v59, %v16151_v32  ;;  %v7603_v54 = vmul.f32 %v14185_v15, %v14994_v53 }
 0x5d5   : > { %v8959_v61 = vadd.f32 %v8958_v42, %v8645_v3  ;;  %v8676_v52 = vsel %vm8164_vm2, %v7908_v33, %v8420_v41  ;;  %vm8134_vm3 = vcmp.ge.f32.partialorder %v7878_v26, 0.0  ;;  %v8390_v34 = vmul.f32 0.1, %v7878_v26  ;;  %v15404_v33 = vpop.f32.mrb[76].mxu1 }
 0x5d6   : > { %v9049_v22 = vadd.f32 %v9048_v17, %v8676_v52  ;;  %vm8167_vm0 = vcmp.ge.f32.partialorder %v7911_v21, 0.0  ;;  %v8423_v12 = vmul.f32 0.1, %v7911_v21  ;;  %v7912_v50 = vadd.f32 %v14182_v6, %v7634_v31  ;;  %v10974_v17 = vld [vmem:[%s15825_s13 + $0x30] sm:$0xff]   ;;  %16152 = vst [vmem:[#allocation52_spill] sm:$0xff] %v15404_v33 }
 0x5d7   : > { %v8960_v56 = vrot.slane %v8959_v61, 4  ;;  %v8646_v11 = vsel %vm8134_vm3, %v7878_v26, %v8390_v34  ;;  %v7881_v29 = vadd.f32 %v14214_v14, %v7603_v54  ;;  %v7604_v53 = vmul.f32 %v14203_v23, %v14996_v60  ;;  %v15406_v26 = vpop.f32.mrb[77].mxu1  ;;  %10331 = vmatpush3.bf16.msra.mxu1 %v10974_v17 }
 0x5d8   : > { %v8972_v44 = vadd.f32 %v8971_v4, %v8646_v11  ;;  %v8679_v0 = vsel %vm8167_vm0, %v7911_v21, %v8423_v12  ;;  %vm8168_vm4 = vcmp.ge.f32.partialorder %v7912_v50, 0.0  ;;  %v8424_v42 = vmul.f32 0.1, %v7912_v50  ;;  %16153 = vst [vmem:[#allocation53_spill] sm:$0xff] %v15406_v26  ;;  %v15411_v21 = vpop.f32.mrb[78].mxu1 }
 0x5d9   : > { %v8961_v41 = vadd.f32 %v8960_v56, %v8959_v61  ;;  %v9037_v3 = vadd.f32 %v9036_v46, %v8679_v0  ;;  %vm8137_vm5 = vcmp.ge.f32.partialorder %v7881_v29, 0.0  ;;  %v8393_v32 = vmul.f32 0.1, %v7881_v29  ;;  %16154 = vst [vmem:[#allocation54_spill] sm:$0xff] %v15411_v21  ;;  %v15413_v61 = vpop.f32.mrb[79].mxu1 }
 0x5da   : > { %v8973_v31 = vrot.slane %v8972_v44, 4  ;;  %v8680_v54 = vsel %vm8168_vm4, %v7912_v50, %v8424_v42  ;;  %v7882_v60 = vadd.f32 %v14220_v7, %v7604_v53  ;;  %v7637_v4 = vmul.f32 %v14171_v25, %v15006_v36  ;;  %16155 = vst [vmem:[#allocation19_spill] sm:$0xff] %v15413_v61  ;;  %v16156_v42 = vld [vmem:[#allocation25_spill] sm:$0xff] }
 0x5db   : > { %v8962_v2 = vrot.slane %v8961_v41, 2  ;;  %v9038_v52 = vrot.slane %v9037_v3, 4  ;;  %v9050_v34 = vadd.f32 %v9049_v22, %v8680_v54  ;;  %v8649_v12 = vsel %vm8137_vm5, %v7881_v29, %v8393_v32 }
 0x5dc   : > { %v8974_v46 = vadd.f32 %v8973_v31, %v8972_v44  ;;  %vm8138_vm6 = vcmp.ge.f32.partialorder %v7882_v60, 0.0  ;;  %v8394_v56 = vmul.f32 0.1, %v7882_v60  ;;  %v7915_v11 = vadd.f32 %v14177_v58, %v7637_v4 }
 0x5dd   : > { %v8963_v50 = vadd.f32 %v8962_v2, %v8961_v41  ;;  %v9039_v0 = vadd.f32 %v9038_v52, %v9037_v3  ;;  %v9051_v53 = vrot.slane %v9050_v34, 4  ;;  %v7607_v36 = vmul.f32 %v14185_v15, %v16156_v42  ;;  %v15423_v3 = vpop.f32.mrb[80].mxu1 }
 0x5de   : > { %v8975_v17 = vrot.slane %v8974_v46, 2  ;;  %v8650_v26 = vsel %vm8138_vm6, %v7882_v60, %v8394_v56  ;;  %vm8171_vm7 = vcmp.ge.f32.partialorder %v7915_v11, 0.0  ;;  %v8427_v21 = vmul.f32 0.1, %v7915_v11  ;;  %16157 = vst [vmem:[#allocation20_spill] sm:$0xff] %v15423_v3  ;;  %v15425_v52 = vpop.f32.mrb[81].mxu1 }
 0x5df   : > { %v8964_v33 = vrot.slane %v8963_v50, 1  ;;  %v9040_v22 = vrot.slane %v9039_v0, 2  ;;  %v9052_v29 = vadd.f32 %v9051_v53, %v9050_v34  ;;  %v7885_v32 = vadd.f32 %v14214_v14, %v7607_v36  ;;  %16158 = vst [vmem:[#allocation22_spill] sm:$0xff] %v15425_v52 }
 0x5e0   : > { %v8976_v44 = vadd.f32 %v8975_v17, %v8974_v46  ;;  %v8683_v31 = vsel %vm8171_vm7, %v7915_v11, %v8427_v21  ;;  %v7638_v54 = vmul.f32 %v14179_v59, %v15020_v9  ;;  %v7608_v41 = vmul.f32 %v14203_v23, %v15022_v47  ;;  %v15429_v46 = vpop.f32.mrb[82].mxu1  ;;  %v16160_v47 = vld [vmem:[#allocation56_spill] sm:$0xff] }
 0x5e1   : > { %v8965_v4 = vadd.f32 %v8964_v33, %v8963_v50  ;;  %v9041_v2 = vadd.f32 %v9040_v22, %v9039_v0  ;;  %v9053_v60 = vrot.slane %v9052_v29, 2  ;;  %vm8141_vm8 = vcmp.ge.f32.partialorder %v7885_v32, 0.0  ;;  %16159 = vst [vmem:[#allocation55_spill] sm:$0xff] %v15429_v46  ;;  %v15433_v33 = vpop.f32.mrb[83].mxu1 }
 0x5e2   : > { %v8977_v56 = vrot.slane %v8976_v44, 1  ;;  %v8397_v34 = vmul.f32 0.1, %v7885_v32  ;;  %v7916_v53 = vadd.f32 %v14182_v6, %v7638_v54  ;;  %v7886_v21 = vadd.f32 %v14220_v7, %v7608_v41 }
 0x5e3   : > { %v9178_v9 = vmul.f32 0.015625, %v8965_v4  ;;  %v9042_v11 = vrot.slane %v9041_v2, 1  ;;  %v9054_v42 = vadd.f32 %v9053_v60, %v9052_v29  ;;  %v7641_v36 = vmul.f32 %v14171_v25, %v16160_v47 }
 0x5e4   : > { %v8978_v50 = vadd.f32 %v8977_v56, %v8976_v44  ;;  %v8653_v0 = vsel %vm8141_vm8, %v7885_v32, %v8397_v34  ;;  %vm8172_vm9 = vcmp.ge.f32.partialorder %v7916_v53, 0.0  ;;  %v8428_v17 = vmul.f32 0.1, %v7916_v53  ;;  %v16161_v56 = vld [vmem:[#allocation26_spill] sm:$0xff] }
 0x5e5   : > { %v9210_v22 = vpack.c.bf16 %v9178_v9, %v9178_v9  ;;  %v9043_v52 = vadd.f32 %v9042_v11, %v9041_v2  ;;  %v9055_v3 = vrot.slane %v9054_v42, 1  ;;  %v9005_v54 = vadd.f32 %v8653_v0, %v8649_v12 }
 0x5e6   : > { %v15435_v61 = vmul.f32 0.015625, %v8978_v50  ;;  %v8684_v41 = vsel %vm8172_vm9, %v7916_v53, %v8428_v17  ;;  %vm8142_vm10 = vcmp.ge.f32.partialorder %v7886_v21, 0.0  ;;  %v8398_v4 = vmul.f32 0.1, %v7886_v21 }
 0x5e7   : > { %v15437_v46 = vunpack.c.l.b16 %v9210_v22  ;;  %v9184_v29 = vmul.f32 0.015625, %v9043_v52  ;;  %v15439_v60 = vadd.f32 %v9055_v3, %v9054_v42  ;;  %v7919_v47 = vadd.f32 %v14177_v58, %v7641_v36 }
 0x5e8   : > { %v9211_v32 = vpack.c.bf16 %v15435_v61, %v15435_v61  ;;  %v8654_v44 = vsel %vm8142_vm10, %v7886_v21, %v8398_v4  ;;  %v7642_v2 = vmul.f32 %v14179_v59, %v16161_v56  ;;  %v7611_v12 = vmul.f32 %v14185_v15, %v15055_v16  ;;  %v16208_v61 = vld [vmem:[#allocation42_spill] sm:$0xff] }
 0x5e9   : > { %v9216_v34 = vpack.c.bf16 %v9184_v29, %v9184_v29  ;;  %v9018_v53 = vadd.f32 %v8654_v44, %v8650_v26  ;;  %vm8175_vm12 = vcmp.ge.f32.partialorder %v7919_v47, 0.0  ;;  %v8431_v9 = vmul.f32 0.1, %v7919_v47  ;;  %v16163_v44 = vld [vmem:[#allocation3_spill] sm:$0xff] }
 0x5ea   : > { %v7920_v52 = vadd.f32 %v14182_v6, %v7642_v2  ;;  %v7889_v3 = vadd.f32 %v14214_v14, %v7611_v12  ;;  %v7612_v11 = vmul.f32 %v14203_v23, %v15058_v37  ;;  %v7645_v21 = vmul.f32 %v14171_v25, %v15060_v63 }
 0x5eb   : > { %v15454_v42 = vunpack.c.l.b16 %v9216_v34  ;;  %v8687_v36 = vsel %vm8175_vm12, %v7919_v47, %v8431_v9  ;;  %v7615_v16 = vmul.f32 %v14185_v15, %v15062_v39  ;;  %v7646_v26 = vmul.f32 %v14179_v59, %v15064_v1  ;;  %v16162_v47 = vld [vmem:[#allocation4_spill] sm:$0xff] }
 0x5ec   : > { %v9083_v50 = vadd.f32 %v8687_v36, %v8683_v31  ;;  %vm8176_vm11 = vcmp.ge.f32.partialorder %v7920_v52, 0.0  ;;  %v8432_v0 = vmul.f32 0.1, %v7920_v52  ;;  %vm8145_vm13 = vcmp.ge.f32.partialorder %v7889_v3, 0.0 }
 0x5ed   : > { %v8401_v17 = vmul.f32 0.1, %v7889_v3  ;;  %v7890_v22 = vadd.f32 %v14220_v7, %v7612_v11  ;;  %v7923_v37 = vadd.f32 %v14177_v58, %v7645_v21  ;;  %v7893_v63 = vadd.f32 %v14214_v14, %v7615_v16 }
 0x5ee   : > { %v8688_v4 = vsel %vm8176_vm11, %v7920_v52, %v8432_v0  ;;  %v7924_v29 = vadd.f32 %v14182_v6, %v7646_v26  ;;  %v7616_v39 = vmul.f32 %v14203_v23, %v16162_v47  ;;  %v7649_v1 = vmul.f32 %v14171_v25, %v16163_v44 }
 0x5ef   : > { %v9096_v31 = vadd.f32 %v8688_v4, %v8684_v41  ;;  %v8657_v56 = vsel %vm8145_vm13, %v7889_v3, %v8401_v17  ;;  %vm8146_vm14 = vcmp.ge.f32.partialorder %v7890_v22, 0.0  ;;  %v8402_v2 = vmul.f32 0.1, %v7890_v22  ;;  %v16164_v3 = vld [vmem:[#allocation57_spill] sm:$0xff] }
 0x5f0   : > { %v9006_v12 = vadd.f32 %v9005_v54, %v8657_v56  ;;  %vm8179_vm15 = vcmp.ge.f32.partialorder %v7923_v37, 0.0  ;;  %v8435_v34 = vmul.f32 0.1, %v7923_v37  ;;  %vm8149_vm2 = vcmp.ge.f32.partialorder %v7893_v63, 0.0 }
 0x5f1   : > { %v8658_v9 = vsel %vm8146_vm14, %v7890_v22, %v8402_v2  ;;  %v8405_v11 = vmul.f32 0.1, %v7893_v63  ;;  %vm8180_vm3 = vcmp.ge.f32.partialorder %v7924_v29, 0.0  ;;  %v8436_v52 = vmul.f32 0.1, %v7924_v29  ;;  %v10975_v2 = vld [vmem:[%s15825_s13 + $0x78] sm:$0xff]  }
 0x5f2   : > { %v9019_v21 = vadd.f32 %v9018_v53, %v8658_v9  ;;  %v8691_v36 = vsel %vm8179_vm15, %v7923_v37, %v8435_v34  ;;  %v7894_v16 = vadd.f32 %v14220_v7, %v7616_v39  ;;  %v7927_v26 = vadd.f32 %v14177_v58, %v7649_v1  ;;  %10332 = vmatprep.subr.bf16.mxu1 %v10975_v2 }
 0x5f3   : > { %v9084_v0 = vadd.f32 %v9083_v50, %v8691_v36  ;;  %v8661_v47 = vsel %vm8149_vm2, %v7893_v63, %v8405_v11  ;;  %v8692_v41 = vsel %vm8180_vm3, %v7924_v29, %v8436_v52  ;;  %v7650_v17 = vmul.f32 %v14179_v59, %v16164_v3 }
 0x5f4   : > { %v9007_v54 = vadd.f32 %v9006_v12, %v8661_v47  ;;  %v9097_v4 = vadd.f32 %v9096_v31, %v8692_v41  ;;  %vm8150_vm0 = vcmp.ge.f32.partialorder %v7894_v16, 0.0  ;;  %v8406_v44 = vmul.f32 0.1, %v7894_v16 }
 0x5f5   : > { %vm8183_vm4 = vcmp.ge.f32.partialorder %v7927_v26, 0.0  ;;  %v8439_v22 = vmul.f32 0.1, %v7927_v26  ;;  %v7928_v56 = vadd.f32 %v14182_v6, %v7650_v17  ;;  %v7619_v53 = vmul.f32 %v14185_v15, %v15083_v49  ;;  %v10976_v49 = vld [vmem:[%s15825_s13 + $0x38] sm:$0xff]  }
 0x5f6   : > { %v8662_v37 = vsel %vm8150_vm0, %v7894_v16, %v8406_v44  ;;  %v7620_v50 = vmul.f32 %v14203_v23, %v15089_v13  ;;  %v7653_v63 = vmul.f32 %v14171_v25, %v15091_v18  ;;  %v7623_v29 = vmul.f32 %v14185_v15, %v15097_v8  ;;  %10333 = vmatpush3.bf16.msra.mxu1 %v10976_v49 }
 0x5f7   : > { %v9020_v39 = vadd.f32 %v9019_v21, %v8662_v37  ;;  %v8695_v1 = vsel %vm8183_vm4, %v7927_v26, %v8439_v22  ;;  %vm8184_vm5 = vcmp.ge.f32.partialorder %v7928_v56, 0.0  ;;  %v8440_v31 = vmul.f32 0.1, %v7928_v56  ;;  %v10977_v22 = vld [vmem:[%s15825_s13 + $0xc0] sm:$0xff]  }
 0x5f8   : > { %v9085_v12 = vadd.f32 %v9084_v0, %v8695_v1  ;;  %v7897_v13 = vadd.f32 %v14214_v14, %v7619_v53  ;;  %v7898_v18 = vadd.f32 %v14220_v7, %v7620_v50  ;;  %v7931_v34 = vadd.f32 %v14177_v58, %v7653_v63  ;;  %10340 = vmatprep.subr.bf16.mxu1 %v10977_v22  ;;  %v16166_v1 = vld [vmem:[#allocation29_spill] sm:$0xff] }
 0x5f9   : > { %v8696_v8 = vsel %vm8184_vm5, %v7928_v56, %v8440_v31  ;;  %v7901_v9 = vadd.f32 %v14214_v14, %v7623_v29  ;;  %v7654_v11 = vmul.f32 %v14179_v59, %v15099_v48  ;;  %v7624_v52 = vmul.f32 %v14203_v23, %v15105_v24  ;;  %v16165_v24 = vld [vmem:[#allocation58_spill] sm:$0xff] }
 0x5fa   : > { %v9098_v21 = vadd.f32 %v9097_v4, %v8696_v8  ;;  %vm8153_vm6 = vcmp.ge.f32.partialorder %v7897_v13, 0.0  ;;  %v8409_v36 = vmul.f32 0.1, %v7897_v13  ;;  %vm8154_vm7 = vcmp.ge.f32.partialorder %v7898_v18, 0.0 }
 0x5fb   : > { %v8410_v16 = vmul.f32 0.1, %v7898_v18  ;;  %vm8187_vm8 = vcmp.ge.f32.partialorder %v7931_v34, 0.0  ;;  %v8443_v26 = vmul.f32 0.1, %v7931_v34  ;;  %vm8157_vm9 = vcmp.ge.f32.partialorder %v7901_v9, 0.0 }
 0x5fc   : > { %v8665_v0 = vsel %vm8153_vm6, %v7897_v13, %v8409_v36  ;;  %v8413_v47 = vmul.f32 0.1, %v7901_v9  ;;  %v7932_v41 = vadd.f32 %v14182_v6, %v7654_v11  ;;  %v7902_v3 = vadd.f32 %v14220_v7, %v7624_v52 }
 0x5fd   : > { %v9008_v48 = vadd.f32 %v9007_v54, %v8665_v0  ;;  %v8666_v17 = vsel %vm8154_vm7, %v7898_v18, %v8410_v16  ;;  %v8699_v44 = vsel %vm8187_vm8, %v7931_v34, %v8443_v26  ;;  %v7657_v4 = vmul.f32 %v14171_v25, %v16165_v24  ;;  %v16167_v18 = vld [vmem:[#allocation28_spill] sm:$0xff]  ;;  %v16168_v0 = vld [vmem:[#allocation30_spill] sm:$0xff] }
 0x5fe   : > { %v9021_v56 = vadd.f32 %v9020_v39, %v8666_v17  ;;  %v9086_v53 = vadd.f32 %v9085_v12, %v8699_v44  ;;  %v8669_v37 = vsel %vm8157_vm9, %v7901_v9, %v8413_v47  ;;  %vm8188_vm10 = vcmp.ge.f32.partialorder %v7932_v41, 0.0  ;;  %v16169_v47 = vld [vmem:[#allocation61_spill] sm:$0xff] }
 0x5ff   : > { %v9009_v50 = vadd.f32 %v9008_v48, %v8669_v37  ;;  %v8444_v63 = vmul.f32 0.1, %v7932_v41  ;;  %vm8158_vm12 = vcmp.ge.f32.partialorder %v7902_v3, 0.0  ;;  %v8414_v29 = vmul.f32 0.1, %v7902_v3 }
 0x600   : > { %v7935_v54 = vadd.f32 %v14177_v58, %v7657_v4  ;;  %v7658_v31 = vmul.f32 %v14179_v59, %v16166_v1  ;;  %v7627_v2 = vmul.f32 %v14185_v15, %v15134_v62  ;;  %v7628_v49 = vmul.f32 %v14203_v23, %v15137_v28 }
 0x601   : > { %v8700_v39 = vsel %vm8188_vm10, %v7932_v41, %v8444_v63  ;;  %v8670_v12 = vsel %vm8158_vm12, %v7902_v3, %v8414_v29  ;;  %v7661_v13 = vmul.f32 %v14171_v25, %v15139_v19  ;;  %v7631_v34 = vmul.f32 %v14185_v15, %v16167_v18  ;;  %v16171_v18 = vld [vmem:[#allocation31_spill] sm:$0xff] }
 0x602   : > { %v9099_v8 = vadd.f32 %v9098_v21, %v8700_v39  ;;  %v9022_v9 = vadd.f32 %v9021_v56, %v8670_v12  ;;  %vm8191_vm11 = vcmp.ge.f32.partialorder %v7935_v54, 0.0  ;;  %v8447_v11 = vmul.f32 0.1, %v7935_v54  ;;  %v16170_v12 = vld [vmem:[#allocation62_spill] sm:$0xff] }
 0x603   : > { %v7936_v52 = vadd.f32 %v14182_v6, %v7658_v31  ;;  %v7905_v36 = vadd.f32 %v14214_v14, %v7627_v2  ;;  %v7906_v62 = vadd.f32 %v14220_v7, %v7628_v49  ;;  %v7939_v28 = vadd.f32 %v14177_v58, %v7661_v13 }
 0x604   : > { %v8703_v16 = vsel %vm8191_vm11, %v7935_v54, %v8447_v11  ;;  %v7909_v26 = vadd.f32 %v14214_v14, %v7631_v34  ;;  %v7662_v19 = vmul.f32 %v14179_v59, %v16168_v0  ;;  %v7632_v21 = vmul.f32 %v14203_v23, %v16169_v47 }
 0x605   : > { %v9087_v41 = vadd.f32 %v9086_v53, %v8703_v16  ;;  %vm8192_vm13 = vcmp.ge.f32.partialorder %v7936_v52, 0.0  ;;  %v8448_v3 = vmul.f32 0.1, %v7936_v52  ;;  %vm8161_vm14 = vcmp.ge.f32.partialorder %v7905_v36, 0.0 }
 0x606   : > { %v8417_v48 = vmul.f32 0.1, %v7905_v36  ;;  %vm8162_vm15 = vcmp.ge.f32.partialorder %v7906_v62, 0.0  ;;  %v8418_v17 = vmul.f32 0.1, %v7906_v62  ;;  %vm8195_vm2 = vcmp.ge.f32.partialorder %v7939_v28, 0.0 }
 0x607   : > { %v8704_v44 = vsel %vm8192_vm13, %v7936_v52, %v8448_v3  ;;  %v8451_v24 = vmul.f32 0.1, %v7939_v28  ;;  %vm8165_vm3 = vcmp.ge.f32.partialorder %v7909_v26, 0.0  ;;  %v8421_v4 = vmul.f32 0.1, %v7909_v26 }
 0x608   : > { %v9100_v22 = vadd.f32 %v9099_v8, %v8704_v44  ;;  %v8673_v56 = vsel %vm8161_vm14, %v7905_v36, %v8417_v48  ;;  %v8674_v37 = vsel %vm8162_vm15, %v7906_v62, %v8418_v17  ;;  %v7940_v63 = vadd.f32 %v14182_v6, %v7662_v19  ;;  %v16172_v8 = vld [vmem:[#allocation32_spill] sm:$0xff] }
 0x609   : > { %v9010_v29 = vadd.f32 %v9009_v50, %v8673_v56  ;;  %v9023_v54 = vadd.f32 %v9022_v9, %v8674_v37  ;;  %v8707_v1 = vsel %vm8195_vm2, %v7939_v28, %v8451_v24  ;;  %v8677_v53 = vsel %vm8165_vm3, %v7909_v26, %v8421_v4  ;;  %v16173_v9 = vld [vmem:[#allocation33_spill] sm:$0xff] }
 0x60a   : > { %v9088_v31 = vadd.f32 %v9087_v41, %v8707_v1  ;;  %vm8196_vm0 = vcmp.ge.f32.partialorder %v7940_v63, 0.0  ;;  %v8452_v2 = vmul.f32 0.1, %v7940_v63  ;;  %v7910_v49 = vadd.f32 %v14220_v7, %v7632_v21  ;;  %v16174_v21 = vld [vmem:[#allocation34_spill] sm:$0xff] }
 0x60b   : > { %v9011_v39 = vadd.f32 %v9010_v29, %v8677_v53  ;;  %v7665_v13 = vmul.f32 %v14171_v25, %v16170_v12  ;;  %v7666_v34 = vmul.f32 %v14179_v59, %v16171_v18  ;;  %v7635_v11 = vmul.f32 %v14185_v15, %v16172_v8 }
 0x60c   : > { %v8708_v52 = vsel %vm8196_vm0, %v7940_v63, %v8452_v2  ;;  %vm8166_vm4 = vcmp.ge.f32.partialorder %v7910_v49, 0.0  ;;  %v8422_v50 = vmul.f32 0.1, %v7910_v49  ;;  %v7636_v36 = vmul.f32 %v14203_v23, %v16173_v9 }
 0x60d   : > { %v9012_v62 = vrot.slane %v9011_v39, 4  ;;  %v9101_v28 = vadd.f32 %v9100_v22, %v8708_v52  ;;  %v7943_v16 = vadd.f32 %v14177_v58, %v7665_v13  ;;  %v7944_v26 = vadd.f32 %v14182_v6, %v7666_v34  ;;  %v16175_v13 = vld [vmem:[#allocation35_spill] sm:$0xff]  ;;  %v16176_v34 = vld [vmem:[#allocation6_spill] sm:$0xff] }
 0x60e   : > { %v8678_v0 = vsel %vm8166_vm4, %v7910_v49, %v8422_v50  ;;  %v7913_v19 = vadd.f32 %v14214_v14, %v7635_v11  ;;  %v7914_v47 = vadd.f32 %v14220_v7, %v7636_v36  ;;  %v7669_v41 = vmul.f32 %v14171_v25, %v16174_v21 }
 0x60f   : > { %v9013_v3 = vadd.f32 %v9012_v62, %v9011_v39  ;;  %v9024_v48 = vadd.f32 %v9023_v54, %v8678_v0  ;;  %vm8199_vm5 = vcmp.ge.f32.partialorder %v7943_v16, 0.0  ;;  %v8455_v17 = vmul.f32 0.1, %v7943_v16  ;;  %v16177_v0 = vld [vmem:[#allocation9_spill] sm:$0xff] }
 0x610   : > { %vm8200_vm6 = vcmp.ge.f32.partialorder %v7944_v26, 0.0  ;;  %v8456_v44 = vmul.f32 0.1, %v7944_v26  ;;  %vm8169_vm7 = vcmp.ge.f32.partialorder %v7913_v19, 0.0  ;;  %v8425_v24 = vmul.f32 0.1, %v7913_v19 }
 0x611   : > { %v9014_v4 = vrot.slane %v9013_v3, 2  ;;  %v9025_v22 = vrot.slane %v9024_v48, 4  ;;  %v8711_v56 = vsel %vm8199_vm5, %v7943_v16, %v8455_v17  ;;  %vm8170_vm8 = vcmp.ge.f32.partialorder %v7914_v47, 0.0 }
 0x612   : > { %v9089_v37 = vadd.f32 %v9088_v31, %v8711_v56  ;;  %v8712_v63 = vsel %vm8200_vm6, %v7944_v26, %v8456_v44  ;;  %v8681_v29 = vsel %vm8169_vm7, %v7913_v19, %v8425_v24  ;;  %v8426_v1 = vmul.f32 0.1, %v7914_v47 }
 0x613   : > { %v9015_v53 = vadd.f32 %v9014_v4, %v9013_v3  ;;  %v9026_v2 = vadd.f32 %v9025_v22, %v9024_v48  ;;  %v9102_v49 = vadd.f32 %v9101_v28, %v8712_v63  ;;  %v7947_v39 = vadd.f32 %v14177_v58, %v7669_v41 }
 0x614   : > { %v9090_v54 = vrot.slane %v9089_v37, 4  ;;  %v8682_v12 = vsel %vm8170_vm8, %v7914_v47, %v8426_v1  ;;  %v7639_v18 = vmul.f32 %v14185_v15, %v16175_v13  ;;  %v7670_v8 = vmul.f32 %v14179_v59, %v16176_v34  ;;  %v16178_v13 = vld [vmem:[#allocation7_spill] sm:$0xff]  ;;  %v16179_v34 = vld [vmem:[#allocation36_spill] sm:$0xff] }
 0x615   : > { %v9016_v11 = vrot.slane %v9015_v53, 1  ;;  %v9027_v52 = vrot.slane %v9026_v2, 2  ;;  %v9103_v50 = vrot.slane %v9102_v49, 4  ;;  %vm8203_vm9 = vcmp.ge.f32.partialorder %v7947_v39, 0.0 }
 0x616   : > { %v9091_v31 = vadd.f32 %v9090_v54, %v9089_v37  ;;  %v8459_v9 = vmul.f32 0.1, %v7947_v39  ;;  %v7917_v36 = vadd.f32 %v14214_v14, %v7639_v18  ;;  %v7948_v62 = vadd.f32 %v14182_v6, %v7670_v8 }
 0x617   : > { %v9017_v28 = vadd.f32 %v9016_v11, %v9015_v53  ;;  %v9028_v16 = vadd.f32 %v9027_v52, %v9026_v2  ;;  %v9104_v26 = vadd.f32 %v9103_v50, %v9102_v49  ;;  %v7640_v19 = vmul.f32 %v14203_v23, %v16177_v0  ;;  %v16180_v50 = vld [vmem:[#allocation10_spill] sm:$0xff] }
 0x618   : > { %v9092_v47 = vrot.slane %v9091_v31, 2  ;;  %v8715_v21 = vsel %vm8203_vm9, %v7947_v39, %v8459_v9  ;;  %vm8173_vm10 = vcmp.ge.f32.partialorder %v7917_v36, 0.0  ;;  %v8429_v41 = vmul.f32 0.1, %v7917_v36 }
 0x619   : > { %v9182_v3 = vmul.f32 0.015625, %v9017_v28  ;;  %v9029_v48 = vrot.slane %v9028_v16, 1  ;;  %v9105_v17 = vrot.slane %v9104_v26, 2  ;;  %vm8204_vm12 = vcmp.ge.f32.partialorder %v7948_v62, 0.0 }
 0x61a   : > { %v9093_v44 = vadd.f32 %v9092_v47, %v9091_v31  ;;  %v8685_v24 = vsel %vm8173_vm10, %v7917_v36, %v8429_v41  ;;  %v8460_v4 = vmul.f32 0.1, %v7948_v62  ;;  %v7918_v22 = vadd.f32 %v14220_v7, %v7640_v19  ;;  %v16183_v41 = vld [vmem:[#allocation38_spill] sm:$0xff] }
 0x61b   : > { %v9214_v56 = vpack.c.bf16 %v9182_v3, %v9182_v3  ;;  %v15548_v37 = vadd.f32 %v9029_v48, %v9028_v16  ;;  %v15550_v63 = vadd.f32 %v9105_v17, %v9104_v26  ;;  %v9057_v1 = vadd.f32 %v8685_v24, %v8681_v29  ;;  %v16181_v29 = vld [vmem:[#allocation12_spill] sm:$0xff]  ;;  %v16182_v16 = vld [vmem:[#allocation37_spill] sm:$0xff] }
 0x61c   : > { %v9094_v53 = vrot.slane %v9093_v44, 1  ;;  %v8716_v2 = vsel %vm8204_vm12, %v7948_v62, %v8460_v4  ;;  %vm8174_vm11 = vcmp.ge.f32.partialorder %v7918_v22, 0.0  ;;  %v8430_v49 = vmul.f32 0.1, %v7918_v22 }
 0x61d   : > { %v15552_v39 = vunpack.c.l.b16 %v9214_v56  ;;  %v9107_v54 = vrot.slane %v15550_v63, 1  ;;  %v7673_v18 = vmul.f32 %v14171_v25, %v16178_v13  ;;  %v7674_v8 = vmul.f32 %v14179_v59, %v16179_v34 }
 0x61e   : > { %v9095_v11 = vadd.f32 %v9094_v53, %v9093_v44  ;;  %v8686_v52 = vsel %vm8174_vm11, %v7918_v22, %v8430_v49  ;;  %v7643_v31 = vmul.f32 %v14185_v15, %v16180_v50  ;;  %v7644_v9 = vmul.f32 %v14203_v23, %v16181_v29 }
 0x61f   : > { %v9070_v36 = vadd.f32 %v8686_v52, %v8682_v12  ;;  %v7951_v62 = vadd.f32 %v14177_v58, %v7673_v18  ;;  %v7952_v28 = vadd.f32 %v14182_v6, %v7674_v8  ;;  %v7677_v26 = vmul.f32 %v14171_v25, %v16182_v16  ;;  %v16186_v16 = vld [vmem:[#allocation11_spill] sm:$0xff] }
 0x620   : > { %v9188_v0 = vmul.f32 0.015625, %v9095_v11  ;;  %v7921_v19 = vadd.f32 %v14214_v14, %v7643_v31  ;;  %v7922_v47 = vadd.f32 %v14220_v7, %v7644_v9  ;;  %v7647_v3 = vmul.f32 %v14185_v15, %v16183_v41  ;;  %v16184_v31 = vld [vmem:[#allocation39_spill] sm:$0xff]  ;;  %v16185_v9 = vld [vmem:[#allocation40_spill] sm:$0xff] }
 0x621   : > { %vm8207_vm13 = vcmp.ge.f32.partialorder %v7951_v62, 0.0  ;;  %v8463_v48 = vmul.f32 0.1, %v7951_v62  ;;  %vm8208_vm14 = vcmp.ge.f32.partialorder %v7952_v28, 0.0  ;;  %v8464_v17 = vmul.f32 0.1, %v7952_v28 }
 0x622   : > { %v9220_v12 = vpack.c.bf16 %v9188_v0, %v9188_v0  ;;  %vm8177_vm15 = vcmp.ge.f32.partialorder %v7921_v19, 0.0  ;;  %v8433_v44 = vmul.f32 0.1, %v7921_v19  ;;  %vm8178_vm2 = vcmp.ge.f32.partialorder %v7922_v47, 0.0 }
 0x623   : > { %v8719_v24 = vsel %vm8207_vm13, %v7951_v62, %v8463_v48  ;;  %v8720_v4 = vsel %vm8208_vm14, %v7952_v28, %v8464_v17  ;;  %v8434_v22 = vmul.f32 0.1, %v7922_v47  ;;  %v7955_v56 = vadd.f32 %v14177_v58, %v7677_v26 }
 0x624   : > { %v15572_v53 = vunpack.c.l.b16 %v9220_v12  ;;  %v9135_v49 = vadd.f32 %v8719_v24, %v8715_v21  ;;  %v9148_v13 = vadd.f32 %v8720_v4, %v8716_v2  ;;  %v8689_v18 = vsel %vm8177_vm15, %v7921_v19, %v8433_v44 }
 0x625   : > { %v9058_v34 = vadd.f32 %v9057_v1, %v8689_v18  ;;  %v8690_v8 = vsel %vm8178_vm2, %v7922_v47, %v8434_v22  ;;  %vm8211_vm3 = vcmp.ge.f32.partialorder %v7955_v56, 0.0  ;;  %v8467_v11 = vmul.f32 0.1, %v7955_v56 }
 0x626   : > { %v9071_v52 = vadd.f32 %v9070_v36, %v8690_v8  ;;  %v7925_v50 = vadd.f32 %v14214_v14, %v7647_v3  ;;  %v7678_v29 = vmul.f32 %v14179_v59, %v16184_v31  ;;  %v7648_v62 = vmul.f32 %v14203_v23, %v16185_v9 }
 0x627   : > { %v8723_v28 = vsel %vm8211_vm3, %v7955_v56, %v8467_v11  ;;  %v7681_v26 = vmul.f32 %v14171_v25, %v16186_v16  ;;  %v7682_v21 = vmul.f32 %v14179_v59, %v15253_v10  ;;  %v7651_v1 = vmul.f32 %v14185_v15, %v15259_v51  ;;  %v16187_v10 = vld [vmem:[#allocation41_spill] sm:$0xff] }
 0x628   : > { %v9136_v2 = vadd.f32 %v9135_v49, %v8723_v28  ;;  %vm8181_vm0 = vcmp.ge.f32.partialorder %v7925_v50, 0.0  ;;  %v8437_v36 = vmul.f32 0.1, %v7925_v50  ;;  %v7956_v0 = vadd.f32 %v14182_v6, %v7678_v29 }
 0x629   : > { %v7926_v19 = vadd.f32 %v14220_v7, %v7648_v62  ;;  %v7959_v47 = vadd.f32 %v14177_v58, %v7681_v26  ;;  %v7960_v41 = vadd.f32 %v14182_v6, %v7682_v21  ;;  %v7929_v3 = vadd.f32 %v14214_v14, %v7651_v1  ;;  %v16188_v21 = vld [vmem:[#allocation44_spill] sm:$0xff] }
 0x62a   : > { %v8693_v48 = vsel %vm8181_vm0, %v7925_v50, %v8437_v36  ;;  %vm8212_vm4 = vcmp.ge.f32.partialorder %v7956_v0, 0.0  ;;  %v8468_v17 = vmul.f32 0.1, %v7956_v0  ;;  %v7652_v12 = vmul.f32 %v14203_v23, %v16187_v10 }
 0x62b   : > { %v9059_v51 = vadd.f32 %v9058_v34, %v8693_v48  ;;  %vm8182_vm5 = vcmp.ge.f32.partialorder %v7926_v19, 0.0  ;;  %v8438_v44 = vmul.f32 0.1, %v7926_v19  ;;  %vm8215_vm6 = vcmp.ge.f32.partialorder %v7959_v47, 0.0 }
 0x62c   : > { %v8724_v24 = vsel %vm8212_vm4, %v7956_v0, %v8468_v17  ;;  %v8471_v4 = vmul.f32 0.1, %v7959_v47  ;;  %vm8216_vm7 = vcmp.ge.f32.partialorder %v7960_v41, 0.0  ;;  %v8472_v22 = vmul.f32 0.1, %v7960_v41 }
 0x62d   : > { %v9149_v56 = vadd.f32 %v9148_v13, %v8724_v24  ;;  %v8694_v49 = vsel %vm8182_vm5, %v7926_v19, %v8438_v44  ;;  %vm8185_vm8 = vcmp.ge.f32.partialorder %v7929_v3, 0.0  ;;  %v8441_v18 = vmul.f32 0.1, %v7929_v3  ;;  %v16190_v19 = vld [vmem:[#allocation14_spill] sm:$0xff] }
 0x62e   : > { %v9072_v8 = vadd.f32 %v9071_v52, %v8694_v49  ;;  %v8727_v11 = vsel %vm8215_vm6, %v7959_v47, %v8471_v4  ;;  %v8728_v50 = vsel %vm8216_vm7, %v7960_v41, %v8472_v22  ;;  %v7930_v31 = vadd.f32 %v14220_v7, %v7652_v12  ;;  %v16191_v41 = vld [vmem:[#allocation46_spill] sm:$0xff] }
 0x62f   : > { %v9137_v29 = vadd.f32 %v9136_v2, %v8727_v11  ;;  %v9150_v9 = vadd.f32 %v9149_v56, %v8728_v50  ;;  %v8697_v62 = vsel %vm8185_vm8, %v7929_v3, %v8441_v18  ;;  %v7685_v34 = vmul.f32 %v14171_v25, %v15263_v5  ;;  %v16189_v2 = vld [vmem:[#allocation63_spill] sm:$0xff] }
 0x630   : > { %v9060_v28 = vadd.f32 %v9059_v51, %v8697_v62  ;;  %vm8186_vm9 = vcmp.ge.f32.partialorder %v7930_v31, 0.0  ;;  %v8442_v16 = vmul.f32 0.1, %v7930_v31  ;;  %v7655_v13 = vmul.f32 %v14185_v15, %v15268_v57 }
 0x631   : > { %v7963_v26 = vadd.f32 %v14177_v58, %v7685_v34  ;;  %v7686_v52 = vmul.f32 %v14179_v59, %v15270_v20  ;;  %v7656_v1 = vmul.f32 %v14203_v23, %v16188_v21  ;;  %v7689_v36 = vmul.f32 %v14171_v25, %v16189_v2  ;;  %v16193_v21 = vld [vmem:[#allocation65_spill] sm:$0xff] }
 0x632   : > { %v8698_v0 = vsel %vm8186_vm9, %v7930_v31, %v8442_v16  ;;  %v7933_v5 = vadd.f32 %v14214_v14, %v7655_v13  ;;  %v7690_v47 = vmul.f32 %v14179_v59, %v16190_v19  ;;  %v7659_v57 = vmul.f32 %v14185_v15, %v16191_v41  ;;  %v16192_v13 = vld [vmem:[#allocation47_spill] sm:$0xff] }
 0x633   : > { %v9073_v3 = vadd.f32 %v9072_v8, %v8698_v0  ;;  %vm8219_vm10 = vcmp.ge.f32.partialorder %v7963_v26, 0.0  ;;  %v8475_v48 = vmul.f32 0.1, %v7963_v26  ;;  %v7964_v20 = vadd.f32 %v14182_v6, %v7686_v52 }
 0x634   : > { %vm8189_vm12 = vcmp.ge.f32.partialorder %v7933_v5, 0.0  ;;  %v8445_v17 = vmul.f32 0.1, %v7933_v5  ;;  %v7934_v10 = vadd.f32 %v14220_v7, %v7656_v1  ;;  %v7967_v12 = vadd.f32 %v14177_v58, %v7689_v36 }
 0x635   : > { %v8731_v51 = vsel %vm8219_vm10, %v7963_v26, %v8475_v48  ;;  %vm8220_vm11 = vcmp.ge.f32.partialorder %v7964_v20, 0.0  ;;  %v8476_v44 = vmul.f32 0.1, %v7964_v20  ;;  %v7968_v24 = vadd.f32 %v14182_v6, %v7690_v47  ;;  %v16195_v47 = vld [vmem:[#allocation49_spill] sm:$0xff] }
 0x636   : > { %v9138_v4 = vadd.f32 %v9137_v29, %v8731_v51  ;;  %v8701_v22 = vsel %vm8189_vm12, %v7933_v5, %v8445_v17  ;;  %vm8190_vm13 = vcmp.ge.f32.partialorder %v7934_v10, 0.0  ;;  %v8446_v56 = vmul.f32 0.1, %v7934_v10  ;;  %v16197_v17 = vld [vmem:[#allocation15_spill] sm:$0xff] }
 0x637   : > { %v9061_v49 = vadd.f32 %v9060_v28, %v8701_v22  ;;  %v8732_v18 = vsel %vm8220_vm11, %v7964_v20, %v8476_v44  ;;  %vm8223_vm14 = vcmp.ge.f32.partialorder %v7967_v12, 0.0  ;;  %v8479_v8 = vmul.f32 0.1, %v7967_v12  ;;  %v16194_v28 = vld [vmem:[#allocation48_spill] sm:$0xff] }
 0x638   : > { %v9151_v11 = vadd.f32 %v9150_v9, %v8732_v18  ;;  %v8702_v50 = vsel %vm8190_vm13, %v7934_v10, %v8446_v56  ;;  %vm8224_vm15 = vcmp.ge.f32.partialorder %v7968_v24, 0.0  ;;  %v8480_v31 = vmul.f32 0.1, %v7968_v24 }
 0x639   : > { %v9074_v62 = vadd.f32 %v9073_v3, %v8702_v50  ;;  %v8735_v34 = vsel %vm8223_vm14, %v7967_v12, %v8479_v8  ;;  %v7937_v16 = vadd.f32 %v14214_v14, %v7659_v57  ;;  %v7660_v26 = vmul.f32 %v14203_v23, %v16192_v13  ;;  %v16196_v57 = vld [vmem:[#allocation13_spill] sm:$0xff] }
 0x63a   : > { %v9139_v52 = vadd.f32 %v9138_v4, %v8735_v34  ;;  %v8736_v29 = vsel %vm8224_vm15, %v7968_v24, %v8480_v31  ;;  %v7693_v1 = vmul.f32 %v14171_v25, %v16193_v21  ;;  %v7663_v2 = vmul.f32 %v14185_v15, %v16194_v28 }
 0x63b   : > { %v9152_v36 = vadd.f32 %v9151_v11, %v8736_v29  ;;  %vm8193_vm2 = vcmp.ge.f32.partialorder %v7937_v16, 0.0  ;;  %v8449_v9 = vmul.f32 0.1, %v7937_v16  ;;  %v7938_v0 = vadd.f32 %v14220_v7, %v7660_v26  ;;  %v16198_v11 = vld [vmem:[#allocation17_spill] sm:$0xff] }
 0x63c   : > { %v7971_v5 = vadd.f32 %v14177_v58, %v7693_v1  ;;  %v7941_v19 = vadd.f32 %v14214_v14, %v7663_v2  ;;  %v7694_v41 = vmul.f32 %v14179_v59, %v16195_v47  ;;  %v7664_v3 = vmul.f32 %v14203_v23, %v16196_v57 }
 0x63d   : > { %v8705_v48 = vsel %vm8193_vm2, %v7937_v16, %v8449_v9  ;;  %vm8194_vm3 = vcmp.ge.f32.partialorder %v7938_v0, 0.0  ;;  %v8450_v20 = vmul.f32 0.1, %v7938_v0  ;;  %v7697_v10 = vmul.f32 %v14171_v25, %v16197_v17 }
 0x63e   : > { %v9062_v12 = vadd.f32 %v9061_v49, %v8705_v48  ;;  %vm8227_vm0 = vcmp.ge.f32.partialorder %v7971_v5, 0.0  ;;  %v8483_v51 = vmul.f32 0.1, %v7971_v5  ;;  %vm8197_vm4 = vcmp.ge.f32.partialorder %v7941_v19, 0.0 }
 0x63f   : > { %v8706_v44 = vsel %vm8194_vm3, %v7938_v0, %v8450_v20  ;;  %v8453_v24 = vmul.f32 0.1, %v7941_v19  ;;  %v7972_v4 = vadd.f32 %v14182_v6, %v7694_v41  ;;  %v7942_v22 = vadd.f32 %v14220_v7, %v7664_v3 }
 0x640   : > { %v9075_v56 = vadd.f32 %v9074_v62, %v8706_v44  ;;  %v8739_v18 = vsel %vm8227_vm0, %v7971_v5, %v8483_v51  ;;  %v7975_v8 = vadd.f32 %v14177_v58, %v7697_v10  ;;  %v7698_v50 = vmul.f32 %v14179_v59, %v16198_v11 }
 0x641   : > { %v9140_v31 = vadd.f32 %v9139_v52, %v8739_v18  ;;  %v8709_v34 = vsel %vm8197_vm4, %v7941_v19, %v8453_v24  ;;  %vm8228_vm5 = vcmp.ge.f32.partialorder %v7972_v4, 0.0  ;;  %v8484_v25 = vmul.f32 0.1, %v7972_v4 }
 0x642   : > { %v9063_v49 = vadd.f32 %v9062_v12, %v8709_v34  ;;  %vm8198_vm6 = vcmp.ge.f32.partialorder %v7942_v22, 0.0  ;;  %v8454_v16 = vmul.f32 0.1, %v7942_v22  ;;  %vm8231_vm7 = vcmp.ge.f32.partialorder %v7975_v8, 0.0 }
 0x643   : > { %v8740_v13 = vsel %vm8228_vm5, %v7972_v4, %v8484_v25  ;;  %v8487_v26 = vmul.f32 0.1, %v7975_v8  ;;  %v7976_v29 = vadd.f32 %v14182_v6, %v7698_v50  ;;  %v7667_v62 = vmul.f32 %v14185_v15, %v15343_v55 }
 0x644   : > { %v9064_v21 = vrot.slane %v9063_v49, 4  ;;  %v9153_v58 = vadd.f32 %v9152_v36, %v8740_v13  ;;  %v8710_v1 = vsel %vm8198_vm6, %v7942_v22, %v8454_v16  ;;  %v7668_v59 = vmul.f32 %v14203_v23, %v15350_v40 }
 0x645   : > { %v9076_v52 = vadd.f32 %v9075_v56, %v8710_v1  ;;  %v8743_v28 = vsel %vm8231_vm7, %v7975_v8, %v8487_v26  ;;  %vm8232_vm8 = vcmp.ge.f32.partialorder %v7976_v29, 0.0  ;;  %v8488_v2 = vmul.f32 0.1, %v7976_v29 }
 0x646   : > { %v9065_v9 = vadd.f32 %v9064_v21, %v9063_v49  ;;  %v9141_v0 = vadd.f32 %v9140_v31, %v8743_v28  ;;  %v7945_v5 = vadd.f32 %v14214_v14, %v7667_v62  ;;  %v7946_v19 = vadd.f32 %v14220_v7, %v7668_v59 }
 0x647   : > { %v9077_v6 = vrot.slane %v9076_v52, 4  ;;  %v8744_v47 = vsel %vm8232_vm8, %v7976_v29, %v8488_v2  ;;  %v7671_v55 = vmul.f32 %v14185_v15, %v15352_v43  ;;  %v7672_v36 = vmul.f32 %v14203_v23, %v15360_v45 }
 0x648   : > { %v9066_v41 = vrot.slane %v9065_v9, 2  ;;  %v9142_v40 = vrot.slane %v9141_v0, 4  ;;  %v9154_v57 = vadd.f32 %v9153_v58, %v8744_v47  ;;  %vm8201_vm9 = vcmp.ge.f32.partialorder %v7945_v5, 0.0 }
 0x649   : > { %v9078_v3 = vadd.f32 %v9077_v6, %v9076_v52  ;;  %v8457_v48 = vmul.f32 0.1, %v7945_v5  ;;  %vm8202_vm10 = vcmp.ge.f32.partialorder %v7946_v19, 0.0  ;;  %v8458_v20 = vmul.f32 0.1, %v7946_v19 }
 0x64a   : > { %v9067_v17 = vadd.f32 %v9066_v41, %v9065_v9  ;;  %v9143_v10 = vadd.f32 %v9142_v40, %v9141_v0  ;;  %v9155_v12 = vrot.slane %v9154_v57, 4  ;;  %v7949_v51 = vadd.f32 %v14214_v14, %v7671_v55  ;;  %v16199_v0 = vld [vmem:[#allocation52_spill] sm:$0xff] }
 0x64b   : > { %v9079_v44 = vrot.slane %v9078_v3, 2  ;;  %v8713_v24 = vsel %vm8201_vm9, %v7945_v5, %v8457_v48  ;;  %v8714_v4 = vsel %vm8202_vm10, %v7946_v19, %v8458_v20  ;;  %v7950_v43 = vadd.f32 %v14220_v7, %v7672_v36 }
 0x64c   : > { %v9068_v22 = vrot.slane %v9067_v17, 1  ;;  %v9144_v45 = vrot.slane %v9143_v10, 2  ;;  %v9156_v56 = vadd.f32 %v9155_v12, %v9154_v57  ;;  %vm8205_vm12 = vcmp.ge.f32.partialorder %v7949_v51, 0.0  ;;  %v16200_v57 = vld [vmem:[#allocation53_spill] sm:$0xff] }
 0x64d   : > { %v15647_v18 = vadd.f32 %v9079_v44, %v9078_v3  ;;  %v8461_v8 = vmul.f32 0.1, %v7949_v51  ;;  %vm8206_vm11 = vcmp.ge.f32.partialorder %v7950_v43, 0.0  ;;  %v8462_v11 = vmul.f32 0.1, %v7950_v43 }
 0x64e   : > { %v9069_v50 = vadd.f32 %v9068_v22, %v9067_v17  ;;  %v9145_v31 = vadd.f32 %v9144_v45, %v9143_v10  ;;  %v9157_v34 = vrot.slane %v9156_v56, 2  ;;  %v7675_v25 = vmul.f32 %v14185_v15, %v15374_v27  ;;  %v16202_v45 = vld [vmem:[#allocation19_spill] sm:$0xff] }
 0x64f   : > { %v9081_v49 = vrot.slane %v15647_v18, 1  ;;  %v8717_v16 = vsel %vm8205_vm12, %v7949_v51, %v8461_v8  ;;  %v8718_v13 = vsel %vm8206_vm11, %v7950_v43, %v8462_v11  ;;  %v7676_v26 = vmul.f32 %v14203_v23, %v15376_v30  ;;  %v16203_v8 = vld [vmem:[#allocation20_spill] sm:$0xff] }
 0x650   : > { %v9186_v29 = vmul.f32 0.015625, %v9069_v50  ;;  %v9146_v62 = vrot.slane %v9145_v31, 1  ;;  %v15654_v21 = vadd.f32 %v9157_v34, %v9156_v56  ;;  %v9109_v58 = vadd.f32 %v8717_v16, %v8713_v24  ;;  %v16201_v24 = vld [vmem:[#allocation54_spill] sm:$0xff] }
 0x651   : > { %v9122_v1 = vadd.f32 %v8718_v13, %v8714_v4  ;;  %v7953_v59 = vadd.f32 %v14214_v14, %v7675_v25  ;;  %v7954_v52 = vadd.f32 %v14220_v7, %v7676_v26  ;;  %v7679_v27 = vmul.f32 %v14185_v15, %v15379_v35 }
 0x652   : > { %v9218_v28 = vpack.c.bf16 %v9186_v29, %v9186_v29  ;;  %v9147_v2 = vadd.f32 %v9146_v62, %v9145_v31  ;;  %v7680_v9 = vmul.f32 %v14203_v23, %v15387_v38  ;;  %v7683_v30 = vmul.f32 %v14185_v15, %v16199_v0  ;;  %v16204_v62 = vld [vmem:[#allocation22_spill] sm:$0xff] }
 0x653   : > { %vm8209_vm13 = vcmp.ge.f32.partialorder %v7953_v59, 0.0  ;;  %v8465_v5 = vmul.f32 0.1, %v7953_v59  ;;  %vm8210_vm14 = vcmp.ge.f32.partialorder %v7954_v52, 0.0  ;;  %v8466_v19 = vmul.f32 0.1, %v7954_v52 }
 0x654   : > { %v15664_v6 = vunpack.c.l.b16 %v9218_v28  ;;  %v9192_v47 = vmul.f32 0.015625, %v9147_v2  ;;  %v7957_v55 = vadd.f32 %v14214_v14, %v7679_v27  ;;  %v7958_v36 = vadd.f32 %v14220_v7, %v7680_v9 }
 0x655   : > { %v8721_v35 = vsel %vm8209_vm13, %v7953_v59, %v8465_v5  ;;  %v8722_v41 = vsel %vm8210_vm14, %v7954_v52, %v8466_v19  ;;  %v7961_v40 = vadd.f32 %v14214_v14, %v7683_v30  ;;  %v7684_v38 = vmul.f32 %v14203_v23, %v16200_v57 }
 0x656   : > { %v9224_v3 = vpack.c.bf16 %v9192_v47, %v9192_v47  ;;  %v9110_v48 = vadd.f32 %v9109_v58, %v8721_v35  ;;  %v9123_v20 = vadd.f32 %v9122_v1, %v8722_v41  ;;  %vm8213_vm15 = vcmp.ge.f32.partialorder %v7957_v55, 0.0  ;;  %v16205_v1 = vld [vmem:[#allocation55_spill] sm:$0xff] }
 0x657   : > { %v8469_v17 = vmul.f32 0.1, %v7957_v55  ;;  %vm8214_vm2 = vcmp.ge.f32.partialorder %v7958_v36, 0.0  ;;  %v8470_v10 = vmul.f32 0.1, %v7958_v36  ;;  %vm8217_vm3 = vcmp.ge.f32.partialorder %v7961_v40, 0.0 }
 0x658   : > { %v15671_v12 = vunpack.c.l.b16 %v9224_v3  ;;  %v8473_v51 = vmul.f32 0.1, %v7961_v40  ;;  %v7962_v44 = vadd.f32 %v14220_v7, %v7684_v38  ;;  %v7687_v4 = vmul.f32 %v14185_v15, %v16201_v24 }
 0x659   : > { %v8725_v43 = vsel %vm8213_vm15, %v7957_v55, %v8469_v17  ;;  %v8726_v22 = vsel %vm8214_vm2, %v7958_v36, %v8470_v10  ;;  %v7688_v56 = vmul.f32 %v14203_v23, %v16202_v45  ;;  %v7691_v11 = vmul.f32 %v14185_v15, %v16203_v8 }
 0x65a   : > { %v9111_v50 = vadd.f32 %v9110_v48, %v8725_v43  ;;  %v9124_v31 = vadd.f32 %v9123_v20, %v8726_v22  ;;  %v8729_v34 = vsel %vm8217_vm3, %v7961_v40, %v8473_v51  ;;  %vm8218_vm0 = vcmp.ge.f32.partialorder %v7962_v44, 0.0  ;;  %v16206_v51 = vld [vmem:[#allocation50_spill] sm:$0xff] }
 0x65b   : > { %v8474_v25 = vmul.f32 0.1, %v7962_v44  ;;  %v7965_v16 = vadd.f32 %v14214_v14, %v7687_v4  ;;  %v7966_v13 = vadd.f32 %v14220_v7, %v7688_v56  ;;  %v7969_v26 = vadd.f32 %v14214_v14, %v7691_v11 }
 0x65c   : > { %v9112_v29 = vadd.f32 %v9111_v50, %v8729_v34  ;;  %v7692_v58 = vmul.f32 %v14203_v23, %v16204_v62  ;;  %v7695_v59 = vmul.f32 %v14185_v15, %v16205_v1  ;;  %v7696_v52 = vmul.f32 %v14203_v23, %v15433_v33  ;;  %v16209_v50 = vld [vmem:[#allocation21_spill] sm:$0xff] }
 0x65d   : > { %v8730_v27 = vsel %vm8218_vm0, %v7962_v44, %v8474_v25  ;;  %vm8221_vm4 = vcmp.ge.f32.partialorder %v7965_v16, 0.0  ;;  %v8477_v28 = vmul.f32 0.1, %v7965_v16  ;;  %vm8222_vm5 = vcmp.ge.f32.partialorder %v7966_v13, 0.0  ;;  %v16207_v44 = vld [vmem:[#allocation27_spill] sm:$0xff]  ;;  %v16211_v25 = vld [vmem:[#allocation24_spill] sm:$0xff] }
 0x65e   : > { %v9125_v2 = vadd.f32 %v9124_v31, %v8730_v27  ;;  %v8478_v9 = vmul.f32 0.1, %v7966_v13  ;;  %vm8225_vm6 = vcmp.ge.f32.partialorder %v7969_v26, 0.0  ;;  %v8481_v0 = vmul.f32 0.1, %v7969_v26  ;;  %v16210_v31 = vld [vmem:[#allocation51_spill] sm:$0xff] }
 0x65f   : > { %v8733_v30 = vsel %vm8221_vm4, %v7965_v16, %v8477_v28  ;;  %v7970_v5 = vadd.f32 %v14220_v7, %v7692_v58  ;;  %v7973_v19 = vadd.f32 %v14214_v14, %v7695_v59  ;;  %v7974_v47 = vadd.f32 %v14220_v7, %v7696_v52  ;;  %v16212_v16 = vld [vmem:[#allocation16_spill] sm:$0xff]  ;;  %v16213_v62 = vld [vmem:[#allocation5_spill] sm:$0xff]  ;;  %v16214_v58 = vld [vmem:[#allocation59_spill] sm:$0xff] }
 0x660   : > { %v9113_v55 = vadd.f32 %v9112_v29, %v8733_v30  ;;  %v8734_v15 = vsel %vm8222_vm5, %v7966_v13, %v8478_v9  ;;  %v8737_v36 = vsel %vm8225_vm6, %v7969_v26, %v8481_v0  ;;  %v9082_v23 = vadd.f32 %v9081_v49, %v15647_v18  ;;  %v16216_v27 = vld [vmem:[#allocation45_spill] sm:$0xff] }
 0x661   : > { %v9126_v33 = vadd.f32 %v9125_v2, %v8734_v15  ;;  %vm8226_vm7 = vcmp.ge.f32.partialorder %v7970_v5, 0.0  ;;  %v8482_v35 = vmul.f32 0.1, %v7970_v5  ;;  %vm8229_vm8 = vcmp.ge.f32.partialorder %v7973_v19, 0.0 }
 0x662   : > { %v9114_v41 = vadd.f32 %v9113_v55, %v8737_v36  ;;  %v8485_v40 = vmul.f32 0.1, %v7973_v19  ;;  %vm8230_vm9 = vcmp.ge.f32.partialorder %v7974_v47, 0.0  ;;  %v8486_v57 = vmul.f32 0.1, %v7974_v47 }
 0x663   : > { %v8738_v38 = vsel %vm8226_vm7, %v7970_v5, %v8482_v35  ;;  %v9183_v14 = vmul.f32 0.015625, %v15548_v37  ;;  %v9187_v3 = vmul.f32 0.015625, %v9082_v23  ;;  %v9346_v7 = vunpack.c.l.b16 %v9211_v32 }
 0x664   : > { %v9127_v48 = vadd.f32 %v9126_v33, %v8738_v38  ;;  %v8741_v20 = vsel %vm8229_vm8, %v7973_v19, %v8485_v40  ;;  %v8742_v17 = vsel %vm8230_vm9, %v7974_v47, %v8486_v57  ;;  %vm9363_vm10 = vcmask 1042434   ;;  %v16217_v40 = vld [vmem:[#allocation43_spill] sm:$0xff]  ;;  %v16219_v38 = vld [vmem:[#allocation8_spill] sm:$0xff] }
 0x665   : > { %v9115_v18 = vadd.f32 %v9114_v41, %v8741_v20  ;;  %v9215_v49 = vpack.c.bf16 %v9183_v14, %v9183_v14  ;;  %v9219_v10 = vpack.c.bf16 %v9187_v3, %v9187_v3  ;;  %v9364_v24 = vsel %vm9363_vm10, %v16207_v44, %v16206_v51 }
 0x666   : > { %v9128_v4 = vadd.f32 %v9127_v48, %v8742_v17  ;;  %vm9365_vm12 = vcmask 1043459   ;;  %vm9367_vm11 = vcmask 1044484   ;;  %vm9369_vm13 = vcmask 1045509  }
 0x667   : > { %v9116_v37 = vrot.slane %v9115_v18, 4  ;;  %v9350_v43 = vunpack.c.l.b16 %v9215_v49  ;;  %v9354_v22 = vunpack.c.l.b16 %v9219_v10  ;;  %v9366_v32 = vsel %vm9365_vm12, %v16208_v61, %v9364_v24 }
 0x668   : > { %v9129_v45 = vrot.slane %v9128_v4, 4  ;;  %v9368_v56 = vsel %vm9367_vm11, %v15437_v46, %v9366_v32  ;;  %vm9371_vm14 = vcmask 1046534   ;;  %vm9373_vm15 = vcmask 1047559  }
 0x669   : > { %v9117_v8 = vadd.f32 %v9116_v37, %v9115_v18  ;;  %v9370_v11 = vsel %vm9369_vm13, %v15552_v39, %v9368_v56  ;;  %v9375_v34 = vsel %vm9361_vm1, %v16210_v31, %v16209_v50  ;;  %v9383_v13 = vsel %vm9363_vm10, %v16212_v16, %v16211_v25  ;;  %v16215_v39 = vld [vmem:[#allocation64_spill] sm:$0xff]  ;;  %v10978_v31 = vld [vmem:[%s15825_s13 + $0x80] sm:$0xff]  }
 0x66a   : > { %v9130_v26 = vadd.f32 %v9129_v45, %v9128_v4  ;;  %v9372_v29 = vsel %vm9371_vm14, %v15664_v6, %v9370_v11  ;;  %v9376_v46 = vsel %vm9363_vm10, %v16213_v62, %v9375_v34  ;;  %v9384_v1 = vsel %vm9365_vm12, %v16214_v58, %v9383_v13  ;;  %v16222_v18 = vld [vmem:[#allocation60_spill] sm:$0xff]  ;;  %v10983_v62 = vld [vmem:[%s15825_s13 + $0xd8] sm:$0xff]   ;;  %v10985_v58 = vld [vmem:[%s15825_s13 + $0xe0] sm:$0xff]  }
 0x66b   : > { %v9118_v59 = vrot.slane %v9117_v8, 2  ;;  %v9377_v52 = vsel %vm9365_vm12, %v16215_v39, %v9376_v46  ;;  %v9385_v28 = vsel %vm9367_vm11, %v16216_v27, %v9384_v1  ;;  %v9108_v2 = vadd.f32 %v9107_v54, %v15550_v63  ;;  %v10979_v25 = vld [vmem:[%s15825_s13 + $0xc8] sm:$0xff]   ;;  %v10984_v46 = vld [vmem:[%s15825_s13 + $0x98] sm:$0xff]   ;;  %v10986_v1 = vld [vmem:[%s15825_s13 + $0xa0] sm:$0xff]  }
 0x66c   : > { %v9131_v9 = vrot.slane %v9130_v26, 2  ;;  %v9378_v6 = vsel %vm9367_vm11, %v9346_v7, %v9377_v52  ;;  %v9386_v0 = vsel %vm9369_vm13, %v15454_v42, %v9385_v28  ;;  %v9159_v30 = vrot.slane %v15654_v21, 1  ;;  %v10980_v13 = vld [vmem:[%s15825_s13 + $0x88] sm:$0xff]   ;;  %v10989_v52 = vld [vmem:[%s15825_s13 + $0xf0] sm:$0xff]   ;;  %v10991_v28 = vld [vmem:[%s15825_s13 + $0xf8] sm:$0xff]  }
 0x66d   : > { %v9119_v5 = vadd.f32 %v9118_v59, %v9117_v8  ;;  %v9379_v19 = vsel %vm9369_vm13, %v9350_v43, %v9378_v6  ;;  %v9387_v47 = vsel %vm9371_vm14, %v15572_v53, %v9386_v0  ;;  %v9185_v55 = vmul.f32 0.015625, %v15439_v60  ;;  %v16220_v60 = vld [vmem:[#allocation23_spill] sm:$0xff]  ;;  %v10990_v27 = vld [vmem:[%s15825_s13 + $0xb0] sm:$0xff]  }
 0x66e   : > { %v9132_v15 = vadd.f32 %v9131_v9, %v9130_v26  ;;  %v9380_v36 = vsel %vm9371_vm14, %v9354_v22, %v9379_v19  ;;  %v15738_v63 = vsel %vm9373_vm15, %v15671_v12, %v9387_v47  ;;  %v9160_v54 = vadd.f32 %v9159_v30, %v15654_v21  ;;  %v16221_v12 = vld [vmem:[#allocation18_spill] sm:$0xff]  ;;  %v10981_v26 = vld [vmem:[%s15825_s13 + $0xd0] sm:$0xff]   ;;  %v10987_v59 = vld [vmem:[%s15825_s13 + $0xe8] sm:$0xff]  }
 0x66f   : > { %v9120_v42 = vrot.slane %v9119_v5, 1  ;;  %v9189_v23 = vmul.f32 0.015625, %v9108_v2  ;;  %v9217_v33 = vpack.c.bf16 %v9185_v55, %v9185_v55  ;;  %v16218_v57 = vpack.c.bf16 %v16217_v40, %v16217_v40  ;;  %v10988_v39 = vld [vmem:[%s15825_s13 + $0xa8] sm:$0xff]   ;;  %v10992_v2 = vld [vmem:[%s15825_s13 + $0xb8] sm:$0xff]   ;;  %v10117_v47 = vld [vmem:[#allocation2] ss:$0 sm:$0xff] }
 0x670   : > { %v9133_v35 = vrot.slane %v9132_v15, 1  ;;  %v9193_v41 = vmul.f32 0.015625, %v9160_v54  ;;  %v9389_v14 = vsel %vm9361_vm1, %v16220_v60, %v16219_v38  ;;  %v9398_v9 = vpack.c.b16 %v15738_v63, %v15738_v63 }
 0x671   : > { %v9348_v53 = vunpack.c.l.b16 %v16218_v57  ;;  %v9121_v3 = vadd.f32 %v9120_v42, %v9119_v5  ;;  %v9221_v7 = vpack.c.bf16 %v9189_v23, %v9189_v23  ;;  %v9352_v48 = vunpack.c.l.b16 %v9217_v33 }
 0x672   : > { %v9390_v20 = vsel %vm9363_vm10, %v16221_v12, %v9389_v14  ;;  %v9134_v21 = vadd.f32 %v9133_v35, %v9132_v15  ;;  %v9225_v17 = vpack.c.bf16 %v9193_v41, %v9193_v41  ;;  %vm9676_vm1 = vcmask 7168  }
 0x673   : > { %v9391_v49 = vsel %vm9365_vm12, %v16222_v18, %v9390_v20  ;;  %v9190_v10 = vmul.f32 0.015625, %v9121_v3  ;;  %v9356_v51 = vunpack.c.l.b16 %v9221_v7 }
 0x674   : > { %v9392_v44 = vsel %vm9367_vm11, %v9348_v53, %v9391_v49  ;;  %v9191_v24 = vmul.f32 0.015625, %v9134_v21  ;;  %v9360_v4 = vunpack.c.l.b16 %v9225_v17 }
 0x675   : > { %v9393_v37 = vsel %vm9369_vm13, %v9352_v48, %v9392_v44  ;;  %v9222_v43 = vpack.c.bf16 %v9190_v10, %v9190_v10 }
 0x676   : > { %v9394_v22 = vsel %vm9371_vm14, %v9356_v51, %v9393_v37  ;;  %v9223_v61 = vpack.c.bf16 %v9191_v24, %v9191_v24 }
 0x677   : > { %v9395_v32 = vsel %vm9373_vm15, %v9360_v4, %v9394_v22  ;;  %v9357_v45 = vunpack.c.l.b16 %v9222_v43 }
 0x678   : > { %v9358_v56 = vunpack.c.l.b16 %v9223_v61  ;;  %v9399_v16 = vpack.c.b16 %v9395_v32, %v9395_v32 }
 0x679   : > { %v9374_v8 = vsel %vm9373_vm15, %v9357_v45, %v9372_v29  ;;  %v10982_v29 = vld [vmem:[%s15825_s13 + $0x90] sm:$0xff]  }
 0x67a   : > { %v9381_v11 = vsel %vm9373_vm15, %v9358_v56, %v9380_v36  ;;  %v9396_v34 = vpack.c.b16 %v9374_v8, %v9374_v8 }
 0x67b   : > { %v9397_v50 = vpack.c.b16 %v9381_v11, %v9381_v11 }
 0x67d   : > { %9628 = vmatprep.mubr.bf16.mxu1 %v9397_v50 }
 0x67e   : > { %9629 = vmatmul.mubr.bf16.vlgmr.msra.gmra.mrb[84].mxu1 %v9396_v34 }
 0x67f   : > { %10341 = vmatpush3.bf16.msra.mxu1 %v10978_v31  ;;  %9668 = vmatprep.mubr.bf16.mxu1 %v9399_v16 }
 0x680   : > { %10342 = vmatprep.subr.bf16.mxu1 %v10979_v25 }
 0x683   : > { %10343 = vmatpush3.bf16.msra.mxu1 %v10980_v13 }
 0x684   : > { %10344 = vmatprep.subr.bf16.mxu1 %v10981_v26 }
 0x687   : > { %10345 = vmatpush3.bf16.msra.mxu1 %v10982_v29 }
 0x688   : > { %10346 = vmatprep.subr.bf16.mxu1 %v10983_v62 }
 0x68b   : > { %10347 = vmatpush3.bf16.msra.mxu1 %v10984_v46 }
 0x68c   : > { %10348 = vmatprep.subr.bf16.mxu1 %v10985_v58 }
 0x68f   : > { %10349 = vmatpush3.bf16.msra.mxu1 %v10986_v1 }
 0x690   : > { %10350 = vmatprep.subr.bf16.mxu1 %v10987_v59 }
 0x693   : > { %10351 = vmatpush3.bf16.msra.mxu1 %v10988_v39 }
 0x694   : > { %10352 = vmatprep.subr.bf16.mxu1 %v10989_v52 }
 0x697   : > { %10353 = vmatpush3.bf16.msra.mxu1 %v10990_v27 }
 0x698   : > { %10354 = vmatprep.subr.bf16.mxu1 %v10991_v28 }
 0x69b   : > { %10355 = vmatpush3.bf16.msra.mxu1 %v10992_v2 }
 0x69e   : > { %9669 = vmatmul.mubr.bf16.vlgmr.msra.gmra.mrb[88].mxu1 %v9398_v9 }
 0x751   : > { %v10334_v6 = vpop.f32.mrb[84].mxu1 }
 0x752   : > { %v10335_v0 = vpop.f32.mrb[85].mxu1 }
 0x753   : > { %v10336_v30 = vadd.f32 %v10335_v0, %v10334_v6  ;;  %v10337_v5 = vpop.f32.mrb[86].mxu1 }
 0x754   : > { %v10338_v19 = vpop.f32.mrb[87].mxu1 }
 0x755   : > { %v9631_v36 = vadd.f32 %v10336_v30, %v10117_v47 }
 0x771   : > { %v10356_v55 = vpop.f32.mrb[88].mxu1 }
 0x772   : > { %v10357_v15 = vpop.f32.mrb[89].mxu1 }
 0x773   : > { %v10358_v54 = vadd.f32 %v10357_v15, %v10356_v55  ;;  %v10359_v42 = vpop.f32.mrb[90].mxu1 }
 0x774   : > { %v10360_v63 = vpop.f32.mrb[91].mxu1 }
 0x775   : > { %v9671_v23 = vadd.f32 %v10358_v54, %v9631_v36 }
 0x777   : > { %9677 = vst.msk [vmem:[%s496_s26] sm:$0xff] %vm9676_vm1, %v9671_v23 }
 0x778 PF: > { %s27_s20 = sadd.s32 1, %s11011_s20  }
 0x779   : > { %p24_p5 = scmp.ge.s32.totalorder %s27_s20, 4  }
 0x77b   :  { %26 = sbr.rel (!%p24_p5) target bundleno = 3 (0x3), region = 110 }

</bundles_post_ra>
